<compile_context>
chip_gen: v6e
topology: v6e:2x2x1
jax: 0.10.0
libtpu: 0.0.40
codegen_flags: <defaults>
</compile_context>

<pallas_src>
import functools

import jax
import jax.numpy as jnp
import numpy as np
from jax.experimental import pallas as pl
from jax.experimental.pallas import tpu as pltpu

EPS = 1e-5                      # nn.BatchNorm2d default
VMEM_LIMIT = 48 * 1024 * 1024   # explicit scoped-VMEM budget (safe on v5e/v6e/v7x)


def _pick_band_rows(H, W, F, budget=12 * 1024 * 1024):
    """Largest row-band height TH dividing H (multiple of 8 when possible) whose
    pass-2 per-band working set stays under a conservative VMEM budget."""
    cands = [d for d in range(H, 0, -1) if H % d == 0 and (d % 8 == 0 or d == H)]
    for TH in cands:
        pat = TH * W * 9 * F * 2                 # bf16 im2col patches (pass 2)
        halo = (TH + 2) * (W + 2) * F * 4        # f32 halo scratch
        band_tiles = TH * W * 2 * F * 4 * 2      # double-buffered z tile (f32)
        acc = TH * W * 2 * F * 4                 # f32 matmul result
        if pat + halo + band_tiles + acc <= budget:
            return TH
    return cands[-1]


# --------------------------------------------------------------------------------------
# Pass 1: fused (3x3 conv1 | 1x1 shortcut conv) as a single im2col matmul + BN partial stats
# --------------------------------------------------------------------------------------
def conv1_shortcut_kernel(xpad_ref, wf_ref, y_ref, s1_ref, pat_ref):
    # xpad_ref: (H+2, W+2, Cin)  padded input image (batch dim squeezed, resident per image)
    # wf_ref  : (9*Cin, 2F) bf16 fused weights: cols [:F]=conv1, cols [F:]=1x1 shortcut
    # y_ref   : (TH, W, 2F)      raw outputs of this row band ([..,:F]=conv1, [..,F:]=shortcut)
    # s1_ref  : (8, 2F)          per-image partial stats (row0=sum, row1=sum of squares)
    # pat_ref : (TH*W, 9*Cin) bf16 VMEM scratch for the im2col patch matrix
    band = pl.program_id(1)
    TH, W, twoF = y_ref.shape
    Cin = xpad_ref.shape[-1]
    r0 = band * TH
    if TH % 8 == 0:
        r0 = pl.multiple_of(r0, 8)

    # im2col: 9 shifted taps written side by side on the K axis (bf16 scratch)
    for kh in range(3):
        for kw in range(3):
            j = (kh * 3 + kw) * Cin
            tap = xpad_ref[pl.ds(r0 + kh, TH), kw:kw + W, :]          # (TH, W, Cin)
            pat_ref[:, j:j + Cin] = tap.reshape(TH * W, Cin).astype(jnp.bfloat16)

    patches = pat_ref[...]                                            # (TH*W, 9*Cin) bf16
    # one MXU matmul: K = 9*Cin, output width 2F (=128 lanes), f32 accumulation
    yblk = jnp.dot(patches, wf_ref[...], preferred_element_type=jnp.float32)

    @pl.when(band == 0)
    def _init():
        s1_ref[...] = jnp.zeros_like(s1_ref)

    s1_ref[0:1, :] += jnp.sum(yblk, axis=0, keepdims=True)
    s1_ref[1:2, :] += jnp.sum(yblk * yblk, axis=0, keepdims=True)

    y_ref[...] = yblk.reshape(TH, W, twoF)


# --------------------------------------------------------------------------------------
# Pass 2: BN1+ReLU applied on the fly, 3x3 conv2 as one K=9F matmul, BN2 partial stats,
#          BN'd shortcut packed alongside (128-lane dense output).
# --------------------------------------------------------------------------------------
def conv2_kernel(y_ref, w2_ref, a1_ref, b1_ref, as_ref, bs_ref,
                 z_ref, s2_ref, h1s_ref, pat_ref):
    # y_ref  : (H, W, 2F)   pass-1 raw outputs, full image (resident across row bands)
    # w2_ref : (9F, F) bf16
    # a1/b1  : (1, F) BN1 scale/shift       as_/bs_ : (1, F) shortcut-BN scale/shift
    # z_ref  : (TH, W, 2F)  [..,:F] = raw conv2, [..,F:] = BN'd shortcut
    # s2_ref : (8, F)       per-image partial BN2 stats
    # h1s_ref: (TH+2, W+2, F) f32 scratch = zero-padded BN1+ReLU activations for this band
    # pat_ref: (TH*W, 9F) bf16 scratch im2col patch matrix
    band = pl.program_id(1)
    nb = pl.num_programs(1)
    TH, W, twoF = z_ref.shape
    F = twoF // 2
    H = y_ref.shape[0]
    r0 = band * TH
    if TH % 8 == 0:
        r0 = pl.multiple_of(r0, 8)

    a1 = a1_ref[...].reshape(1, 1, F)
    b1 = b1_ref[...].reshape(1, 1, F)

    # borders must be exact zeros for the padding=1 conv; only the two lateral columns
    # need explicit zeroing (every other element is overwritten below each band).
    h1s_ref[:, 0:1, :] = jnp.zeros((TH + 2, 1, F), h1s_ref.dtype)
    h1s_ref[:, W + 1:W + 2, :] = jnp.zeros((TH + 2, 1, F), h1s_ref.dtype)

    yband = y_ref[pl.ds(r0, TH), :, :]                                # (TH, W, 2F)
    h1s_ref[1:TH + 1, 1:W + 1, :] = jnp.maximum(yband[..., :F] * a1 + b1, 0.0)

    # row halos: recomputed redundantly, masked to zero at the image border
    top = y_ref[pl.ds(jnp.maximum(r0 - 1, 0), 1), :, :][..., :F]      # (1, W, F)
    h1s_ref[0:1, 1:W + 1, :] = (jnp.maximum(top * a1 + b1, 0.0)
                                * jnp.where(band > 0, 1.0, 0.0))
    bot = y_ref[pl.ds(jnp.minimum(r0 + TH, H - 1), 1), :, :][..., :F]
    h1s_ref[TH + 1:TH + 2, 1:W + 1, :] = (jnp.maximum(bot * a1 + b1, 0.0)
                                          * jnp.where(band + 1 < nb, 1.0, 0.0))

    # im2col over the padded scratch: one K = 9F matmul (bf16 patch scratch)
    for kh in range(3):
        for kw in range(3):
            j = (kh * 3 + kw) * F
            tap = h1s_ref[kh:kh + TH, kw:kw + W, :]                   # (TH, W, F)
            pat_ref[:, j:j + F] = tap.reshape(TH * W, F).astype(jnp.bfloat16)

    patches = pat_ref[...]                                            # (TH*W, 9F) bf16
    acc = jnp.dot(patches, w2_ref[...], preferred_element_type=jnp.float32)  # (TH*W, F)

    @pl.when(band == 0)
    def _init():
        s2_ref[...] = jnp.zeros_like(s2_ref)

    s2_ref[0:1, :] += jnp.sum(acc, axis=0, keepdims=True)
    s2_ref[1:2, :] += jnp.sum(acc * acc, axis=0, keepdims=True)

    # shortcut branch: its BN affine is already known after pass 1 -> VPU work here
    scn = yband[..., F:] * as_ref[...].reshape(1, 1, F) + bs_ref[...].reshape(1, 1, F)

    z_ref[:, :, :F] = acc.reshape(TH, W, F)
    z_ref[:, :, F:] = scn


# --------------------------------------------------------------------------------------
# Pass 3: finalize BN2 + residual add (pure elementwise)
# --------------------------------------------------------------------------------------
def bn2_add_kernel(z_ref, a2_ref, b2_ref, out_ref):
    TH, W, F = out_ref.shape
    main = z_ref[:, :, :F] * a2_ref[...].reshape(1, 1, F) + b2_ref[...].reshape(1, 1, F)
    out_ref[...] = main + z_ref[:, :, F:]


# --------------------------------------------------------------------------------------
# Wrapper
# --------------------------------------------------------------------------------------
@functools.partial(jax.jit, static_argnames=("band_rows",))
def residual_block_pallas(x_nchw, params, band_rows=None):
    """x_nchw: (N, Cin, H, W) float32 -> (N, F, H, W) float32 (training-mode BN)."""
    N, Cin, H, W = x_nchw.shape
    F = params["w1"].shape[0]
    TH = _pick_band_rows(H, W, F) if band_rows is None else band_rows
    assert H % TH == 0, "band_rows must divide H"
    nb = H // TH
    cnt = float(N * H * W)

    # ---- layout glue (all tiny): NCHW -> NHWC, OIHW -> (kh,kw,cin) x F ----------------
    x = jnp.transpose(x_nchw, (0, 2, 3, 1)).astype(jnp.float32)       # (N, H, W, Cin)
    xpad = jnp.pad(x, ((0, 0), (1, 1), (1, 1), (0, 0)))               # cheap: Cin channels

    w1r = jnp.transpose(params["w1"], (2, 3, 1, 0)).reshape(9 * Cin, F)
    wsr = jnp.transpose(params["ws"][:, :, 0, 0], (1, 0))             # (Cin, F)
    wf = jnp.zeros((9 * Cin, 2 * F), jnp.float32)
    wf = wf.at[:, :F].set(w1r)
    ctr = 4 * Cin                                                     # rows of the (1,1) tap
    wf = wf.at[ctr:ctr + Cin, F:].set(wsr)
    wf = wf.astype(jnp.bfloat16)
    w2r = jnp.transpose(params["w2"], (2, 3, 1, 0)).reshape(9 * F, F).astype(jnp.bfloat16)

    conv_cparams = pltpu.CompilerParams(
        dimension_semantics=("parallel", "arbitrary"),   # batch across cores, bands reduce stats
        vmem_limit_bytes=VMEM_LIMIT)

    # ---- pass 1: conv1 + 1x1 shortcut (fused matmul) + BN1/BNs partial stats ----------
    y, s1 = pl.pallas_call(
        conv1_shortcut_kernel,
        grid=(N, nb),
        in_specs=[
            pl.BlockSpec((None, H + 2, W + 2, Cin), lambda n, b: (n, 0, 0, 0)),
            pl.BlockSpec((9 * Cin, 2 * F), lambda n, b: (0, 0)),
        ],
        out_specs=[
            pl.BlockSpec((None, TH, W, 2 * F), lambda n, b: (n, b, 0, 0)),
            pl.BlockSpec((None, 8, 2 * F), lambda n, b: (n, 0, 0)),
        ],
        out_shape=[
            jax.ShapeDtypeStruct((N, H, W, 2 * F), jnp.float32),
            jax.ShapeDtypeStruct((N, 8, 2 * F), jnp.float32),
        ],
        scratch_shapes=[pltpu.VMEM((TH * W, 9 * Cin), jnp.bfloat16)],
        compiler_params=conv_cparams,
    )(xpad, wf)

    # fold per-image partial stats into BN scale/shift (tiny, ~2F values)
    s1t = jnp.sum(s1, axis=0)
    mean1 = s1t[0] / cnt
    var1 = jnp.maximum(s1t[1] / cnt - mean1 * mean1, 0.0)
    gcat = jnp.concatenate([params["g1"], params["gs"]])
    bcat = jnp.concatenate([params["b1"], params["bs"]])
    acat = gcat * jax.lax.rsqrt(var1 + EPS)
    ccat = bcat - mean1 * acat
    a1 = acat[:F].reshape(1, F)
    b1 = ccat[:F].reshape(1, F)
    a_s = acat[F:].reshape(1, F)
    b_s = ccat[F:].reshape(1, F)

    # ---- pass 2: BN1+ReLU -> conv2 (im2col matmul) + BN2 partial stats, BN'd shortcut -
    z, s2 = pl.pallas_call(
        conv2_kernel,
        grid=(N, nb),
        in_specs=[
            pl.BlockSpec((None, H, W, 2 * F), lambda n, b: (n, 0, 0, 0)),
            pl.BlockSpec((9 * F, F), lambda n, b: (0, 0)),
            pl.BlockSpec((1, F), lambda n, b: (0, 0)),
            pl.BlockSpec((1, F), lambda n, b: (0, 0)),
            pl.BlockSpec((1, F), lambda n, b: (0, 0)),
            pl.BlockSpec((1, F), lambda n, b: (0, 0)),
        ],
        out_specs=[
            pl.BlockSpec((None, TH, W, 2 * F), lambda n, b: (n, b, 0, 0)),
            pl.BlockSpec((None, 8, F), lambda n, b: (n, 0, 0)),
        ],
        out_shape=[
            jax.ShapeDtypeStruct((N, H, W, 2 * F), jnp.float32),
            jax.ShapeDtypeStruct((N, 8, F), jnp.float32),
        ],
        scratch_shapes=[
            pltpu.VMEM((TH + 2, W + 2, F), jnp.float32),
            pltpu.VMEM((TH * W, 9 * F), jnp.bfloat16),
        ],
        compiler_params=conv_cparams,
    )(y, w2r, a1, b1, a_s, b_s)

    s2t = jnp.sum(s2, axis=0)
    mean2 = s2t[0] / cnt
    var2 = jnp.maximum(s2t[1] / cnt - mean2 * mean2, 0.0)
    a2v = params["g2"] * jax.lax.rsqrt(var2 + EPS)
    b2v = params["b2"] - mean2 * a2v
    a2 = a2v.reshape(1, F)
    b2 = b2v.reshape(1, F)

    # ---- pass 3: finalize BN2 + residual add -----------------------------------------
    out_nhwc = pl.pallas_call(
        bn2_add_kernel,
        grid=(N, nb),
        in_specs=[
            pl.BlockSpec((None, TH, W, 2 * F), lambda n, b: (n, b, 0, 0)),
            pl.BlockSpec((1, F), lambda n, b: (0, 0)),
            pl.BlockSpec((1, F), lambda n, b: (0, 0)),
        ],
        out_specs=pl.BlockSpec((None, TH, W, F), lambda n, b: (n, b, 0, 0)),
        out_shape=jax.ShapeDtypeStruct((N, H, W, F), jnp.float32),
        compiler_params=pltpu.CompilerParams(
            dimension_semantics=("parallel", "parallel"),
            vmem_limit_bytes=VMEM_LIMIT),
    )(z, a2, b2)

    return jnp.transpose(out_nhwc, (0, 3, 1, 2))   # back to NCHW


# --------------------------------------------------------------------------------------
# Pure-JAX reference (lax.conv at HIGHEST precision) with identical semantics.
# --------------------------------------------------------------------------------------
def residual_block_reference(x, p):
    def conv(x, w, pad):
        return jax.lax.conv_general_dilated(
            x, w, window_strides=(1, 1), padding=((pad, pad), (pad, pad)),
            dimension_numbers=("NCHW", "OIHW", "NCHW"),
            precision=jax.lax.Precision.HIGHEST)

    def bn(x, g, b):
        mean = jnp.mean(x, axis=(0, 2, 3), keepdims=True)
        var = jnp.mean((x - mean) ** 2, axis=(0, 2, 3), keepdims=True)
        xn = (x - mean) * jax.lax.rsqrt(var + EPS)
        return xn * g.reshape(1, -1, 1, 1) + b.reshape(1, -1, 1, 1)

    h = jax.nn.relu(bn(conv(x, p["w1"], 1), p["g1"], p["b1"]))
    main = bn(conv(h, p["w2"], 1), p["g2"], p["b2"])
    sc = bn(conv(x, p["ws"], 0), p["gs"], p["bs"])
    return main + sc


if __name__ == "__main__":
    # shapes consistent with the module defaults (in_channels != filters -> shortcut conv)
    N, Cin, H, W = 2, 4, 16, 16
    F = 64  # filters (module default)

    key = jax.random.PRNGKey(0)
    kx, k1, k2, k3, k4, k5, k6, k7, k8, k9 = jax.random.split(key, 10)

    def bf16_repr(a):
        # Weights are stored bf16-representable (cast bf16 -> f32): the kernels feed the MXU
        # bf16 operands, while the reference stays f32 / HIGHEST, so the 2e-2 tolerance
        # checks the algorithm rather than weight-quantization noise.
        return a.astype(jnp.bfloat16).astype(jnp.float32)

    x = jax.random.normal(kx, (N, Cin, H, W), jnp.float32)
    params = {
        # conv weights, PyTorch OIHW layout
        "w1": bf16_repr(jax.random.normal(k1, (F, Cin, 3, 3), jnp.float32) * 0.2),
        "w2": bf16_repr(jax.random.normal(k2, (F, F, 3, 3), jnp.float32) * 0.05),
        "ws": bf16_repr(jax.random.normal(k3, (F, Cin, 1, 1), jnp.float32) * 0.2),
        # BatchNorm affine params (non-trivial deterministic init)
        "g1": 1.0 + 0.1 * jax.random.normal(k4, (F,), jnp.float32),
        "b1": 0.1 * jax.random.normal(k5, (F,), jnp.float32),
        "g2": 1.0 + 0.1 * jax.random.normal(k6, (F,), jnp.float32),
        "b2": 0.1 * jax.random.normal(k7, (F,), jnp.float32),
        "gs": 1.0 + 0.1 * jax.random.normal(k8, (F,), jnp.float32),
        "bs": 0.1 * jax.random.normal(k9, (F,), jnp.float32),
    }

    ref = jax.block_until_ready(residual_block_reference(x, params))

    # auto-picked band height (single band per image at this size: biggest matmuls)
    out_auto = jax.block_until_ready(residual_block_pallas(x, params))
    # forced smaller bands: exercises the multi-band BN-stat accumulator + halo path
    out_band = jax.block_until_ready(residual_block_pallas(x, params, band_rows=8))

    for name, out in (("auto", out_auto), ("band8", out_band)):
        max_diff = float(jnp.max(jnp.abs(out - ref)))
        if not np.allclose(np.asarray(out), np.asarray(ref), atol=2e-2, rtol=2e-2):
            raise AssertionError(
                f"Pallas output mismatch vs reference ({name}), max_diff={max_diff}")

    print("KERNEL_OK")
</pallas_src>

<mosaic_0001>
module attributes {stable_mosaic.version = 11 : i64} {
  func.func @conv1_shortcut_kernel(%arg0: i32, %arg1: i32, %arg2: memref<1x18x18x4xf32, #tpu.memory_space<vmem>>, %arg3: memref<36x128xbf16, #tpu.memory_space<vmem>>, %arg4: memref<1x16x16x128xf32, #tpu.memory_space<vmem>>, %arg5: memref<1x8x128xf32, #tpu.memory_space<vmem>>, %arg6: memref<256x36xbf16, #tpu.memory_space<vmem>>) attributes {dimension_semantics = [#tpu.dimension_semantics<parallel>, #tpu.dimension_semantics<arbitrary>], iteration_bounds = array<i64: 2, 1>, scalar_prefetch = 0 : i64, scratch_operands = 1 : i64, tpu.core_type = #tpu.core_type<tc>, window_params = [{transform_indices = @transform_0, window_bounds = array<i64: 1, 18, 18, 4>}, {pipeline_mode = #tpu.pipeline_mode<synchronous>, transform_indices = @transform_1, window_bounds = array<i64: 36, 128>}, {transform_indices = @transform_2, window_bounds = array<i64: 1, 16, 16, 128>}, {transform_indices = @transform_3, window_bounds = array<i64: 1, 8, 128>}]} {
    %c16_i32 = arith.constant 16 : i32
    %0 = arith.muli %arg1, %c16_i32 : i32
    %1 = tpu.assume_multiple %0, 8 : i32
    %c0_i32 = arith.constant 0 : i32
    %2 = arith.addi %1, %c0_i32 : i32
    %c0 = arith.constant 0 : index
    %3 = arith.index_cast %2 : i32 to index
    %c0_0 = arith.constant 0 : index
    %c0_1 = arith.constant 0 : index
    %4 = vector.load %arg2[%c0, %3, %c0_0, %c0_1] : memref<1x18x18x4xf32, #tpu.memory_space<vmem>>, vector<1x16x16x4xf32>
    %5 = vector.shape_cast %4 : vector<1x16x16x4xf32> to vector<16x16x4xf32>
    %6 = vector.shape_cast %5 : vector<16x16x4xf32> to vector<256x4xf32>
    %7 = arith.truncf %6 : vector<256x4xf32> to vector<256x4xbf16>
    %c0_2 = arith.constant 0 : index
    %c0_3 = arith.constant 0 : index
    %8 = vector.load %arg6[%c0_2, %c0_3] : memref<256x36xbf16, #tpu.memory_space<vmem>>, vector<256x4xbf16>
    tpu.vector_store %arg6[%c0_2, %c0_3], %7 {strides = array<i32>} : memref<256x36xbf16, #tpu.memory_space<vmem>>, vector<256x4xbf16>,
    %c0_i32_4 = arith.constant 0 : i32
    %9 = arith.addi %1, %c0_i32_4 : i32
    %c0_5 = arith.constant 0 : index
    %10 = arith.index_cast %9 : i32 to index
    %c1 = arith.constant 1 : index
    %c0_6 = arith.constant 0 : index
    %11 = vector.load %arg2[%c0_5, %10, %c1, %c0_6] : memref<1x18x18x4xf32, #tpu.memory_space<vmem>>, vector<1x16x16x4xf32>
    %12 = vector.shape_cast %11 : vector<1x16x16x4xf32> to vector<16x16x4xf32>
    %13 = vector.shape_cast %12 : vector<16x16x4xf32> to vector<256x4xf32>
    %14 = arith.truncf %13 : vector<256x4xf32> to vector<256x4xbf16>
    %c0_7 = arith.constant 0 : index
    %c4 = arith.constant 4 : index
    %15 = vector.load %arg6[%c0_7, %c4] : memref<256x36xbf16, #tpu.memory_space<vmem>>, vector<256x4xbf16>
    tpu.vector_store %arg6[%c0_7, %c4], %14 {strides = array<i32>} : memref<256x36xbf16, #tpu.memory_space<vmem>>, vector<256x4xbf16>,
    %c0_i32_8 = arith.constant 0 : i32
    %16 = arith.addi %1, %c0_i32_8 : i32
    %c0_9 = arith.constant 0 : index
    %17 = arith.index_cast %16 : i32 to index
    %c2 = arith.constant 2 : index
    %c0_10 = arith.constant 0 : index
    %18 = vector.load %arg2[%c0_9, %17, %c2, %c0_10] : memref<1x18x18x4xf32, #tpu.memory_space<vmem>>, vector<1x16x16x4xf32>
    %19 = vector.shape_cast %18 : vector<1x16x16x4xf32> to vector<16x16x4xf32>
    %20 = vector.shape_cast %19 : vector<16x16x4xf32> to vector<256x4xf32>
    %21 = arith.truncf %20 : vector<256x4xf32> to vector<256x4xbf16>
    %c0_11 = arith.constant 0 : index
    %c8 = arith.constant 8 : index
    %22 = vector.load %arg6[%c0_11, %c8] : memref<256x36xbf16, #tpu.memory_space<vmem>>, vector<256x4xbf16>
    tpu.vector_store %arg6[%c0_11, %c8], %21 {strides = array<i32>} : memref<256x36xbf16, #tpu.memory_space<vmem>>, vector<256x4xbf16>,
    %c1_i32 = arith.constant 1 : i32
    %23 = arith.addi %1, %c1_i32 : i32
    %c0_12 = arith.constant 0 : index
    %24 = arith.index_cast %23 : i32 to index
    %c0_13 = arith.constant 0 : index
    %c0_14 = arith.constant 0 : index
    %25 = vector.load %arg2[%c0_12, %24, %c0_13, %c0_14] : memref<1x18x18x4xf32, #tpu.memory_space<vmem>>, vector<1x16x16x4xf32>
    %26 = vector.shape_cast %25 : vector<1x16x16x4xf32> to vector<16x16x4xf32>
    %27 = vector.shape_cast %26 : vector<16x16x4xf32> to vector<256x4xf32>
    %28 = arith.truncf %27 : vector<256x4xf32> to vector<256x4xbf16>
    %c0_15 = arith.constant 0 : index
    %c12 = arith.constant 12 : index
    %29 = vector.load %arg6[%c0_15, %c12] : memref<256x36xbf16, #tpu.memory_space<vmem>>, vector<256x4xbf16>
    tpu.vector_store %arg6[%c0_15, %c12], %28 {strides = array<i32>} : memref<256x36xbf16, #tpu.memory_space<vmem>>, vector<256x4xbf16>,
    %c1_i32_16 = arith.constant 1 : i32
    %30 = arith.addi %1, %c1_i32_16 : i32
    %c0_17 = arith.constant 0 : index
    %31 = arith.index_cast %30 : i32 to index
    %c1_18 = arith.constant 1 : index
    %c0_19 = arith.constant 0 : index
    %32 = vector.load %arg2[%c0_17, %31, %c1_18, %c0_19] : memref<1x18x18x4xf32, #tpu.memory_space<vmem>>, vector<1x16x16x4xf32>
    %33 = vector.shape_cast %32 : vector<1x16x16x4xf32> to vector<16x16x4xf32>
    %34 = vector.shape_cast %33 : vector<16x16x4xf32> to vector<256x4xf32>
    %35 = arith.truncf %34 : vector<256x4xf32> to vector<256x4xbf16>
    %c0_20 = arith.constant 0 : index
    %c16 = arith.constant 16 : index
    %36 = vector.load %arg6[%c0_20, %c16] : memref<256x36xbf16, #tpu.memory_space<vmem>>, vector<256x4xbf16>
    tpu.vector_store %arg6[%c0_20, %c16], %35 {strides = array<i32>} : memref<256x36xbf16, #tpu.memory_space<vmem>>, vector<256x4xbf16>,
    %c1_i32_21 = arith.constant 1 : i32
    %37 = arith.addi %1, %c1_i32_21 : i32
    %c0_22 = arith.constant 0 : index
    %38 = arith.index_cast %37 : i32 to index
    %c2_23 = arith.constant 2 : index
    %c0_24 = arith.constant 0 : index
    %39 = vector.load %arg2[%c0_22, %38, %c2_23, %c0_24] : memref<1x18x18x4xf32, #tpu.memory_space<vmem>>, vector<1x16x16x4xf32>
    %40 = vector.shape_cast %39 : vector<1x16x16x4xf32> to vector<16x16x4xf32>
    %41 = vector.shape_cast %40 : vector<16x16x4xf32> to vector<256x4xf32>
    %42 = arith.truncf %41 : vector<256x4xf32> to vector<256x4xbf16>
    %c0_25 = arith.constant 0 : index
    %c20 = arith.constant 20 : index
    %43 = vector.load %arg6[%c0_25, %c20] : memref<256x36xbf16, #tpu.memory_space<vmem>>, vector<256x4xbf16>
    tpu.vector_store %arg6[%c0_25, %c20], %42 {strides = array<i32>} : memref<256x36xbf16, #tpu.memory_space<vmem>>, vector<256x4xbf16>,
    %c2_i32 = arith.constant 2 : i32
    %44 = arith.addi %1, %c2_i32 : i32
    %c0_26 = arith.constant 0 : index
    %45 = arith.index_cast %44 : i32 to index
    %c0_27 = arith.constant 0 : index
    %c0_28 = arith.constant 0 : index
    %46 = vector.load %arg2[%c0_26, %45, %c0_27, %c0_28] : memref<1x18x18x4xf32, #tpu.memory_space<vmem>>, vector<1x16x16x4xf32>
    %47 = vector.shape_cast %46 : vector<1x16x16x4xf32> to vector<16x16x4xf32>
    %48 = vector.shape_cast %47 : vector<16x16x4xf32> to vector<256x4xf32>
    %49 = arith.truncf %48 : vector<256x4xf32> to vector<256x4xbf16>
    %c0_29 = arith.constant 0 : index
    %c24 = arith.constant 24 : index
    %50 = vector.load %arg6[%c0_29, %c24] : memref<256x36xbf16, #tpu.memory_space<vmem>>, vector<256x4xbf16>
    tpu.vector_store %arg6[%c0_29, %c24], %49 {strides = array<i32>} : memref<256x36xbf16, #tpu.memory_space<vmem>>, vector<256x4xbf16>,
    %c2_i32_30 = arith.constant 2 : i32
    %51 = arith.addi %1, %c2_i32_30 : i32
    %c0_31 = arith.constant 0 : index
    %52 = arith.index_cast %51 : i32 to index
    %c1_32 = arith.constant 1 : index
    %c0_33 = arith.constant 0 : index
    %53 = vector.load %arg2[%c0_31, %52, %c1_32, %c0_33] : memref<1x18x18x4xf32, #tpu.memory_space<vmem>>, vector<1x16x16x4xf32>
    %54 = vector.shape_cast %53 : vector<1x16x16x4xf32> to vector<16x16x4xf32>
    %55 = vector.shape_cast %54 : vector<16x16x4xf32> to vector<256x4xf32>
    %56 = arith.truncf %55 : vector<256x4xf32> to vector<256x4xbf16>
    %c0_34 = arith.constant 0 : index
    %c28 = arith.constant 28 : index
    %57 = vector.load %arg6[%c0_34, %c28] : memref<256x36xbf16, #tpu.memory_space<vmem>>, vector<256x4xbf16>
    tpu.vector_store %arg6[%c0_34, %c28], %56 {strides = array<i32>} : memref<256x36xbf16, #tpu.memory_space<vmem>>, vector<256x4xbf16>,
    %c2_i32_35 = arith.constant 2 : i32
    %58 = arith.addi %1, %c2_i32_35 : i32
    %c0_36 = arith.constant 0 : index
    %59 = arith.index_cast %58 : i32 to index
    %c2_37 = arith.constant 2 : index
    %c0_38 = arith.constant 0 : index
    %60 = vector.load %arg2[%c0_36, %59, %c2_37, %c0_38] : memref<1x18x18x4xf32, #tpu.memory_space<vmem>>, vector<1x16x16x4xf32>
    %61 = vector.shape_cast %60 : vector<1x16x16x4xf32> to vector<16x16x4xf32>
    %62 = vector.shape_cast %61 : vector<16x16x4xf32> to vector<256x4xf32>
    %63 = arith.truncf %62 : vector<256x4xf32> to vector<256x4xbf16>
    %c0_39 = arith.constant 0 : index
    %c32 = arith.constant 32 : index
    %64 = vector.load %arg6[%c0_39, %c32] : memref<256x36xbf16, #tpu.memory_space<vmem>>, vector<256x4xbf16>
    tpu.vector_store %arg6[%c0_39, %c32], %63 {strides = array<i32>} : memref<256x36xbf16, #tpu.memory_space<vmem>>, vector<256x4xbf16>,
    %c0_40 = arith.constant 0 : index
    %c0_41 = arith.constant 0 : index
    %65 = vector.load %arg6[%c0_40, %c0_41] : memref<256x36xbf16, #tpu.memory_space<vmem>>, vector<256x36xbf16>
    %c0_42 = arith.constant 0 : index
    %c0_43 = arith.constant 0 : index
    %66 = vector.load %arg3[%c0_42, %c0_43] : memref<36x128xbf16, #tpu.memory_space<vmem>>, vector<36x128xbf16>
    %cst = arith.constant dense<0.000000e+00> : vector<256x128xf32>
    %67 = tpu.matmul %65, %66, %cst {dimension_numbers = #tpu.dot_dimension_numbers<[1], [0], [0], [1], [0, 0, 1, 1], [], []>} : vector<256x36xbf16>, vector<36x128xbf16>, vector<256x128xf32> -> vector<256x128xf32>
    %c0_i32_44 = arith.constant 0 : i32
    %68 = arith.cmpi eq, %arg1, %c0_i32_44 : i32
    %69 = arith.extui %68 : i1 to i32
    %c0_i32_45 = arith.constant 0 : i32
    %70 = arith.cmpi ne, %69, %c0_i32_45 : i32
    scf.if %70 {
      %cst_64 = arith.constant 0.000000e+00 : f32
      %92 = vector.broadcast %cst_64 : f32 to vector<8x128xf32>
      %c0_65 = arith.constant 0 : index
      %c0_66 = arith.constant 0 : index
      %c0_67 = arith.constant 0 : index
      %93 = vector.load %arg5[%c0_65, %c0_66, %c0_67] : memref<1x8x128xf32, #tpu.memory_space<vmem>>, vector<1x8x128xf32>
      %94 = vector.shape_cast %93 : vector<1x8x128xf32> to vector<8x128xf32>
      %95 = vector.shape_cast %92 : vector<8x128xf32> to vector<1x8x128xf32>
      tpu.vector_store %arg5[%c0_65, %c0_66, %c0_67], %95 {strides = array<i32>} : memref<1x8x128xf32, #tpu.memory_space<vmem>>, vector<1x8x128xf32>,
    } else {
    }
    %c0_46 = arith.constant 0 : index
    %c0_47 = arith.constant 0 : index
    %c0_48 = arith.constant 0 : index
    %71 = vector.load %arg5[%c0_46, %c0_47, %c0_48] : memref<1x8x128xf32, #tpu.memory_space<vmem>>, vector<1x1x128xf32>
    %72 = vector.shape_cast %71 : vector<1x1x128xf32> to vector<1x128xf32>
    %cst_49 = arith.constant dense<0.000000e+00> : vector<128xf32>
    %73 = vector.multi_reduction <add>, %67, %cst_49 [0] : vector<256x128xf32> to vector<128xf32>
    %74 = vector.shape_cast %73 : vector<128xf32> to vector<1x128xf32>
    %75 = arith.addf %72, %74 : vector<1x128xf32>
    %c0_50 = arith.constant 0 : index
    %c0_51 = arith.constant 0 : index
    %c0_52 = arith.constant 0 : index
    %76 = vector.load %arg5[%c0_50, %c0_51, %c0_52] : memref<1x8x128xf32, #tpu.memory_space<vmem>>, vector<1x1x128xf32>
    %77 = vector.shape_cast %76 : vector<1x1x128xf32> to vector<1x128xf32>
    %78 = vector.shape_cast %75 : vector<1x128xf32> to vector<1x1x128xf32>
    tpu.vector_store %arg5[%c0_50, %c0_51, %c0_52], %78 {strides = array<i32>} : memref<1x8x128xf32, #tpu.memory_space<vmem>>, vector<1x1x128xf32>,
    %c0_53 = arith.constant 0 : index
    %c1_54 = arith.constant 1 : index
    %c0_55 = arith.constant 0 : index
    %79 = vector.load %arg5[%c0_53, %c1_54, %c0_55] : memref<1x8x128xf32, #tpu.memory_space<vmem>>, vector<1x1x128xf32>
    %80 = vector.shape_cast %79 : vector<1x1x128xf32> to vector<1x128xf32>
    %81 = arith.mulf %67, %67 : vector<256x128xf32>
    %cst_56 = arith.constant dense<0.000000e+00> : vector<128xf32>
    %82 = vector.multi_reduction <add>, %81, %cst_56 [0] : vector<256x128xf32> to vector<128xf32>
    %83 = vector.shape_cast %82 : vector<128xf32> to vector<1x128xf32>
    %84 = arith.addf %80, %83 : vector<1x128xf32>
    %c0_57 = arith.constant 0 : index
    %c1_58 = arith.constant 1 : index
    %c0_59 = arith.constant 0 : index
    %85 = vector.load %arg5[%c0_57, %c1_58, %c0_59] : memref<1x8x128xf32, #tpu.memory_space<vmem>>, vector<1x1x128xf32>
    %86 = vector.shape_cast %85 : vector<1x1x128xf32> to vector<1x128xf32>
    %87 = vector.shape_cast %84 : vector<1x128xf32> to vector<1x1x128xf32>
    tpu.vector_store %arg5[%c0_57, %c1_58, %c0_59], %87 {strides = array<i32>} : memref<1x8x128xf32, #tpu.memory_space<vmem>>, vector<1x1x128xf32>,
    %88 = vector.shape_cast %67 : vector<256x128xf32> to vector<16x16x128xf32>
    %c0_60 = arith.constant 0 : index
    %c0_61 = arith.constant 0 : index
    %c0_62 = arith.constant 0 : index
    %c0_63 = arith.constant 0 : index
    %89 = vector.load %arg4[%c0_60, %c0_61, %c0_62, %c0_63] : memref<1x16x16x128xf32, #tpu.memory_space<vmem>>, vector<1x16x16x128xf32>
    %90 = vector.shape_cast %89 : vector<1x16x16x128xf32> to vector<16x16x128xf32>
    %91 = vector.shape_cast %88 : vector<16x16x128xf32> to vector<1x16x16x128xf32>
    tpu.vector_store %arg4[%c0_60, %c0_61, %c0_62, %c0_63], %91 {strides = array<i32>} : memref<1x16x16x128xf32, #tpu.memory_space<vmem>>, vector<1x16x16x128xf32>,
    return
  }
  func.func @transform_0(%arg0: i32, %arg1: i32) -> (i32, i32, i32, i32) {
    %c0_i32 = arith.constant 0 : i32
    %c0_i32_0 = arith.constant 0 : i32
    %c0_i32_1 = arith.constant 0 : i32
    %c0_i32_2 = arith.constant 0 : i32
    return %arg0, %c0_i32, %c0_i32_0, %c0_i32_1 : i32, i32, i32, i32
  }
  func.func @transform_1(%arg0: i32, %arg1: i32) -> (i32, i32) {
    %c0_i32 = arith.constant 0 : i32
    %c0_i32_0 = arith.constant 0 : i32
    %c0_i32_1 = arith.constant 0 : i32
    return %c0_i32, %c0_i32_0 : i32, i32
  }
  func.func @transform_2(%arg0: i32, %arg1: i32) -> (i32, i32, i32, i32) {
    %c0_i32 = arith.constant 0 : i32
    %c0_i32_0 = arith.constant 0 : i32
    %c0_i32_1 = arith.constant 0 : i32
    return %arg0, %arg1, %c0_i32, %c0_i32_0 : i32, i32, i32, i32
  }
  func.func @transform_3(%arg0: i32, %arg1: i32) -> (i32, i32, i32) {
    %c0_i32 = arith.constant 0 : i32
    %c0_i32_0 = arith.constant 0 : i32
    %c0_i32_1 = arith.constant 0 : i32
    return %arg0, %c0_i32, %c0_i32_0 : i32, i32, i32
  }
}

module attributes {stable_mosaic.version = 11 : i64} {
  func.func @conv2_kernel(%arg0: i32, %arg1: i32, %arg2: memref<1x16x16x128xf32, #tpu.memory_space<vmem>>, %arg3: memref<576x64xbf16, #tpu.memory_space<vmem>>, %arg4: memref<1x64xf32, #tpu.memory_space<vmem>>, %arg5: memref<1x64xf32, #tpu.memory_space<vmem>>, %arg6: memref<1x64xf32, #tpu.memory_space<vmem>>, %arg7: memref<1x64xf32, #tpu.memory_space<vmem>>, %arg8: memref<1x16x16x128xf32, #tpu.memory_space<vmem>>, %arg9: memref<1x8x64xf32, #tpu.memory_space<vmem>>, %arg10: memref<18x18x64xf32, #tpu.memory_space<vmem>>, %arg11: memref<256x576xbf16, #tpu.memory_space<vmem>>) attributes {dimension_semantics = [#tpu.dimension_semantics<parallel>, #tpu.dimension_semantics<arbitrary>], iteration_bounds = array<i64: 2, 1>, scalar_prefetch = 0 : i64, scratch_operands = 2 : i64, tpu.core_type = #tpu.core_type<tc>, window_params = [{transform_indices = @transform_0, window_bounds = array<i64: 1, 16, 16, 128>}, {pipeline_mode = #tpu.pipeline_mode<synchronous>, transform_indices = @transform_1, window_bounds = array<i64: 576, 64>}, {pipeline_mode = #tpu.pipeline_mode<synchronous>, transform_indices = @transform_2, window_bounds = array<i64: 1, 64>}, {pipeline_mode = #tpu.pipeline_mode<synchronous>, transform_indices = @transform_3, window_bounds = array<i64: 1, 64>}, {pipeline_mode = #tpu.pipeline_mode<synchronous>, transform_indices = @transform_4, window_bounds = array<i64: 1, 64>}, {pipeline_mode = #tpu.pipeline_mode<synchronous>, transform_indices = @transform_5, window_bounds = array<i64: 1, 64>}, {transform_indices = @transform_6, window_bounds = array<i64: 1, 16, 16, 128>}, {transform_indices = @transform_7, window_bounds = array<i64: 1, 8, 64>}]} {
    %c16_i32 = arith.constant 16 : i32
    %0 = arith.muli %arg1, %c16_i32 : i32
    %1 = tpu.assume_multiple %0, 8 : i32
    %c0 = arith.constant 0 : index
    %c0_0 = arith.constant 0 : index
    %2 = vector.load %arg4[%c0, %c0_0] : memref<1x64xf32, #tpu.memory_space<vmem>>, vector<1x64xf32>
    %3 = vector.shape_cast %2 : vector<1x64xf32> to vector<1x1x64xf32>
    %c0_1 = arith.constant 0 : index
    %c0_2 = arith.constant 0 : index
    %4 = vector.load %arg5[%c0_1, %c0_2] : memref<1x64xf32, #tpu.memory_space<vmem>>, vector<1x64xf32>
    %5 = vector.shape_cast %4 : vector<1x64xf32> to vector<1x1x64xf32>
    %cst = arith.constant 0.000000e+00 : f32
    %6 = vector.broadcast %cst : f32 to vector<18x1x64xf32>
    %c0_3 = arith.constant 0 : index
    %c0_4 = arith.constant 0 : index
    %c0_5 = arith.constant 0 : index
    %7 = vector.load %arg10[%c0_3, %c0_4, %c0_5] : memref<18x18x64xf32, #tpu.memory_space<vmem>>, vector<18x1x64xf32>
    tpu.vector_store %arg10[%c0_3, %c0_4, %c0_5], %6 {strides = array<i32>} : memref<18x18x64xf32, #tpu.memory_space<vmem>>, vector<18x1x64xf32>,
    %cst_6 = arith.constant 0.000000e+00 : f32
    %8 = vector.broadcast %cst_6 : f32 to vector<18x1x64xf32>
    %c0_7 = arith.constant 0 : index
    %c17 = arith.constant 17 : index
    %c0_8 = arith.constant 0 : index
    %9 = vector.load %arg10[%c0_7, %c17, %c0_8] : memref<18x18x64xf32, #tpu.memory_space<vmem>>, vector<18x1x64xf32>
    tpu.vector_store %arg10[%c0_7, %c17, %c0_8], %8 {strides = array<i32>} : memref<18x18x64xf32, #tpu.memory_space<vmem>>, vector<18x1x64xf32>,
    %c0_9 = arith.constant 0 : index
    %10 = arith.index_cast %1 : i32 to index
    %c0_10 = arith.constant 0 : index
    %c0_11 = arith.constant 0 : index
    %11 = vector.load %arg2[%c0_9, %10, %c0_10, %c0_11] : memref<1x16x16x128xf32, #tpu.memory_space<vmem>>, vector<1x16x16x128xf32>
    %12 = vector.shape_cast %11 : vector<1x16x16x128xf32> to vector<16x16x128xf32>
    %13 = vector.extract_strided_slice %12 {offsets = [0, 0, 0], sizes = [16, 16, 64], strides = [1, 1, 1]} : vector<16x16x128xf32> to vector<16x16x64xf32>
    %14 = vector.broadcast %3 : vector<1x1x64xf32> to vector<16x16x64xf32>
    %15 = arith.mulf %13, %14 : vector<16x16x64xf32>
    %16 = vector.broadcast %5 : vector<1x1x64xf32> to vector<16x16x64xf32>
    %17 = arith.addf %15, %16 : vector<16x16x64xf32>
    %cst_12 = arith.constant 0.000000e+00 : f32
    %18 = vector.broadcast %cst_12 : f32 to vector<16x16x64xf32>
    %19 = arith.maximumf %17, %18 : vector<16x16x64xf32>
    %c1 = arith.constant 1 : index
    %c1_13 = arith.constant 1 : index
    %c0_14 = arith.constant 0 : index
    %20 = vector.load %arg10[%c1, %c1_13, %c0_14] : memref<18x18x64xf32, #tpu.memory_space<vmem>>, vector<16x16x64xf32>
    tpu.vector_store %arg10[%c1, %c1_13, %c0_14], %19 {strides = array<i32>} : memref<18x18x64xf32, #tpu.memory_space<vmem>>, vector<16x16x64xf32>,
    %c1_i32 = arith.constant 1 : i32
    %21 = arith.subi %1, %c1_i32 : i32
    %c0_i32 = arith.constant 0 : i32
    %22 = arith.maxsi %21, %c0_i32 : i32
    %c0_15 = arith.constant 0 : index
    %23 = arith.index_cast %22 : i32 to index
    %c0_16 = arith.constant 0 : index
    %c0_17 = arith.constant 0 : index
    %24 = vector.load %arg2[%c0_15, %23, %c0_16, %c0_17] : memref<1x16x16x128xf32, #tpu.memory_space<vmem>>, vector<1x1x16x128xf32>
    %25 = vector.shape_cast %24 : vector<1x1x16x128xf32> to vector<1x16x128xf32>
    %26 = vector.extract_strided_slice %25 {offsets = [0, 0, 0], sizes = [1, 16, 64], strides = [1, 1, 1]} : vector<1x16x128xf32> to vector<1x16x64xf32>
    %27 = vector.broadcast %3 : vector<1x1x64xf32> to vector<1x16x64xf32>
    %28 = arith.mulf %26, %27 : vector<1x16x64xf32>
    %29 = vector.broadcast %5 : vector<1x1x64xf32> to vector<1x16x64xf32>
    %30 = arith.addf %28, %29 : vector<1x16x64xf32>
    %cst_18 = arith.constant 0.000000e+00 : f32
    %31 = vector.broadcast %cst_18 : f32 to vector<1x16x64xf32>
    %32 = arith.maximumf %30, %31 : vector<1x16x64xf32>
    %c0_i32_19 = arith.constant 0 : i32
    %33 = arith.cmpi sgt, %arg1, %c0_i32_19 : i32
    %cst_20 = arith.constant 1.000000e+00 : f32
    %cst_21 = arith.constant 0.000000e+00 : f32
    %34 = arith.select %33, %cst_20, %cst_21 : f32
    %35 = vector.broadcast %34 : f32 to vector<1x16x64xf32>
    %36 = arith.mulf %32, %35 : vector<1x16x64xf32>
    %c0_22 = arith.constant 0 : index
    %c1_23 = arith.constant 1 : index
    %c0_24 = arith.constant 0 : index
    %37 = vector.load %arg10[%c0_22, %c1_23, %c0_24] : memref<18x18x64xf32, #tpu.memory_space<vmem>>, vector<1x16x64xf32>
    tpu.vector_store %arg10[%c0_22, %c1_23, %c0_24], %36 {strides = array<i32>} : memref<18x18x64xf32, #tpu.memory_space<vmem>>, vector<1x16x64xf32>,
    %c16_i32_25 = arith.constant 16 : i32
    %38 = arith.addi %1, %c16_i32_25 : i32
    %c15_i32 = arith.constant 15 : i32
    %39 = arith.minsi %38, %c15_i32 : i32
    %c0_26 = arith.constant 0 : index
    %40 = arith.index_cast %39 : i32 to index
    %c0_27 = arith.constant 0 : index
    %c0_28 = arith.constant 0 : index
    %41 = vector.load %arg2[%c0_26, %40, %c0_27, %c0_28] : memref<1x16x16x128xf32, #tpu.memory_space<vmem>>, vector<1x1x16x128xf32>
    %42 = vector.shape_cast %41 : vector<1x1x16x128xf32> to vector<1x16x128xf32>
    %43 = vector.extract_strided_slice %42 {offsets = [0, 0, 0], sizes = [1, 16, 64], strides = [1, 1, 1]} : vector<1x16x128xf32> to vector<1x16x64xf32>
    %44 = vector.broadcast %3 : vector<1x1x64xf32> to vector<1x16x64xf32>
    %45 = arith.mulf %43, %44 : vector<1x16x64xf32>
    %46 = vector.broadcast %5 : vector<1x1x64xf32> to vector<1x16x64xf32>
    %47 = arith.addf %45, %46 : vector<1x16x64xf32>
    %cst_29 = arith.constant 0.000000e+00 : f32
    %48 = vector.broadcast %cst_29 : f32 to vector<1x16x64xf32>
    %49 = arith.maximumf %47, %48 : vector<1x16x64xf32>
    %c1_i32_30 = arith.constant 1 : i32
    %50 = arith.addi %arg1, %c1_i32_30 : i32
    %c1_i32_31 = arith.constant 1 : i32
    %51 = arith.cmpi slt, %50, %c1_i32_31 : i32
    %cst_32 = arith.constant 1.000000e+00 : f32
    %cst_33 = arith.constant 0.000000e+00 : f32
    %52 = arith.select %51, %cst_32, %cst_33 : f32
    %53 = vector.broadcast %52 : f32 to vector<1x16x64xf32>
    %54 = arith.mulf %49, %53 : vector<1x16x64xf32>
    %c17_34 = arith.constant 17 : index
    %c1_35 = arith.constant 1 : index
    %c0_36 = arith.constant 0 : index
    %55 = vector.load %arg10[%c17_34, %c1_35, %c0_36] : memref<18x18x64xf32, #tpu.memory_space<vmem>>, vector<1x16x64xf32>
    tpu.vector_store %arg10[%c17_34, %c1_35, %c0_36], %54 {strides = array<i32>} : memref<18x18x64xf32, #tpu.memory_space<vmem>>, vector<1x16x64xf32>,
    %c0_37 = arith.constant 0 : index
    %c0_38 = arith.constant 0 : index
    %c0_39 = arith.constant 0 : index
    %56 = vector.load %arg10[%c0_37, %c0_38, %c0_39] : memref<18x18x64xf32, #tpu.memory_space<vmem>>, vector<16x16x64xf32>
    %57 = vector.shape_cast %56 : vector<16x16x64xf32> to vector<256x64xf32>
    %58 = arith.truncf %57 : vector<256x64xf32> to vector<256x64xbf16>
    %c0_40 = arith.constant 0 : index
    %c0_41 = arith.constant 0 : index
    %59 = vector.load %arg11[%c0_40, %c0_41] : memref<256x576xbf16, #tpu.memory_space<vmem>>, vector<256x64xbf16>
    tpu.vector_store %arg11[%c0_40, %c0_41], %58 {strides = array<i32>} : memref<256x576xbf16, #tpu.memory_space<vmem>>, vector<256x64xbf16>,
    %c0_42 = arith.constant 0 : index
    %c1_43 = arith.constant 1 : index
    %c0_44 = arith.constant 0 : index
    %60 = vector.load %arg10[%c0_42, %c1_43, %c0_44] : memref<18x18x64xf32, #tpu.memory_space<vmem>>, vector<16x16x64xf32>
    %61 = vector.shape_cast %60 : vector<16x16x64xf32> to vector<256x64xf32>
    %62 = arith.truncf %61 : vector<256x64xf32> to vector<256x64xbf16>
    %c0_45 = arith.constant 0 : index
    %c64 = arith.constant 64 : index
    %63 = vector.load %arg11[%c0_45, %c64] : memref<256x576xbf16, #tpu.memory_space<vmem>>, vector<256x64xbf16>
    tpu.vector_store %arg11[%c0_45, %c64], %62 {strides = array<i32>} : memref<256x576xbf16, #tpu.memory_space<vmem>>, vector<256x64xbf16>,
    %c0_46 = arith.constant 0 : index
    %c2 = arith.constant 2 : index
    %c0_47 = arith.constant 0 : index
    %64 = vector.load %arg10[%c0_46, %c2, %c0_47] : memref<18x18x64xf32, #tpu.memory_space<vmem>>, vector<16x16x64xf32>
    %65 = vector.shape_cast %64 : vector<16x16x64xf32> to vector<256x64xf32>
    %66 = arith.truncf %65 : vector<256x64xf32> to vector<256x64xbf16>
    %c0_48 = arith.constant 0 : index
    %c128 = arith.constant 128 : index
    %67 = vector.load %arg11[%c0_48, %c128] : memref<256x576xbf16, #tpu.memory_space<vmem>>, vector<256x64xbf16>
    tpu.vector_store %arg11[%c0_48, %c128], %66 {strides = array<i32>} : memref<256x576xbf16, #tpu.memory_space<vmem>>, vector<256x64xbf16>,
    %c1_49 = arith.constant 1 : index
    %c0_50 = arith.constant 0 : index
    %c0_51 = arith.constant 0 : index
    %68 = vector.load %arg10[%c1_49, %c0_50, %c0_51] : memref<18x18x64xf32, #tpu.memory_space<vmem>>, vector<16x16x64xf32>
    %69 = vector.shape_cast %68 : vector<16x16x64xf32> to vector<256x64xf32>
    %70 = arith.truncf %69 : vector<256x64xf32> to vector<256x64xbf16>
    %c0_52 = arith.constant 0 : index
    %c192 = arith.constant 192 : index
    %71 = vector.load %arg11[%c0_52, %c192] : memref<256x576xbf16, #tpu.memory_space<vmem>>, vector<256x64xbf16>
    tpu.vector_store %arg11[%c0_52, %c192], %70 {strides = array<i32>} : memref<256x576xbf16, #tpu.memory_space<vmem>>, vector<256x64xbf16>,
    %c1_53 = arith.constant 1 : index
    %c1_54 = arith.constant 1 : index
    %c0_55 = arith.constant 0 : index
    %72 = vector.load %arg10[%c1_53, %c1_54, %c0_55] : memref<18x18x64xf32, #tpu.memory_space<vmem>>, vector<16x16x64xf32>
    %73 = vector.shape_cast %72 : vector<16x16x64xf32> to vector<256x64xf32>
    %74 = arith.truncf %73 : vector<256x64xf32> to vector<256x64xbf16>
    %c0_56 = arith.constant 0 : index
    %c256 = arith.constant 256 : index
    %75 = vector.load %arg11[%c0_56, %c256] : memref<256x576xbf16, #tpu.memory_space<vmem>>, vector<256x64xbf16>
    tpu.vector_store %arg11[%c0_56, %c256], %74 {strides = array<i32>} : memref<256x576xbf16, #tpu.memory_space<vmem>>, vector<256x64xbf16>,
    %c1_57 = arith.constant 1 : index
    %c2_58 = arith.constant 2 : index
    %c0_59 = arith.constant 0 : index
    %76 = vector.load %arg10[%c1_57, %c2_58, %c0_59] : memref<18x18x64xf32, #tpu.memory_space<vmem>>, vector<16x16x64xf32>
    %77 = vector.shape_cast %76 : vector<16x16x64xf32> to vector<256x64xf32>
    %78 = arith.truncf %77 : vector<256x64xf32> to vector<256x64xbf16>
    %c0_60 = arith.constant 0 : index
    %c320 = arith.constant 320 : index
    %79 = vector.load %arg11[%c0_60, %c320] : memref<256x576xbf16, #tpu.memory_space<vmem>>, vector<256x64xbf16>
    tpu.vector_store %arg11[%c0_60, %c320], %78 {strides = array<i32>} : memref<256x576xbf16, #tpu.memory_space<vmem>>, vector<256x64xbf16>,
    %c2_61 = arith.constant 2 : index
    %c0_62 = arith.constant 0 : index
    %c0_63 = arith.constant 0 : index
    %80 = vector.load %arg10[%c2_61, %c0_62, %c0_63] : memref<18x18x64xf32, #tpu.memory_space<vmem>>, vector<16x16x64xf32>
    %81 = vector.shape_cast %80 : vector<16x16x64xf32> to vector<256x64xf32>
    %82 = arith.truncf %81 : vector<256x64xf32> to vector<256x64xbf16>
    %c0_64 = arith.constant 0 : index
    %c384 = arith.constant 384 : index
    %83 = vector.load %arg11[%c0_64, %c384] : memref<256x576xbf16, #tpu.memory_space<vmem>>, vector<256x64xbf16>
    tpu.vector_store %arg11[%c0_64, %c384], %82 {strides = array<i32>} : memref<256x576xbf16, #tpu.memory_space<vmem>>, vector<256x64xbf16>,
    %c2_65 = arith.constant 2 : index
    %c1_66 = arith.constant 1 : index
    %c0_67 = arith.constant 0 : index
    %84 = vector.load %arg10[%c2_65, %c1_66, %c0_67] : memref<18x18x64xf32, #tpu.memory_space<vmem>>, vector<16x16x64xf32>
    %85 = vector.shape_cast %84 : vector<16x16x64xf32> to vector<256x64xf32>
    %86 = arith.truncf %85 : vector<256x64xf32> to vector<256x64xbf16>
    %c0_68 = arith.constant 0 : index
    %c448 = arith.constant 448 : index
    %87 = vector.load %arg11[%c0_68, %c448] : memref<256x576xbf16, #tpu.memory_space<vmem>>, vector<256x64xbf16>
    tpu.vector_store %arg11[%c0_68, %c448], %86 {strides = array<i32>} : memref<256x576xbf16, #tpu.memory_space<vmem>>, vector<256x64xbf16>,
    %c2_69 = arith.constant 2 : index
    %c2_70 = arith.constant 2 : index
    %c0_71 = arith.constant 0 : index
    %88 = vector.load %arg10[%c2_69, %c2_70, %c0_71] : memref<18x18x64xf32, #tpu.memory_space<vmem>>, vector<16x16x64xf32>
    %89 = vector.shape_cast %88 : vector<16x16x64xf32> to vector<256x64xf32>
    %90 = arith.truncf %89 : vector<256x64xf32> to vector<256x64xbf16>
    %c0_72 = arith.constant 0 : index
    %c512 = arith.constant 512 : index
    %91 = vector.load %arg11[%c0_72, %c512] : memref<256x576xbf16, #tpu.memory_space<vmem>>, vector<256x64xbf16>
    tpu.vector_store %arg11[%c0_72, %c512], %90 {strides = array<i32>} : memref<256x576xbf16, #tpu.memory_space<vmem>>, vector<256x64xbf16>,
    %c0_73 = arith.constant 0 : index
    %c0_74 = arith.constant 0 : index
    %92 = vector.load %arg11[%c0_73, %c0_74] : memref<256x576xbf16, #tpu.memory_space<vmem>>, vector<256x576xbf16>
    %c0_75 = arith.constant 0 : index
    %c0_76 = arith.constant 0 : index
    %93 = vector.load %arg3[%c0_75, %c0_76] : memref<576x64xbf16, #tpu.memory_space<vmem>>, vector<576x64xbf16>
    %cst_77 = arith.constant dense<0.000000e+00> : vector<256x64xf32>
    %94 = tpu.matmul %92, %93, %cst_77 {dimension_numbers = #tpu.dot_dimension_numbers<[1], [0], [0], [1], [0, 0, 1, 1], [], []>} : vector<256x576xbf16>, vector<576x64xbf16>, vector<256x64xf32> -> vector<256x64xf32>
    %c0_i32_78 = arith.constant 0 : i32
    %95 = arith.cmpi eq, %arg1, %c0_i32_78 : i32
    %96 = arith.extui %95 : i1 to i32
    %c0_i32_79 = arith.constant 0 : i32
    %97 = arith.cmpi ne, %96, %c0_i32_79 : i32
    scf.if %97 {
      %cst_106 = arith.constant 0.000000e+00 : f32
      %131 = vector.broadcast %cst_106 : f32 to vector<8x64xf32>
      %c0_107 = arith.constant 0 : index
      %c0_108 = arith.constant 0 : index
      %c0_109 = arith.constant 0 : index
      %132 = vector.load %arg9[%c0_107, %c0_108, %c0_109] : memref<1x8x64xf32, #tpu.memory_space<vmem>>, vector<1x8x64xf32>
      %133 = vector.shape_cast %132 : vector<1x8x64xf32> to vector<8x64xf32>
      %134 = vector.shape_cast %131 : vector<8x64xf32> to vector<1x8x64xf32>
      tpu.vector_store %arg9[%c0_107, %c0_108, %c0_109], %134 {strides = array<i32>} : memref<1x8x64xf32, #tpu.memory_space<vmem>>, vector<1x8x64xf32>,
    } else {
    }
    %c0_80 = arith.constant 0 : index
    %c0_81 = arith.constant 0 : index
    %c0_82 = arith.constant 0 : index
    %98 = vector.load %arg9[%c0_80, %c0_81, %c0_82] : memref<1x8x64xf32, #tpu.memory_space<vmem>>, vector<1x1x64xf32>
    %99 = vector.shape_cast %98 : vector<1x1x64xf32> to vector<1x64xf32>
    %cst_83 = arith.constant dense<0.000000e+00> : vector<64xf32>
    %100 = vector.multi_reduction <add>, %94, %cst_83 [0] : vector<256x64xf32> to vector<64xf32>
    %101 = vector.shape_cast %100 : vector<64xf32> to vector<1x64xf32>
    %102 = arith.addf %99, %101 : vector<1x64xf32>
    %c0_84 = arith.constant 0 : index
    %c0_85 = arith.constant 0 : index
    %c0_86 = arith.constant 0 : index
    %103 = vector.load %arg9[%c0_84, %c0_85, %c0_86] : memref<1x8x64xf32, #tpu.memory_space<vmem>>, vector<1x1x64xf32>
    %104 = vector.shape_cast %103 : vector<1x1x64xf32> to vector<1x64xf32>
    %105 = vector.shape_cast %102 : vector<1x64xf32> to vector<1x1x64xf32>
    tpu.vector_store %arg9[%c0_84, %c0_85, %c0_86], %105 {strides = array<i32>} : memref<1x8x64xf32, #tpu.memory_space<vmem>>, vector<1x1x64xf32>,
    %c0_87 = arith.constant 0 : index
    %c1_88 = arith.constant 1 : index
    %c0_89 = arith.constant 0 : index
    %106 = vector.load %arg9[%c0_87, %c1_88, %c0_89] : memref<1x8x64xf32, #tpu.memory_space<vmem>>, vector<1x1x64xf32>
    %107 = vector.shape_cast %106 : vector<1x1x64xf32> to vector<1x64xf32>
    %108 = arith.mulf %94, %94 : vector<256x64xf32>
    %cst_90 = arith.constant dense<0.000000e+00> : vector<64xf32>
    %109 = vector.multi_reduction <add>, %108, %cst_90 [0] : vector<256x64xf32> to vector<64xf32>
    %110 = vector.shape_cast %109 : vector<64xf32> to vector<1x64xf32>
    %111 = arith.addf %107, %110 : vector<1x64xf32>
    %c0_91 = arith.constant 0 : index
    %c1_92 = arith.constant 1 : index
    %c0_93 = arith.constant 0 : index
    %112 = vector.load %arg9[%c0_91, %c1_92, %c0_93] : memref<1x8x64xf32, #tpu.memory_space<vmem>>, vector<1x1x64xf32>
    %113 = vector.shape_cast %112 : vector<1x1x64xf32> to vector<1x64xf32>
    %114 = vector.shape_cast %111 : vector<1x64xf32> to vector<1x1x64xf32>
    tpu.vector_store %arg9[%c0_91, %c1_92, %c0_93], %114 {strides = array<i32>} : memref<1x8x64xf32, #tpu.memory_space<vmem>>, vector<1x1x64xf32>,
    %115 = vector.extract_strided_slice %12 {offsets = [0, 0, 64], sizes = [16, 16, 64], strides = [1, 1, 1]} : vector<16x16x128xf32> to vector<16x16x64xf32>
    %c0_94 = arith.constant 0 : index
    %c0_95 = arith.constant 0 : index
    %116 = vector.load %arg6[%c0_94, %c0_95] : memref<1x64xf32, #tpu.memory_space<vmem>>, vector<1x64xf32>
    %117 = vector.shape_cast %116 : vector<1x64xf32> to vector<1x1x64xf32>
    %118 = vector.broadcast %117 : vector<1x1x64xf32> to vector<16x16x64xf32>
    %119 = arith.mulf %115, %118 : vector<16x16x64xf32>
    %c0_96 = arith.constant 0 : index
    %c0_97 = arith.constant 0 : index
    %120 = vector.load %arg7[%c0_96, %c0_97] : memref<1x64xf32, #tpu.memory_space<vmem>>, vector<1x64xf32>
    %121 = vector.shape_cast %120 : vector<1x64xf32> to vector<1x1x64xf32>
    %122 = vector.broadcast %121 : vector<1x1x64xf32> to vector<16x16x64xf32>
    %123 = arith.addf %119, %122 : vector<16x16x64xf32>
    %124 = vector.shape_cast %94 : vector<256x64xf32> to vector<16x16x64xf32>
    %c0_98 = arith.constant 0 : index
    %c0_99 = arith.constant 0 : index
    %c0_100 = arith.constant 0 : index
    %c0_101 = arith.constant 0 : index
    %125 = vector.load %arg8[%c0_98, %c0_99, %c0_100, %c0_101] : memref<1x16x16x128xf32, #tpu.memory_space<vmem>>, vector<1x16x16x64xf32>
    %126 = vector.shape_cast %125 : vector<1x16x16x64xf32> to vector<16x16x64xf32>
    %127 = vector.shape_cast %124 : vector<16x16x64xf32> to vector<1x16x16x64xf32>
    tpu.vector_store %arg8[%c0_98, %c0_99, %c0_100, %c0_101], %127 {strides = array<i32>} : memref<1x16x16x128xf32, #tpu.memory_space<vmem>>, vector<1x16x16x64xf32>,
    %c0_102 = arith.constant 0 : index
    %c0_103 = arith.constant 0 : index
    %c0_104 = arith.constant 0 : index
    %c64_105 = arith.constant 64 : index
    %128 = vector.load %arg8[%c0_102, %c0_103, %c0_104, %c64_105] : memref<1x16x16x128xf32, #tpu.memory_space<vmem>>, vector<1x16x16x64xf32>
    %129 = vector.shape_cast %128 : vector<1x16x16x64xf32> to vector<16x16x64xf32>
    %130 = vector.shape_cast %123 : vector<16x16x64xf32> to vector<1x16x16x64xf32>
    tpu.vector_store %arg8[%c0_102, %c0_103, %c0_104, %c64_105], %130 {strides = array<i32>} : memref<1x16x16x128xf32, #tpu.memory_space<vmem>>, vector<1x16x16x64xf32>,
    return
  }
  func.func @transform_0(%arg0: i32, %arg1: i32) -> (i32, i32, i32, i32) {
    %c0_i32 = arith.constant 0 : i32
    %c0_i32_0 = arith.constant 0 : i32
    %c0_i32_1 = arith.constant 0 : i32
    %c0_i32_2 = arith.constant 0 : i32
    return %arg0, %c0_i32, %c0_i32_0, %c0_i32_1 : i32, i32, i32, i32
  }
  func.func @transform_1(%arg0: i32, %arg1: i32) -> (i32, i32) {
    %c0_i32 = arith.constant 0 : i32
    %c0_i32_0 = arith.constant 0 : i32
    %c0_i32_1 = arith.constant 0 : i32
    return %c0_i32, %c0_i32_0 : i32, i32
  }
  func.func @transform_2(%arg0: i32, %arg1: i32) -> (i32, i32) {
    %c0_i32 = arith.constant 0 : i32
    %c0_i32_0 = arith.constant 0 : i32
    %c0_i32_1 = arith.constant 0 : i32
    return %c0_i32, %c0_i32_0 : i32, i32
  }
  func.func @transform_3(%arg0: i32, %arg1: i32) -> (i32, i32) {
    %c0_i32 = arith.constant 0 : i32
    %c0_i32_0 = arith.constant 0 : i32
    %c0_i32_1 = arith.constant 0 : i32
    return %c0_i32, %c0_i32_0 : i32, i32
  }
  func.func @transform_4(%arg0: i32, %arg1: i32) -> (i32, i32) {
    %c0_i32 = arith.constant 0 : i32
    %c0_i32_0 = arith.constant 0 : i32
    %c0_i32_1 = arith.constant 0 : i32
    return %c0_i32, %c0_i32_0 : i32, i32
  }
  func.func @transform_5(%arg0: i32, %arg1: i32) -> (i32, i32) {
    %c0_i32 = arith.constant 0 : i32
    %c0_i32_0 = arith.constant 0 : i32
    %c0_i32_1 = arith.constant 0 : i32
    return %c0_i32, %c0_i32_0 : i32, i32
  }
  func.func @transform_6(%arg0: i32, %arg1: i32) -> (i32, i32, i32, i32) {
    %c0_i32 = arith.constant 0 : i32
    %c0_i32_0 = arith.constant 0 : i32
    %c0_i32_1 = arith.constant 0 : i32
    return %arg0, %arg1, %c0_i32, %c0_i32_0 : i32, i32, i32, i32
  }
  func.func @transform_7(%arg0: i32, %arg1: i32) -> (i32, i32, i32) {
    %c0_i32 = arith.constant 0 : i32
    %c0_i32_0 = arith.constant 0 : i32
    %c0_i32_1 = arith.constant 0 : i32
    return %arg0, %c0_i32, %c0_i32_0 : i32, i32, i32
  }
}

module attributes {stable_mosaic.version = 11 : i64} {
  func.func @bn2_add_kernel(%arg0: i32, %arg1: i32, %arg2: memref<1x16x16x128xf32, #tpu.memory_space<vmem>>, %arg3: memref<1x64xf32, #tpu.memory_space<vmem>>, %arg4: memref<1x64xf32, #tpu.memory_space<vmem>>, %arg5: memref<1x16x16x64xf32, #tpu.memory_space<vmem>>) attributes {dimension_semantics = [#tpu.dimension_semantics<parallel>, #tpu.dimension_semantics<parallel>], iteration_bounds = array<i64: 2, 1>, scalar_prefetch = 0 : i64, scratch_operands = 0 : i64, tpu.core_type = #tpu.core_type<tc>, window_params = [{transform_indices = @transform_0, window_bounds = array<i64: 1, 16, 16, 128>}, {pipeline_mode = #tpu.pipeline_mode<synchronous>, transform_indices = @transform_1, window_bounds = array<i64: 1, 64>}, {pipeline_mode = #tpu.pipeline_mode<synchronous>, transform_indices = @transform_2, window_bounds = array<i64: 1, 64>}, {transform_indices = @transform_3, window_bounds = array<i64: 1, 16, 16, 64>}]} {
    %c0 = arith.constant 0 : index
    %c0_0 = arith.constant 0 : index
    %c0_1 = arith.constant 0 : index
    %c0_2 = arith.constant 0 : index
    %0 = vector.load %arg2[%c0, %c0_0, %c0_1, %c0_2] : memref<1x16x16x128xf32, #tpu.memory_space<vmem>>, vector<1x16x16x64xf32>
    %1 = vector.shape_cast %0 : vector<1x16x16x64xf32> to vector<16x16x64xf32>
    %c0_3 = arith.constant 0 : index
    %c0_4 = arith.constant 0 : index
    %2 = vector.load %arg3[%c0_3, %c0_4] : memref<1x64xf32, #tpu.memory_space<vmem>>, vector<1x64xf32>
    %3 = vector.shape_cast %2 : vector<1x64xf32> to vector<1x1x64xf32>
    %4 = vector.broadcast %3 : vector<1x1x64xf32> to vector<16x16x64xf32>
    %5 = arith.mulf %1, %4 : vector<16x16x64xf32>
    %c0_5 = arith.constant 0 : index
    %c0_6 = arith.constant 0 : index
    %6 = vector.load %arg4[%c0_5, %c0_6] : memref<1x64xf32, #tpu.memory_space<vmem>>, vector<1x64xf32>
    %7 = vector.shape_cast %6 : vector<1x64xf32> to vector<1x1x64xf32>
    %8 = vector.broadcast %7 : vector<1x1x64xf32> to vector<16x16x64xf32>
    %9 = arith.addf %5, %8 : vector<16x16x64xf32>
    %c0_7 = arith.constant 0 : index
    %c0_8 = arith.constant 0 : index
    %c0_9 = arith.constant 0 : index
    %c64 = arith.constant 64 : index
    %10 = vector.load %arg2[%c0_7, %c0_8, %c0_9, %c64] : memref<1x16x16x128xf32, #tpu.memory_space<vmem>>, vector<1x16x16x64xf32>
    %11 = vector.shape_cast %10 : vector<1x16x16x64xf32> to vector<16x16x64xf32>
    %12 = arith.addf %9, %11 : vector<16x16x64xf32>
    %c0_10 = arith.constant 0 : index
    %c0_11 = arith.constant 0 : index
    %c0_12 = arith.constant 0 : index
    %c0_13 = arith.constant 0 : index
    %13 = vector.load %arg5[%c0_10, %c0_11, %c0_12, %c0_13] : memref<1x16x16x64xf32, #tpu.memory_space<vmem>>, vector<1x16x16x64xf32>
    %14 = vector.shape_cast %13 : vector<1x16x16x64xf32> to vector<16x16x64xf32>
    %15 = vector.shape_cast %12 : vector<16x16x64xf32> to vector<1x16x16x64xf32>
    tpu.vector_store %arg5[%c0_10, %c0_11, %c0_12, %c0_13], %15 {strides = array<i32>} : memref<1x16x16x64xf32, #tpu.memory_space<vmem>>, vector<1x16x16x64xf32>,
    return
  }
  func.func @transform_0(%arg0: i32, %arg1: i32) -> (i32, i32, i32, i32) {
    %c0_i32 = arith.constant 0 : i32
    %c0_i32_0 = arith.constant 0 : i32
    %c0_i32_1 = arith.constant 0 : i32
    return %arg0, %arg1, %c0_i32, %c0_i32_0 : i32, i32, i32, i32
  }
  func.func @transform_1(%arg0: i32, %arg1: i32) -> (i32, i32) {
    %c0_i32 = arith.constant 0 : i32
    %c0_i32_0 = arith.constant 0 : i32
    %c0_i32_1 = arith.constant 0 : i32
    return %c0_i32, %c0_i32_0 : i32, i32
  }
  func.func @transform_2(%arg0: i32, %arg1: i32) -> (i32, i32) {
    %c0_i32 = arith.constant 0 : i32
    %c0_i32_0 = arith.constant 0 : i32
    %c0_i32_1 = arith.constant 0 : i32
    return %c0_i32, %c0_i32_0 : i32, i32
  }
  func.func @transform_3(%arg0: i32, %arg1: i32) -> (i32, i32, i32, i32) {
    %c0_i32 = arith.constant 0 : i32
    %c0_i32_0 = arith.constant 0 : i32
    %c0_i32_1 = arith.constant 0 : i32
    return %arg0, %arg1, %c0_i32, %c0_i32_0 : i32, i32, i32, i32
  }
}

</mosaic_0001>

<bundles_post_ra>
// kernel: residual_block_pallas.5
= control target key start
LH: loop header
LB: loop body
LE: loop exit
PB: predicated region body
PF: predicated region fallthrough
CT: control target
= control target key end

     0   :  { %8 = vsyncpa [#allocation3], 0  ;;  %s1235_s0 = inlined_call_operand.vmem [shape: f32[2,16,16,128], index: 0, kind: input, shape index: {}]   ;;  %s1236_s1 = inlined_call_operand.vmem [shape: f32[1,64], index: 1, kind: input, shape index: {}]   ;;  %s1237_s2 = inlined_call_operand.vmem [shape: f32[1,64], index: 2, kind: input, shape index: {}]   ;;  %s1238_s3 = inlined_call_operand.hbm [shape: f32[2,16,16,64], index: 3, kind: output, shape index: {}]  }
   0x1   :  { %10 = vsyncpa [#allocation3 + $0x1], 0  ;;  %s782_s12 = smov 0   ;;  %s784_s13 = smov 0  }
   0x2   :  { %s786_s14 = smov 0   ;;  %s788_s15 = smov 0  }
   0x3   :  { %s790_s16 = smov 0   ;;  %s792_s17 = smov 0  }
   0x4 LB: > { %s605_s18 = sadd.s32 4294967295, %s756_s17   ;;  %s606_s19 = sadd.s32 4294967294, %s756_s17   ;;  %s756_s17 = sphi %s792_s17, %s16_s17   ;;  %s752_s16 = sphi %s790_s16, %s1245_s16   ;;  %s748_s15 = sphi %s788_s15, %s1244_s15   ;;  %s744_s14 = sphi %s786_s14, %s1243_s14   ;;  %s740_s13 = sphi %s784_s13, %s1242_s13   ;;  %s736_s12 = sphi %s782_s12, %s1241_s12  }
   0x5   : > { %s28_s20 = sadd.s32 1, %s752_s16  ;;  %s107_s21 = sadd.s32 1, %s744_s14 }
   0x6   : > { %p30_p0 = scmp.ge.s32.totalorder %s28_s20, 2  ;;  %p117_p1 = scmp.ne.s32.totalorder %s744_s14, %s740_s13 }
   0x7   : > { %p118_p2 = scmp.eq.s32.totalorder %s605_s18, 1  ;;  %p123_p3 = scmp.ne.s32.totalorder %s740_s13, %s736_s12 }
   0x8   : > { %s1247_s20 = smov (%p30_p0, %s28_s20), 0  ;;  %p124_p5 = scmp.eq.s32.totalorder %s606_s19, 1 }
   0x9   : > { %p822_p4 = por %p118_p2, %p117_p1  ;;  %s102_s23 = ssub.s32 %s752_s16, %s1247_s20 }
   0xa   : > { %p609_p6 = scmp.ge.s32.totalorder %s756_s17, 1  ;;  %p105_p7 = scmp.eq.s32.totalorder %s102_s23, 0 }
   0xb   : > { %p829_p8 = por %p124_p5, %p123_p3  ;;  %p162_p9 = scmp.lt.s32.totalorder %s756_s17, 3 }
   0xc   : > { %s835_s25 = scalar_select %p105_p7, %s744_s14, %s107_s21  }
   0xd   : > { %p163_p10 = pnand %p609_p6, %p162_p9 }
   0xe   : > { %p192_p11 = scmp.lt.s32.totalorder (!%p163_p10), %s748_s15, 1  ;;  %s758_s4 = smov (!%p163_p10), 64  }
   0xf   : > { %166 = sbr.rel (%p163_p10) target bundleno = 216 (0xd8), region = 32  ;;  %s188_s9 = sand.u32 (!%p163_p10), 1, %s740_s13  }
  0x10   : > { %s610_s10 = sshll.u32 (!%p163_p10), %s188_s9, 8  ;;  %s621_s18 = sshll.u32 (!%p163_p10), %s748_s15, 12 }
  0x11   : > { %s1033_s11 = scalar_lea.vmem (!%p163_p10), [#allocation2], %s610_s10  ;;  %s759_s28 = smov (!%p163_p10), [#allocation2]  }
  0x12   : > { %s523_s19 = sshll.u32 (!%p163_p10), %s1033_s11, 4  ;;  %s684_s29 = sshll.u32 (!%p163_p10), %s759_s28, 4  ;;  %s1182_s19 = int_to_ptr.vmem [resolvable:$true] %s523_s19  ;;  %s685_s29 = int_to_ptr.vmem [resolvable:$false] %s684_s29 }
  0x13   : > { %p687_p1 = scmp.lt.s32.totalorder (!%p163_p10), %s1182_s19, %s685_s29 }
  0x14   : > { %s193_s26 = scalar_select %p192_p11, %s748_s15, 1  ;;  %v1007_v32 = vld [vmem:[%s1236_s1] ss:$0 sm:$0xff]  ;;  %vm473_vm0 = vcmask 523264  }
  0x15   : > { %v1016_v35 = vld [vmem:[%s1237_s2] ss:$0 sm:$0xff]  ;;  %s1190_s15 = scalar_lea.sflag [#allocation3], %s188_s9 }
  0x16   : > { %s620_s27 = sshll.u32 %s193_s26, 8  ;;  %s1180_s26 = scalar_lea.hbm %s1238_s3, %s621_s18 }
  0x17   : > { %s842_s30 = scalar_lea.vmem %s1235_s0, %s620_s27  ;;  %s680_s27 = scalar_lea.vmem %s1182_s19, 4096 }
  0x18   : > { %v845_v0 = vld [vmem:[%s842_s30 + $0x10] sm:$0xff]  ;;  %v848_v1 = vld [vmem:[%s842_s30] sm:$0xff]  ;;  %v855_v2 = vld [vmem:[%s842_s30 + $0x18] sm:$0xff]  ;;  %p681_p12 = scmp.ne.s32.totalorder %s1182_s19, %s680_s27 }
  0x19   : > { %349 = vrot.lane.b32.xlu1 %v845_v0, %s758_s4  ;;  %345 = vrot.lane.b32.xlu0 %v848_v1, %s758_s4  ;;  %v858_v3 = vld [vmem:[%s842_s30 + $0x8] sm:$0xff]  ;;  %v868_v5 = vld [vmem:[%s842_s30 + $0x20] sm:$0xff]  ;;  %v244_v33 = vmul.f32 %v1007_v32, %v845_v0  ;;  %v242_v34 = vmul.f32 %v1007_v32, %v848_v1  ;;  %v245_v36 = vmul.f32 %v1007_v32, %v855_v2 }
  0x1a   : > { %v865_v4 = vld [vmem:[%s842_s30 + $0x28] sm:$0xff]  ;;  %v875_v6 = vld [vmem:[%s842_s30 + $0x38] sm:$0xff]  ;;  %v878_v7 = vld [vmem:[%s842_s30 + $0x30] sm:$0xff]  ;;  %v243_v37 = vmul.f32 %v1007_v32, %v858_v3  ;;  %v246_v41 = vmul.f32 %v1007_v32, %v868_v5  ;;  %p682_p13 = pnand %p681_p12, %p822_p4 }
  0x1b   : > { %v885_v8 = vld [vmem:[%s842_s30 + $0x48] sm:$0xff]  ;;  %v888_v9 = vld [vmem:[%s842_s30 + $0x40] sm:$0xff]  ;;  %v895_v10 = vld [vmem:[%s842_s30 + $0x58] sm:$0xff]  ;;  %v283_v38 = vadd.f32 %v1016_v35, %v244_v33  ;;  %v281_v39 = vadd.f32 %v1016_v35, %v242_v34  ;;  %v247_v40 = vmul.f32 %v1007_v32, %v865_v4  ;;  %v284_v46 = vadd.f32 %v1016_v35, %v245_v36 }
  0x1c   : > { %v898_v11 = vld [vmem:[%s842_s30 + $0x50] sm:$0xff]  ;;  %v905_v12 = vld [vmem:[%s842_s30 + $0x68] sm:$0xff]  ;;  %v908_v13 = vld [vmem:[%s842_s30 + $0x60] sm:$0xff]  ;;  %v282_v47 = vadd.f32 %v1016_v35, %v243_v37  ;;  %v249_v48 = vmul.f32 %v1007_v32, %v875_v6  ;;  %v248_v49 = vmul.f32 %v1007_v32, %v878_v7  ;;  %v285_v55 = vadd.f32 %v1016_v35, %v246_v41  ;;  %p683_p0 = pneg %p682_p13 }
  0x1d   : > { %351 = vrot.lane.b32.xlu1 %v855_v2, %s758_s4  ;;  %347 = vrot.lane.b32.xlu0 %v858_v3, %s758_s4  ;;  %v915_v14 = vld [vmem:[%s842_s30 + $0x78] sm:$0xff]  ;;  %v918_v15 = vld [vmem:[%s842_s30 + $0x70] sm:$0xff]  ;;  %v286_v54 = vadd.f32 %v1016_v35, %v247_v40  ;;  %v251_v56 = vmul.f32 %v1007_v32, %v885_v8  ;;  %v250_v57 = vmul.f32 %v1007_v32, %v888_v9 }
  0x1e   : > { %v925_v16 = vld [vmem:[%s842_s30 + $0x88] sm:$0xff]  ;;  %v928_v17 = vld [vmem:[%s842_s30 + $0x80] sm:$0xff]  ;;  %v935_v18 = vld [vmem:[%s842_s30 + $0x98] sm:$0xff]  ;;  %v288_v62 = vadd.f32 %v1016_v35, %v249_v48  ;;  %v287_v63 = vadd.f32 %v1016_v35, %v248_v49  ;;  %v253_v0 = vmul.f32 %v1007_v32, %v895_v10  ;;  %v252_v1 = vmul.f32 %v1007_v32, %v898_v11 }
  0x1f   : > { %v938_v19 = vld [vmem:[%s842_s30 + $0x90] sm:$0xff]  ;;  %v945_v20 = vld [vmem:[%s842_s30 + $0xa8] sm:$0xff]  ;;  %v948_v21 = vld [vmem:[%s842_s30 + $0xa0] sm:$0xff] }
  0x20   : > { %v955_v22 = vld [vmem:[%s842_s30 + $0xb8] sm:$0xff]  ;;  %v958_v23 = vld [vmem:[%s842_s30 + $0xb0] sm:$0xff]  ;;  %v965_v24 = vld [vmem:[%s842_s30 + $0xc8] sm:$0xff]  ;;  %v292_v36 = vadd.f32 %v1016_v35, %v253_v0  ;;  %v291_v37 = vadd.f32 %v1016_v35, %v252_v1 }
  0x21   : > { %355 = vrot.lane.b32.xlu1 %v865_v4, %s758_s4  ;;  %353 = vrot.lane.b32.xlu0 %v868_v5, %s758_s4  ;;  %v968_v25 = vld [vmem:[%s842_s30 + $0xc0] sm:$0xff]  ;;  %v975_v26 = vld [vmem:[%s842_s30 + $0xd8] sm:$0xff] }
  0x22   : > { %v978_v27 = vld [vmem:[%s842_s30 + $0xd0] sm:$0xff]  ;;  %v985_v28 = vld [vmem:[%s842_s30 + $0xe8] sm:$0xff]  ;;  %v988_v29 = vld [vmem:[%s842_s30 + $0xe0] sm:$0xff] }
  0x23   : > { %v995_v30 = vld [vmem:[%s842_s30 + $0xf8] sm:$0xff]  ;;  %v998_v31 = vld [vmem:[%s842_s30 + $0xf0] sm:$0xff]  ;;  %s686_s30 = scalar_lea.vmem %s685_s29, 8192 }
  0x24   : > { %p688_p2 = scmp.lt.s32.totalorder %s686_s30, %s680_s27 }
  0x25   : > { %359 = vrot.lane.b32.xlu1 %v875_v6, %s758_s4  ;;  %357 = vrot.lane.b32.xlu0 %v878_v7, %s758_s4  ;;  %v290_v6 = vadd.f32 %v1016_v35, %v251_v56  ;;  %v289_v7 = vadd.f32 %v1016_v35, %v250_v57 }
  0x26   : > { %p689_p3 = por %p688_p2, %p687_p1 }
  0x28   : > { %p690_p5 = pnand %p689_p3, %p683_p0 }
  0x29   : > { %363 = vrot.lane.b32.xlu1 %v885_v8, %s758_s4  ;;  %361 = vrot.lane.b32.xlu0 %v888_v9, %s758_s4  ;;  %v255_v8 = vmul.f32 %v1007_v32, %v905_v12  ;;  %v254_v9 = vmul.f32 %v1007_v32, %v908_v13 }
  0x2d   : > { %367 = vrot.lane.b32.xlu1 %v895_v10, %s758_s4  ;;  %365 = vrot.lane.b32.xlu0 %v898_v11, %s758_s4 }
  0x31   : > { %371 = vrot.lane.b32.xlu1 %v905_v12, %s758_s4  ;;  %369 = vrot.lane.b32.xlu0 %v908_v13, %s758_s4  ;;  %v257_v12 = vmul.f32 %v1007_v32, %v915_v14  ;;  %v256_v13 = vmul.f32 %v1007_v32, %v918_v15 }
  0x33   : > { %v296_v48 = vadd.f32 %v1016_v35, %v257_v12  ;;  %v295_v49 = vadd.f32 %v1016_v35, %v256_v13 }
  0x35   : > { %375 = vrot.lane.b32.xlu1 %v915_v14, %s758_s4  ;;  %373 = vrot.lane.b32.xlu0 %v918_v15, %s758_s4  ;;  %v259_v14 = vmul.f32 %v1007_v32, %v925_v16  ;;  %v258_v15 = vmul.f32 %v1007_v32, %v928_v17 }
  0x39   : > { %379 = vrot.lane.b32.xlu1 %v925_v16, %s758_s4  ;;  %377 = vrot.lane.b32.xlu0 %v928_v17, %s758_s4  ;;  %v261_v16 = vmul.f32 %v1007_v32, %v935_v18  ;;  %v260_v17 = vmul.f32 %v1007_v32, %v938_v19 }
  0x3d   : > { %383 = vrot.lane.b32.xlu1 %v935_v18, %s758_s4  ;;  %381 = vrot.lane.b32.xlu0 %v938_v19, %s758_s4  ;;  %v263_v18 = vmul.f32 %v1007_v32, %v945_v20  ;;  %v262_v19 = vmul.f32 %v1007_v32, %v948_v21 }
  0x41   : > { %387 = vrot.lane.b32.xlu1 %v945_v20, %s758_s4  ;;  %385 = vrot.lane.b32.xlu0 %v948_v21, %s758_s4  ;;  %v265_v20 = vmul.f32 %v1007_v32, %v955_v22  ;;  %v264_v21 = vmul.f32 %v1007_v32, %v958_v23 }
  0x45   : > { %391 = vrot.lane.b32.xlu1 %v955_v22, %s758_s4  ;;  %389 = vrot.lane.b32.xlu0 %v958_v23, %s758_s4  ;;  %v267_v22 = vmul.f32 %v1007_v32, %v965_v24  ;;  %v266_v23 = vmul.f32 %v1007_v32, %v968_v25 }
  0x49   : > { %395 = vrot.lane.b32.xlu1 %v965_v24, %s758_s4  ;;  %393 = vrot.lane.b32.xlu0 %v968_v25, %s758_s4  ;;  %v269_v24 = vmul.f32 %v1007_v32, %v975_v26  ;;  %v268_v25 = vmul.f32 %v1007_v32, %v978_v27 }
  0x4d   : > { %399 = vrot.lane.b32.xlu1 %v975_v26, %s758_s4  ;;  %397 = vrot.lane.b32.xlu0 %v978_v27, %s758_s4  ;;  %v271_v26 = vmul.f32 %v1007_v32, %v985_v28  ;;  %v270_v27 = vmul.f32 %v1007_v32, %v988_v29 }
  0x51   : > { %403 = vrot.lane.b32.xlu1 %v985_v28, %s758_s4  ;;  %401 = vrot.lane.b32.xlu0 %v988_v29, %s758_s4  ;;  %v273_v28 = vmul.f32 %v1007_v32, %v995_v30  ;;  %v272_v29 = vmul.f32 %v1007_v32, %v998_v31 }
  0x55   : > { %407 = vrot.lane.b32.xlu1 %v995_v30, %s758_s4  ;;  %405 = vrot.lane.b32.xlu0 %v998_v31, %s758_s4 }
  0x8b   : > { %v350_v42 = vpop.permute.xlu1 %349  ;;  %v346_v43 = vpop.permute.xlu0 %345 }
  0x8c   : > { %v443_v44 = vadd.f32 %v350_v42, %v283_v38  ;;  %v441_v45 = vadd.f32 %v346_v43, %v281_v39  ;;  %v294_v42 = vadd.f32 %v1016_v35, %v255_v8  ;;  %v293_v43 = vadd.f32 %v1016_v35, %v254_v9 }
  0x8d   : > { %v304_v8 = vadd.f32 %v1016_v35, %v265_v20  ;;  %v303_v9 = vadd.f32 %v1016_v35, %v264_v21 }
  0x8e   : > { %476 = vst.msk [vmem:[%s1033_s11 + $0x10] sm:$0xff] %vm473_vm0, %v443_v44  ;;  %474 = vst.msk [vmem:[%s1033_s11] sm:$0xff] %vm473_vm0, %v441_v45 }
  0x8f   : > { %v352_v50 = vpop.permute.xlu1 %351  ;;  %v348_v51 = vpop.permute.xlu0 %347 }
  0x90   : > { %v444_v52 = vadd.f32 %v352_v50, %v284_v46  ;;  %v442_v53 = vadd.f32 %v348_v51, %v282_v47 }
  0x92   : > { %477 = vst.msk [vmem:[%s1033_s11 + $0x18] sm:$0xff] %vm473_vm0, %v444_v52  ;;  %475 = vst.msk [vmem:[%s1033_s11 + $0x8] sm:$0xff] %vm473_vm0, %v442_v53 }
  0x93   : > { %v356_v58 = vpop.permute.xlu1 %355  ;;  %v354_v59 = vpop.permute.xlu0 %353 }
  0x94   : > { %v446_v60 = vadd.f32 %v356_v58, %v286_v54  ;;  %v445_v61 = vadd.f32 %v354_v59, %v285_v55  ;;  %v298_v54 = vadd.f32 %v1016_v35, %v259_v14  ;;  %v297_v55 = vadd.f32 %v1016_v35, %v258_v15 }
  0x96   : > { %479 = vst.msk [vmem:[%s1033_s11 + $0x28] sm:$0xff] %vm473_vm0, %v446_v60  ;;  %478 = vst.msk [vmem:[%s1033_s11 + $0x20] sm:$0xff] %vm473_vm0, %v445_v61  ;;  %v300_v60 = vadd.f32 %v1016_v35, %v261_v16  ;;  %v299_v61 = vadd.f32 %v1016_v35, %v260_v17 }
  0x97   : > { %v360_v2 = vpop.permute.xlu1 %359  ;;  %v358_v3 = vpop.permute.xlu0 %357 }
  0x98   : > { %v448_v4 = vadd.f32 %v360_v2, %v288_v62  ;;  %v447_v5 = vadd.f32 %v358_v3, %v287_v63  ;;  %v302_v2 = vadd.f32 %v1016_v35, %v263_v18  ;;  %v301_v3 = vadd.f32 %v1016_v35, %v262_v19 }
  0x9a   : > { %481 = vst.msk [vmem:[%s1033_s11 + $0x38] sm:$0xff] %vm473_vm0, %v448_v4  ;;  %480 = vst.msk [vmem:[%s1033_s11 + $0x30] sm:$0xff] %vm473_vm0, %v447_v5 }
  0x9b   : > { %v364_v10 = vpop.permute.xlu1 %363  ;;  %v362_v11 = vpop.permute.xlu0 %361 }
  0x9c   : > { %v450_v33 = vadd.f32 %v364_v10, %v290_v6  ;;  %v449_v34 = vadd.f32 %v362_v11, %v289_v7 }
  0x9e   : > { %483 = vst.msk [vmem:[%s1033_s11 + $0x48] sm:$0xff] %vm473_vm0, %v450_v33  ;;  %482 = vst.msk [vmem:[%s1033_s11 + $0x40] sm:$0xff] %vm473_vm0, %v449_v34 }
  0x9f   : > { %v368_v38 = vpop.permute.xlu1 %367  ;;  %v366_v39 = vpop.permute.xlu0 %365 }
  0xa0   : > { %v452_v40 = vadd.f32 %v368_v38, %v292_v36  ;;  %v451_v41 = vadd.f32 %v366_v39, %v291_v37  ;;  %v306_v36 = vadd.f32 %v1016_v35, %v267_v22  ;;  %v305_v37 = vadd.f32 %v1016_v35, %v266_v23 }
  0xa2   : > { %485 = vst.msk [vmem:[%s1033_s11 + $0x58] sm:$0xff] %vm473_vm0, %v452_v40  ;;  %484 = vst.msk [vmem:[%s1033_s11 + $0x50] sm:$0xff] %vm473_vm0, %v451_v41  ;;  %v308_v40 = vadd.f32 %v1016_v35, %v269_v24  ;;  %v307_v41 = vadd.f32 %v1016_v35, %v268_v25 }
  0xa3   : > { %v372_v44 = vpop.permute.xlu1 %371  ;;  %v370_v45 = vpop.permute.xlu0 %369 }
  0xa4   : > { %v454_v46 = vadd.f32 %v372_v44, %v294_v42  ;;  %v453_v47 = vadd.f32 %v370_v45, %v293_v43  ;;  %v310_v44 = vadd.f32 %v1016_v35, %v271_v26  ;;  %v309_v45 = vadd.f32 %v1016_v35, %v270_v27 }
  0xa6   : > { %487 = vst.msk [vmem:[%s1033_s11 + $0x68] sm:$0xff] %vm473_vm0, %v454_v46  ;;  %486 = vst.msk [vmem:[%s1033_s11 + $0x60] sm:$0xff] %vm473_vm0, %v453_v47  ;;  %v312_v47 = vadd.f32 %v1016_v35, %v273_v28 }
  0xa7   : > { %v376_v50 = vpop.permute.xlu1 %375  ;;  %v374_v51 = vpop.permute.xlu0 %373 }
  0xa8   : > { %v456_v52 = vadd.f32 %v376_v50, %v296_v48  ;;  %v455_v53 = vadd.f32 %v374_v51, %v295_v49  ;;  %v311_v48 = vadd.f32 %v1016_v35, %v272_v29 }
  0xaa   : > { %489 = vst.msk [vmem:[%s1033_s11 + $0x78] sm:$0xff] %vm473_vm0, %v456_v52  ;;  %488 = vst.msk [vmem:[%s1033_s11 + $0x70] sm:$0xff] %vm473_vm0, %v455_v53 }
  0xab   : > { %v380_v56 = vpop.permute.xlu1 %379  ;;  %v378_v57 = vpop.permute.xlu0 %377 }
  0xac   : > { %v458_v58 = vadd.f32 %v380_v56, %v298_v54  ;;  %v457_v59 = vadd.f32 %v378_v57, %v297_v55 }
  0xae   : > { %491 = vst.msk [vmem:[%s1033_s11 + $0x88] sm:$0xff] %vm473_vm0, %v458_v58  ;;  %490 = vst.msk [vmem:[%s1033_s11 + $0x80] sm:$0xff] %vm473_vm0, %v457_v59 }
  0xaf   : > { %v384_v62 = vpop.permute.xlu1 %383  ;;  %v382_v63 = vpop.permute.xlu0 %381 }
  0xb0   : > { %v460_v0 = vadd.f32 %v384_v62, %v300_v60  ;;  %v459_v1 = vadd.f32 %v382_v63, %v299_v61 }
  0xb2   : > { %493 = vst.msk [vmem:[%s1033_s11 + $0x98] sm:$0xff] %vm473_vm0, %v460_v0  ;;  %492 = vst.msk [vmem:[%s1033_s11 + $0x90] sm:$0xff] %vm473_vm0, %v459_v1 }
  0xb3   : > { %v388_v4 = vpop.permute.xlu1 %387  ;;  %v386_v5 = vpop.permute.xlu0 %385 }
  0xb4   : > { %v462_v6 = vadd.f32 %v388_v4, %v302_v2  ;;  %v461_v7 = vadd.f32 %v386_v5, %v301_v3 }
  0xb6   : > { %495 = vst.msk [vmem:[%s1033_s11 + $0xa8] sm:$0xff] %vm473_vm0, %v462_v6  ;;  %494 = vst.msk [vmem:[%s1033_s11 + $0xa0] sm:$0xff] %vm473_vm0, %v461_v7 }
  0xb7   : > { %v392_v10 = vpop.permute.xlu1 %391  ;;  %v390_v11 = vpop.permute.xlu0 %389 }
  0xb8   : > { %v464_v33 = vadd.f32 %v392_v10, %v304_v8  ;;  %v463_v34 = vadd.f32 %v390_v11, %v303_v9 }
  0xba   : > { %497 = vst.msk [vmem:[%s1033_s11 + $0xb8] sm:$0xff] %vm473_vm0, %v464_v33  ;;  %496 = vst.msk [vmem:[%s1033_s11 + $0xb0] sm:$0xff] %vm473_vm0, %v463_v34 }
  0xbb   : > { %v396_v12 = vpop.permute.xlu1 %395  ;;  %v394_v13 = vpop.permute.xlu0 %393 }
  0xbc   : > { %v466_v38 = vadd.f32 %v396_v12, %v306_v36  ;;  %v465_v39 = vadd.f32 %v394_v13, %v305_v37 }
  0xbe   : > { %499 = vst.msk [vmem:[%s1033_s11 + $0xc8] sm:$0xff] %vm473_vm0, %v466_v38  ;;  %498 = vst.msk [vmem:[%s1033_s11 + $0xc0] sm:$0xff] %vm473_vm0, %v465_v39 }
  0xbf   : > { %v400_v42 = vpop.permute.xlu1 %399  ;;  %v398_v43 = vpop.permute.xlu0 %397 }
  0xc0   : > { %v468_v14 = vadd.f32 %v400_v42, %v308_v40  ;;  %v467_v15 = vadd.f32 %v398_v43, %v307_v41 }
  0xc2   : > { %501 = vst.msk [vmem:[%s1033_s11 + $0xd8] sm:$0xff] %vm473_vm0, %v468_v14  ;;  %500 = vst.msk [vmem:[%s1033_s11 + $0xd0] sm:$0xff] %vm473_vm0, %v467_v15 }
  0xc3   : > { %v404_v30 = vpop.permute.xlu1 %403  ;;  %v402_v46 = vpop.permute.xlu0 %401 }
  0xc4   : > { %v470_v31 = vadd.f32 %v404_v30, %v310_v44  ;;  %v469_v32 = vadd.f32 %v402_v46, %v309_v45 }
  0xc6   : > { %503 = vst.msk [vmem:[%s1033_s11 + $0xe8] sm:$0xff] %vm473_vm0, %v470_v31  ;;  %502 = vst.msk [vmem:[%s1033_s11 + $0xe0] sm:$0xff] %vm473_vm0, %v469_v32 }
  0xc7   : > { %v408_v49 = vpop.permute.xlu1 %407  ;;  %v406_v16 = vpop.permute.xlu0 %405 }
  0xc8   : > { %v472_v35 = vadd.f32 %v408_v49, %v312_v47  ;;  %v471_v17 = vadd.f32 %v406_v16, %v311_v48 }
  0xca   : > { %505 = vst.msk [vmem:[%s1033_s11 + $0xf8] sm:$0xff] %vm473_vm0, %v472_v35  ;;  %504 = vst.msk [vmem:[%s1033_s11 + $0xf0] sm:$0xff] %vm473_vm0, %v471_v17 }
  0xcb   : > { %693 = shalt.err (!%p690_p5)
}
  0xcc   : > { %s694_s4 = scalar_lea.hbm %s1180_s26, 4096  ;;  %s698_s7 = scalar_lea.hbm %s1238_s3, 8192 }
  0xcd   : > { %p695_p6 = scmp.ne.s32.totalorder %s1180_s26, %s694_s4  ;;  %p699_p10 = scmp.lt.s32.totalorder %s1180_s26, %s1238_s3 }
  0xce   : > { %p700_p11 = scmp.lt.s32.totalorder %s698_s7, %s694_s4 }
  0xcf   : > { %p696_p7 = pnand %p695_p6, %p822_p4 }
  0xd0   : > { %p701_p12 = por %p700_p11, %p699_p10 }
  0xd1   : > { %p697_p9 = pneg %p696_p7 }
  0xd3   : > { %p702_p13 = pnand %p701_p12, %p697_p9 }
  0xd5   : > { %705 = shalt.err (!%p702_p13)
}
  0xd6   : > { %s760_s10 = smov 128   ;;  %s761_s11 = smov 8  }
  0xd7   : > { %622 = dma.vmem_to_hbm [thread:$0]  (%p822_p4), %s1182_s19, 4096, %s1180_s26, %s1190_s15, %s760_s10, %s760_s10, %s761_s11  }
  0xd8 PF: > { %p628_p0 = scmp.ge.s32.totalorder %s756_s17, 2  ;;  %s538_s18 = sand.u32 1, %s736_s12  }
  0xd9   : > { %s539_s21 = scalar_lea.sflag [#allocation3], %s538_s18 }
  0xda   : > { %p625_p1 = pnand %p628_p0, %p829_p8 }
  0xdc   : > { %p626_p2 = pneg %p625_p1 }
  0xde   : > { %731 = dma.done.wait (%p626_p2), %s539_s21, 4096  }
  0xdf   : > { %733 = vsyncadd (%p626_p2), %s539_s21, 4294963200  ;;  %s16_s17 = sadd.s32 1, %s756_s17   ;;  %s1241_s12 = smov %s740_s13 }
  0xe0   : > { %p13_p3 = scmp.ge.s32.totalorder %s16_s17, 4   ;;  %s1242_s13 = smov %s744_s14 }
  0xe1   : > { %s1243_s14 = smov %s835_s25  ;;  %s1244_s15 = smov %s752_s16 }
  0xe2   : > { %s1245_s16 = smov %s1247_s20  ;;  %15 = sbr.rel (!%p13_p3) target bundleno = 4 (0x4), region = 67 }
  0xe7   :  { %544 = vsyncpa [#allocation3], 1 }
  0xe8   :  { %546 = vsyncpa [#allocation3 + $0x1], 1 }

// kernel: residual_block_pallas.3
= control target key start
LH: loop header
LB: loop body
LE: loop exit
PB: predicated region body
PF: predicated region fallthrough
CT: control target
= control target key end

     0   :  { %s4075_s12 = smov 0   ;;  %s4077_s13 = smov 0   ;;  %s5088_s0 = inlined_call_operand.vmem [shape: f32[2,18,18,4], index: 0, kind: input, shape index: {}]   ;;  %s5089_s1 = inlined_call_operand.vmem [shape: bf16[36,128], index: 1, kind: input, shape index: {}]   ;;  %s5090_s2 = inlined_call_operand.vmem [shape: f32[2,16,16,128], index: 2, kind: output, shape index: {0}]   ;;  %s5091_s3 = inlined_call_operand.vmem [shape: f32[2,8,128], index: 3, kind: output, shape index: {1}]  }
   0x1   :  { %s4079_s14 = smov 0  }
   0x2 LB: > { %s26_s15 = sadd.s32 1, %s4040_s13  ;;  %p3093_p0 = scmp.ge.s32.totalorder %s4044_s14, 1  ;;  %s4044_s14 = sphi %s4079_s14, %s14_s14   ;;  %s4040_s13 = sphi %s4077_s13, %s5093_s13   ;;  %s4036_s12 = sphi %s4075_s12, %s5092_s12  }
   0x3   : > { %p28_p1 = scmp.ge.s32.totalorder %s26_s15, 2  ;;  %p154_p2 = scmp.lt.s32.totalorder %s4044_s14, 3 }
   0x5   : > { %s5095_s15 = smov (%p28_p1, %s26_s15), 0  ;;  %p155_p3 = pnand %p3093_p0, %p154_p2 }
   0x6   : > { %p187_p4 = scmp.lt.s32.totalorder (!%p155_p3), %s4036_s12, 1  ;;  %s4046_s20 = smov (!%p155_p3), 4  }
   0x7   : > { %158 = sbr.rel (%p155_p3) target bundleno = 872 (0x368), region = 28  ;;  %s4047_s21 = smov (!%p155_p3), 8  }
   0x8   : > { %s4048_s22 = smov (!%p155_p3), 12   ;;  %s4049_s23 = smov (!%p155_p3), 16  }
   0x9   : > { %s4050_s24 = smov (!%p155_p3), 20   ;;  %s4051_s25 = smov (!%p155_p3), 24  }
   0xa   : > { %s4052_s28 = smov (!%p155_p3), 28   ;;  %s4053_s6 = smov (!%p155_p3), 32  }
   0xc   : > { %s5097_s12 = smov (!%p187_p4, %s4036_s12), 1  ;;  %vm371_vm0 = vcmask 27648   ;;  %vm628_vm1 = vcmask 60448   ;;  %vm885_vm2 = vcmask 93248   ;;  %vm2647_vm3 = vcmask 1041408  }
   0xd   : > { %s3969_s16 = smul.u32 432, %s5097_s12  ;;  %vm1145_vm4 = vcmask 126048   ;;  %vm1402_vm5 = vcmask 158848   ;;  %vm1659_vm6 = vcmask 191648   ;;  %vm1919_vm7 = vcmask 224448   ;;  %s3615_s7 = sshll.u32 %s5097_s12, 8 }
   0xe   : > { %vm2176_vm8 = vcmask 257248   ;;  %vm2433_vm9 = vcmask 290048   ;;  %vm2598_vm10 = vcmask 293888   ;;  %s4974_s10 = scalar_lea.vmem %s5090_s2, %s3615_s7  ;;  %s3097_s11 = sshll.u32 %s5097_s12, 3 }
   0xf   : > { %s4099_s19 = scalar_lea.vmem %s5088_s0, %s3969_s16  ;;  %s5060_s18 = scalar_lea.vmem %s5091_s3, %s3097_s11 }
  0x10   : > { %v406_v0 = vld [vmem:[%s4099_s19 + $0x19] sm:$0xff]  ;;  %v404_v1 = vld [vmem:[%s4099_s19 + $0x1] sm:$0xff]  ;;  %v405_v5 = vld [vmem:[%s4099_s19 + $0x9] sm:$0xff] }
  0x11   : > { %v407_v2 = vld [vmem:[%s4099_s19 + $0x21] sm:$0xff]  ;;  %v4104_v3 = vpack.c.bf16 %v406_v0, %v406_v0  ;;  %v3648_v4 = vpack.c.bf16 %v404_v1, %v404_v1  ;;  %v3649_v7 = vpack.c.bf16 %v405_v5, %v405_v5  ;;  %v409_v8 = vld [vmem:[%s4099_s19 + $0x39] sm:$0xff]  ;;  %v408_v9 = vld [vmem:[%s4099_s19 + $0x31] sm:$0xff] }
  0x12   : > { %v4110_v6 = vpack.c.bf16 %v407_v2, %v407_v2  ;;  %v4117_v10 = vpack.c.bf16 %v409_v8, %v409_v8  ;;  %v4119_v11 = vpack.c.bf16 %v408_v9, %v408_v9  ;;  %v411_v12 = vld [vmem:[%s4099_s19 + $0x51] sm:$0xff]  ;;  %v410_v13 = vld [vmem:[%s4099_s19 + $0x49] sm:$0xff]  ;;  %v412_v17 = vld [vmem:[%s4099_s19 + $0x61] sm:$0xff] }
  0x13   : > { %536 = vrot.lane.b32.xlu1 %v4104_v3, %s4046_s20  ;;  %532 = vrot.lane.b32.xlu0 %v3648_v4, %s4046_s20  ;;  %v4127_v14 = vpack.c.bf16 %v411_v12, %v411_v12  ;;  %v4129_v15 = vpack.c.bf16 %v410_v13, %v410_v13  ;;  %v413_v16 = vld [vmem:[%s4099_s19 + $0x69] sm:$0xff]  ;;  %v4139_v19 = vpack.c.bf16 %v412_v17, %v412_v17  ;;  %v415_v20 = vld [vmem:[%s4099_s19 + $0x81] sm:$0xff] }
  0x14   : > { %v4137_v18 = vpack.c.bf16 %v413_v16, %v413_v16  ;;  %v414_v21 = vld [vmem:[%s4099_s19 + $0x79] sm:$0xff]  ;;  %v3659_v22 = vpack.c.bf16 %v415_v20, %v415_v20  ;;  %v416_v25 = vld [vmem:[%s4099_s19 + $0x91] sm:$0xff]  ;;  %v212_v32 = vld [vmem:[%s4099_s19 + $0x8] sm:$0xff] }
  0x15   : > { %v3658_v23 = vpack.c.bf16 %v414_v21, %v414_v21  ;;  %v417_v24 = vld [vmem:[%s4099_s19 + $0x99] sm:$0xff]  ;;  %v3660_v33 = vpack.c.bf16 %v416_v25, %v416_v25  ;;  %v419_v34 = vld [vmem:[%s4099_s19 + $0xb1] sm:$0xff]  ;;  %v418_v35 = vld [vmem:[%s4099_s19 + $0xa9] sm:$0xff]  ;;  %v3617_v37 = vpack.c.bf16 %v212_v32, %v212_v32 }
  0x16   : > { %v213_v26 = vld [vmem:[%s4099_s19 + $0x18] sm:$0xff]  ;;  %v211_v27 = vld [vmem:[%s4099_s19] sm:$0xff]  ;;  %v3661_v28 = vpack.c.bf16 %v417_v24, %v417_v24  ;;  %v4162_v38 = vld [vmem:[%s4099_s19 + $0xc9] sm:$0xff]  ;;  %v3663_v46 = vpack.c.bf16 %v419_v34, %v419_v34  ;;  %v3662_v47 = vpack.c.bf16 %v418_v35, %v418_v35 }
  0x17   : > { %538 = vrot.lane.b32.xlu1 %v4110_v6, %s4046_s20  ;;  %534 = vrot.lane.b32.xlu0 %v3649_v7, %s4046_s20  ;;  %v4151_v29 = vpack.c.bf16 %v213_v26, %v213_v26  ;;  %v3616_v30 = vpack.c.bf16 %v211_v27, %v211_v27  ;;  %v214_v31 = vld [vmem:[%s4099_s19 + $0x20] sm:$0xff]  ;;  %v216_v39 = vld [vmem:[%s4099_s19 + $0x38] sm:$0xff]  ;;  %373 = vst.msk [vmem:[#allocation2 + $0x4] sm:$0xf] %vm371_vm0, %v3617_v37 }
  0x18   : > { %v4159_v36 = vpack.c.bf16 %v214_v31, %v214_v31  ;;  %v215_v40 = vld [vmem:[%s4099_s19 + $0x30] sm:$0xff]  ;;  %v4170_v41 = vld [vmem:[%s4099_s19 + $0xc1] sm:$0xff]  ;;  %v4175_v42 = vpack.c.bf16 %v216_v39, %v216_v39  ;;  %v221_v56 = vld [vmem:[%s4099_s19 + $0x78] sm:$0xff]  ;;  %v3665_v63 = vpack.c.bf16 %v4162_v38, %v4162_v38 }
  0x19   : > { %374 = vst.msk [vmem:[#allocation2 + $0x8] sm:$0xf] %vm371_vm0, %v4151_v29  ;;  %372 = vst.msk [vmem:[#allocation2] sm:$0xf] %vm371_vm0, %v3616_v30  ;;  %v4177_v43 = vpack.c.bf16 %v215_v40, %v215_v40  ;;  %v218_v44 = vld [vmem:[%s4099_s19 + $0x50] sm:$0xff]  ;;  %v217_v45 = vld [vmem:[%s4099_s19 + $0x48] sm:$0xff]  ;;  %v4206_v58 = vpack.c.bf16 %v221_v56, %v221_v56  ;;  %v3664_v9 = vpack.c.bf16 %v4170_v41, %v4170_v41 }
  0x1a   : > { %375 = vst.msk [vmem:[#allocation2 + $0xc] sm:$0xf] %vm371_vm0, %v4159_v36  ;;  %v4181_v48 = vpack.c.bf16 %v218_v44, %v218_v44  ;;  %v4183_v49 = vpack.c.bf16 %v217_v45, %v217_v45  ;;  %v220_v50 = vld [vmem:[%s4099_s19 + $0x68] sm:$0xff]  ;;  %v219_v51 = vld [vmem:[%s4099_s19 + $0x60] sm:$0xff]  ;;  %377 = vst.msk [vmem:[#allocation2 + $0x14] sm:$0xf] %vm371_vm0, %v4175_v42 }
  0x1b   : > { %542 = vrot.lane.b32.xlu1 %v4117_v10, %s4046_s20  ;;  %540 = vrot.lane.b32.xlu0 %v4119_v11, %s4046_s20  ;;  %v222_v52 = vld [vmem:[%s4099_s19 + $0x80] sm:$0xff]  ;;  %376 = vst.msk [vmem:[#allocation2 + $0x10] sm:$0xf] %vm371_vm0, %v4177_v43  ;;  %v4194_v53 = vpack.c.bf16 %v220_v50, %v220_v50  ;;  %v4196_v54 = vpack.c.bf16 %v219_v51, %v219_v51  ;;  %v224_v57 = vld [vmem:[%s4099_s19 + $0x98] sm:$0xff]  ;;  %382 = vst.msk [vmem:[#allocation2 + $0x28] sm:$0xf] %vm371_vm0, %v4206_v58 }
  0x1c   : > { %v4198_v55 = vpack.c.bf16 %v222_v52, %v222_v52  ;;  %379 = vst.msk [vmem:[#allocation2 + $0x1c] sm:$0xf] %vm371_vm0, %v4181_v48  ;;  %378 = vst.msk [vmem:[#allocation2 + $0x18] sm:$0xf] %vm371_vm0, %v4183_v49  ;;  %v4208_v59 = vpack.c.bf16 %v224_v57, %v224_v57  ;;  %v223_v60 = vld [vmem:[%s4099_s19 + $0x90] sm:$0xff]  ;;  %v225_v62 = vld [vmem:[%s4099_s19 + $0xa8] sm:$0xff] }
  0x1d   : > { %v226_v61 = vld [vmem:[%s4099_s19 + $0xb0] sm:$0xff]  ;;  %v423_v0 = vld [vmem:[%s4099_s19 + $0xe1] sm:$0xff]  ;;  %381 = vst.msk [vmem:[#allocation2 + $0x24] sm:$0xf] %vm371_vm0, %v4194_v53  ;;  %380 = vst.msk [vmem:[#allocation2 + $0x20] sm:$0xf] %vm371_vm0, %v4196_v54  ;;  %v4222_v1 = vpack.c.bf16 %v223_v60, %v223_v60  ;;  %v4226_v4 = vpack.c.bf16 %v225_v62, %v225_v62 }
  0x1e   : > { %383 = vst.msk [vmem:[#allocation2 + $0x2c] sm:$0xf] %vm371_vm0, %v4198_v55  ;;  %v4224_v2 = vpack.c.bf16 %v226_v61, %v226_v61  ;;  %v228_v5 = vld [vmem:[%s4099_s19 + $0xc8] sm:$0xff]  ;;  %v227_v7 = vld [vmem:[%s4099_s19 + $0xc0] sm:$0xff]  ;;  %385 = vst.msk [vmem:[#allocation2 + $0x34] sm:$0xf] %vm371_vm0, %v4208_v59  ;;  %v3667_v31 = vpack.c.bf16 %v423_v0, %v423_v0 }
  0x1f   : > { %546 = vrot.lane.b32.xlu1 %v4127_v14, %s4046_s20  ;;  %544 = vrot.lane.b32.xlu0 %v4129_v15, %s4046_s20  ;;  %v230_v8 = vld [vmem:[%s4099_s19 + $0xe0] sm:$0xff]  ;;  %v4237_v12 = vpack.c.bf16 %v228_v5, %v228_v5  ;;  %v4239_v13 = vpack.c.bf16 %v227_v7, %v227_v7  ;;  %v229_v17 = vld [vmem:[%s4099_s19 + $0xd8] sm:$0xff]  ;;  %384 = vst.msk [vmem:[#allocation2 + $0x30] sm:$0xf] %vm371_vm0, %v4222_v1  ;;  %386 = vst.msk [vmem:[#allocation2 + $0x38] sm:$0xf] %vm371_vm0, %v4226_v4 }
  0x20   : > { %v4241_v16 = vpack.c.bf16 %v230_v8, %v230_v8  ;;  %v232_v20 = vld [vmem:[%s4099_s19 + $0xf8] sm:$0xff]  ;;  %v231_v21 = vld [vmem:[%s4099_s19 + $0xf0] sm:$0xff]  ;;  %387 = vst.msk [vmem:[#allocation2 + $0x3c] sm:$0xf] %vm371_vm0, %v4224_v2  ;;  %v233_v26 = vld [vmem:[%s4099_s19 + $0x108] sm:$0xff] }
  0x21   : > { %v4258_v24 = vpack.c.bf16 %v231_v21, %v231_v21  ;;  %v234_v25 = vld [vmem:[%s4099_s19 + $0x110] sm:$0xff]  ;;  %v422_v27 = vld [vmem:[%s4099_s19 + $0xd9] sm:$0xff]  ;;  %389 = vst.msk [vmem:[#allocation2 + $0x44] sm:$0xf] %vm371_vm0, %v4237_v12  ;;  %388 = vst.msk [vmem:[#allocation2 + $0x40] sm:$0xf] %vm371_vm0, %v4239_v13  ;;  %v3638_v30 = vpack.c.bf16 %v233_v26, %v233_v26 }
  0x22   : > { %391 = vst.msk [vmem:[#allocation2 + $0x4c] sm:$0xf] %vm371_vm0, %v4241_v16  ;;  %v236_v32 = vld [vmem:[%s4099_s19 + $0x128] sm:$0xff]  ;;  %v3666_v34 = vpack.c.bf16 %v422_v27, %v422_v27  ;;  %v425_v35 = vld [vmem:[%s4099_s19 + $0xf9] sm:$0xff]  ;;  %v424_v39 = vld [vmem:[%s4099_s19 + $0xf1] sm:$0xff] }
  0x23   : > { %550 = vrot.lane.b32.xlu1 %v4137_v18, %s4046_s20  ;;  %548 = vrot.lane.b32.xlu0 %v4139_v19, %s4046_s20  ;;  %392 = vst.msk [vmem:[#allocation2 + $0x50] sm:$0xf] %vm371_vm0, %v4258_v24  ;;  %394 = vst.msk [vmem:[#allocation2 + $0x58] sm:$0xf] %vm371_vm0, %v3638_v30  ;;  %v3641_v37 = vpack.c.bf16 %v236_v32, %v236_v32  ;;  %v3669_v40 = vpack.c.bf16 %v425_v35, %v425_v35  ;;  %v238_v41 = vld [vmem:[%s4099_s19 + $0x140] sm:$0xff]  ;;  %v237_v44 = vld [vmem:[%s4099_s19 + $0x138] sm:$0xff] }
  0x24   : > { %v3668_v45 = vpack.c.bf16 %v424_v39, %v424_v39  ;;  %v3642_v50 = vpack.c.bf16 %v237_v44, %v237_v44  ;;  %v426_v51 = vld [vmem:[%s4099_s19 + $0x109] sm:$0xff]  ;;  %v240_v56 = vld [vmem:[%s4099_s19 + $0x158] sm:$0xff]  ;;  %v428_v0 = vld [vmem:[%s4099_s19 + $0x121] sm:$0xff] }
  0x25   : > { %397 = vst.msk [vmem:[#allocation2 + $0x64] sm:$0xf] %vm371_vm0, %v3641_v37  ;;  %v239_v57 = vld [vmem:[%s4099_s19 + $0x150] sm:$0xff]  ;;  %v3670_v60 = vpack.c.bf16 %v426_v51, %v426_v51  ;;  %v3645_v62 = vpack.c.bf16 %v240_v56, %v240_v56  ;;  %v241_v8 = vld [vmem:[%s4099_s19 + $0x168] sm:$0xff] }
  0x26   : > { %398 = vst.msk [vmem:[#allocation2 + $0x68] sm:$0xf] %vm371_vm0, %v3642_v50  ;;  %v429_v61 = vld [vmem:[%s4099_s19 + $0x129] sm:$0xff]  ;;  %v431_v21 = vld [vmem:[%s4099_s19 + $0x141] sm:$0xff]  ;;  %v432_v30 = vld [vmem:[%s4099_s19 + $0x151] sm:$0xff] }
  0x27   : > { %554 = vrot.lane.b32.xlu1 %v3659_v22, %s4046_s20  ;;  %552 = vrot.lane.b32.xlu0 %v3658_v23, %s4046_s20  ;;  %v4254_v22 = vpack.c.bf16 %v229_v17, %v229_v17  ;;  %v4256_v23 = vpack.c.bf16 %v232_v20, %v232_v20  ;;  %401 = vst.msk [vmem:[#allocation2 + $0x74] sm:$0xf] %vm371_vm0, %v3645_v62  ;;  %v242_v7 = vld [vmem:[%s4099_s19 + $0x170] sm:$0xff]  ;;  %v661_v39 = vld [vmem:[%s4099_s19 + $0x2] sm:$0xff] }
  0x28   : > { %v3673_v5 = vpack.c.bf16 %v429_v61, %v429_v61  ;;  %v3647_v17 = vpack.c.bf16 %v242_v7, %v242_v7  ;;  %v3646_v20 = vpack.c.bf16 %v241_v8, %v241_v8  ;;  %v3675_v26 = vpack.c.bf16 %v431_v21, %v431_v21  ;;  %v664_v44 = vld [vmem:[%s4099_s19 + $0x22] sm:$0xff]  ;;  %v666_v50 = vld [vmem:[%s4099_s19 + $0x3a] sm:$0xff]  ;;  %v665_v51 = vld [vmem:[%s4099_s19 + $0x32] sm:$0xff] }
  0x29   : > { %390 = vst.msk [vmem:[#allocation2 + $0x48] sm:$0xf] %vm371_vm0, %v4254_v22  ;;  %393 = vst.msk [vmem:[#allocation2 + $0x54] sm:$0xf] %vm371_vm0, %v4256_v23  ;;  %v3676_v32 = vpack.c.bf16 %v432_v30, %v432_v30  ;;  %v4339_v56 = vpack.c.bf16 %v665_v51, %v665_v51  ;;  %v672_v8 = vld [vmem:[%s4099_s19 + $0x82] sm:$0xff]  ;;  %v674_v21 = vld [vmem:[%s4099_s19 + $0x9a] sm:$0xff] }
  0x2a   : > { %403 = vst.msk [vmem:[#allocation2 + $0x7c] sm:$0xf] %vm371_vm0, %v3647_v17  ;;  %402 = vst.msk [vmem:[#allocation2 + $0x78] sm:$0xf] %vm371_vm0, %v3646_v20  ;;  %v4367_v17 = vpack.c.bf16 %v672_v8, %v672_v8  ;;  %v675_v30 = vld [vmem:[%s4099_s19 + $0xaa] sm:$0xff] }
  0x2b   : > { %558 = vrot.lane.b32.xlu1 %v3661_v28, %s4046_s20  ;;  %556 = vrot.lane.b32.xlu0 %v3660_v33, %s4046_s20  ;;  %v3639_v28 = vpack.c.bf16 %v234_v25, %v234_v25  ;;  %v235_v33 = vld [vmem:[%s4099_s19 + $0x120] sm:$0xff]  ;;  %v686_v8 = vld [vmem:[%s4099_s19 + $0x12a] sm:$0xff] }
  0x2c   : > { %v3640_v38 = vpack.c.bf16 %v235_v33, %v235_v33  ;;  %v430_v25 = vld [vmem:[%s4099_s19 + $0x139] sm:$0xff]  ;;  %v435_v33 = vld [vmem:[%s4099_s19 + $0x171] sm:$0xff] }
  0x2d   : > { %395 = vst.msk [vmem:[#allocation2 + $0x5c] sm:$0xf] %vm371_vm0, %v3639_v28  ;;  %v3674_v27 = vpack.c.bf16 %v430_v25, %v430_v25  ;;  %v433_v28 = vld [vmem:[%s4099_s19 + $0x159] sm:$0xff]  ;;  %v3679_v35 = vpack.c.bf16 %v435_v33, %v435_v33  ;;  %v678_v33 = vld [vmem:[%s4099_s19 + $0xca] sm:$0xff] }
  0x2e   : > { %396 = vst.msk [vmem:[#allocation2 + $0x60] sm:$0xf] %vm371_vm0, %v3640_v38  ;;  %v662_v38 = vld [vmem:[%s4099_s19 + $0xa] sm:$0xff]  ;;  %v673_v25 = vld [vmem:[%s4099_s19 + $0x92] sm:$0xff] }
  0x2f   : > { %562 = vrot.lane.b32.xlu1 %v3663_v46, %s4046_s20  ;;  %560 = vrot.lane.b32.xlu0 %v3662_v47, %s4046_s20  ;;  %v427_v46 = vld [vmem:[%s4099_s19 + $0x111] sm:$0xff]  ;;  %v3643_v47 = vpack.c.bf16 %v238_v41, %v238_v41  ;;  %v3680_v41 = vpack.c.bf16 %v661_v39, %v661_v39  ;;  %v679_v39 = vld [vmem:[%s4099_s19 + $0xda] sm:$0xff] }
  0x30   : > { %v3671_v52 = vpack.c.bf16 %v427_v46, %v427_v46  ;;  %v4327_v46 = vpack.c.bf16 %v664_v44, %v664_v44  ;;  %v682_v44 = vld [vmem:[%s4099_s19 + $0xfa] sm:$0xff] }
  0x31   : > { %399 = vst.msk [vmem:[#allocation2 + $0x6c] sm:$0xf] %vm371_vm0, %v3643_v47 }
  0x33   : > { %566 = vrot.lane.b32.xlu1 %v3665_v63, %s4046_s20  ;;  %564 = vrot.lane.b32.xlu0 %v3664_v9, %s4046_s20  ;;  %v3644_v63 = vpack.c.bf16 %v239_v57, %v239_v57  ;;  %v3672_v9 = vpack.c.bf16 %v428_v0, %v428_v0  ;;  %v668_v57 = vld [vmem:[%s4099_s19 + $0x52] sm:$0xff]  ;;  %v669_v0 = vld [vmem:[%s4099_s19 + $0x62] sm:$0xff] }
  0x34   : > { %v4347_v61 = vpack.c.bf16 %v668_v57, %v668_v57  ;;  %v4359_v7 = vpack.c.bf16 %v669_v0, %v669_v0  ;;  %v684_v57 = vld [vmem:[%s4099_s19 + $0x112] sm:$0xff] }
  0x35   : > { %400 = vst.msk [vmem:[#allocation2 + $0x70] sm:$0xf] %vm371_vm0, %v3644_v63  ;;  %v670_v63 = vld [vmem:[%s4099_s19 + $0x6a] sm:$0xff] }
  0x37   : > { %570 = vrot.lane.b32.xlu1 %v3667_v31, %s4046_s20  ;;  %568 = vrot.lane.b32.xlu0 %v3666_v34, %s4046_s20  ;;  %v3677_v31 = vpack.c.bf16 %v433_v28, %v433_v28  ;;  %v434_v34 = vld [vmem:[%s4099_s19 + $0x169] sm:$0xff]  ;;  %v676_v28 = vld [vmem:[%s4099_s19 + $0xb2] sm:$0xff] }
  0x38   : > { %v3678_v37 = vpack.c.bf16 %v434_v34, %v434_v34  ;;  %v677_v34 = vld [vmem:[%s4099_s19 + $0xc2] sm:$0xff] }
  0x3b   : > { %574 = vrot.lane.b32.xlu1 %v3669_v40, %s4046_s20  ;;  %572 = vrot.lane.b32.xlu0 %v3668_v45, %s4046_s20  ;;  %v3681_v40 = vpack.c.bf16 %v662_v38, %v662_v38  ;;  %v663_v45 = vld [vmem:[%s4099_s19 + $0x1a] sm:$0xff]  ;;  %v680_v38 = vld [vmem:[%s4099_s19 + $0xe2] sm:$0xff] }
  0x3c   : > { %v4329_v47 = vpack.c.bf16 %v663_v45, %v663_v45  ;;  %v681_v45 = vld [vmem:[%s4099_s19 + $0xf2] sm:$0xff] }
  0x3d   : > { %v3700_v51 = vpack.c.bf16 %v681_v45, %v681_v45 }
  0x3f   : > { %578 = vrot.lane.b32.xlu1 %v3671_v52, %s4046_s20  ;;  %576 = vrot.lane.b32.xlu0 %v3670_v60, %s4046_s20  ;;  %v4337_v52 = vpack.c.bf16 %v666_v50, %v666_v50  ;;  %v667_v60 = vld [vmem:[%s4099_s19 + $0x4a] sm:$0xff]  ;;  %v3701_v50 = vpack.c.bf16 %v682_v44, %v682_v44 }
  0x40   : > { %v4349_v62 = vpack.c.bf16 %v667_v60, %v667_v60  ;;  %v683_v60 = vld [vmem:[%s4099_s19 + $0x10a] sm:$0xff] }
  0x41   : > { %v3702_v0 = vpack.c.bf16 %v683_v60, %v683_v60 }
  0x43   : > { %582 = vrot.lane.b32.xlu1 %v3673_v5, %s4046_s20  ;;  %580 = vrot.lane.b32.xlu0 %v3672_v9, %s4046_s20  ;;  %v4357_v5 = vpack.c.bf16 %v670_v63, %v670_v63  ;;  %v671_v9 = vld [vmem:[%s4099_s19 + $0x7a] sm:$0xff]  ;;  %v3703_v63 = vpack.c.bf16 %v684_v57, %v684_v57 }
  0x44   : > { %v4369_v20 = vpack.c.bf16 %v671_v9, %v671_v9  ;;  %v685_v9 = vld [vmem:[%s4099_s19 + $0x122] sm:$0xff] }
  0x47   : > { %586 = vrot.lane.b32.xlu1 %v3675_v26, %s4046_s20  ;;  %584 = vrot.lane.b32.xlu0 %v3674_v27, %s4046_s20  ;;  %v4377_v26 = vpack.c.bf16 %v674_v21, %v674_v21  ;;  %v4379_v27 = vpack.c.bf16 %v673_v25, %v673_v25  ;;  %v3705_v21 = vpack.c.bf16 %v686_v8, %v686_v8 }
  0x48   : > { %v3704_v25 = vpack.c.bf16 %v685_v9, %v685_v9 }
  0x4b   : > { %590 = vrot.lane.b32.xlu1 %v3677_v31, %s4046_s20  ;;  %588 = vrot.lane.b32.xlu0 %v3676_v32, %s4046_s20  ;;  %v3695_v31 = vpack.c.bf16 %v676_v28, %v676_v28  ;;  %v3694_v32 = vpack.c.bf16 %v675_v30, %v675_v30  ;;  %v688_v28 = vld [vmem:[%s4099_s19 + $0x142] sm:$0xff]  ;;  %v687_v30 = vld [vmem:[%s4099_s19 + $0x13a] sm:$0xff] }
  0x4f   : > { %594 = vrot.lane.b32.xlu1 %v3679_v35, %s4046_s20  ;;  %592 = vrot.lane.b32.xlu0 %v3678_v37, %s4046_s20  ;;  %v3697_v35 = vpack.c.bf16 %v678_v33, %v678_v33  ;;  %v3696_v37 = vpack.c.bf16 %v677_v34, %v677_v34  ;;  %v690_v33 = vld [vmem:[%s4099_s19 + $0x15a] sm:$0xff]  ;;  %v689_v34 = vld [vmem:[%s4099_s19 + $0x152] sm:$0xff] }
  0x53   : > { %791 = vrot.lane.b32.xlu1 %v3681_v40, %s4047_s21  ;;  %789 = vrot.lane.b32.xlu0 %v3680_v41, %s4047_s21  ;;  %v3699_v40 = vpack.c.bf16 %v680_v38, %v680_v38  ;;  %v3698_v41 = vpack.c.bf16 %v679_v39, %v679_v39  ;;  %v3709_v38 = vpack.c.bf16 %v690_v33, %v690_v33 }
  0x54   : > { %v3708_v39 = vpack.c.bf16 %v689_v34, %v689_v34 }
  0x57   : > { %795 = vrot.lane.b32.xlu1 %v4327_v46, %s4047_s21  ;;  %793 = vrot.lane.b32.xlu0 %v4329_v47, %s4047_s21 }
  0x5b   : > { %799 = vrot.lane.b32.xlu1 %v4337_v52, %s4047_s21  ;;  %797 = vrot.lane.b32.xlu0 %v4339_v56, %s4047_s21 }
  0x5f   : > { %803 = vrot.lane.b32.xlu1 %v4347_v61, %s4047_s21  ;;  %801 = vrot.lane.b32.xlu0 %v4349_v62, %s4047_s21 }
  0x63   : > { %807 = vrot.lane.b32.xlu1 %v4357_v5, %s4047_s21  ;;  %805 = vrot.lane.b32.xlu0 %v4359_v7, %s4047_s21 }
  0x67   : > { %811 = vrot.lane.b32.xlu1 %v4367_v17, %s4047_s21  ;;  %809 = vrot.lane.b32.xlu0 %v4369_v20, %s4047_s21 }
  0x6b   : > { %815 = vrot.lane.b32.xlu1 %v4377_v26, %s4047_s21  ;;  %813 = vrot.lane.b32.xlu0 %v4379_v27, %s4047_s21 }
  0x6f   : > { %819 = vrot.lane.b32.xlu1 %v3695_v31, %s4047_s21  ;;  %817 = vrot.lane.b32.xlu0 %v3694_v32, %s4047_s21  ;;  %v3707_v31 = vpack.c.bf16 %v688_v28, %v688_v28  ;;  %v3706_v32 = vpack.c.bf16 %v687_v30, %v687_v30 }
  0x73   : > { %823 = vrot.lane.b32.xlu1 %v3697_v35, %s4047_s21  ;;  %821 = vrot.lane.b32.xlu0 %v3696_v37, %s4047_s21 }
  0x77   : > { %827 = vrot.lane.b32.xlu1 %v3699_v40, %s4047_s21  ;;  %825 = vrot.lane.b32.xlu0 %v3698_v41, %s4047_s21  ;;  %v692_v40 = vld [vmem:[%s4099_s19 + $0x172] sm:$0xff]  ;;  %v691_v41 = vld [vmem:[%s4099_s19 + $0x16a] sm:$0xff] }
  0x7b   : > { %831 = vrot.lane.b32.xlu1 %v3701_v50, %s4047_s21  ;;  %829 = vrot.lane.b32.xlu0 %v3700_v51, %s4047_s21  ;;  %v3711_v50 = vpack.c.bf16 %v692_v40, %v692_v40  ;;  %v3710_v51 = vpack.c.bf16 %v691_v41, %v691_v41 }
  0x7f   : > { %835 = vrot.lane.b32.xlu1 %v3703_v63, %s4047_s21  ;;  %833 = vrot.lane.b32.xlu0 %v3702_v0, %s4047_s21 }
  0x83   : > { %839 = vrot.lane.b32.xlu1 %v3705_v21, %s4047_s21  ;;  %837 = vrot.lane.b32.xlu0 %v3704_v25, %s4047_s21 }
  0x85   : > { %v537_v35 = vpop.permute.xlu1 %536  ;;  %v533_v37 = vpop.permute.xlu0 %532 }
  0x86   : > { %631 = vst.msk [vmem:[#allocation2 + $0x8] sm:$0xf] %vm628_vm1, %v537_v35  ;;  %629 = vst.msk [vmem:[#allocation2] sm:$0xf] %vm628_vm1, %v533_v37 }
  0x87   : > { %843 = vrot.lane.b32.xlu1 %v3707_v31, %s4047_s21  ;;  %841 = vrot.lane.b32.xlu0 %v3706_v32, %s4047_s21 }
  0x89   : > { %v539_v44 = vpop.permute.xlu1 %538  ;;  %v535_v45 = vpop.permute.xlu0 %534 }
  0x8a   : > { %632 = vst.msk [vmem:[#allocation2 + $0xc] sm:$0xf] %vm628_vm1, %v539_v44  ;;  %630 = vst.msk [vmem:[#allocation2 + $0x4] sm:$0xf] %vm628_vm1, %v535_v45 }
  0x8b   : > { %847 = vrot.lane.b32.xlu1 %v3709_v38, %s4047_s21  ;;  %845 = vrot.lane.b32.xlu0 %v3708_v39, %s4047_s21 }
  0x8d   : > { %v543_v57 = vpop.permute.xlu1 %542  ;;  %v541_v60 = vpop.permute.xlu0 %540 }
  0x8e   : > { %634 = vst.msk [vmem:[#allocation2 + $0x14] sm:$0xf] %vm628_vm1, %v543_v57  ;;  %633 = vst.msk [vmem:[#allocation2 + $0x10] sm:$0xf] %vm628_vm1, %v541_v60 }
  0x8f   : > { %851 = vrot.lane.b32.xlu1 %v3711_v50, %s4047_s21  ;;  %849 = vrot.lane.b32.xlu0 %v3710_v51, %s4047_s21 }
  0x91   : > { %v547_v63 = vpop.permute.xlu1 %546  ;;  %v545_v0 = vpop.permute.xlu0 %544 }
  0x92   : > { %636 = vst.msk [vmem:[#allocation2 + $0x1c] sm:$0xf] %vm628_vm1, %v547_v63  ;;  %635 = vst.msk [vmem:[#allocation2 + $0x18] sm:$0xf] %vm628_vm1, %v545_v0  ;;  %v4004_v0 = vld [vmem:[%s5089_s1 + $0x8] sm:$0xff]  }
  0x93   : > { %1051 = vrot.lane.b32.xlu1 %v4159_v36, %s4048_s22  ;;  %1049 = vrot.lane.b32.xlu0 %v4151_v29, %s4048_s22 }
  0x95   : > { %v551_v8 = vpop.permute.xlu1 %550  ;;  %v549_v9 = vpop.permute.xlu0 %548 }
  0x96   : > { %638 = vst.msk [vmem:[#allocation2 + $0x24] sm:$0xf] %vm628_vm1, %v551_v8  ;;  %637 = vst.msk [vmem:[#allocation2 + $0x20] sm:$0xf] %vm628_vm1, %v549_v9  ;;  %v4005_v8 = vld [vmem:[%s5089_s1] sm:$0xff]  }
  0x97   : > { %1055 = vrot.lane.b32.xlu1 %v4175_v42, %s4048_s22  ;;  %1053 = vrot.lane.b32.xlu0 %v4177_v43, %s4048_s22 }
  0x99   : > { %v555_v21 = vpop.permute.xlu1 %554  ;;  %v553_v25 = vpop.permute.xlu0 %552 }
  0x9a   : > { %640 = vst.msk [vmem:[#allocation2 + $0x2c] sm:$0xf] %vm628_vm1, %v555_v21  ;;  %639 = vst.msk [vmem:[#allocation2 + $0x28] sm:$0xf] %vm628_vm1, %v553_v25 }
  0x9b   : > { %1059 = vrot.lane.b32.xlu1 %v4181_v48, %s4048_s22  ;;  %1057 = vrot.lane.b32.xlu0 %v4183_v49, %s4048_s22 }
  0x9d   : > { %v559_v29 = vpop.permute.xlu1 %558  ;;  %v557_v36 = vpop.permute.xlu0 %556 }
  0x9e   : > { %642 = vst.msk [vmem:[#allocation2 + $0x34] sm:$0xf] %vm628_vm1, %v559_v29  ;;  %641 = vst.msk [vmem:[#allocation2 + $0x30] sm:$0xf] %vm628_vm1, %v557_v36 }
  0x9f   : > { %1063 = vrot.lane.b32.xlu1 %v4194_v53, %s4048_s22  ;;  %1061 = vrot.lane.b32.xlu0 %v4196_v54, %s4048_s22 }
  0xa1   : > { %v563_v28 = vpop.permute.xlu1 %562  ;;  %v561_v30 = vpop.permute.xlu0 %560 }
  0xa2   : > { %644 = vst.msk [vmem:[#allocation2 + $0x3c] sm:$0xf] %vm628_vm1, %v563_v28  ;;  %643 = vst.msk [vmem:[#allocation2 + $0x38] sm:$0xf] %vm628_vm1, %v561_v30 }
  0xa3   : > { %1067 = vrot.lane.b32.xlu1 %v4198_v55, %s4048_s22  ;;  %1065 = vrot.lane.b32.xlu0 %v4206_v58, %s4048_s22 }
  0xa5   : > { %v567_v31 = vpop.permute.xlu1 %566  ;;  %v565_v32 = vpop.permute.xlu0 %564 }
  0xa6   : > { %646 = vst.msk [vmem:[#allocation2 + $0x44] sm:$0xf] %vm628_vm1, %v567_v31  ;;  %645 = vst.msk [vmem:[#allocation2 + $0x40] sm:$0xf] %vm628_vm1, %v565_v32  ;;  %v3456_v31 = vld [vmem:[%s4099_s19 + $0x79] sm:$0xff] }
  0xa7   : > { %1071 = vrot.lane.b32.xlu1 %v4208_v59, %s4048_s22  ;;  %1069 = vrot.lane.b32.xlu0 %v4222_v1, %s4048_s22 }
  0xa9   : > { %v571_v33 = vpop.permute.xlu1 %570  ;;  %v569_v34 = vpop.permute.xlu0 %568 }
  0xaa   : > { %648 = vst.msk [vmem:[#allocation2 + $0x4c] sm:$0xf] %vm628_vm1, %v571_v33  ;;  %647 = vst.msk [vmem:[#allocation2 + $0x48] sm:$0xf] %vm628_vm1, %v569_v34  ;;  %v3846_v34 = vpack.c.bf16 %v3456_v31, %v3456_v31  ;;  %v3336_v31 = vld [vmem:[%s4099_s19 + $0xc2] sm:$0xff] }
  0xab   : > { %1075 = vrot.lane.b32.xlu1 %v4224_v2, %s4048_s22  ;;  %1073 = vrot.lane.b32.xlu0 %v4226_v4, %s4048_s22 }
  0xad   : > { %v575_v35 = vpop.permute.xlu1 %574  ;;  %v573_v37 = vpop.permute.xlu0 %572 }
  0xae   : > { %650 = vst.msk [vmem:[#allocation2 + $0x54] sm:$0xf] %vm628_vm1, %v575_v35  ;;  %649 = vst.msk [vmem:[#allocation2 + $0x50] sm:$0xf] %vm628_vm1, %v573_v37 }
  0xaf   : > { %1079 = vrot.lane.b32.xlu1 %v4237_v12, %s4048_s22  ;;  %1077 = vrot.lane.b32.xlu0 %v4239_v13, %s4048_s22 }
  0xb1   : > { %v579_v38 = vpop.permute.xlu1 %578  ;;  %v577_v39 = vpop.permute.xlu0 %576 }
  0xb2   : > { %652 = vst.msk [vmem:[#allocation2 + $0x5c] sm:$0xf] %vm628_vm1, %v579_v38  ;;  %651 = vst.msk [vmem:[#allocation2 + $0x58] sm:$0xf] %vm628_vm1, %v577_v39 }
  0xb3   : > { %1306 = vrot.lane.b32.xlu1 %v4104_v3, %s4049_s23  ;;  %1081 = vrot.lane.b32.xlu0 %v4254_v22, %s4048_s22 }
  0xb5   : > { %v583_v40 = vpop.permute.xlu1 %582  ;;  %v581_v41 = vpop.permute.xlu0 %580 }
  0xb6   : > { %654 = vst.msk [vmem:[#allocation2 + $0x64] sm:$0xf] %vm628_vm1, %v583_v40  ;;  %653 = vst.msk [vmem:[#allocation2 + $0x60] sm:$0xf] %vm628_vm1, %v581_v41 }
  0xb7   : > { %1310 = vrot.lane.b32.xlu1 %v4119_v11, %s4049_s23  ;;  %1308 = vrot.lane.b32.xlu0 %v4110_v6, %s4049_s23 }
  0xb9   : > { %v587_v44 = vpop.permute.xlu1 %586  ;;  %v585_v45 = vpop.permute.xlu0 %584 }
  0xba   : > { %656 = vst.msk [vmem:[#allocation2 + $0x6c] sm:$0xf] %vm628_vm1, %v587_v44  ;;  %655 = vst.msk [vmem:[#allocation2 + $0x68] sm:$0xf] %vm628_vm1, %v585_v45  ;;  %v3268_v44 = vld [vmem:[%s4099_s19 + $0x91] sm:$0xff] }
  0xbb   : > { %1563 = vrot.lane.b32.xlu1 %v4329_v47, %s4050_s24  ;;  %1312 = vrot.lane.b32.xlu0 %v4117_v10, %s4049_s23 }
  0xbd   : > { %v591_v3 = vpop.permute.xlu1 %590  ;;  %v589_v50 = vpop.permute.xlu0 %588 }
  0xbe   : > { %658 = vst.msk [vmem:[#allocation2 + $0x74] sm:$0xf] %vm628_vm1, %v591_v3  ;;  %657 = vst.msk [vmem:[#allocation2 + $0x70] sm:$0xf] %vm628_vm1, %v589_v50  ;;  %v3269_v50 = vld [vmem:[%s4099_s19 + $0x99] sm:$0xff] }
  0xbf   : > { %1567 = vrot.lane.b32.xlu1 %v4339_v56, %s4050_s24  ;;  %1565 = vrot.lane.b32.xlu0 %v4327_v46, %s4050_s24 }
  0xc1   : > { %v595_v6 = vpop.permute.xlu1 %594  ;;  %v593_v51 = vpop.permute.xlu0 %592 }
  0xc2   : > { %660 = vst.msk [vmem:[#allocation2 + $0x7c] sm:$0xf] %vm628_vm1, %v595_v6  ;;  %659 = vst.msk [vmem:[#allocation2 + $0x78] sm:$0xf] %vm628_vm1, %v593_v51 }
  0xc3   : > { %1823 = vrot.lane.b32.xlu1 %v4177_v43, %s4051_s25  ;;  %1569 = vrot.lane.b32.xlu0 %v4337_v52, %s4050_s24  ;;  %v4003_v43 = vld [vmem:[%s5089_s1 + $0x10] ss:$0 sps:$4 sm:$0x33]  }
  0xc4   : > { %3967 = vmatprep.subr.msk.bf16.mxu0 %vm2647_vm3, %v4003_v43  ;;  %3968 = vmatprep.subr.msk.bf16.mxu1 %vm2647_vm3, %v4003_v43 }
  0xc5   : > { %v792_v47 = vpop.permute.xlu1 %791  ;;  %v790_v57 = vpop.permute.xlu0 %789 }
  0xc6   : > { %887 = vst.msk [vmem:[#allocation2 + $0x4] sm:$0xf] %vm885_vm2, %v792_v47  ;;  %886 = vst.msk [vmem:[#allocation2] sm:$0xf] %vm885_vm2, %v790_v57 }
  0xc7   : > { %1827 = vrot.lane.b32.xlu1 %v4183_v49, %s4051_s25  ;;  %1825 = vrot.lane.b32.xlu0 %v4175_v42, %s4051_s25  ;;  %v2649_v49 = vsel %vm2647_vm3, %v4003_v43, 0 }
  0xc8   : > { %3924 = vmatpush3.bf16.msra.mxu0 %v2649_v49  ;;  %3964 = vmatpush3.bf16.msra.mxu1 %v2649_v49 }
  0xc9   : > { %v796_v46 = vpop.permute.xlu1 %795  ;;  %v794_v60 = vpop.permute.xlu0 %793  ;;  %3925 = vmatprep.subr.bf16.mxu0 %v4004_v0  ;;  %3962 = vmatprep.subr.bf16.mxu1 %v4004_v0 }
  0xca   : > { %889 = vst.msk [vmem:[#allocation2 + $0xc] sm:$0xf] %vm885_vm2, %v796_v46  ;;  %888 = vst.msk [vmem:[#allocation2 + $0x8] sm:$0xf] %vm885_vm2, %v794_v60 }
  0xcb   : > { %2080 = vrot.lane.b32.xlu1 %v4119_v11, %s4052_s28  ;;  %1829 = vrot.lane.b32.xlu0 %v4181_v48, %s4051_s25 }
  0xcc   : > { %3926 = vmatpush3.bf16.msra.mxu0 %v4004_v0  ;;  %3965 = vmatpush3.bf16.msra.mxu1 %v4004_v0 }
  0xcd   : > { %v800_v42 = vpop.permute.xlu1 %799  ;;  %v798_v63 = vpop.permute.xlu0 %797  ;;  %3927 = vmatprep.subr.bf16.mxu0 %v4005_v8  ;;  %3963 = vmatprep.subr.bf16.mxu1 %v4005_v8 }
  0xce   : > { %891 = vst.msk [vmem:[#allocation2 + $0x14] sm:$0xf] %vm885_vm2, %v800_v42  ;;  %890 = vst.msk [vmem:[#allocation2 + $0x10] sm:$0xf] %vm885_vm2, %v798_v63  ;;  %v3522_v63 = vld [vmem:[%s4099_s19 + $0x92] sm:$0xff] }
  0xcf   : > { %2084 = vrot.lane.b32.xlu1 %v4129_v15, %s4052_s28  ;;  %2082 = vrot.lane.b32.xlu0 %v4117_v10, %s4052_s28 }
  0xd0   : > { %3928 = vmatpush3.bf16.msra.mxu0 %v4005_v8  ;;  %3966 = vmatpush3.bf16.msra.mxu1 %v4005_v8  ;;  %v3524_v8 = vld [vmem:[%s4099_s19 + $0xaa] sm:$0xff] }
  0xd1   : > { %v804_v11 = vpop.permute.xlu1 %803  ;;  %v802_v48 = vpop.permute.xlu0 %801 }
  0xd2   : > { %893 = vst.msk [vmem:[#allocation2 + $0x1c] sm:$0xf] %vm885_vm2, %v804_v11  ;;  %892 = vst.msk [vmem:[#allocation2 + $0x18] sm:$0xf] %vm885_vm2, %v802_v48 }
  0xd3   : > { %2337 = vrot.lane.b32.xlu1 %v4339_v56, %s4053_s6  ;;  %2086 = vrot.lane.b32.xlu0 %v4127_v14, %s4052_s28 }
  0xd5   : > { %v808_v10 = vpop.permute.xlu1 %807  ;;  %v806_v9 = vpop.permute.xlu0 %805 }
  0xd6   : > { %895 = vst.msk [vmem:[#allocation2 + $0x24] sm:$0xf] %vm885_vm2, %v808_v10  ;;  %894 = vst.msk [vmem:[#allocation2 + $0x20] sm:$0xf] %vm885_vm2, %v806_v9  ;;  %v3523_v10 = vld [vmem:[%s4099_s19 + $0x9a] sm:$0xff] }
  0xd7   : > { %2341 = vrot.lane.b32.xlu1 %v4349_v62, %s4053_s6  ;;  %2339 = vrot.lane.b32.xlu0 %v4337_v52, %s4053_s6 }
  0xd9   : > { %v812_v56 = vpop.permute.xlu1 %811  ;;  %v810_v21 = vpop.permute.xlu0 %809 }
  0xda   : > { %897 = vst.msk [vmem:[#allocation2 + $0x2c] sm:$0xf] %vm885_vm2, %v812_v56  ;;  %896 = vst.msk [vmem:[#allocation2 + $0x28] sm:$0xf] %vm885_vm2, %v810_v21  ;;  %v3882_v56 = vpack.c.bf16 %v3524_v8, %v3524_v8  ;;  %v3881_v21 = vpack.c.bf16 %v3523_v10, %v3523_v10 }
  0xdb   : > { %1314 = vrot.lane.b32.xlu1 %v4129_v15, %s4049_s23  ;;  %2343 = vrot.lane.b32.xlu0 %v4347_v61, %s4053_s6 }
  0xdd   : > { %v816_v25 = vpop.permute.xlu1 %815  ;;  %v814_v29 = vpop.permute.xlu0 %813 }
  0xde   : > { %899 = vst.msk [vmem:[#allocation2 + $0x34] sm:$0xf] %vm885_vm2, %v816_v25  ;;  %898 = vst.msk [vmem:[#allocation2 + $0x30] sm:$0xf] %vm885_vm2, %v814_v29  ;;  %v3525_v25 = vld [vmem:[%s4099_s19 + $0xb2] sm:$0xff] }
  0xdf   : > { %1318 = vrot.lane.b32.xlu1 %v4139_v19, %s4049_s23  ;;  %1316 = vrot.lane.b32.xlu0 %v4127_v14, %s4049_s23 }
  0xe1   : > { %v820_v52 = vpop.permute.xlu1 %819  ;;  %v818_v36 = vpop.permute.xlu0 %817 }
  0xe2   : > { %901 = vst.msk [vmem:[#allocation2 + $0x3c] sm:$0xf] %vm885_vm2, %v820_v52  ;;  %900 = vst.msk [vmem:[#allocation2 + $0x38] sm:$0xf] %vm885_vm2, %v818_v36  ;;  %v3883_v36 = vpack.c.bf16 %v3525_v25, %v3525_v25 }
  0xe3   : > { %1571 = vrot.lane.b32.xlu1 %v4349_v62, %s4050_s24  ;;  %1320 = vrot.lane.b32.xlu0 %v4137_v18, %s4049_s23  ;;  %v3454_v18 = vld [vmem:[%s4099_s19 + $0x61] sm:$0xff] }
  0xe5   : > { %v824_v15 = vpop.permute.xlu1 %823  ;;  %v822_v28 = vpop.permute.xlu0 %821 }
  0xe6   : > { %903 = vst.msk [vmem:[#allocation2 + $0x44] sm:$0xf] %vm885_vm2, %v824_v15  ;;  %902 = vst.msk [vmem:[#allocation2 + $0x40] sm:$0xf] %vm885_vm2, %v822_v28  ;;  %v3272_v15 = vld [vmem:[%s4099_s19 + $0xc1] sm:$0xff] }
  0xe7   : > { %1575 = vrot.lane.b32.xlu1 %v4359_v7, %s4050_s24  ;;  %1573 = vrot.lane.b32.xlu0 %v4347_v61, %s4050_s24  ;;  %v3844_v61 = vpack.c.bf16 %v3454_v18, %v3454_v18  ;;  %v3273_v18 = vld [vmem:[%s4099_s19 + $0xc9] sm:$0xff] }
  0xe9   : > { %v828_v14 = vpop.permute.xlu1 %827  ;;  %v826_v19 = vpop.permute.xlu0 %825 }
  0xea   : > { %905 = vst.msk [vmem:[#allocation2 + $0x4c] sm:$0xf] %vm885_vm2, %v828_v14  ;;  %904 = vst.msk [vmem:[#allocation2 + $0x48] sm:$0xf] %vm885_vm2, %v826_v19  ;;  %v3758_v19 = vpack.c.bf16 %v3272_v15, %v3272_v15 }
  0xeb   : > { %1831 = vrot.lane.b32.xlu1 %v4196_v54, %s4051_s25  ;;  %1577 = vrot.lane.b32.xlu0 %v4357_v5, %s4050_s24  ;;  %v3455_v54 = vld [vmem:[%s4099_s19 + $0x69] sm:$0xff] }
  0xec   : > { %v3845_v35 = vpack.c.bf16 %v3455_v54, %v3455_v54 }
  0xed   : > { %v832_v62 = vpop.permute.xlu1 %831  ;;  %v830_v30 = vpop.permute.xlu0 %829 }
  0xee   : > { %907 = vst.msk [vmem:[#allocation2 + $0x54] sm:$0xf] %vm885_vm2, %v832_v62  ;;  %906 = vst.msk [vmem:[#allocation2 + $0x50] sm:$0xf] %vm885_vm2, %v830_v30 }
  0xef   : > { %1835 = vrot.lane.b32.xlu1 %v4206_v58, %s4051_s25  ;;  %1833 = vrot.lane.b32.xlu0 %v4194_v53, %s4051_s25  ;;  %v3457_v58 = vld [vmem:[%s4099_s19 + $0x81] sm:$0xff] }
  0xf0   : > { %v3847_v53 = vpack.c.bf16 %v3457_v58, %v3457_v58 }
  0xf1   : > { %v836_v32 = vpop.permute.xlu1 %835  ;;  %v834_v33 = vpop.permute.xlu0 %833 }
  0xf2   : > { %909 = vst.msk [vmem:[#allocation2 + $0x5c] sm:$0xf] %vm885_vm2, %v836_v32  ;;  %908 = vst.msk [vmem:[#allocation2 + $0x58] sm:$0xf] %vm885_vm2, %v834_v33  ;;  %v3790_v33 = vpack.c.bf16 %v3336_v31, %v3336_v31 }
  0xf3   : > { %2088 = vrot.lane.b32.xlu1 %v3844_v61, %s4052_s28  ;;  %1837 = vrot.lane.b32.xlu0 %v4198_v55, %s4051_s25  ;;  %v3759_v61 = vpack.c.bf16 %v3273_v18, %v3273_v18 }
  0xf5   : > { %v840_v37 = vpop.permute.xlu1 %839  ;;  %v838_v38 = vpop.permute.xlu0 %837 }
  0xf6   : > { %911 = vst.msk [vmem:[#allocation2 + $0x64] sm:$0xf] %vm885_vm2, %v840_v37  ;;  %910 = vst.msk [vmem:[#allocation2 + $0x60] sm:$0xf] %vm885_vm2, %v838_v38 }
  0xf7   : > { %2092 = vrot.lane.b32.xlu1 %v3846_v34, %s4052_s28  ;;  %2090 = vrot.lane.b32.xlu0 %v3845_v35, %s4052_s28 }
  0xf9   : > { %v844_v39 = vpop.permute.xlu1 %843  ;;  %v842_v40 = vpop.permute.xlu0 %841 }
  0xfa   : > { %913 = vst.msk [vmem:[#allocation2 + $0x6c] sm:$0xf] %vm885_vm2, %v844_v39  ;;  %912 = vst.msk [vmem:[#allocation2 + $0x68] sm:$0xf] %vm885_vm2, %v842_v40 }
  0xfb   : > { %2345 = vrot.lane.b32.xlu1 %v4359_v7, %s4053_s6  ;;  %2094 = vrot.lane.b32.xlu0 %v3847_v53, %s4052_s28  ;;  %v3754_v7 = vpack.c.bf16 %v3268_v44, %v3268_v44 }
  0xfd   : > { %v848_v55 = vpop.permute.xlu1 %847  ;;  %v846_v41 = vpop.permute.xlu0 %845 }
  0xfe   : > { %915 = vst.msk [vmem:[#allocation2 + $0x74] sm:$0xf] %vm885_vm2, %v848_v55  ;;  %914 = vst.msk [vmem:[#allocation2 + $0x70] sm:$0xf] %vm885_vm2, %v846_v41  ;;  %v3464_v55 = vld [vmem:[%s4099_s19 + $0xd9] sm:$0xff] }
  0xff   : > { %2349 = vrot.lane.b32.xlu1 %v4369_v20, %s4053_s6  ;;  %2347 = vrot.lane.b32.xlu0 %v4357_v5, %s4053_s6  ;;  %v3755_v5 = vpack.c.bf16 %v3269_v50, %v3269_v50  ;;  %v3854_v44 = vpack.c.bf16 %v3464_v55, %v3464_v55 }
 0x101   : > { %v852_v45 = vpop.permute.xlu1 %851  ;;  %v850_v3 = vpop.permute.xlu0 %849 }
 0x102   : > { %917 = vst.msk [vmem:[#allocation2 + $0x7c] sm:$0xf] %vm885_vm2, %v852_v45  ;;  %916 = vst.msk [vmem:[#allocation2 + $0x78] sm:$0xf] %vm885_vm2, %v850_v3  ;;  %v3465_v45 = vld [vmem:[%s4099_s19 + $0xe1] sm:$0xff] }
 0x103   : > { %1322 = vrot.lane.b32.xlu1 %v3846_v34, %s4049_s23  ;;  %2351 = vrot.lane.b32.xlu0 %v4367_v17, %s4053_s6  ;;  %v3337_v34 = vld [vmem:[%s4099_s19 + $0xca] sm:$0xff] }
 0x104   : > { %v3791_v37 = vpack.c.bf16 %v3337_v34, %v3337_v34 }
 0x105   : > { %v1052_v6 = vpop.permute.xlu1 %1051  ;;  %v1050_v51 = vpop.permute.xlu0 %1049 }
 0x106   : > { %1147 = vst.msk [vmem:[#allocation2 + $0x4] sm:$0xf] %vm1145_vm4, %v1052_v6  ;;  %1146 = vst.msk [vmem:[#allocation2] sm:$0xf] %vm1145_vm4, %v1050_v51 }
 0x107   : > { %1326 = vrot.lane.b32.xlu1 %v3754_v7, %s4049_s23  ;;  %1324 = vrot.lane.b32.xlu0 %v3847_v53, %s4049_s23 }
 0x109   : > { %v1056_v47 = vpop.permute.xlu1 %1055  ;;  %v1054_v57 = vpop.permute.xlu0 %1053 }
 0x10a   : > { %1149 = vst.msk [vmem:[#allocation2 + $0xc] sm:$0xf] %vm1145_vm4, %v1056_v47  ;;  %1148 = vst.msk [vmem:[#allocation2 + $0x8] sm:$0xf] %vm1145_vm4, %v1054_v57 }
 0x10b   : > { %1579 = vrot.lane.b32.xlu1 %v4369_v20, %s4050_s24  ;;  %1328 = vrot.lane.b32.xlu0 %v3755_v5, %s4049_s23 }
 0x10d   : > { %v1060_v46 = vpop.permute.xlu1 %1059  ;;  %v1058_v60 = vpop.permute.xlu0 %1057 }
 0x10e   : > { %1151 = vst.msk [vmem:[#allocation2 + $0x14] sm:$0xf] %vm1145_vm4, %v1060_v46  ;;  %1150 = vst.msk [vmem:[#allocation2 + $0x10] sm:$0xf] %vm1145_vm4, %v1058_v60 }
 0x10f   : > { %1583 = vrot.lane.b32.xlu1 %v4379_v27, %s4050_s24  ;;  %1581 = vrot.lane.b32.xlu0 %v4367_v17, %s4050_s24  ;;  %v3460_v17 = vld [vmem:[%s4099_s19 + $0xa9] sm:$0xff] }
 0x111   : > { %v1064_v43 = vpop.permute.xlu1 %1063  ;;  %v1062_v49 = vpop.permute.xlu0 %1061 }
 0x112   : > { %1153 = vst.msk [vmem:[#allocation2 + $0x1c] sm:$0xf] %vm1145_vm4, %v1064_v43  ;;  %1152 = vst.msk [vmem:[#allocation2 + $0x18] sm:$0xf] %vm1145_vm4, %v1062_v49 }
 0x113   : > { %1839 = vrot.lane.b32.xlu1 %v4222_v1, %s4051_s25  ;;  %1585 = vrot.lane.b32.xlu0 %v4377_v26, %s4050_s24  ;;  %v3850_v26 = vpack.c.bf16 %v3460_v17, %v3460_v17 }
 0x115   : > { %v1068_v20 = vpop.permute.xlu1 %1067  ;;  %v1066_v42 = vpop.permute.xlu0 %1065 }
 0x116   : > { %1155 = vst.msk [vmem:[#allocation2 + $0x24] sm:$0xf] %vm1145_vm4, %v1068_v20  ;;  %1154 = vst.msk [vmem:[#allocation2 + $0x20] sm:$0xf] %vm1145_vm4, %v1066_v42 }
 0x117   : > { %1843 = vrot.lane.b32.xlu1 %v4226_v4, %s4051_s25  ;;  %1841 = vrot.lane.b32.xlu0 %v4208_v59, %s4051_s25  ;;  %v3461_v4 = vld [vmem:[%s4099_s19 + $0xb1] sm:$0xff]  ;;  %v3880_v59 = vpack.c.bf16 %v3522_v63, %v3522_v63 }
 0x118   : > { %v3851_v48 = vpack.c.bf16 %v3461_v4, %v3461_v4 }
 0x119   : > { %v1072_v27 = vpop.permute.xlu1 %1071  ;;  %v1070_v1 = vpop.permute.xlu0 %1069 }
 0x11a   : > { %1157 = vst.msk [vmem:[#allocation2 + $0x2c] sm:$0xf] %vm1145_vm4, %v1072_v27  ;;  %1156 = vst.msk [vmem:[#allocation2 + $0x28] sm:$0xf] %vm1145_vm4, %v1070_v1  ;;  %v3276_v27 = vld [vmem:[%s4099_s19 + $0xf1] sm:$0xff] }
 0x11b   : > { %2096 = vrot.lane.b32.xlu1 %v3754_v7, %s4052_s28  ;;  %1845 = vrot.lane.b32.xlu0 %v4224_v2, %s4051_s25  ;;  %v3528_v7 = vld [vmem:[%s4099_s19 + $0xda] sm:$0xff]  ;;  %v3762_v63 = vpack.c.bf16 %v3276_v27, %v3276_v27 }
 0x11c   : > { %v3886_v51 = vpack.c.bf16 %v3528_v7, %v3528_v7 }
 0x11d   : > { %v1076_v0 = vpop.permute.xlu1 %1075  ;;  %v1074_v11 = vpop.permute.xlu0 %1073 }
 0x11e   : > { %1159 = vst.msk [vmem:[#allocation2 + $0x34] sm:$0xf] %vm1145_vm4, %v1076_v0  ;;  %1158 = vst.msk [vmem:[#allocation2 + $0x30] sm:$0xf] %vm1145_vm4, %v1074_v11  ;;  %v3341_v0 = vld [vmem:[%s4099_s19 + $0xfa] sm:$0xff]  ;;  %v3340_v11 = vld [vmem:[%s4099_s19 + $0xf2] sm:$0xff] }
 0x11f   : > { %2100 = vrot.lane.b32.xlu1 %v3850_v26, %s4052_s28  ;;  %2098 = vrot.lane.b32.xlu0 %v3755_v5, %s4052_s28  ;;  %v3529_v5 = vld [vmem:[%s4099_s19 + $0xe2] sm:$0xff]  ;;  %v3795_v8 = vpack.c.bf16 %v3341_v0, %v3341_v0  ;;  %v3794_v10 = vpack.c.bf16 %v3340_v11, %v3340_v11 }
 0x120   : > { %v3887_v46 = vpack.c.bf16 %v3529_v5, %v3529_v5  ;;  %v3281_v5 = vld [vmem:[%s4099_s19 + $0x129] sm:$0xff] }
 0x121   : > { %v1080_v9 = vpop.permute.xlu1 %1079  ;;  %v1078_v2 = vpop.permute.xlu0 %1077 }
 0x122   : > { %1161 = vst.msk [vmem:[#allocation2 + $0x3c] sm:$0xf] %vm1145_vm4, %v1080_v9  ;;  %1160 = vst.msk [vmem:[#allocation2 + $0x38] sm:$0xf] %vm1145_vm4, %v1078_v2  ;;  %v3403_v9 = vld [vmem:[%s4099_s19 + $0xf8] sm:$0xff]  ;;  %v3402_v2 = vld [vmem:[%s4099_s19 + $0xf0] sm:$0xff] }
 0x123   : > { %2353 = vrot.lane.b32.xlu1 %v3880_v59, %s4053_s6  ;;  %2102 = vrot.lane.b32.xlu0 %v3851_v48, %s4052_s28  ;;  %v3825_v25 = vpack.c.bf16 %v3403_v9, %v3403_v9  ;;  %v3473_v9 = vld [vmem:[%s4099_s19 + $0x141] sm:$0xff] }
 0x125   : > { %v1307_v29 = vpop.permute.xlu1 %1306  ;;  %v1082_v52 = vpop.permute.xlu0 %1081 }
 0x126   : > { %1403 = vst.msk [vmem:[#allocation2] sm:$0xf] %vm1402_vm5, %v1307_v29  ;;  %v3824_v29 = vpack.c.bf16 %v3402_v2, %v3402_v2  ;;  %v3472_v2 = vld [vmem:[%s4099_s19 + $0x139] sm:$0xff] }
 0x127   : > { %1162 = vst.msk [vmem:[#allocation2 + $0x40] sm:$0xf] %vm1145_vm4, %v1082_v52  ;;  %2357 = vrot.lane.b32.xlu1 %v3882_v56, %s4053_s6  ;;  %2355 = vrot.lane.b32.xlu0 %v3881_v21, %s4053_s6  ;;  %v3405_v52 = vld [vmem:[%s4099_s19 + $0x110] sm:$0xff] }
 0x129   : > { %v1311_v28 = vpop.permute.xlu1 %1310  ;;  %v1309_v14 = vpop.permute.xlu0 %1308 }
 0x12a   : > { %1405 = vst.msk [vmem:[#allocation2 + $0x8] sm:$0xf] %vm1402_vm5, %v1311_v28  ;;  %1404 = vst.msk [vmem:[#allocation2 + $0x4] sm:$0xf] %vm1402_vm5, %v1309_v14  ;;  %v3827_v14 = vpack.c.bf16 %v3405_v52, %v3405_v52  ;;  %v3862_v52 = vpack.c.bf16 %v3472_v2, %v3472_v2 }
 0x12b   : > { %1330 = vrot.lane.b32.xlu1 %v3850_v26, %s4049_s23  ;;  %2359 = vrot.lane.b32.xlu0 %v3883_v36, %s4053_s6 }
 0x12d   : > { %v1564_v62 = vpop.permute.xlu1 %1563  ;;  %v1313_v30 = vpop.permute.xlu0 %1312 }
 0x12e   : > { %1660 = vst.msk [vmem:[#allocation2] sm:$0xf] %vm1659_vm6, %v1564_v62 }
 0x12f   : > { %1406 = vst.msk [vmem:[#allocation2 + $0xc] sm:$0xf] %vm1402_vm5, %v1313_v30  ;;  %1334 = vrot.lane.b32.xlu1 %v3758_v19, %s4049_s23  ;;  %1332 = vrot.lane.b32.xlu0 %v3851_v48, %s4049_s23  ;;  %v3469_v30 = vld [vmem:[%s4099_s19 + $0x111] sm:$0xff] }
 0x131   : > { %v1568_v54 = vpop.permute.xlu1 %1567  ;;  %v1566_v32 = vpop.permute.xlu0 %1565 }
 0x132   : > { %1662 = vst.msk [vmem:[#allocation2 + $0x8] sm:$0xf] %vm1659_vm6, %v1568_v54  ;;  %1661 = vst.msk [vmem:[#allocation2 + $0x4] sm:$0xf] %vm1659_vm6, %v1566_v32  ;;  %v3859_v32 = vpack.c.bf16 %v3469_v30, %v3469_v30 }
 0x133   : > { %1587 = vrot.lane.b32.xlu1 %v3882_v56, %s4050_s24  ;;  %1336 = vrot.lane.b32.xlu0 %v3759_v61, %s4049_s23 }
 0x135   : > { %v1824_v35 = vpop.permute.xlu1 %1823  ;;  %v1570_v58 = vpop.permute.xlu0 %1569 }
 0x136   : > { %1920 = vst.msk [vmem:[#allocation2] sm:$0xf] %vm1919_vm7, %v1824_v35 }
 0x137   : > { %1663 = vst.msk [vmem:[#allocation2 + $0xc] sm:$0xf] %vm1659_vm6, %v1570_v58  ;;  %1591 = vrot.lane.b32.xlu1 %v3790_v33, %s4050_s24  ;;  %1589 = vrot.lane.b32.xlu0 %v3883_v36, %s4050_s24  ;;  %v3404_v36 = vld [vmem:[%s4099_s19 + $0x108] sm:$0xff]  ;;  %v3533_v58 = vld [vmem:[%s4099_s19 + $0x112] sm:$0xff] }
 0x139   : > { %v1828_v38 = vpop.permute.xlu1 %1827  ;;  %v1826_v53 = vpop.permute.xlu0 %1825 }
 0x13a   : > { %1922 = vst.msk [vmem:[#allocation2 + $0x8] sm:$0xf] %vm1919_vm7, %v1828_v38  ;;  %1921 = vst.msk [vmem:[#allocation2 + $0x4] sm:$0xf] %vm1919_vm7, %v1826_v53 }
 0x13b   : > { %1847 = vrot.lane.b32.xlu1 %v4239_v13, %s4051_s25  ;;  %1593 = vrot.lane.b32.xlu0 %v3791_v37, %s4050_s24 }
 0x13d   : > { %v2081_v39 = vpop.permute.xlu1 %2080  ;;  %v1830_v40 = vpop.permute.xlu0 %1829 }
 0x13e   : > { %2177 = vst.msk [vmem:[#allocation2] sm:$0xf] %vm2176_vm8, %v2081_v39 }
 0x13f   : > { %1923 = vst.msk [vmem:[#allocation2 + $0xc] sm:$0xf] %vm1919_vm7, %v1830_v40  ;;  %1851 = vrot.lane.b32.xlu1 %v4254_v22, %s4051_s25  ;;  %1849 = vrot.lane.b32.xlu0 %v4237_v12, %s4051_s25  ;;  %v3855_v12 = vpack.c.bf16 %v3465_v45, %v3465_v45  ;;  %v3891_v40 = vpack.c.bf16 %v3533_v58, %v3533_v58  ;;  %v3217_v45 = vld [vmem:[%s4099_s19 + $0x128] sm:$0xff] }
 0x140   : > { %v3735_v7 = vpack.c.bf16 %v3217_v45, %v3217_v45 }
 0x141   : > { %v2085_v41 = vpop.permute.xlu1 %2084  ;;  %v2083_v13 = vpop.permute.xlu0 %2082 }
 0x142   : > { %2179 = vst.msk [vmem:[#allocation2 + $0x8] sm:$0xf] %vm2176_vm8, %v2085_v41  ;;  %2178 = vst.msk [vmem:[#allocation2 + $0x4] sm:$0xf] %vm2176_vm8, %v2083_v13 }
 0x143   : > { %2104 = vrot.lane.b32.xlu1 %v3758_v19, %s4052_s28  ;;  %1853 = vrot.lane.b32.xlu0 %v4241_v16, %s4051_s25  ;;  %v3826_v19 = vpack.c.bf16 %v3404_v36, %v3404_v36 }
 0x145   : > { %v2338_v22 = vpop.permute.xlu1 %2337  ;;  %v2087_v3 = vpop.permute.xlu0 %2086 }
 0x146   : > { %2434 = vst.msk [vmem:[#allocation2] sm:$0xf] %vm2433_vm9, %v2338_v22  ;;  %v3216_v22 = vld [vmem:[%s4099_s19 + $0x120] sm:$0xff] }
 0x147   : > { %2180 = vst.msk [vmem:[#allocation2 + $0xc] sm:$0xf] %vm2176_vm8, %v2087_v3  ;;  %2108 = vrot.lane.b32.xlu1 %v3854_v44, %s4052_s28  ;;  %2106 = vrot.lane.b32.xlu0 %v3759_v61, %s4052_s28  ;;  %v3468_v61 = vld [vmem:[%s4099_s19 + $0x109] sm:$0xff] }
 0x149   : > { %v2342_v50 = vpop.permute.xlu1 %2341  ;;  %v2340_v6 = vpop.permute.xlu0 %2339 }
 0x14a   : > { %2436 = vst.msk [vmem:[#allocation2 + $0x8] sm:$0xf] %vm2433_vm9, %v2342_v50  ;;  %2435 = vst.msk [vmem:[#allocation2 + $0x4] sm:$0xf] %vm2433_vm9, %v2340_v6  ;;  %v3734_v50 = vpack.c.bf16 %v3216_v22, %v3216_v22 }
 0x14b   : > { %2361 = vrot.lane.b32.xlu1 %v3790_v33, %s4053_s6  ;;  %2110 = vrot.lane.b32.xlu0 %v3855_v12, %s4052_s28  ;;  %v3858_v33 = vpack.c.bf16 %v3468_v61, %v3468_v61 }
 0x14d   : > { %v1315_v47 = vpop.permute.xlu1 %1314  ;;  %v2344_v57 = vpop.permute.xlu0 %2343 }
 0x14e   : > { %1407 = vst.msk [vmem:[#allocation2 + $0x10] sm:$0xf] %vm1402_vm5, %v1315_v47  ;;  %v3280_v47 = vld [vmem:[%s4099_s19 + $0x121] sm:$0xff] }
 0x14f   : > { %2437 = vst.msk [vmem:[#allocation2 + $0xc] sm:$0xf] %vm2433_vm9, %v2344_v57  ;;  %2365 = vrot.lane.b32.xlu1 %v3886_v51, %s4053_s6  ;;  %2363 = vrot.lane.b32.xlu0 %v3791_v37, %s4053_s6  ;;  %v3532_v37 = vld [vmem:[%s4099_s19 + $0x10a] sm:$0xff] }
 0x150   : > { %v3890_v55 = vpack.c.bf16 %v3532_v37, %v3532_v37 }
 0x151   : > { %v1319_v60 = vpop.permute.xlu1 %1318  ;;  %v1317_v43 = vpop.permute.xlu0 %1316  ;;  %v4006_v49 = vld [vmem:[#allocation2] sm:$0xff]  }
 0x152   : > { %1409 = vst.msk [vmem:[#allocation2 + $0x18] sm:$0xf] %vm1402_vm5, %v1319_v60  ;;  %1408 = vst.msk [vmem:[#allocation2 + $0x14] sm:$0xf] %vm1402_vm5, %v1317_v43  ;;  %3929 = vmatprep.mubr.msk.bf16.mxu0 %vm2598_vm10, %v4006_v49  ;;  %v3767_v60 = vpack.c.bf16 %v3281_v5, %v3281_v5  ;;  %v3766_v43 = vpack.c.bf16 %v3280_v47, %v3280_v47 }
 0x153   : > { %1083 = vrot.lane.b32.xlu1 %v4241_v16, %s4048_s22  ;;  %2367 = vrot.lane.b32.xlu0 %v3887_v46, %s4053_s6  ;;  %v3277_v16 = vld [vmem:[%s4099_s19 + $0xf9] sm:$0xff] }
 0x155   : > { %v1572_v20 = vpop.permute.xlu1 %1571  ;;  %v1321_v42 = vpop.permute.xlu0 %1320 }
 0x156   : > { %v4007_v17 = vld [vmem:[#allocation2 + $0x8] sm:$0xff]   ;;  %1664 = vst.msk [vmem:[#allocation2 + $0x10] sm:$0xf] %vm1659_vm6, %v1572_v20 }
 0x157   : > { %1410 = vst.msk [vmem:[#allocation2 + $0x1c] sm:$0xf] %vm1402_vm5, %v1321_v42  ;;  %1087 = vrot.lane.b32.xlu1 %v4256_v23, %s4048_s22  ;;  %1085 = vrot.lane.b32.xlu0 %v4258_v24, %s4048_s22  ;;  %v3763_v23 = vpack.c.bf16 %v3277_v16, %v3277_v16  ;;  %v3345_v42 = vld [vmem:[%s4099_s19 + $0x12a] sm:$0xff] }
 0x158   : > { %3930 = vmatmul.mubr.msk.bf16.vlgmr.msra.gmra.mxu0 %vm2598_vm10, %v4007_v17  ;;  %v3344_v17 = vld [vmem:[%s4099_s19 + $0x122] sm:$0xff] }
 0x159   : > { %v1576_v1 = vpop.permute.xlu1 %1575  ;;  %v1574_v26 = vpop.permute.xlu0 %1573 }
 0x15a   : > { %1666 = vst.msk [vmem:[#allocation2 + $0x18] sm:$0xf] %vm1659_vm6, %v1576_v1  ;;  %1665 = vst.msk [vmem:[#allocation2 + $0x14] sm:$0xf] %vm1659_vm6, %v1574_v26  ;;  %v3799_v1 = vpack.c.bf16 %v3345_v42, %v3345_v42  ;;  %v3798_v26 = vpack.c.bf16 %v3344_v17, %v3344_v17 }
 0x15b   : > { %1340 = vrot.lane.b32.xlu1 %v3855_v12, %s4049_s23  ;;  %1338 = vrot.lane.b32.xlu0 %v3854_v44, %s4049_s23 }
 0x15d   : > { %v1832_v4 = vpop.permute.xlu1 %1831  ;;  %v1578_v24 = vpop.permute.xlu0 %1577 }
 0x15e   : > { %1924 = vst.msk [vmem:[#allocation2 + $0x10] sm:$0xf] %vm1919_vm7, %v1832_v4  ;;  %v3409_v4 = vld [vmem:[%s4099_s19 + $0x140] sm:$0xff] }
 0x15f   : > { %1667 = vst.msk [vmem:[#allocation2 + $0x1c] sm:$0xf] %vm1659_vm6, %v1578_v24  ;;  %1344 = vrot.lane.b32.xlu1 %v3763_v23, %s4049_s23  ;;  %1342 = vrot.lane.b32.xlu0 %v3762_v63, %s4049_s23  ;;  %v3408_v24 = vld [vmem:[%s4099_s19 + $0x138] sm:$0xff] }
 0x161   : > { %v1836_v59 = vpop.permute.xlu1 %1835  ;;  %v1834_v48 = vpop.permute.xlu0 %1833 }
 0x162   : > { %1926 = vst.msk [vmem:[#allocation2 + $0x18] sm:$0xf] %vm1919_vm7, %v1836_v59  ;;  %1925 = vst.msk [vmem:[#allocation2 + $0x14] sm:$0xf] %vm1919_vm7, %v1834_v48  ;;  %v3831_v59 = vpack.c.bf16 %v3409_v4, %v3409_v4  ;;  %v3830_v48 = vpack.c.bf16 %v3408_v24, %v3408_v24 }
 0x163   : > { %1597 = vrot.lane.b32.xlu1 %v3887_v46, %s4050_s24  ;;  %1595 = vrot.lane.b32.xlu0 %v3886_v51, %s4050_s24 }
 0x165   : > { %v2089_v56 = vpop.permute.xlu1 %2088  ;;  %v1838_v21 = vpop.permute.xlu0 %1837 }
 0x166   : > { %2181 = vst.msk [vmem:[#allocation2 + $0x10] sm:$0xf] %vm2176_vm8, %v2089_v56 }
 0x167   : > { %1927 = vst.msk [vmem:[#allocation2 + $0x1c] sm:$0xf] %vm1919_vm7, %v1838_v21  ;;  %1601 = vrot.lane.b32.xlu1 %v3795_v8, %s4050_s24  ;;  %1599 = vrot.lane.b32.xlu0 %v3794_v10, %s4050_s24 }
 0x169   : > { %v2093_v15 = vpop.permute.xlu1 %2092  ;;  %v2091_v28 = vpop.permute.xlu0 %2090 }
 0x16a   : > { %2183 = vst.msk [vmem:[#allocation2 + $0x18] sm:$0xf] %vm2176_vm8, %v2093_v15  ;;  %2182 = vst.msk [vmem:[#allocation2 + $0x14] sm:$0xf] %vm2176_vm8, %v2091_v28 }
 0x16b   : > { %1857 = vrot.lane.b32.xlu1 %v3825_v25, %s4051_s25  ;;  %1855 = vrot.lane.b32.xlu0 %v3824_v29, %s4051_s25  ;;  %v3863_v29 = vpack.c.bf16 %v3473_v9, %v3473_v9 }
 0x16d   : > { %v2346_v18 = vpop.permute.xlu1 %2345  ;;  %v2095_v62 = vpop.permute.xlu0 %2094 }
 0x16e   : > { %2438 = vst.msk [vmem:[#allocation2 + $0x10] sm:$0xf] %vm2433_vm9, %v2346_v18 }
 0x16f   : > { %2184 = vst.msk [vmem:[#allocation2 + $0x1c] sm:$0xf] %vm2176_vm8, %v2095_v62  ;;  %1861 = vrot.lane.b32.xlu1 %v3827_v14, %s4051_s25  ;;  %1859 = vrot.lane.b32.xlu0 %v3826_v19, %s4051_s25 }
 0x171   : > { %v2350_v31 = vpop.permute.xlu1 %2349  ;;  %v2348_v54 = vpop.permute.xlu0 %2347 }
 0x172   : > { %2440 = vst.msk [vmem:[#allocation2 + $0x18] sm:$0xf] %vm2433_vm9, %v2350_v31  ;;  %2439 = vst.msk [vmem:[#allocation2 + $0x14] sm:$0xf] %vm2433_vm9, %v2348_v54 }
 0x173   : > { %2114 = vrot.lane.b32.xlu1 %v3763_v23, %s4052_s28  ;;  %2112 = vrot.lane.b32.xlu0 %v3762_v63, %s4052_s28 }
 0x175   : > { %v1323_v34 = vpop.permute.xlu1 %1322  ;;  %v2352_v35 = vpop.permute.xlu0 %2351 }
 0x176   : > { %1411 = vst.msk [vmem:[#allocation2 + $0x20] sm:$0xf] %vm1402_vm5, %v1323_v34 }
 0x177   : > { %2441 = vst.msk [vmem:[#allocation2 + $0x1c] sm:$0xf] %vm2433_vm9, %v2352_v35  ;;  %2118 = vrot.lane.b32.xlu1 %v3859_v32, %s4052_s28  ;;  %2116 = vrot.lane.b32.xlu0 %v3858_v33, %s4052_s28 }
 0x179   : > { %v1327_v38 = vpop.permute.xlu1 %1326  ;;  %v1325_v53 = vpop.permute.xlu0 %1324  ;;  %v4008_v39 = vld [vmem:[#allocation2 + $0x10] sm:$0xff]  }
 0x17a   : > { %1413 = vst.msk [vmem:[#allocation2 + $0x28] sm:$0xf] %vm1402_vm5, %v1327_v38  ;;  %1412 = vst.msk [vmem:[#allocation2 + $0x24] sm:$0xf] %vm1402_vm5, %v1325_v53  ;;  %3933 = vmatprep.mubr.msk.bf16.mxu0 %vm2598_vm10, %v4008_v39  ;;  %v3285_v39 = vld [vmem:[%s4099_s19 + $0x159] sm:$0xff] }
 0x17b   : > { %2371 = vrot.lane.b32.xlu1 %v3795_v8, %s4053_s6  ;;  %2369 = vrot.lane.b32.xlu0 %v3794_v10, %s4053_s6 }
 0x17d   : > { %v1580_v41 = vpop.permute.xlu1 %1579  ;;  %v1329_v13 = vpop.permute.xlu0 %1328 }
 0x17e   : > { %v4009_v44 = vld [vmem:[#allocation2 + $0x18] sm:$0xff]   ;;  %1668 = vst.msk [vmem:[#allocation2 + $0x20] sm:$0xf] %vm1659_vm6, %v1580_v41 }
 0x17f   : > { %1414 = vst.msk [vmem:[#allocation2 + $0x2c] sm:$0xf] %vm1402_vm5, %v1329_v13  ;;  %2375 = vrot.lane.b32.xlu1 %v3891_v40, %s4053_s6  ;;  %2373 = vrot.lane.b32.xlu0 %v3890_v55, %s4053_s6  ;;  %v3771_v13 = vpack.c.bf16 %v3285_v39, %v3285_v39 }
 0x180   : > { %3934 = vmatmul.mubr.msk.bf16.gmra.mxu0 %vm2598_vm10, %v4009_v44 }
 0x181   : > { %v1584_v3 = vpop.permute.xlu1 %1583  ;;  %v1582_v12 = vpop.permute.xlu0 %1581 }
 0x182   : > { %1670 = vst.msk [vmem:[#allocation2 + $0x28] sm:$0xf] %vm1659_vm6, %v1584_v3  ;;  %1669 = vst.msk [vmem:[#allocation2 + $0x24] sm:$0xf] %vm1659_vm6, %v1582_v12  ;;  %v3349_v3 = vld [vmem:[%s4099_s19 + $0x15a] sm:$0xff]  ;;  %v3348_v12 = vld [vmem:[%s4099_s19 + $0x152] sm:$0xff] }
 0x183   : > { %1091 = vrot.lane.b32.xlu1 %v3827_v14, %s4048_s22  ;;  %1089 = vrot.lane.b32.xlu0 %v3826_v19, %s4048_s22  ;;  %v3537_v14 = vld [vmem:[%s4099_s19 + $0x142] sm:$0xff]  ;;  %v3536_v19 = vld [vmem:[%s4099_s19 + $0x13a] sm:$0xff] }
 0x184   : > { %v3895_v30 = vpack.c.bf16 %v3537_v14, %v3537_v14  ;;  %v3894_v61 = vpack.c.bf16 %v3536_v19, %v3536_v19 }
 0x185   : > { %v1840_v6 = vpop.permute.xlu1 %1839  ;;  %v1586_v51 = vpop.permute.xlu0 %1585 }
 0x186   : > { %1928 = vst.msk [vmem:[#allocation2 + $0x20] sm:$0xf] %vm1919_vm7, %v1840_v6  ;;  %v3803_v6 = vpack.c.bf16 %v3349_v3, %v3349_v3 }
 0x187   : > { %1671 = vst.msk [vmem:[#allocation2 + $0x2c] sm:$0xf] %vm1659_vm6, %v1586_v51  ;;  %1095 = vrot.lane.b32.xlu1 %v3735_v7, %s4048_s22  ;;  %1093 = vrot.lane.b32.xlu0 %v3734_v50, %s4048_s22  ;;  %v3802_v51 = vpack.c.bf16 %v3348_v12, %v3348_v12 }
 0x189   : > { %v1844_v57 = vpop.permute.xlu1 %1843  ;;  %v1842_v46 = vpop.permute.xlu0 %1841 }
 0x18a   : > { %1930 = vst.msk [vmem:[#allocation2 + $0x28] sm:$0xf] %vm1919_vm7, %v1844_v57  ;;  %1929 = vst.msk [vmem:[#allocation2 + $0x24] sm:$0xf] %vm1919_vm7, %v1842_v46  ;;  %v3413_v57 = vld [vmem:[%s4099_s19 + $0x170] sm:$0xff]  ;;  %v3412_v46 = vld [vmem:[%s4099_s19 + $0x168] sm:$0xff] }
 0x18b   : > { %1348 = vrot.lane.b32.xlu1 %v3859_v32, %s4049_s23  ;;  %1346 = vrot.lane.b32.xlu0 %v3858_v33, %s4049_s23  ;;  %v3221_v32 = vld [vmem:[%s4099_s19 + $0x158] sm:$0xff]  ;;  %v3220_v33 = vld [vmem:[%s4099_s19 + $0x150] sm:$0xff]  ;;  %v3834_v42 = vpack.c.bf16 %v3412_v46, %v3412_v46 }
 0x18c   : > { %v3739_v58 = vpack.c.bf16 %v3221_v32, %v3221_v32  ;;  %v3738_v37 = vpack.c.bf16 %v3220_v33, %v3220_v33 }
 0x18d   : > { %v2097_v49 = vpop.permute.xlu1 %2096  ;;  %v1846_v20 = vpop.permute.xlu0 %1845 }
 0x18e   : > { %2185 = vst.msk [vmem:[#allocation2 + $0x20] sm:$0xf] %vm2176_vm8, %v2097_v49 }
 0x18f   : > { %1931 = vst.msk [vmem:[#allocation2 + $0x2c] sm:$0xf] %vm1919_vm7, %v1846_v20  ;;  %1352 = vrot.lane.b32.xlu1 %v3767_v60, %s4049_s23  ;;  %1350 = vrot.lane.b32.xlu0 %v3766_v43, %s4049_s23  ;;  %v3835_v20 = vpack.c.bf16 %v3413_v57, %v3413_v57 }
 0x191   : > { %v2101_v16 = vpop.permute.xlu1 %2100  ;;  %v2099_v27 = vpop.permute.xlu0 %2098 }
 0x192   : > { %2187 = vst.msk [vmem:[#allocation2 + $0x28] sm:$0xf] %vm2176_vm8, %v2101_v16  ;;  %2186 = vst.msk [vmem:[#allocation2 + $0x24] sm:$0xf] %vm2176_vm8, %v2099_v27 }
 0x193   : > { %1605 = vrot.lane.b32.xlu1 %v3891_v40, %s4050_s24  ;;  %1603 = vrot.lane.b32.xlu0 %v3890_v55, %s4050_s24  ;;  %v3284_v40 = vld [vmem:[%s4099_s19 + $0x151] sm:$0xff] }
 0x194   : > { %v3770_v44 = vpack.c.bf16 %v3284_v40, %v3284_v40 }
 0x195   : > { %v2354_v23 = vpop.permute.xlu1 %2353  ;;  %v2103_v63 = vpop.permute.xlu0 %2102 }
 0x196   : > { %2442 = vst.msk [vmem:[#allocation2 + $0x20] sm:$0xf] %vm2433_vm9, %v2354_v23 }
 0x197   : > { %2188 = vst.msk [vmem:[#allocation2 + $0x2c] sm:$0xf] %vm2176_vm8, %v2103_v63  ;;  %1609 = vrot.lane.b32.xlu1 %v3799_v1, %s4050_s24  ;;  %1607 = vrot.lane.b32.xlu0 %v3798_v26, %s4050_s24 }
 0x199   : > { %v2358_v0 = vpop.permute.xlu1 %2357  ;;  %v2356_v11 = vpop.permute.xlu0 %2355 }
 0x19a   : > { %2444 = vst.msk [vmem:[#allocation2 + $0x28] sm:$0xf] %vm2433_vm9, %v2358_v0  ;;  %2443 = vst.msk [vmem:[#allocation2 + $0x24] sm:$0xf] %vm2433_vm9, %v2356_v11 }
 0x19b   : > { %1865 = vrot.lane.b32.xlu1 %v3735_v7, %s4051_s25  ;;  %1863 = vrot.lane.b32.xlu0 %v3734_v50, %s4051_s25 }
 0x19d   : > { %v1331_v8 = vpop.permute.xlu1 %1330  ;;  %v2360_v10 = vpop.permute.xlu0 %2359 }
 0x19e   : > { %1415 = vst.msk [vmem:[#allocation2 + $0x30] sm:$0xf] %vm1402_vm5, %v1331_v8 }
 0x19f   : > { %2445 = vst.msk [vmem:[#allocation2 + $0x2c] sm:$0xf] %vm2433_vm9, %v2360_v10  ;;  %1869 = vrot.lane.b32.xlu1 %v3831_v59, %s4051_s25  ;;  %1867 = vrot.lane.b32.xlu0 %v3830_v48, %s4051_s25 }
 0x1a1   : > { %v1335_v56 = vpop.permute.xlu1 %1334  ;;  %v1333_v21 = vpop.permute.xlu0 %1332  ;;  %v4010_v25 = vld [vmem:[#allocation2 + $0x20] sm:$0xff]  }
 0x1a2   : > { %1417 = vst.msk [vmem:[#allocation2 + $0x38] sm:$0xf] %vm1402_vm5, %v1335_v56  ;;  %1416 = vst.msk [vmem:[#allocation2 + $0x34] sm:$0xf] %vm1402_vm5, %v1333_v21  ;;  %3937 = vmatprep.mubr.msk.bf16.mxu0 %vm2598_vm10, %v4010_v25  ;;  %v3225_v25 = vld [vmem:[%s4099_s19 + $0x188] sm:$0xff] }
 0x1a3   : > { %2122 = vrot.lane.b32.xlu1 %v3767_v60, %s4052_s28  ;;  %2120 = vrot.lane.b32.xlu0 %v3766_v43, %s4052_s28 }
 0x1a5   : > { %v1588_v36 = vpop.permute.xlu1 %1587  ;;  %v1337_v15 = vpop.permute.xlu0 %1336 }
 0x1a6   : > { %v4011_v28 = vld [vmem:[#allocation2 + $0x28] sm:$0xff]   ;;  %1672 = vst.msk [vmem:[#allocation2 + $0x30] sm:$0xf] %vm1659_vm6, %v1588_v36 }
 0x1a7   : > { %1418 = vst.msk [vmem:[#allocation2 + $0x3c] sm:$0xf] %vm1402_vm5, %v1337_v15  ;;  %2126 = vrot.lane.b32.xlu1 %v3863_v29, %s4052_s28  ;;  %2124 = vrot.lane.b32.xlu0 %v3862_v52, %s4052_s28  ;;  %v3743_v15 = vpack.c.bf16 %v3225_v25, %v3225_v25 }
 0x1a8   : > { %3938 = vmatmul.mubr.msk.bf16.gmra.mxu0 %vm2598_vm10, %v4011_v28 }
 0x1a9   : > { %v1592_v18 = vpop.permute.xlu1 %1591  ;;  %v1590_v62 = vpop.permute.xlu0 %1589 }
 0x1aa   : > { %1674 = vst.msk [vmem:[#allocation2 + $0x38] sm:$0xf] %vm1659_vm6, %v1592_v18  ;;  %1673 = vst.msk [vmem:[#allocation2 + $0x34] sm:$0xf] %vm1659_vm6, %v1590_v62  ;;  %v3289_v18 = vld [vmem:[%s4099_s19 + $0x189] sm:$0xff]  ;;  %v3288_v62 = vld [vmem:[%s4099_s19 + $0x181] sm:$0xff] }
 0x1ab   : > { %2379 = vrot.lane.b32.xlu1 %v3799_v1, %s4053_s6  ;;  %2377 = vrot.lane.b32.xlu0 %v3798_v26, %s4053_s6  ;;  %v3477_v1 = vld [vmem:[%s4099_s19 + $0x171] sm:$0xff]  ;;  %v3476_v26 = vld [vmem:[%s4099_s19 + $0x169] sm:$0xff] }
 0x1ac   : > { %v3867_v4 = vpack.c.bf16 %v3477_v1, %v3477_v1  ;;  %v3866_v24 = vpack.c.bf16 %v3476_v26, %v3476_v26 }
 0x1ad   : > { %v1848_v31 = vpop.permute.xlu1 %1847  ;;  %v1594_v54 = vpop.permute.xlu0 %1593 }
 0x1ae   : > { %1932 = vst.msk [vmem:[#allocation2 + $0x30] sm:$0xf] %vm1919_vm7, %v1848_v31  ;;  %v3775_v31 = vpack.c.bf16 %v3289_v18, %v3289_v18 }
 0x1af   : > { %1675 = vst.msk [vmem:[#allocation2 + $0x3c] sm:$0xf] %vm1659_vm6, %v1594_v54  ;;  %2383 = vrot.lane.b32.xlu1 %v3895_v30, %s4053_s6  ;;  %2381 = vrot.lane.b32.xlu0 %v3894_v61, %s4053_s6  ;;  %v3774_v54 = vpack.c.bf16 %v3288_v62, %v3288_v62 }
 0x1b1   : > { %v1852_v34 = vpop.permute.xlu1 %1851  ;;  %v1850_v35 = vpop.permute.xlu0 %1849 }
 0x1b2   : > { %1934 = vst.msk [vmem:[#allocation2 + $0x38] sm:$0xf] %vm1919_vm7, %v1852_v34  ;;  %1933 = vst.msk [vmem:[#allocation2 + $0x34] sm:$0xf] %vm1919_vm7, %v1850_v35  ;;  %v3353_v34 = vld [vmem:[%s4099_s19 + $0x18a] sm:$0xff]  ;;  %v3352_v35 = vld [vmem:[%s4099_s19 + $0x182] sm:$0xff] }
 0x1b3   : > { %1099 = vrot.lane.b32.xlu1 %v3831_v59, %s4048_s22  ;;  %1097 = vrot.lane.b32.xlu0 %v3830_v48, %s4048_s22  ;;  %v3541_v59 = vld [vmem:[%s4099_s19 + $0x172] sm:$0xff]  ;;  %v3540_v48 = vld [vmem:[%s4099_s19 + $0x16a] sm:$0xff] }
 0x1b4   : > { %v3899_v9 = vpack.c.bf16 %v3541_v59, %v3541_v59  ;;  %v3898_v2 = vpack.c.bf16 %v3540_v48, %v3540_v48 }
 0x1b5   : > { %v2105_v38 = vpop.permute.xlu1 %2104  ;;  %v1854_v53 = vpop.permute.xlu0 %1853 }
 0x1b6   : > { %2189 = vst.msk [vmem:[#allocation2 + $0x30] sm:$0xf] %vm2176_vm8, %v2105_v38  ;;  %v3807_v38 = vpack.c.bf16 %v3353_v34, %v3353_v34 }
 0x1b7   : > { %1935 = vst.msk [vmem:[#allocation2 + $0x3c] sm:$0xf] %vm1919_vm7, %v1854_v53  ;;  %1103 = vrot.lane.b32.xlu1 %v3739_v58, %s4048_s22  ;;  %1101 = vrot.lane.b32.xlu0 %v3738_v37, %s4048_s22  ;;  %v3806_v53 = vpack.c.bf16 %v3352_v35, %v3352_v35 }
 0x1b9   : > { %v2109_v55 = vpop.permute.xlu1 %2108  ;;  %v2107_v41 = vpop.permute.xlu0 %2106 }
 0x1ba   : > { %2191 = vst.msk [vmem:[#allocation2 + $0x38] sm:$0xf] %vm2176_vm8, %v2109_v55  ;;  %2190 = vst.msk [vmem:[#allocation2 + $0x34] sm:$0xf] %vm2176_vm8, %v2107_v41  ;;  %v3417_v41 = vld [vmem:[%s4099_s19 + $0x1a0] sm:$0xff] }
 0x1bb   : > { %1356 = vrot.lane.b32.xlu1 %v3863_v29, %s4049_s23  ;;  %1354 = vrot.lane.b32.xlu0 %v3862_v52, %s4049_s23  ;;  %v3224_v29 = vld [vmem:[%s4099_s19 + $0x180] sm:$0xff]  ;;  %v3839_v3 = vpack.c.bf16 %v3417_v41, %v3417_v41 }
 0x1bc   : > { %v3742_v28 = vpack.c.bf16 %v3224_v29, %v3224_v29 }
 0x1bd   : > { %v2362_v45 = vpop.permute.xlu1 %2361  ;;  %v2111_v22 = vpop.permute.xlu0 %2110 }
 0x1be   : > { %2446 = vst.msk [vmem:[#allocation2 + $0x30] sm:$0xf] %vm2433_vm9, %v2362_v45 }
 0x1bf   : > { %2192 = vst.msk [vmem:[#allocation2 + $0x3c] sm:$0xf] %vm2176_vm8, %v2111_v22  ;;  %1360 = vrot.lane.b32.xlu1 %v3771_v13, %s4049_s23  ;;  %1358 = vrot.lane.b32.xlu0 %v3770_v44, %s4049_s23 }
 0x1c1   : > { %v2366_v7 = vpop.permute.xlu1 %2365  ;;  %v2364_v50 = vpop.permute.xlu0 %2363 }
 0x1c2   : > { %2448 = vst.msk [vmem:[#allocation2 + $0x38] sm:$0xf] %vm2433_vm9, %v2366_v7  ;;  %2447 = vst.msk [vmem:[#allocation2 + $0x34] sm:$0xf] %vm2433_vm9, %v2364_v50 }
 0x1c3   : > { %1613 = vrot.lane.b32.xlu1 %v3895_v30, %s4050_s24  ;;  %1611 = vrot.lane.b32.xlu0 %v3894_v61, %s4050_s24 }
 0x1c5   : > { %v1084_v5 = vpop.permute.xlu1 %1083  ;;  %v2368_v47 = vpop.permute.xlu0 %2367 }
 0x1c6   : > { %1163 = vst.msk [vmem:[#allocation2 + $0x44] sm:$0xf] %vm1145_vm4, %v1084_v5 }
 0x1c7   : > { %2449 = vst.msk [vmem:[#allocation2 + $0x3c] sm:$0xf] %vm2433_vm9, %v2368_v47  ;;  %1617 = vrot.lane.b32.xlu1 %v3803_v6, %s4050_s24  ;;  %1615 = vrot.lane.b32.xlu0 %v3802_v51, %s4050_s24 }
 0x1c9   : > { %v1088_v60 = vpop.permute.xlu1 %1087  ;;  %v1086_v43 = vpop.permute.xlu0 %1085  ;;  %v4012_v49 = vld [vmem:[#allocation2 + $0x30] sm:$0xff]  }
 0x1ca   : > { %1165 = vst.msk [vmem:[#allocation2 + $0x4c] sm:$0xf] %vm1145_vm4, %v1088_v60  ;;  %1164 = vst.msk [vmem:[#allocation2 + $0x48] sm:$0xf] %vm1145_vm4, %v1086_v43  ;;  %3941 = vmatprep.mubr.msk.bf16.mxu0 %vm2598_vm10, %v4012_v49  ;;  %v3545_v49 = vld [vmem:[%s4099_s19 + $0x1a2] sm:$0xff] }
 0x1cb   : > { %1873 = vrot.lane.b32.xlu1 %v3739_v58, %s4051_s25  ;;  %1871 = vrot.lane.b32.xlu0 %v3738_v37, %s4051_s25 }
 0x1cd   : > { %v1341_v17 = vpop.permute.xlu1 %1340  ;;  %v1339_v16 = vpop.permute.xlu0 %1338 }
 0x1ce   : > { %v4013_v27 = vld [vmem:[#allocation2 + $0x38] sm:$0xff]   ;;  %1420 = vst.msk [vmem:[#allocation2 + $0x44] sm:$0xf] %vm1402_vm5, %v1341_v17  ;;  %1419 = vst.msk [vmem:[#allocation2 + $0x40] sm:$0xf] %vm1402_vm5, %v1339_v16  ;;  %v3903_v16 = vpack.c.bf16 %v3545_v49, %v3545_v49 }
 0x1cf   : > { %1877 = vrot.lane.b32.xlu1 %v3835_v20, %s4051_s25  ;;  %1875 = vrot.lane.b32.xlu0 %v3834_v42, %s4051_s25 }
 0x1d0   : > { %3942 = vmatmul.mubr.msk.bf16.gmra.mxu0 %vm2598_vm10, %v4013_v27 }
 0x1d1   : > { %v1345_v23 = vpop.permute.xlu1 %1344  ;;  %v1343_v63 = vpop.permute.xlu0 %1342 }
 0x1d2   : > { %1422 = vst.msk [vmem:[#allocation2 + $0x4c] sm:$0xf] %vm1402_vm5, %v1345_v23  ;;  %1421 = vst.msk [vmem:[#allocation2 + $0x48] sm:$0xf] %vm1402_vm5, %v1343_v63 }
 0x1d3   : > { %2130 = vrot.lane.b32.xlu1 %v3771_v13, %s4052_s28  ;;  %2128 = vrot.lane.b32.xlu0 %v3770_v44, %s4052_s28  ;;  %v3416_v13 = vld [vmem:[%s4099_s19 + $0x198] sm:$0xff] }
 0x1d4   : > { %v3838_v12 = vpack.c.bf16 %v3416_v13, %v3416_v13 }
 0x1d5   : > { %v1598_v0 = vpop.permute.xlu1 %1597  ;;  %v1596_v11 = vpop.permute.xlu0 %1595 }
 0x1d6   : > { %1677 = vst.msk [vmem:[#allocation2 + $0x44] sm:$0xf] %vm1659_vm6, %v1598_v0  ;;  %1676 = vst.msk [vmem:[#allocation2 + $0x40] sm:$0xf] %vm1659_vm6, %v1596_v11 }
 0x1d7   : > { %2134 = vrot.lane.b32.xlu1 %v3867_v4, %s4052_s28  ;;  %2132 = vrot.lane.b32.xlu0 %v3866_v24, %s4052_s28 }
 0x1d9   : > { %v1602_v8 = vpop.permute.xlu1 %1601  ;;  %v1600_v10 = vpop.permute.xlu0 %1599 }
 0x1da   : > { %1679 = vst.msk [vmem:[#allocation2 + $0x4c] sm:$0xf] %vm1659_vm6, %v1602_v8  ;;  %1678 = vst.msk [vmem:[#allocation2 + $0x48] sm:$0xf] %vm1659_vm6, %v1600_v10 }
 0x1db   : > { %2387 = vrot.lane.b32.xlu1 %v3803_v6, %s4053_s6  ;;  %2385 = vrot.lane.b32.xlu0 %v3802_v51, %s4053_s6  ;;  %v3481_v6 = vld [vmem:[%s4099_s19 + $0x1a1] sm:$0xff]  ;;  %v3480_v51 = vld [vmem:[%s4099_s19 + $0x199] sm:$0xff] }
 0x1dc   : > { %v3871_v57 = vpack.c.bf16 %v3481_v6, %v3481_v6  ;;  %v3870_v46 = vpack.c.bf16 %v3480_v51, %v3480_v51 }
 0x1dd   : > { %v1858_v56 = vpop.permute.xlu1 %1857  ;;  %v1856_v21 = vpop.permute.xlu0 %1855 }
 0x1de   : > { %1937 = vst.msk [vmem:[#allocation2 + $0x44] sm:$0xf] %vm1919_vm7, %v1858_v56  ;;  %1936 = vst.msk [vmem:[#allocation2 + $0x40] sm:$0xf] %vm1919_vm7, %v1856_v21 }
 0x1df   : > { %2391 = vrot.lane.b32.xlu1 %v3899_v9, %s4053_s6  ;;  %2389 = vrot.lane.b32.xlu0 %v3898_v2, %s4053_s6 }
 0x1e1   : > { %v1862_v52 = vpop.permute.xlu1 %1861  ;;  %v1860_v36 = vpop.permute.xlu0 %1859 }
 0x1e2   : > { %1939 = vst.msk [vmem:[#allocation2 + $0x4c] sm:$0xf] %vm1919_vm7, %v1862_v52  ;;  %1938 = vst.msk [vmem:[#allocation2 + $0x48] sm:$0xf] %vm1919_vm7, %v1860_v36 }
 0x1e3   : > { %1107 = vrot.lane.b32.xlu1 %v3835_v20, %s4048_s22  ;;  %1105 = vrot.lane.b32.xlu0 %v3834_v42, %s4048_s22  ;;  %v3544_v20 = vld [vmem:[%s4099_s19 + $0x19a] sm:$0xff] }
 0x1e4   : > { %v3902_v27 = vpack.c.bf16 %v3544_v20, %v3544_v20 }
 0x1e5   : > { %v2115_v14 = vpop.permute.xlu1 %2114  ;;  %v2113_v19 = vpop.permute.xlu0 %2112 }
 0x1e6   : > { %2194 = vst.msk [vmem:[#allocation2 + $0x44] sm:$0xf] %vm2176_vm8, %v2115_v14  ;;  %2193 = vst.msk [vmem:[#allocation2 + $0x40] sm:$0xf] %vm2176_vm8, %v2113_v19 }
 0x1e7   : > { %1111 = vrot.lane.b32.xlu1 %v3743_v15, %s4048_s22  ;;  %1109 = vrot.lane.b32.xlu0 %v3742_v28, %s4048_s22 }
 0x1e9   : > { %v2119_v30 = vpop.permute.xlu1 %2118  ;;  %v2117_v61 = vpop.permute.xlu0 %2116 }
 0x1ea   : > { %2196 = vst.msk [vmem:[#allocation2 + $0x4c] sm:$0xf] %vm2176_vm8, %v2119_v30  ;;  %2195 = vst.msk [vmem:[#allocation2 + $0x48] sm:$0xf] %vm2176_vm8, %v2117_v61 }
 0x1eb   : > { %1364 = vrot.lane.b32.xlu1 %v3867_v4, %s4049_s23  ;;  %1362 = vrot.lane.b32.xlu0 %v3866_v24, %s4049_s23 }
 0x1ed   : > { %v2372_v32 = vpop.permute.xlu1 %2371  ;;  %v2370_v33 = vpop.permute.xlu0 %2369 }
 0x1ee   : > { %2451 = vst.msk [vmem:[#allocation2 + $0x44] sm:$0xf] %vm2433_vm9, %v2372_v32  ;;  %2450 = vst.msk [vmem:[#allocation2 + $0x40] sm:$0xf] %vm2433_vm9, %v2370_v33 }
 0x1ef   : > { %1368 = vrot.lane.b32.xlu1 %v3775_v31, %s4049_s23  ;;  %1366 = vrot.lane.b32.xlu0 %v3774_v54, %s4049_s23 }
 0x1f1   : > { %v2376_v58 = vpop.permute.xlu1 %2375  ;;  %v2374_v37 = vpop.permute.xlu0 %2373 }
 0x1f2   : > { %2453 = vst.msk [vmem:[#allocation2 + $0x4c] sm:$0xf] %vm2433_vm9, %v2376_v58  ;;  %2452 = vst.msk [vmem:[#allocation2 + $0x48] sm:$0xf] %vm2433_vm9, %v2374_v37 }
 0x1f3   : > { %1621 = vrot.lane.b32.xlu1 %v3899_v9, %s4050_s24  ;;  %1619 = vrot.lane.b32.xlu0 %v3898_v2, %s4050_s24 }
 0x1f5   : > { %v1092_v39 = vpop.permute.xlu1 %1091  ;;  %v1090_v40 = vpop.permute.xlu0 %1089  ;;  %v4014_v55 = vld [vmem:[#allocation2 + $0x40] sm:$0xff]  }
 0x1f6   : > { %1167 = vst.msk [vmem:[#allocation2 + $0x54] sm:$0xf] %vm1145_vm4, %v1092_v39  ;;  %1166 = vst.msk [vmem:[#allocation2 + $0x50] sm:$0xf] %vm1145_vm4, %v1090_v40  ;;  %3945 = vmatprep.mubr.msk.bf16.mxu1 %vm2598_vm10, %v4014_v55 }
 0x1f7   : > { %1625 = vrot.lane.b32.xlu1 %v3807_v38, %s4050_s24  ;;  %1623 = vrot.lane.b32.xlu0 %v3806_v53, %s4050_s24 }
 0x1f9   : > { %v1096_v44 = vpop.permute.xlu1 %1095  ;;  %v1094_v45 = vpop.permute.xlu0 %1093  ;;  %v4015_v22 = vld [vmem:[#allocation2 + $0x48] sm:$0xff]  }
 0x1fa   : > { %1169 = vst.msk [vmem:[#allocation2 + $0x5c] sm:$0xf] %vm1145_vm4, %v1096_v44  ;;  %1168 = vst.msk [vmem:[#allocation2 + $0x58] sm:$0xf] %vm1145_vm4, %v1094_v45  ;;  %3946 = vmatmul.mubr.msk.bf16.vlgmr.msra.gmra.mxu1 %vm2598_vm10, %v4015_v22 }
 0x1fb   : > { %1881 = vrot.lane.b32.xlu1 %v3743_v15, %s4051_s25  ;;  %1879 = vrot.lane.b32.xlu0 %v3742_v28, %s4051_s25 }
 0x1fd   : > { %v1349_v7 = vpop.permute.xlu1 %1348  ;;  %v1347_v50 = vpop.permute.xlu0 %1346 }
 0x1fe   : > { %1424 = vst.msk [vmem:[#allocation2 + $0x54] sm:$0xf] %vm1402_vm5, %v1349_v7  ;;  %1423 = vst.msk [vmem:[#allocation2 + $0x50] sm:$0xf] %vm1402_vm5, %v1347_v50 }
 0x1ff   : > { %1885 = vrot.lane.b32.xlu1 %v3839_v3, %s4051_s25  ;;  %1883 = vrot.lane.b32.xlu0 %v3838_v12, %s4051_s25 }
 0x201   : > { %v1353_v5 = vpop.permute.xlu1 %1352  ;;  %v1351_v47 = vpop.permute.xlu0 %1350 }
 0x202   : > { %1426 = vst.msk [vmem:[#allocation2 + $0x5c] sm:$0xf] %vm1402_vm5, %v1353_v5  ;;  %1425 = vst.msk [vmem:[#allocation2 + $0x58] sm:$0xf] %vm1402_vm5, %v1351_v47 }
 0x203   : > { %2138 = vrot.lane.b32.xlu1 %v3775_v31, %s4052_s28  ;;  %2136 = vrot.lane.b32.xlu0 %v3774_v54, %s4052_s28 }
 0x205   : > { %v1606_v60 = vpop.permute.xlu1 %1605  ;;  %v1604_v43 = vpop.permute.xlu0 %1603 }
 0x206   : > { %1681 = vst.msk [vmem:[#allocation2 + $0x54] sm:$0xf] %vm1659_vm6, %v1606_v60  ;;  %1680 = vst.msk [vmem:[#allocation2 + $0x50] sm:$0xf] %vm1659_vm6, %v1604_v43 }
 0x207   : > { %2142 = vrot.lane.b32.xlu1 %v3871_v57, %s4052_s28  ;;  %2140 = vrot.lane.b32.xlu0 %v3870_v46, %s4052_s28 }
 0x209   : > { %v1610_v42 = vpop.permute.xlu1 %1609  ;;  %v1608_v17 = vpop.permute.xlu0 %1607 }
 0x20a   : > { %1683 = vst.msk [vmem:[#allocation2 + $0x5c] sm:$0xf] %vm1659_vm6, %v1610_v42  ;;  %1682 = vst.msk [vmem:[#allocation2 + $0x58] sm:$0xf] %vm1659_vm6, %v1608_v17 }
 0x20b   : > { %2395 = vrot.lane.b32.xlu1 %v3807_v38, %s4053_s6  ;;  %2393 = vrot.lane.b32.xlu0 %v3806_v53, %s4053_s6 }
 0x20d   : > { %v1866_v1 = vpop.permute.xlu1 %1865  ;;  %v1864_v26 = vpop.permute.xlu0 %1863 }
 0x20e   : > { %1941 = vst.msk [vmem:[#allocation2 + $0x54] sm:$0xf] %vm1919_vm7, %v1866_v1  ;;  %1940 = vst.msk [vmem:[#allocation2 + $0x50] sm:$0xf] %vm1919_vm7, %v1864_v26 }
 0x20f   : > { %2399 = vrot.lane.b32.xlu1 %v3903_v16, %s4053_s6  ;;  %2397 = vrot.lane.b32.xlu0 %v3902_v27, %s4053_s6 }
 0x211   : > { %v1870_v23 = vpop.permute.xlu1 %1869  ;;  %v1868_v63 = vpop.permute.xlu0 %1867 }
 0x212   : > { %1943 = vst.msk [vmem:[#allocation2 + $0x5c] sm:$0xf] %vm1919_vm7, %v1870_v23  ;;  %1942 = vst.msk [vmem:[#allocation2 + $0x58] sm:$0xf] %vm1919_vm7, %v1868_v63 }
 0x215   : > { %v2123_v4 = vpop.permute.xlu1 %2122  ;;  %v2121_v24 = vpop.permute.xlu0 %2120 }
 0x216   : > { %2198 = vst.msk [vmem:[#allocation2 + $0x54] sm:$0xf] %vm2176_vm8, %v2123_v4  ;;  %2197 = vst.msk [vmem:[#allocation2 + $0x50] sm:$0xf] %vm2176_vm8, %v2121_v24 }
 0x218   : > { %v3931_v0 = vpop.f32.mrf.mxu0 }
 0x219   : > { %2931 = vst [vmem:[%s4974_s10 + $0x10] sm:$0xff] %v3931_v0  ;;  %v2127_v11 = vpop.permute.xlu1 %2126  ;;  %v2125_v59 = vpop.permute.xlu0 %2124  ;;  %v2860_v29 = vmul.f32 %v3931_v0, %v3931_v0 }
 0x21a   : > { %2200 = vst.msk [vmem:[#allocation2 + $0x5c] sm:$0xf] %vm2176_vm8, %v2127_v11  ;;  %2199 = vst.msk [vmem:[#allocation2 + $0x58] sm:$0xf] %vm2176_vm8, %v2125_v59  ;;  %v2685_v48 = vpop.f32.mrf.mxu0 }
 0x21b   : > { %2929 = vst [vmem:[%s4974_s10] sm:$0xff] %v2685_v48  ;;  %v2858_v56 = vmul.f32 %v2685_v48, %v2685_v48 }
 0x21c   : > { %v3932_v8 = vpop.f32.mrf.mxu0 }
 0x21d   : > { %2932 = vst [vmem:[%s4974_s10 + $0x18] sm:$0xff] %v3932_v8  ;;  %v2380_v10 = vpop.permute.xlu1 %2379  ;;  %v2378_v9 = vpop.permute.xlu0 %2377  ;;  %v2861_v14 = vmul.f32 %v3932_v8, %v3932_v8 }
 0x21e   : > { %2455 = vst.msk [vmem:[#allocation2 + $0x54] sm:$0xf] %vm2433_vm9, %v2380_v10  ;;  %2454 = vst.msk [vmem:[#allocation2 + $0x50] sm:$0xf] %vm2433_vm9, %v2378_v9  ;;  %v2688_v2 = vpop.f32.mrf.mxu0 }
 0x21f   : > { %v2818_v21 = vadd.f32 %v2688_v2, %v2685_v48  ;;  %v2859_v25 = vmul.f32 %v2688_v2, %v2688_v2  ;;  %2930 = vst [vmem:[%s4974_s10 + $0x8] sm:$0xff] %v2688_v2 }
 0x221   : > { %v2819_v52 = vadd.f32 %v3931_v0, %v2818_v21  ;;  %v2890_v36 = vadd.f32 %v2859_v25, %v2858_v56  ;;  %v2384_v15 = vpop.permute.xlu1 %2383  ;;  %v2382_v28 = vpop.permute.xlu0 %2381 }
 0x222   : > { %2457 = vst.msk [vmem:[#allocation2 + $0x5c] sm:$0xf] %vm2433_vm9, %v2384_v15  ;;  %2456 = vst.msk [vmem:[#allocation2 + $0x58] sm:$0xf] %vm2433_vm9, %v2382_v28 }
 0x223   : > { %v2891_v19 = vadd.f32 %v2890_v36, %v2860_v29  ;;  %v2820_v18 = vadd.f32 %v3932_v8, %v2819_v52 }
 0x225   : > { %v1100_v62 = vpop.permute.xlu1 %1099  ;;  %v1098_v30 = vpop.permute.xlu0 %1097  ;;  %v4016_v61 = vld [vmem:[#allocation2 + $0x50] sm:$0xff]   ;;  %v2892_v31 = vadd.f32 %v2891_v19, %v2861_v14 }
 0x226   : > { %1171 = vst.msk [vmem:[#allocation2 + $0x64] sm:$0xf] %vm1145_vm4, %v1100_v62  ;;  %1170 = vst.msk [vmem:[#allocation2 + $0x60] sm:$0xf] %vm1145_vm4, %v1098_v30  ;;  %3949 = vmatprep.mubr.msk.bf16.mxu1 %vm2598_vm10, %v4016_v61 }
 0x229   : > { %v1104_v54 = vpop.permute.xlu1 %1103  ;;  %v1102_v32 = vpop.permute.xlu0 %1101  ;;  %v4017_v33 = vld [vmem:[#allocation2 + $0x58] sm:$0xff]  }
 0x22a   : > { %1173 = vst.msk [vmem:[#allocation2 + $0x6c] sm:$0xf] %vm1145_vm4, %v1104_v54  ;;  %1172 = vst.msk [vmem:[#allocation2 + $0x68] sm:$0xf] %vm1145_vm4, %v1102_v32  ;;  %3950 = vmatmul.mubr.msk.bf16.gmra.mxu1 %vm2598_vm10, %v4017_v33 }
 0x22d   : > { %v1357_v34 = vpop.permute.xlu1 %1356  ;;  %v1355_v35 = vpop.permute.xlu0 %1354 }
 0x22e   : > { %1428 = vst.msk [vmem:[#allocation2 + $0x64] sm:$0xf] %vm1402_vm5, %v1357_v34  ;;  %1427 = vst.msk [vmem:[#allocation2 + $0x60] sm:$0xf] %vm1402_vm5, %v1355_v35 }
 0x231   : > { %v1361_v58 = vpop.permute.xlu1 %1360  ;;  %v1359_v37 = vpop.permute.xlu0 %1358 }
 0x232   : > { %1430 = vst.msk [vmem:[#allocation2 + $0x6c] sm:$0xf] %vm1402_vm5, %v1361_v58  ;;  %1429 = vst.msk [vmem:[#allocation2 + $0x68] sm:$0xf] %vm1402_vm5, %v1359_v37 }
 0x235   : > { %v1614_v38 = vpop.permute.xlu1 %1613  ;;  %v1612_v53 = vpop.permute.xlu0 %1611 }
 0x236   : > { %1685 = vst.msk [vmem:[#allocation2 + $0x64] sm:$0xf] %vm1659_vm6, %v1614_v38  ;;  %1684 = vst.msk [vmem:[#allocation2 + $0x60] sm:$0xf] %vm1659_vm6, %v1612_v53 }
 0x239   : > { %v1618_v39 = vpop.permute.xlu1 %1617  ;;  %v1616_v40 = vpop.permute.xlu0 %1615 }
 0x23a   : > { %1687 = vst.msk [vmem:[#allocation2 + $0x6c] sm:$0xf] %vm1659_vm6, %v1618_v39  ;;  %1686 = vst.msk [vmem:[#allocation2 + $0x68] sm:$0xf] %vm1659_vm6, %v1616_v40 }
 0x23d   : > { %v1874_v55 = vpop.permute.xlu1 %1873  ;;  %v1872_v41 = vpop.permute.xlu0 %1871 }
 0x23e   : > { %1945 = vst.msk [vmem:[#allocation2 + $0x64] sm:$0xf] %vm1919_vm7, %v1874_v55  ;;  %1944 = vst.msk [vmem:[#allocation2 + $0x60] sm:$0xf] %vm1919_vm7, %v1872_v41 }
 0x240   : > { %v3935_v13 = vpop.f32.mrf.mxu0 }
 0x241   : > { %2935 = vst [vmem:[%s4974_s10 + $0x30] sm:$0xff] %v3935_v13  ;;  %v1878_v44 = vpop.permute.xlu1 %1877  ;;  %v1876_v45 = vpop.permute.xlu0 %1875  ;;  %v2864_v46 = vmul.f32 %v3935_v13, %v3935_v13 }
 0x242   : > { %1947 = vst.msk [vmem:[#allocation2 + $0x6c] sm:$0xf] %vm1919_vm7, %v1878_v44  ;;  %1946 = vst.msk [vmem:[#allocation2 + $0x68] sm:$0xf] %vm1919_vm7, %v1876_v45  ;;  %v2701_v22 = vpop.f32.mrf.mxu0 }
 0x243   : > { %v2821_v3 = vadd.f32 %v2820_v18, %v2701_v22  ;;  %v2862_v12 = vmul.f32 %v2701_v22, %v2701_v22  ;;  %2933 = vst [vmem:[%s4974_s10 + $0x20] sm:$0xff] %v2701_v22 }
 0x244   : > { %v3936_v7 = vpop.f32.mrf.mxu0 }
 0x245   : > { %v2893_v50 = vadd.f32 %v2892_v31, %v2862_v12  ;;  %2936 = vst [vmem:[%s4974_s10 + $0x38] sm:$0xff] %v3936_v7  ;;  %v2131_v6 = vpop.permute.xlu1 %2130  ;;  %v2129_v51 = vpop.permute.xlu0 %2128  ;;  %v2865_v42 = vmul.f32 %v3936_v7, %v3936_v7 }
 0x246   : > { %2202 = vst.msk [vmem:[#allocation2 + $0x64] sm:$0xf] %vm2176_vm8, %v2131_v6  ;;  %2201 = vst.msk [vmem:[#allocation2 + $0x60] sm:$0xf] %vm2176_vm8, %v2129_v51  ;;  %v2704_v5 = vpop.f32.mrf.mxu0 }
 0x247   : > { %v2822_v47 = vadd.f32 %v2821_v3, %v2704_v5  ;;  %v2863_v57 = vmul.f32 %v2704_v5, %v2704_v5  ;;  %2934 = vst [vmem:[%s4974_s10 + $0x28] sm:$0xff] %v2704_v5 }
 0x249   : > { %v2823_v60 = vadd.f32 %v3935_v13, %v2822_v47  ;;  %v2894_v43 = vadd.f32 %v2893_v50, %v2863_v57  ;;  %v2135_v49 = vpop.permute.xlu1 %2134  ;;  %v2133_v20 = vpop.permute.xlu0 %2132 }
 0x24a   : > { %2204 = vst.msk [vmem:[#allocation2 + $0x6c] sm:$0xf] %vm2176_vm8, %v2135_v49  ;;  %2203 = vst.msk [vmem:[#allocation2 + $0x68] sm:$0xf] %vm2176_vm8, %v2133_v20 }
 0x24b   : > { %v2895_v17 = vadd.f32 %v2894_v43, %v2864_v46  ;;  %v2824_v16 = vadd.f32 %v3936_v7, %v2823_v60 }
 0x24d   : > { %v2388_v27 = vpop.permute.xlu1 %2387  ;;  %v2386_v1 = vpop.permute.xlu0 %2385  ;;  %v2896_v26 = vadd.f32 %v2895_v17, %v2865_v42 }
 0x24e   : > { %2459 = vst.msk [vmem:[#allocation2 + $0x64] sm:$0xf] %vm2433_vm9, %v2388_v27  ;;  %2458 = vst.msk [vmem:[#allocation2 + $0x60] sm:$0xf] %vm2433_vm9, %v2386_v1 }
 0x251   : > { %v2392_v23 = vpop.permute.xlu1 %2391  ;;  %v2390_v63 = vpop.permute.xlu0 %2389 }
 0x252   : > { %2461 = vst.msk [vmem:[#allocation2 + $0x6c] sm:$0xf] %vm2433_vm9, %v2392_v23  ;;  %2460 = vst.msk [vmem:[#allocation2 + $0x68] sm:$0xf] %vm2433_vm9, %v2390_v63 }
 0x255   : > { %v1108_v4 = vpop.permute.xlu1 %1107  ;;  %v1106_v24 = vpop.permute.xlu0 %1105  ;;  %v4018_v0 = vld [vmem:[#allocation2 + $0x60] sm:$0xff]  }
 0x256   : > { %1175 = vst.msk [vmem:[#allocation2 + $0x74] sm:$0xf] %vm1145_vm4, %v1108_v4  ;;  %1174 = vst.msk [vmem:[#allocation2 + $0x70] sm:$0xf] %vm1145_vm4, %v1106_v24  ;;  %3953 = vmatprep.mubr.msk.bf16.mxu1 %vm2598_vm10, %v4018_v0 }
 0x259   : > { %v1112_v11 = vpop.permute.xlu1 %1111  ;;  %v1110_v59 = vpop.permute.xlu0 %1109  ;;  %v4019_v48 = vld [vmem:[#allocation2 + $0x68] sm:$0xff]  }
 0x25a   : > { %1177 = vst.msk [vmem:[#allocation2 + $0x7c] sm:$0xf] %vm1145_vm4, %v1112_v11  ;;  %1176 = vst.msk [vmem:[#allocation2 + $0x78] sm:$0xf] %vm1145_vm4, %v1110_v59  ;;  %3954 = vmatmul.mubr.msk.bf16.gmra.mxu1 %vm2598_vm10, %v4019_v48 }
 0x25d   : > { %v1365_v8 = vpop.permute.xlu1 %1364  ;;  %v1363_v10 = vpop.permute.xlu0 %1362 }
 0x25e   : > { %1432 = vst.msk [vmem:[#allocation2 + $0x74] sm:$0xf] %vm1402_vm5, %v1365_v8  ;;  %1431 = vst.msk [vmem:[#allocation2 + $0x70] sm:$0xf] %vm1402_vm5, %v1363_v10 }
 0x261   : > { %v1369_v9 = vpop.permute.xlu1 %1368  ;;  %v1367_v2 = vpop.permute.xlu0 %1366 }
 0x262   : > { %1434 = vst.msk [vmem:[#allocation2 + $0x7c] sm:$0xf] %vm1402_vm5, %v1369_v9  ;;  %1433 = vst.msk [vmem:[#allocation2 + $0x78] sm:$0xf] %vm1402_vm5, %v1367_v2 }
 0x265   : > { %v1622_v56 = vpop.permute.xlu1 %1621  ;;  %v1620_v21 = vpop.permute.xlu0 %1619 }
 0x266   : > { %1689 = vst.msk [vmem:[#allocation2 + $0x74] sm:$0xf] %vm1659_vm6, %v1622_v56  ;;  %1688 = vst.msk [vmem:[#allocation2 + $0x70] sm:$0xf] %vm1659_vm6, %v1620_v21 }
 0x268   : > { %v3939_v25 = vpop.f32.mrf.mxu0 }
 0x269   : > { %2939 = vst [vmem:[%s4974_s10 + $0x50] sm:$0xff] %v3939_v25  ;;  %v1626_v29 = vpop.permute.xlu1 %1625  ;;  %v1624_v52 = vpop.permute.xlu0 %1623  ;;  %v2868_v54 = vmul.f32 %v3939_v25, %v3939_v25 }
 0x26a   : > { %1691 = vst.msk [vmem:[#allocation2 + $0x7c] sm:$0xf] %vm1659_vm6, %v1626_v29  ;;  %1690 = vst.msk [vmem:[#allocation2 + $0x78] sm:$0xf] %vm1659_vm6, %v1624_v52  ;;  %v2717_v36 = vpop.f32.mrf.mxu0 }
 0x26b   : > { %v2825_v15 = vadd.f32 %v2824_v16, %v2717_v36  ;;  %v2866_v28 = vmul.f32 %v2717_v36, %v2717_v36  ;;  %2937 = vst [vmem:[%s4974_s10 + $0x40] sm:$0xff] %v2717_v36 }
 0x26c   : > { %v3940_v14 = vpop.f32.mrf.mxu0 }
 0x26d   : > { %v2897_v19 = vadd.f32 %v2896_v26, %v2866_v28  ;;  %2940 = vst [vmem:[%s4974_s10 + $0x58] sm:$0xff] %v3940_v14  ;;  %v1882_v18 = vpop.permute.xlu1 %1881  ;;  %v1880_v62 = vpop.permute.xlu0 %1879  ;;  %v2869_v58 = vmul.f32 %v3940_v14, %v3940_v14 }
 0x26e   : > { %1949 = vst.msk [vmem:[#allocation2 + $0x74] sm:$0xf] %vm1919_vm7, %v1882_v18  ;;  %1948 = vst.msk [vmem:[#allocation2 + $0x70] sm:$0xf] %vm1919_vm7, %v1880_v62  ;;  %v2720_v30 = vpop.f32.mrf.mxu0 }
 0x26f   : > { %v2826_v61 = vadd.f32 %v2825_v15, %v2720_v30  ;;  %v2867_v31 = vmul.f32 %v2720_v30, %v2720_v30  ;;  %2938 = vst [vmem:[%s4974_s10 + $0x48] sm:$0xff] %v2720_v30 }
 0x271   : > { %v2827_v32 = vadd.f32 %v3939_v25, %v2826_v61  ;;  %v2898_v33 = vadd.f32 %v2897_v19, %v2867_v31  ;;  %v1886_v34 = vpop.permute.xlu1 %1885  ;;  %v1884_v35 = vpop.permute.xlu0 %1883  ;;  %v4054_v25 = vmov 0.0  }
 0x272   : > { %1951 = vst.msk [vmem:[#allocation2 + $0x7c] sm:$0xf] %vm1919_vm7, %v1886_v34  ;;  %1950 = vst.msk [vmem:[#allocation2 + $0x78] sm:$0xf] %vm1919_vm7, %v1884_v35 }
 0x273   : > { %v2899_v37 = vadd.f32 %v2898_v33, %v2868_v54  ;;  %v2828_v38 = vadd.f32 %v3940_v14, %v2827_v32  ;;  %2816 = vst [vmem:[%s5060_s18] sm:$0xff] %v4054_v25 }
 0x275   : > { %v2139_v53 = vpop.permute.xlu1 %2138  ;;  %v2137_v39 = vpop.permute.xlu0 %2136  ;;  %v2900_v40 = vadd.f32 %v2899_v37, %v2869_v58 }
 0x276   : > { %2206 = vst.msk [vmem:[#allocation2 + $0x74] sm:$0xf] %vm2176_vm8, %v2139_v53  ;;  %2205 = vst.msk [vmem:[#allocation2 + $0x70] sm:$0xf] %vm2176_vm8, %v2137_v39 }
 0x279   : > { %v2143_v55 = vpop.permute.xlu1 %2142  ;;  %v2141_v41 = vpop.permute.xlu0 %2140 }
 0x27a   : > { %2208 = vst.msk [vmem:[#allocation2 + $0x7c] sm:$0xf] %vm2176_vm8, %v2143_v55  ;;  %2207 = vst.msk [vmem:[#allocation2 + $0x78] sm:$0xf] %vm2176_vm8, %v2141_v41 }
 0x27d   : > { %v2396_v13 = vpop.permute.xlu1 %2395  ;;  %v2394_v44 = vpop.permute.xlu0 %2393 }
 0x27e   : > { %2463 = vst.msk [vmem:[#allocation2 + $0x74] sm:$0xf] %vm2433_vm9, %v2396_v13  ;;  %2462 = vst.msk [vmem:[#allocation2 + $0x70] sm:$0xf] %vm2433_vm9, %v2394_v44 }
 0x281   : > { %v2400_v45 = vpop.permute.xlu1 %2399  ;;  %v2398_v22 = vpop.permute.xlu0 %2397 }
 0x282   : > { %2465 = vst.msk [vmem:[#allocation2 + $0x7c] sm:$0xf] %vm2433_vm9, %v2400_v45  ;;  %2464 = vst.msk [vmem:[#allocation2 + $0x78] sm:$0xf] %vm2433_vm9, %v2398_v22 }
 0x285   : > { %v4020_v3 = vld [vmem:[#allocation2 + $0x70] sm:$0xff]  }
 0x286   : > { %3957 = vmatprep.mubr.msk.bf16.mxu1 %vm2598_vm10, %v4020_v3 }
 0x289   : > { %v4021_v12 = vld [vmem:[#allocation2 + $0x78] sm:$0xff]  }
 0x28a   : > { %3958 = vmatmul.mubr.msk.bf16.gmra.mxu1 %vm2598_vm10, %v4021_v12 }
 0x290   : > { %v3943_v7 = vpop.f32.mrf.mxu0 }
 0x291   : > { %2943 = vst [vmem:[%s4974_s10 + $0x70] sm:$0xff] %v3943_v7  ;;  %v2872_v43 = vmul.f32 %v3943_v7, %v3943_v7 }
 0x292   : > { %v2733_v50 = vpop.f32.mrf.mxu0 }
 0x293   : > { %v2829_v6 = vadd.f32 %v2828_v38, %v2733_v50  ;;  %v2870_v51 = vmul.f32 %v2733_v50, %v2733_v50  ;;  %2941 = vst [vmem:[%s4974_s10 + $0x60] sm:$0xff] %v2733_v50 }
 0x294   : > { %v3944_v5 = vpop.f32.mrf.mxu0 }
 0x295   : > { %v2901_v47 = vadd.f32 %v2900_v40, %v2870_v51  ;;  %2944 = vst [vmem:[%s4974_s10 + $0x78] sm:$0xff] %v3944_v5  ;;  %v2873_v42 = vmul.f32 %v3944_v5, %v3944_v5 }
 0x296   : > { %v2736_v57 = vpop.f32.mrf.mxu0 }
 0x297   : > { %v2830_v46 = vadd.f32 %v2829_v6, %v2736_v57  ;;  %v2871_v60 = vmul.f32 %v2736_v57, %v2736_v57  ;;  %2942 = vst [vmem:[%s4974_s10 + $0x68] sm:$0xff] %v2736_v57 }
 0x299   : > { %v2831_v49 = vadd.f32 %v3943_v7, %v2830_v46  ;;  %v2902_v20 = vadd.f32 %v2901_v47, %v2871_v60 }
 0x29b   : > { %v2903_v17 = vadd.f32 %v2902_v20, %v2872_v43  ;;  %v2832_v16 = vadd.f32 %v3944_v5, %v2831_v49 }
 0x29d   : > { %v2904_v27 = vadd.f32 %v2903_v17, %v2873_v42 }
 0x2ba   : > { %v3947_v1 = vpop.f32.mrf.mxu1 }
 0x2bb   : > { %2947 = vst [vmem:[%s4974_s10 + $0x90] sm:$0xff] %v3947_v1  ;;  %v2876_v48 = vmul.f32 %v3947_v1, %v3947_v1 }
 0x2bc   : > { %v2749_v26 = vpop.f32.mrf.mxu1 }
 0x2bd   : > { %v2833_v23 = vadd.f32 %v2832_v16, %v2749_v26  ;;  %v2874_v63 = vmul.f32 %v2749_v26, %v2749_v26  ;;  %2945 = vst [vmem:[%s4974_s10 + $0x80] sm:$0xff] %v2749_v26 }
 0x2be   : > { %v3948_v4 = vpop.f32.mrf.mxu1 }
 0x2bf   : > { %v2905_v24 = vadd.f32 %v2904_v27, %v2874_v63  ;;  %2948 = vst [vmem:[%s4974_s10 + $0x98] sm:$0xff] %v3948_v4  ;;  %v2877_v9 = vmul.f32 %v3948_v4, %v3948_v4 }
 0x2c0   : > { %v2752_v0 = vpop.f32.mrf.mxu1 }
 0x2c1   : > { %v2834_v11 = vadd.f32 %v2833_v23, %v2752_v0  ;;  %v2875_v59 = vmul.f32 %v2752_v0, %v2752_v0  ;;  %2946 = vst [vmem:[%s4974_s10 + $0x88] sm:$0xff] %v2752_v0 }
 0x2c3   : > { %v2835_v8 = vadd.f32 %v3947_v1, %v2834_v11  ;;  %v2906_v10 = vadd.f32 %v2905_v24, %v2875_v59 }
 0x2c5   : > { %v2907_v2 = vadd.f32 %v2906_v10, %v2876_v48  ;;  %v2836_v56 = vadd.f32 %v3948_v4, %v2835_v8  ;;  %v2817_v8 = vld [vmem:[%s5060_s18] sm:$0x1] }
 0x2c7   : > { %v2908_v21 = vadd.f32 %v2907_v2, %v2877_v9  ;;  %v2857_v2 = vld [vmem:[%s5060_s18 + $0x1] sm:$0x1] }
 0x2ea   : > { %v3951_v29 = vpop.f32.mrf.mxu1 }
 0x2eb   : > { %2951 = vst [vmem:[%s4974_s10 + $0xb0] sm:$0xff] %v3951_v29  ;;  %v2880_v30 = vmul.f32 %v3951_v29, %v3951_v29 }
 0x2ec   : > { %v2765_v52 = vpop.f32.mrf.mxu1 }
 0x2ed   : > { %v2837_v36 = vadd.f32 %v2836_v56, %v2765_v52  ;;  %v2878_v15 = vmul.f32 %v2765_v52, %v2765_v52  ;;  %2949 = vst [vmem:[%s4974_s10 + $0xa0] sm:$0xff] %v2765_v52 }
 0x2ee   : > { %v3952_v28 = vpop.f32.mrf.mxu1 }
 0x2ef   : > { %v2909_v14 = vadd.f32 %v2908_v21, %v2878_v15  ;;  %2952 = vst [vmem:[%s4974_s10 + $0xb8] sm:$0xff] %v3952_v28  ;;  %v2881_v54 = vmul.f32 %v3952_v28, %v3952_v28 }
 0x2f0   : > { %v2768_v19 = vpop.f32.mrf.mxu1 }
 0x2f1   : > { %v2838_v18 = vadd.f32 %v2837_v36, %v2768_v19  ;;  %v2879_v62 = vmul.f32 %v2768_v19, %v2768_v19  ;;  %2950 = vst [vmem:[%s4974_s10 + $0xa8] sm:$0xff] %v2768_v19 }
 0x2f3   : > { %v2839_v61 = vadd.f32 %v3951_v29, %v2838_v18  ;;  %v2910_v31 = vadd.f32 %v2909_v14, %v2879_v62 }
 0x2f5   : > { %v2911_v32 = vadd.f32 %v2910_v31, %v2880_v30  ;;  %v2840_v33 = vadd.f32 %v3952_v28, %v2839_v61 }
 0x2f7   : > { %v2912_v34 = vadd.f32 %v2911_v32, %v2881_v54 }
 0x31a   : > { %v3955_v35 = vpop.f32.mrf.mxu1 }
 0x31b   : > { %2955 = vst [vmem:[%s4974_s10 + $0xd0] sm:$0xff] %v3955_v35  ;;  %v2884_v44 = vmul.f32 %v3955_v35, %v3955_v35 }
 0x31c   : > { %v2781_v58 = vpop.f32.mrf.mxu1 }
 0x31d   : > { %2953 = vst [vmem:[%s4974_s10 + $0xc0] sm:$0xff] %v2781_v58  ;;  %v2882_v53 = vmul.f32 %v2781_v58, %v2781_v58  ;;  %v2841_v39 = vadd.f32 %v2840_v33, %v2781_v58 }
 0x31e   : > { %v3956_v37 = vpop.f32.mrf.mxu1 }
 0x31f   : > { %2956 = vst [vmem:[%s4974_s10 + $0xd8] sm:$0xff] %v3956_v37  ;;  %v2913_v55 = vadd.f32 %v2912_v34, %v2882_v53  ;;  %v2885_v7 = vmul.f32 %v3956_v37, %v3956_v37 }
 0x320   : > { %v2784_v38 = vpop.f32.mrf.mxu1 }
 0x321   : > { %2954 = vst [vmem:[%s4974_s10 + $0xc8] sm:$0xff] %v2784_v38  ;;  %v2883_v40 = vmul.f32 %v2784_v38, %v2784_v38  ;;  %v2842_v41 = vadd.f32 %v2841_v39, %v2784_v38 }
 0x323   : > { %v2914_v13 = vadd.f32 %v2913_v55, %v2883_v40  ;;  %v2843_v45 = vadd.f32 %v3955_v35, %v2842_v41 }
 0x325   : > { %v2915_v3 = vadd.f32 %v2914_v13, %v2884_v44  ;;  %v2844_v50 = vadd.f32 %v3956_v37, %v2843_v45 }
 0x327   : > { %v2916_v47 = vadd.f32 %v2915_v3, %v2885_v7 }
 0x34a   : > { %v3959_v22 = vpop.f32.mrf.mxu1 }
 0x34b   : > { %2959 = vst [vmem:[%s4974_s10 + $0xf0] sm:$0xff] %v3959_v22  ;;  %v2888_v49 = vmul.f32 %v3959_v22, %v3959_v22 }
 0x34c   : > { %v2797_v12 = vpop.f32.mrf.mxu1 }
 0x34d   : > { %v2886_v6 = vmul.f32 %v2797_v12, %v2797_v12  ;;  %2957 = vst [vmem:[%s4974_s10 + $0xe0] sm:$0xff] %v2797_v12  ;;  %v2845_v5 = vadd.f32 %v2844_v50, %v2797_v12 }
 0x34e   : > { %v3960_v51 = vpop.f32.mrf.mxu1 }
 0x34f   : > { %2960 = vst [vmem:[%s4974_s10 + $0xf8] sm:$0xff] %v3960_v51  ;;  %v2917_v46 = vadd.f32 %v2916_v47, %v2886_v6  ;;  %v2889_v17 = vmul.f32 %v3960_v51, %v3960_v51 }
 0x350   : > { %v2800_v57 = vpop.f32.mrf.mxu1 }
 0x351   : > { %v2846_v60 = vadd.f32 %v2845_v5, %v2800_v57  ;;  %v2887_v43 = vmul.f32 %v2800_v57, %v2800_v57  ;;  %2958 = vst [vmem:[%s4974_s10 + $0xe8] sm:$0xff] %v2800_v57 }
 0x353   : > { %v2847_v20 = vadd.f32 %v3959_v22, %v2846_v60  ;;  %v2918_v42 = vadd.f32 %v2917_v46, %v2887_v43 }
 0x355   : > { %v2848_v16 = vadd.f32 %v3960_v51, %v2847_v20  ;;  %v2919_v27 = vadd.f32 %v2918_v42, %v2888_v49 }
 0x357   : > { %v2849_v1 = vrot.slane %v2848_v16, 4  ;;  %v2920_v26 = vadd.f32 %v2919_v27, %v2889_v17 }
 0x359   : > { %v2850_v23 = vadd.f32 %v2849_v1, %v2848_v16  ;;  %v2921_v63 = vrot.slane %v2920_v26, 4 }
 0x35b   : > { %v2851_v4 = vrot.slane %v2850_v23, 2  ;;  %v2922_v24 = vadd.f32 %v2921_v63, %v2920_v26 }
 0x35d   : > { %v2852_v0 = vadd.f32 %v2851_v4, %v2850_v23  ;;  %v2923_v11 = vrot.slane %v2922_v24, 2 }
 0x35f   : > { %v2853_v59 = vrot.slane %v2852_v0, 1  ;;  %v2924_v48 = vadd.f32 %v2923_v11, %v2922_v24 }
 0x361   : > { %v2854_v10 = vadd.f32 %v2853_v59, %v2852_v0  ;;  %v2925_v9 = vrot.slane %v2924_v48, 1 }
 0x363   : > { %v2855_v56 = vadd.f32 %v2854_v10, %v2817_v8  ;;  %v2926_v21 = vadd.f32 %v2925_v9, %v2924_v48 }
 0x365   : > { %2856 = vst [vmem:[%s5060_s18] sm:$0x1] %v2855_v56  ;;  %v2927_v25 = vadd.f32 %v2926_v21, %v2857_v2 }
 0x367   : > { %2928 = vst [vmem:[%s5060_s18 + $0x1] sm:$0x1] %v2927_v25 }
 0x368 PF: > { %s14_s14 = sadd.s32 1, %s4044_s14   ;;  %s5092_s12 = smov %s4040_s13 }
 0x369   : > { %p11_p5 = scmp.ge.s32.totalorder %s14_s14, 4   ;;  %s5093_s13 = smov %s5095_s15 }
 0x36b   :  { %13 = sbr.rel (!%p11_p5) target bundleno = 2 (0x2), region = 77 }

// kernel: residual_block_pallas.4
= control target key start
LH: loop header
LB: loop body
LE: loop exit
PB: predicated region body
PF: predicated region fallthrough
CT: control target
= control target key end

     0   :  { %s5603_s24 = smov 0   ;;  %s5605_s25 = smov 0   ;;  %s7318_s0 = inlined_call_operand.vmem [shape: f32[2,16,16,128], index: 0, kind: input, shape index: {}]   ;;  %s7319_s1 = inlined_call_operand.vmem [shape: bf16[576,64], index: 1, kind: input, shape index: {}]   ;;  %s7320_s2 = inlined_call_operand.vmem [shape: f32[1,64], index: 2, kind: input, shape index: {}]   ;;  %s7321_s3 = inlined_call_operand.vmem [shape: f32[1,64], index: 3, kind: input, shape index: {}]   ;;  %s7322_s4 = inlined_call_operand.vmem [shape: f32[1,64], index: 4, kind: input, shape index: {}]   ;;  %s7323_s5 = inlined_call_operand.vmem [shape: f32[1,64], index: 5, kind: input, shape index: {}]   ;;  %s7324_s6 = inlined_call_operand.vmem [shape: f32[2,16,16,128], index: 6, kind: output, shape index: {0}]   ;;  %s7325_s7 = inlined_call_operand.vmem [shape: f32[2,8,64], index: 7, kind: output, shape index: {1}]  }
   0x1   :  { %s5607_s26 = smov 0  }
   0x2 LB: > { %s30_s27 = sadd.s32 1, %s5555_s25  ;;  %p4332_p0 = scmp.ge.s32.totalorder %s5559_s26, 1  ;;  %s5559_s26 = sphi %s5607_s26, %s18_s26   ;;  %s5555_s25 = sphi %s5605_s25, %s7377_s25   ;;  %s5551_s24 = sphi %s5603_s24, %s7376_s24  }
   0x3   : > { %p32_p1 = scmp.ge.s32.totalorder %s30_s27, 2  ;;  %p254_p2 = scmp.lt.s32.totalorder %s5559_s26, 3 }
   0x5   : > { %s7379_s27 = smov (%p32_p1, %s30_s27), 0  ;;  %p255_p3 = pnand %p4332_p0, %p254_p2 }
   0x7   : > { %258 = sbr.rel (%p255_p3) target bundleno = 644 (0x284), region = 44 }
   0xc   : > { %p295_p4 = scmp.lt.s32.totalorder %s5551_s24, 1  ;;  %vm319_vm0 = vcmask 516096   ;;  %v5382_v0 = vld [vmem:[%s7319_s1 + $0x78] sm:$0xff]   ;;  %v5629_v1 = vld [vmem:[%s7320_s2] ss:$0 sm:$0xff]  ;;  %v5561_v2 = vmov 0.0  }
   0xd   : > { %321 = vst.msk [vmem:[#allocation2 + $0x18] sm:$0x1] %vm319_vm0, %v5561_v2  ;;  %320 = vst.msk [vmem:[#allocation2] sm:$0x1] %vm319_vm0, %v5561_v2  ;;  %v5383_v3 = vld [vmem:[%s7319_s1 + $0x38] sm:$0xff]   ;;  %5340 = vmatprep.subr.bf16.mxu1 %v5382_v0  ;;  %5056 = vmatprep.subr.bf16.mxu0 %v5382_v0  ;;  %v5384_v5 = vld [vmem:[%s7319_s1 + $0x70] sm:$0xff]  }
   0xe   : > { %s7381_s24 = smov (!%p295_p4, %s5551_s24), 1  ;;  %322 = vst.msk [vmem:[#allocation2 + $0x30] sm:$0x1] %vm319_vm0, %v5561_v2  ;;  %323 = vst.msk [vmem:[#allocation2 + $0x48] sm:$0x1] %vm319_vm0, %v5561_v2  ;;  %5348 = vmatpush3.bf16.msra.mxu1 %v5383_v3  ;;  %5057 = vmatpush3.bf16.msra.mxu0 %v5383_v3  ;;  %v5385_v6 = vld [vmem:[%s7319_s1 + $0x30] sm:$0xff]  }
   0xf   : > { %324 = vst.msk [vmem:[#allocation2 + $0x60] sm:$0x1] %vm319_vm0, %v5561_v2  ;;  %325 = vst.msk [vmem:[#allocation2 + $0x78] sm:$0x1] %vm319_vm0, %v5561_v2  ;;  %s4766_s11 = sshll.u32 %s7381_s24, 8  ;;  %5341 = vmatprep.subr.bf16.mxu1 %v5384_v5  ;;  %5058 = vmatprep.subr.bf16.mxu0 %v5384_v5  ;;  %vm499_vm1 = vcmask 523264  }
  0x10   : > { %326 = vst.msk [vmem:[#allocation2 + $0x90] sm:$0x1] %vm319_vm0, %v5561_v2  ;;  %327 = vst.msk [vmem:[#allocation2 + $0xa8] sm:$0x1] %vm319_vm0, %v5561_v2  ;;  %v5710_v4 = vld [vmem:[%s7321_s3] ss:$0 sm:$0xff]  ;;  %s5720_s18 = scalar_lea.vmem %s7318_s0, %s4766_s11  ;;  %s6836_s17 = scalar_lea.vmem %s7324_s6, %s4766_s11 }
  0x11   : > { %328 = vst.msk [vmem:[#allocation2 + $0xc0] sm:$0x1] %vm319_vm0, %v5561_v2  ;;  %329 = vst.msk [vmem:[#allocation2 + $0xd8] sm:$0x1] %vm319_vm0, %v5561_v2  ;;  %v380_v7 = vld [vmem:[%s5720_s18 + $0xb0] sm:$0xff]  ;;  %v358_v8 = vld [vmem:[%s5720_s18] sm:$0xff] }
  0x12   : > { %330 = vst.msk [vmem:[#allocation2 + $0xf0] sm:$0x1] %vm319_vm0, %v5561_v2  ;;  %331 = vst.msk [vmem:[#allocation2 + $0x108] sm:$0x1] %vm319_vm0, %v5561_v2  ;;  %v381_v9 = vld [vmem:[%s5720_s18 + $0xb8] sm:$0xff]  ;;  %v418_v10 = vmul.f32 %v5629_v1, %v380_v7  ;;  %v396_v11 = vmul.f32 %v5629_v1, %v358_v8  ;;  %v382_v13 = vld [vmem:[%s5720_s18 + $0xc0] sm:$0xff]  ;;  %5349 = vmatpush3.bf16.msra.mxu1 %v5385_v6  ;;  %5059 = vmatpush3.bf16.msra.mxu0 %v5385_v6 }
  0x13   : > { %332 = vst.msk [vmem:[#allocation2 + $0x120] sm:$0x1] %vm319_vm0, %v5561_v2  ;;  %333 = vst.msk [vmem:[#allocation2 + $0x138] sm:$0x1] %vm319_vm0, %v5561_v2  ;;  %v419_v12 = vmul.f32 %v5629_v1, %v381_v9  ;;  %v359_v14 = vld [vmem:[%s5720_s18 + $0x8] sm:$0xff]  ;;  %v420_v16 = vmul.f32 %v5629_v1, %v382_v13  ;;  %v360_v19 = vld [vmem:[%s5720_s18 + $0x10] sm:$0xff] }
  0x14   : > { %334 = vst.msk [vmem:[#allocation2 + $0x150] sm:$0x1] %vm319_vm0, %v5561_v2  ;;  %335 = vst.msk [vmem:[#allocation2 + $0x168] sm:$0x1] %vm319_vm0, %v5561_v2  ;;  %v383_v15 = vld [vmem:[%s5720_s18 + $0xc8] sm:$0xff]  ;;  %v397_v17 = vmul.f32 %v5629_v1, %v359_v14  ;;  %v361_v20 = vld [vmem:[%s5720_s18 + $0x18] sm:$0xff]  ;;  %v456_v21 = vadd.f32 %v5710_v4, %v418_v10  ;;  %v434_v22 = vadd.f32 %v5710_v4, %v396_v11 }
  0x15   : > { %336 = vst.msk [vmem:[#allocation2 + $0x180] sm:$0x1] %vm319_vm0, %v5561_v2  ;;  %337 = vst.msk [vmem:[#allocation2 + $0x198] sm:$0x1] %vm319_vm0, %v5561_v2  ;;  %v421_v18 = vmul.f32 %v5629_v1, %v383_v15  ;;  %v457_v23 = vadd.f32 %v5710_v4, %v419_v12  ;;  %v398_v24 = vmul.f32 %v5629_v1, %v360_v19  ;;  %v384_v29 = vld [vmem:[%s5720_s18 + $0xd0] sm:$0xff]  ;;  %v385_v30 = vld [vmem:[%s5720_s18 + $0xd8] sm:$0xff] }
  0x16   : > { %338 = vst.msk [vmem:[#allocation2 + $0x11] sm:$0x1] %vm319_vm0, %v5561_v2  ;;  %339 = vst.msk [vmem:[#allocation2 + $0x29] sm:$0x1] %vm319_vm0, %v5561_v2  ;;  %v458_v25 = vadd.f32 %v5710_v4, %v420_v16  ;;  %v435_v26 = vadd.f32 %v5710_v4, %v397_v17  ;;  %v399_v28 = vmul.f32 %v5629_v1, %v361_v20  ;;  %v488_v31 = vmax.f32 %v456_v21, 0.0  ;;  %v362_v35 = vld [vmem:[%s5720_s18 + $0x20] sm:$0xff] }
  0x17   : > { %340 = vst.msk [vmem:[#allocation2 + $0x41] sm:$0x1] %vm319_vm0, %v5561_v2  ;;  %341 = vst.msk [vmem:[#allocation2 + $0x59] sm:$0x1] %vm319_vm0, %v5561_v2  ;;  %v459_v27 = vadd.f32 %v5710_v4, %v421_v18  ;;  %v466_v32 = vmax.f32 %v434_v22, 0.0  ;;  %v489_v33 = vmax.f32 %v457_v23, 0.0  ;;  %v436_v34 = vadd.f32 %v5710_v4, %v398_v24 }
  0x18   : > { %342 = vst.msk [vmem:[#allocation2 + $0x71] sm:$0x1] %vm319_vm0, %v5561_v2  ;;  %343 = vst.msk [vmem:[#allocation2 + $0x89] sm:$0x1] %vm319_vm0, %v5561_v2  ;;  %v363_v36 = vld [vmem:[%s5720_s18 + $0x28] sm:$0xff]  ;;  %v490_v37 = vmax.f32 %v458_v25, 0.0  ;;  %v437_v40 = vadd.f32 %v5710_v4, %v399_v28  ;;  %v422_v45 = vmul.f32 %v5629_v1, %v384_v29  ;;  %v423_v46 = vmul.f32 %v5629_v1, %v385_v30 }
  0x19   : > { %344 = vst.msk [vmem:[#allocation2 + $0xa1] sm:$0x1] %vm319_vm0, %v5561_v2  ;;  %345 = vst.msk [vmem:[#allocation2 + $0xb9] sm:$0x1] %vm319_vm0, %v5561_v2  ;;  %v467_v38 = vmax.f32 %v435_v26, 0.0  ;;  %v491_v39 = vmax.f32 %v459_v27, 0.0  ;;  %v400_v51 = vmul.f32 %v5629_v1, %v362_v35  ;;  %v401_v52 = vmul.f32 %v5629_v1, %v363_v36 }
  0x1a   : > { %346 = vst.msk [vmem:[#allocation2 + $0xd1] sm:$0x1] %vm319_vm0, %v5561_v2  ;;  %347 = vst.msk [vmem:[#allocation2 + $0xe9] sm:$0x1] %vm319_vm0, %v5561_v2  ;;  %v386_v41 = vld [vmem:[%s5720_s18 + $0xe0] sm:$0xff]  ;;  %v387_v42 = vld [vmem:[%s5720_s18 + $0xe8] sm:$0xff]  ;;  %v460_v55 = vadd.f32 %v5710_v4, %v422_v45  ;;  %v461_v56 = vadd.f32 %v5710_v4, %v423_v46 }
  0x1b   : > { %348 = vst.msk [vmem:[#allocation2 + $0x101] sm:$0x1] %vm319_vm0, %v5561_v2  ;;  %349 = vst.msk [vmem:[#allocation2 + $0x119] sm:$0x1] %vm319_vm0, %v5561_v2  ;;  %v468_v43 = vmax.f32 %v436_v34, 0.0  ;;  %v548_v44 = vmul.f32 0.0, %v466_v32  ;;  %v424_v57 = vmul.f32 %v5629_v1, %v386_v41  ;;  %v425_v58 = vmul.f32 %v5629_v1, %v387_v42 }
  0x1c   : > { %350 = vst.msk [vmem:[#allocation2 + $0x131] sm:$0x1] %vm319_vm0, %v5561_v2  ;;  %351 = vst.msk [vmem:[#allocation2 + $0x149] sm:$0x1] %vm319_vm0, %v5561_v2  ;;  %v364_v47 = vld [vmem:[%s5720_s18 + $0x30] sm:$0xff]  ;;  %v365_v48 = vld [vmem:[%s5720_s18 + $0x38] sm:$0xff]  ;;  %v438_v61 = vadd.f32 %v5710_v4, %v400_v51  ;;  %v439_v62 = vadd.f32 %v5710_v4, %v401_v52 }
  0x1d   : > { %352 = vst.msk [vmem:[#allocation2 + $0x161] sm:$0x1] %vm319_vm0, %v5561_v2  ;;  %353 = vst.msk [vmem:[#allocation2 + $0x179] sm:$0x1] %vm319_vm0, %v5561_v2  ;;  %v469_v49 = vmax.f32 %v437_v40, 0.0  ;;  %v549_v50 = vmul.f32 0.0, %v467_v38  ;;  %v402_v63 = vmul.f32 %v5629_v1, %v364_v47  ;;  %v403_v0 = vmul.f32 %v5629_v1, %v365_v48 }
  0x1e   : > { %354 = vst.msk [vmem:[#allocation2 + $0x191] sm:$0x1] %vm319_vm0, %v5561_v2  ;;  %355 = vst.msk [vmem:[#allocation2 + $0x1a9] sm:$0x1] %vm319_vm0, %v5561_v2  ;;  %v5386_v53 = vld [vmem:[%s7319_s1 + $0x68] sm:$0xff]   ;;  %v388_v59 = vld [vmem:[%s5720_s18 + $0xf0] sm:$0xff]  ;;  %v462_v8 = vadd.f32 %v5710_v4, %v424_v57  ;;  %v463_v9 = vadd.f32 %v5710_v4, %v425_v58 }
  0x1f   : > { %522 = vst.msk [vmem:[#allocation2 + $0x121] sm:$0xff] %vm499_vm1, %v488_v31  ;;  %500 = vst.msk [vmem:[#allocation2 + $0x19] sm:$0xff] %vm499_vm1, %v466_v32  ;;  %v5387_v54 = vld [vmem:[%s7319_s1 + $0x28] sm:$0xff]   ;;  %v389_v60 = vld [vmem:[%s5720_s18 + $0xf8] sm:$0xff]  ;;  %5342 = vmatprep.subr.bf16.mxu1 %v5386_v53  ;;  %v492_v6 = vmax.f32 %v460_v55, 0.0  ;;  %v493_v7 = vmax.f32 %v461_v56, 0.0  ;;  %5060 = vmatprep.subr.bf16.mxu0 %v5386_v53  ;;  %v440_v13 = vadd.f32 %v5710_v4, %v402_v63 }
  0x20   : > { %523 = vst.msk [vmem:[#allocation2 + $0x129] sm:$0xff] %vm499_vm1, %v489_v33  ;;  %524 = vst.msk [vmem:[#allocation2 + $0x139] sm:$0xff] %vm499_vm1, %v490_v37  ;;  %v366_v3 = vld [vmem:[%s5720_s18 + $0x40] sm:$0xff]  ;;  %v367_v10 = vld [vmem:[%s5720_s18 + $0x48] sm:$0xff]  ;;  %5350 = vmatpush3.bf16.msra.mxu1 %v5387_v54  ;;  %v470_v11 = vmax.f32 %v438_v61, 0.0  ;;  %v471_v12 = vmax.f32 %v439_v62, 0.0  ;;  %v441_v14 = vadd.f32 %v5710_v4, %v403_v0  ;;  %5061 = vmatpush3.bf16.msra.mxu0 %v5387_v54 }
  0x21   : > { %501 = vst.msk [vmem:[#allocation2 + $0x21] sm:$0xff] %vm499_vm1, %v467_v38  ;;  %525 = vst.msk [vmem:[#allocation2 + $0x141] sm:$0xff] %vm499_vm1, %v491_v39  ;;  %v5388_v5 = vld [vmem:[%s7319_s1 + $0x60] sm:$0xff]   ;;  %v5390_v16 = vld [vmem:[%s7319_s1 + $0x58] sm:$0xff]   ;;  %v494_v17 = vmax.f32 %v462_v8, 0.0  ;;  %v495_v18 = vmax.f32 %v463_v9, 0.0  ;;  %v426_v19 = vmul.f32 %v5629_v1, %v388_v59  ;;  %v427_v20 = vmul.f32 %v5629_v1, %v389_v60 }
  0x22   : > { %502 = vst.msk [vmem:[#allocation2 + $0x31] sm:$0xff] %vm499_vm1, %v468_v43  ;;  %550 = vst.msk [vmem:[#allocation2 + $0x1] sm:$0xff] %vm499_vm1, %v548_v44  ;;  %5343 = vmatprep.subr.bf16.mxu1 %v5388_v5  ;;  %v5389_v15 = vld [vmem:[%s7319_s1 + $0x20] sm:$0xff]   ;;  %5062 = vmatprep.subr.bf16.mxu0 %v5388_v5  ;;  %v472_v24 = vmax.f32 %v440_v13, 0.0  ;;  %v473_v25 = vmax.f32 %v441_v14, 0.0  ;;  %vm734_vm2 = vcmask 519168   ;;  %v404_v31 = vmul.f32 %v5629_v1, %v366_v3 }
  0x23   : > { %503 = vst.msk [vmem:[#allocation2 + $0x39] sm:$0xff] %vm499_vm1, %v469_v49  ;;  %551 = vst.msk [vmem:[#allocation2 + $0x9] sm:$0xff] %vm499_vm1, %v549_v50  ;;  %v464_v30 = vadd.f32 %v5710_v4, %v426_v19  ;;  %v465_v35 = vadd.f32 %v5710_v4, %v427_v20  ;;  %v405_v36 = vmul.f32 %v5629_v1, %v367_v10  ;;  %s5562_s13 = smov 64   ;;  %v368_v54 = vld [vmem:[%s5720_s18 + $0x50] sm:$0xff]  ;;  %v369_v61 = vld [vmem:[%s5720_s18 + $0x58] sm:$0xff]  ;;  %vm991_vm3 = vcmask 1043968  }
  0x24   : > { %526 = vst.msk [vmem:[#allocation2 + $0x151] sm:$0xff] %vm499_vm1, %v492_v6  ;;  %527 = vst.msk [vmem:[#allocation2 + $0x159] sm:$0xff] %vm499_vm1, %v493_v7  ;;  %5351 = vmatpush3.bf16.msra.mxu1 %v5389_v15  ;;  %5063 = vmatpush3.bf16.msra.mxu0 %v5389_v15  ;;  %v442_v46 = vadd.f32 %v5710_v4, %v404_v31  ;;  %v406_v5 = vmul.f32 %v5629_v1, %v368_v54  ;;  %v370_v7 = vld [vmem:[%s5720_s18 + $0x60] sm:$0xff]  ;;  %v371_v8 = vld [vmem:[%s5720_s18 + $0x68] sm:$0xff]  ;;  %vm4171_vm4 = vcmask 1048064  }
  0x25   : > { %504 = vst.msk [vmem:[#allocation2 + $0x49] sm:$0xff] %vm499_vm1, %v470_v11  ;;  %505 = vst.msk [vmem:[#allocation2 + $0x51] sm:$0xff] %vm499_vm1, %v471_v12  ;;  %5344 = vmatprep.subr.bf16.mxu1 %v5390_v16  ;;  %v496_v40 = vmax.f32 %v464_v30, 0.0  ;;  %v497_v44 = vmax.f32 %v465_v35, 0.0  ;;  %5064 = vmatprep.subr.bf16.mxu0 %v5390_v16  ;;  %v443_v51 = vadd.f32 %v5710_v4, %v405_v36 }
  0x26   : > { %v791_v21 = vld [vmem:[#allocation2 + $0x121] sm:$0xff]  ;;  %v1216_v22 = vld [vmem:[#allocation2 + $0x18] sm:$0xff]  ;;  %528 = vst.msk [vmem:[#allocation2 + $0x169] sm:$0xff] %vm499_vm1, %v494_v17  ;;  %529 = vst.msk [vmem:[#allocation2 + $0x171] sm:$0xff] %vm499_vm1, %v495_v18  ;;  %v474_v60 = vmax.f32 %v442_v46, 0.0  ;;  %v407_v6 = vmul.f32 %v5629_v1, %v369_v61  ;;  %v444_v13 = vadd.f32 %v5710_v4, %v406_v5  ;;  %v408_v20 = vmul.f32 %v5629_v1, %v370_v7 }
  0x27   : > { %v792_v23 = vld [vmem:[#allocation2 + $0x129] sm:$0xff]  ;;  %v4824_v26 = vpack.c.bf16 %v791_v21, %v791_v21  ;;  %v4864_v27 = vpack.c.bf16 %v1216_v22, %v1216_v22  ;;  %v1240_v28 = vld [vmem:[#allocation2 + $0x138] sm:$0xff]  ;;  %506 = vst.msk [vmem:[#allocation2 + $0x61] sm:$0xff] %vm499_vm1, %v472_v24  ;;  %507 = vst.msk [vmem:[#allocation2 + $0x69] sm:$0xff] %vm499_vm1, %v473_v25  ;;  %v475_v3 = vmax.f32 %v443_v51, 0.0  ;;  %v409_v21 = vmul.f32 %v5629_v1, %v371_v8 }
  0x28   : > { %v1217_v29 = vld [vmem:[#allocation2 + $0x20] sm:$0xff]  ;;  %v4888_v32 = vpack.c.bf16 %v1240_v28, %v1240_v28  ;;  %v4825_v37 = vpack.c.bf16 %v792_v23, %v792_v23  ;;  %530 = vst.msk [vmem:[#allocation2 + $0x181] sm:$0xff] %vm499_vm1, %v496_v40  ;;  %531 = vst.msk [vmem:[#allocation2 + $0x189] sm:$0xff] %vm499_vm1, %v497_v44  ;;  %v445_v14 = vadd.f32 %v5710_v4, %v407_v6  ;;  %v372_v18 = vld [vmem:[%s5720_s18 + $0x70] sm:$0xff] }
  0x29   : > { %v5812_v33 = vpack.c.bf16 %v1217_v29, %v1217_v29  ;;  %v1241_v34 = vld [vmem:[#allocation2 + $0x140] sm:$0xff]  ;;  %943 = vrot.lane.b32.xlu1 %v4824_v26, %s5562_s13  ;;  %1344 = vrot.lane.b32.xlu0 %v4864_v27, %s5562_s13  ;;  %v1218_v39 = vld [vmem:[#allocation2 + $0x30] sm:$0xff]  ;;  %737 = vst.msk [vmem:[#allocation3 + $0x28] sm:$0xf] %vm734_vm2, %v4864_v27  ;;  %v373_v24 = vld [vmem:[%s5720_s18 + $0x78] sm:$0xff]  ;;  %v476_v27 = vmax.f32 %v444_v13, 0.0  ;;  %v446_v31 = vadd.f32 %v5710_v4, %v408_v20 }
  0x2a   : > { %v5820_v38 = vpack.c.bf16 %v1241_v34, %v1241_v34  ;;  %v769_v41 = vld [vmem:[#allocation2 + $0x19] sm:$0xff]  ;;  %v5823_v42 = vpack.c.bf16 %v1218_v39, %v1218_v39  ;;  %761 = vst.msk [vmem:[#allocation3 + $0x208] sm:$0xf] %vm734_vm2, %v4888_v32  ;;  %v1665_v47 = vld [vmem:[#allocation2 + $0x22] sm:$0xff]  ;;  %v477_v28 = vmax.f32 %v445_v14, 0.0 }
  0x2b   : > { %v1219_v43 = vld [vmem:[#allocation2 + $0x38] sm:$0xff]  ;;  %738 = vst.msk [vmem:[#allocation3 + $0x3c] sm:$0xf] %vm734_vm2, %v5812_v33  ;;  %v1242_v50 = vld [vmem:[#allocation2 + $0x150] sm:$0xff]  ;;  %v5836_v52 = vpack.c.bf16 %v1665_v47, %v1665_v47  ;;  %v4802_v55 = vpack.c.bf16 %v769_v41, %v769_v41  ;;  %v770_v10 = vld [vmem:[#allocation2 + $0x21] sm:$0xff] }
  0x2c   : > { %v5828_v45 = vpack.c.bf16 %v1219_v43, %v1219_v43  ;;  %v1664_v48 = vld [vmem:[#allocation2 + $0x1a] sm:$0xff]  ;;  %762 = vst.msk [vmem:[#allocation3 + $0x21c] sm:$0xf] %vm734_vm2, %v5820_v38  ;;  %739 = vst.msk [vmem:[#allocation3 + $0x50] sm:$0xf] %vm734_vm2, %v5823_v42  ;;  %v5847_v57 = vpack.c.bf16 %v1242_v50, %v1242_v50  ;;  %v1221_v58 = vld [vmem:[#allocation2 + $0x50] sm:$0xff]  ;;  %v4803_v25 = vpack.c.bf16 %v770_v10, %v770_v10 }
  0x2d   : > { %v1243_v49 = vld [vmem:[#allocation2 + $0x158] sm:$0xff]  ;;  %v5838_v53 = vpack.c.bf16 %v1664_v48, %v1664_v48  ;;  %945 = vrot.lane.b32.xlu1 %v4825_v37, %s5562_s13  ;;  %1392 = vrot.lane.b32.xlu0 %v4888_v32, %s5562_s13  ;;  %v1220_v59 = vld [vmem:[#allocation2 + $0x48] sm:$0xff]  ;;  %v5852_v63 = vpack.c.bf16 %v1221_v58, %v1221_v58  ;;  %1187 = vst.msk [vmem:[#allocation3 + $0x40] sm:$0xf] %vm734_vm2, %v5836_v52  ;;  %v598_v22 = vld [vmem:[#allocation2 + $0x120] sm:$0xff]  ;;  %v478_v43 = vmax.f32 %v446_v31, 0.0 }
  0x2e   : > { %v5845_v56 = vpack.c.bf16 %v1243_v49, %v1243_v49  ;;  %740 = vst.msk [vmem:[#allocation3 + $0x64] sm:$0xf] %vm734_vm2, %v5828_v45  ;;  %v793_v62 = vld [vmem:[#allocation2 + $0x139] sm:$0xff]  ;;  %v5854_v0 = vpack.c.bf16 %v1220_v59, %v1220_v59  ;;  %763 = vst.msk [vmem:[#allocation3 + $0x230] sm:$0xf] %vm734_vm2, %v5847_v57  ;;  %v1668_v17 = vld [vmem:[#allocation2 + $0x4a] sm:$0xff]  ;;  %v447_v32 = vadd.f32 %v5710_v4, %v409_v21 }
  0x2f   : > { %1186 = vst.msk [vmem:[#allocation3 + $0x2c] sm:$0xf] %vm734_vm2, %v5838_v53  ;;  %742 = vst.msk [vmem:[#allocation3 + $0x8c] sm:$0xf] %vm734_vm2, %v5852_v63  ;;  %v4826_v9 = vpack.c.bf16 %v793_v62, %v793_v62  ;;  %v1667_v11 = vld [vmem:[#allocation2 + $0x3a] sm:$0xff]  ;;  %v1666_v12 = vld [vmem:[#allocation2 + $0x32] sm:$0xff]  ;;  %v5904_v35 = vpack.c.bf16 %v598_v22, %v598_v22  ;;  %v410_v37 = vmul.f32 %v5629_v1, %v372_v18 }
  0x30   : > { %508 = vst.msk [vmem:[#allocation2 + $0x79] sm:$0xff] %vm499_vm1, %v474_v60  ;;  %509 = vst.msk [vmem:[#allocation2 + $0x81] sm:$0xff] %vm499_vm1, %v475_v3  ;;  %v5879_v15 = vpack.c.bf16 %v1667_v11, %v1667_v11  ;;  %v1669_v16 = vld [vmem:[#allocation2 + $0x52] sm:$0xff]  ;;  %v5882_v19 = vpack.c.bf16 %v1666_v12, %v1666_v12  ;;  %v1024_v23 = vld [vmem:[#allocation2 + $0x2] sm:$0xff]  ;;  %v479_v44 = vmax.f32 %v447_v32, 0.0 }
  0x31   : > { %764 = vst.msk [vmem:[#allocation3 + $0x244] sm:$0xf] %vm734_vm2, %v5845_v56  ;;  %741 = vst.msk [vmem:[#allocation3 + $0x78] sm:$0xf] %vm734_vm2, %v5854_v0  ;;  %1346 = vrot.lane.b32.xlu1 %v5812_v33, %s5562_s13  ;;  %899 = vrot.lane.b32.xlu0 %v4802_v55, %s5562_s13  ;;  %v5887_v26 = vld [vmem:[#allocation2 + $0x141] sm:$0xff]  ;;  %v5889_v29 = vpack.c.bf16 %v1669_v16, %v1669_v16  ;;  %v5898_v33 = vpack.c.bf16 %v1668_v17, %v1668_v17  ;;  %v1671_v40 = vld [vmem:[#allocation2 + $0x6a] sm:$0xff] }
  0x32   : > { %1189 = vst.msk [vmem:[#allocation3 + $0x68] sm:$0xf] %vm734_vm2, %v5879_v15  ;;  %v767_v30 = vld [vmem:[#allocation2 + $0x1] sm:$0xff]  ;;  %1188 = vst.msk [vmem:[#allocation3 + $0x54] sm:$0xf] %vm734_vm2, %v5882_v19  ;;  %v4832_v36 = vpack.c.bf16 %v1024_v23, %v1024_v23  ;;  %v5391_v41 = vld [vmem:[%s7319_s1 + $0x18] sm:$0xff]   ;;  %v4827_v48 = vpack.c.bf16 %v5887_v26, %v5887_v26  ;;  %v448_v51 = vadd.f32 %v5710_v4, %v410_v37 }
  0x33   : > { %v599_v34 = vld [vmem:[#allocation2 + $0x128] sm:$0xff]  ;;  %510 = vst.msk [vmem:[#allocation2 + $0x91] sm:$0xff] %vm499_vm1, %v476_v27  ;;  %511 = vst.msk [vmem:[#allocation2 + $0x99] sm:$0xff] %vm499_vm1, %v477_v28  ;;  %v4800_v49 = vpack.c.bf16 %v767_v30, %v767_v30  ;;  %5352 = vmatpush3.bf16.msra.mxu1 %v5391_v41  ;;  %v5392_v55 = vld [vmem:[%s7319_s1 + $0x50] sm:$0xff]   ;;  %v5932_v61 = vpack.c.bf16 %v1671_v40, %v1671_v40  ;;  %5065 = vmatpush3.bf16.msra.mxu0 %v5391_v41 }
  0x34   : > { %v1048_v39 = vld [vmem:[#allocation2 + $0x122] sm:$0xff]  ;;  %1191 = vst.msk [vmem:[#allocation3 + $0x90] sm:$0xf] %vm734_vm2, %v5889_v29  ;;  %v1025_v47 = vld [vmem:[#allocation2 + $0xa] sm:$0xff]  ;;  %1190 = vst.msk [vmem:[#allocation3 + $0x7c] sm:$0xf] %vm734_vm2, %v5898_v33  ;;  %v5930_v59 = vpack.c.bf16 %v599_v34, %v599_v34  ;;  %5345 = vmatprep.subr.bf16.mxu1 %v5392_v55  ;;  %5066 = vmatprep.subr.bf16.mxu0 %v5392_v55 }
  0x35   : > { %1394 = vrot.lane.b32.xlu1 %v5820_v38, %s5562_s13  ;;  %947 = vrot.lane.b32.xlu0 %v4826_v9, %s5562_s13  ;;  %v411_v38 = vmul.f32 %v5629_v1, %v373_v24  ;;  %v1670_v46 = vld [vmem:[#allocation2 + $0x62] sm:$0xff]  ;;  %759 = vst.msk [vmem:[#allocation3 + $0x1e0] sm:$0xf] %vm734_vm2, %v5904_v35  ;;  %1184 = vst.msk [vmem:[#allocation3 + $0x4] sm:$0xf] %vm734_vm2, %v4832_v36  ;;  %v1049_v58 = vld [vmem:[#allocation2 + $0x12a] sm:$0xff]  ;;  %v4856_v60 = vpack.c.bf16 %v1048_v39, %v1048_v39 }
  0x36   : > { %v768_v50 = vld [vmem:[#allocation2 + $0x9] sm:$0xff]  ;;  %512 = vst.msk [vmem:[#allocation2 + $0xa9] sm:$0xff] %vm499_vm1, %v478_v43  ;;  %513 = vst.msk [vmem:[#allocation2 + $0xb1] sm:$0xff] %vm499_vm1, %v479_v44  ;;  %v574_v62 = vld [vmem:[#allocation2] sm:$0xff]  ;;  %v480_v3 = vmax.f32 %v448_v51, 0.0  ;;  %v5934_v6 = vpack.c.bf16 %v1670_v46, %v1670_v46  ;;  %v4833_v7 = vpack.c.bf16 %v1025_v47, %v1025_v47  ;;  %v4857_v9 = vpack.c.bf16 %v1049_v58, %v1049_v58 }
  0x37   : > { %v449_v54 = vadd.f32 %v5710_v4, %v411_v38  ;;  %v5394_v8 = vld [vmem:[%s7319_s1 + $0x48] sm:$0xff]   ;;  %760 = vst.msk [vmem:[#allocation3 + $0x1f4] sm:$0xf] %vm734_vm2, %v5930_v59  ;;  %1208 = vst.msk [vmem:[#allocation3 + $0x1e4] sm:$0xf] %vm734_vm2, %v4856_v60  ;;  %v4768_v10 = vpack.c.bf16 %v574_v62, %v574_v62  ;;  %v374_v12 = vld [vmem:[%s5720_s18 + $0x80] sm:$0xff]  ;;  %v4801_v14 = vpack.c.bf16 %v768_v50, %v768_v50 }
  0x38   : > { %1193 = vst.msk [vmem:[#allocation3 + $0xb8] sm:$0xf] %vm734_vm2, %v5932_v61  ;;  %1185 = vst.msk [vmem:[#allocation3 + $0x18] sm:$0xf] %vm734_vm2, %v4833_v7  ;;  %v5395_v11 = vld [vmem:[%s7319_s1 + $0x8] sm:$0xff]   ;;  %v412_v16 = vmul.f32 %v5629_v1, %v374_v12  ;;  %v5396_v21 = vld [vmem:[%s7319_s1 + $0x40] sm:$0xff]  }
  0x39   : > { %901 = vrot.lane.b32.xlu1 %v4803_v25, %s5562_s13  ;;  %1348 = vrot.lane.b32.xlu0 %v5823_v42, %s5562_s13  ;;  %v481_v5 = vmax.f32 %v449_v54, 0.0  ;;  %v5393_v42 = vld [vmem:[%s7319_s1 + $0x10] sm:$0xff]   ;;  %514 = vst.msk [vmem:[#allocation2 + $0xc1] sm:$0xff] %vm499_vm1, %v480_v3  ;;  %v375_v13 = vld [vmem:[%s5720_s18 + $0x88] sm:$0xff]  ;;  %v772_v22 = vld [vmem:[#allocation2 + $0x39] sm:$0xff] }
  0x3a   : > { %5353 = vmatpush3.bf16.msra.mxu1 %v5393_v42  ;;  %1192 = vst.msk [vmem:[#allocation3 + $0xa4] sm:$0xf] %vm734_vm2, %v5934_v6  ;;  %1209 = vst.msk [vmem:[#allocation3 + $0x1f8] sm:$0xf] %vm734_vm2, %v4857_v9  ;;  %v413_v17 = vmul.f32 %v5629_v1, %v375_v13  ;;  %5067 = vmatpush3.bf16.msra.mxu0 %v5393_v42  ;;  %v450_v18 = vadd.f32 %v5710_v4, %v412_v16  ;;  %v771_v23 = vld [vmem:[#allocation2 + $0x31] sm:$0xff]  ;;  %v5397_v25 = vld [vmem:[%s7319_s1] sm:$0xff]  }
  0x3b   : > { %515 = vst.msk [vmem:[#allocation2 + $0xc9] sm:$0xff] %vm499_vm1, %v481_v5  ;;  %5346 = vmatprep.subr.bf16.mxu1 %v5394_v8  ;;  %5068 = vmatprep.subr.bf16.mxu0 %v5394_v8  ;;  %v1673_v26 = vld [vmem:[#allocation2 + $0x82] sm:$0xff]  ;;  %v1672_v30 = vld [vmem:[#allocation2 + $0x7a] sm:$0xff]  ;;  %v5981_v37 = vpack.c.bf16 %v772_v22, %v772_v22  ;;  %v795_v39 = vld [vmem:[#allocation2 + $0x151] sm:$0xff]  ;;  %v5991_v43 = vpack.c.bf16 %v771_v23, %v771_v23 }
  0x3c   : > { %735 = vst.msk [vmem:[#allocation3] sm:$0xf] %vm734_vm2, %v4768_v10  ;;  %v451_v20 = vadd.f32 %v5710_v4, %v413_v17  ;;  %v482_v24 = vmax.f32 %v450_v18, 0.0  ;;  %v5974_v28 = vpack.c.bf16 %v1673_v26, %v1673_v26  ;;  %v575_v31 = vld [vmem:[#allocation2 + $0x8] sm:$0xff]  ;;  %v796_v38 = vld [vmem:[#allocation2 + $0x159] sm:$0xff]  ;;  %v376_v41 = vld [vmem:[%s5720_s18 + $0x90] sm:$0xff]  ;;  %v4828_v9 = vpack.c.bf16 %v795_v39, %v795_v39 }
  0x3d   : > { %949 = vrot.lane.b32.xlu1 %v4827_v48, %s5562_s13  ;;  %895 = vrot.lane.b32.xlu0 %v4800_v49, %s5562_s13  ;;  %v1051_v32 = vld [vmem:[#allocation2 + $0x142] sm:$0xff]  ;;  %v4769_v34 = vpack.c.bf16 %v575_v31, %v575_v31  ;;  %v1050_v40 = vld [vmem:[#allocation2 + $0x13a] sm:$0xff]  ;;  %v414_v47 = vmul.f32 %v5629_v1, %v376_v41  ;;  %v1674_v49 = vld [vmem:[#allocation2 + $0x92] sm:$0xff]  ;;  %v4829_v8 = vpack.c.bf16 %v796_v38, %v796_v38 }
  0x3e   : > { %5354 = vmatpush3.bf16.msra.mxu1 %v5395_v11  ;;  %v483_v27 = vmax.f32 %v451_v20, 0.0  ;;  %5069 = vmatpush3.bf16.msra.mxu0 %v5395_v11  ;;  %516 = vst.msk [vmem:[#allocation2 + $0xd9] sm:$0xff] %vm499_vm1, %v482_v24  ;;  %v5979_v36 = vpack.c.bf16 %v1051_v32, %v1051_v32  ;;  %v5996_v44 = vpack.c.bf16 %v1050_v40, %v1050_v40  ;;  %v377_v46 = vld [vmem:[%s5720_s18 + $0x98] sm:$0xff]  ;;  %v378_v55 = vld [vmem:[%s5720_s18 + $0xa0] sm:$0xff]  ;;  %v379_v3 = vld [vmem:[%s5720_s18 + $0xa8] sm:$0xff] }
  0x3f   : > { %5347 = vmatprep.subr.bf16.mxu1 %v5396_v21  ;;  %5070 = vmatprep.subr.bf16.mxu0 %v5396_v21  ;;  %1195 = vst.msk [vmem:[#allocation3 + $0xe0] sm:$0xf] %vm734_vm2, %v5974_v28  ;;  %736 = vst.msk [vmem:[#allocation3 + $0x14] sm:$0xf] %vm734_vm2, %v4769_v34  ;;  %v1675_v48 = vld [vmem:[#allocation2 + $0x9a] sm:$0xff]  ;;  %v6005_v50 = vpack.c.bf16 %v1674_v49, %v1674_v49  ;;  %v1052_v54 = vld [vmem:[#allocation2 + $0x152] sm:$0xff]  ;;  %v452_v58 = vadd.f32 %v5710_v4, %v414_v47 }
  0x40   : > { %517 = vst.msk [vmem:[#allocation2 + $0xe1] sm:$0xff] %vm499_vm1, %v483_v27  ;;  %v1053_v51 = vld [vmem:[#allocation2 + $0x15a] sm:$0xff]  ;;  %v6013_v62 = vpack.c.bf16 %v1052_v54, %v1052_v54  ;;  %v416_v5 = vmul.f32 %v5629_v1, %v378_v55  ;;  %v417_v42 = vmul.f32 %v5629_v1, %v379_v3  ;;  %v1244_v16 = vld [vmem:[#allocation2 + $0x168] sm:$0xff]  ;;  %v605_v18 = vld [vmem:[#allocation2 + $0x170] sm:$0xff] }
  0x41   : > { %1350 = vrot.lane.b32.xlu1 %v5828_v45, %s5562_s13  ;;  %897 = vrot.lane.b32.xlu0 %v4801_v14, %s5562_s13  ;;  %v5977_v45 = vpack.c.bf16 %v1672_v30, %v1672_v30  ;;  %1211 = vst.msk [vmem:[#allocation3 + $0x220] sm:$0xf] %vm734_vm2, %v5979_v36  ;;  %1210 = vst.msk [vmem:[#allocation3 + $0x20c] sm:$0xf] %vm734_vm2, %v5996_v44  ;;  %v6011_v60 = vpack.c.bf16 %v1053_v51, %v1053_v51  ;;  %v484_v10 = vmax.f32 %v452_v58, 0.0  ;;  %v1245_v14 = vld [vmem:[#allocation2 + $0x170] sm:$0xff] }
  0x42   : > { %5355 = vmatpush3.bf16.msra.mxu1 %v5397_v25  ;;  %5071 = vmatpush3.bf16.msra.mxu0 %v5397_v25  ;;  %1196 = vst.msk [vmem:[#allocation3 + $0xf4] sm:$0xf] %vm734_vm2, %v6005_v50  ;;  %1212 = vst.msk [vmem:[#allocation3 + $0x234] sm:$0xf] %vm734_vm2, %v6013_v62  ;;  %v455_v12 = vadd.f32 %v5710_v4, %v417_v42  ;;  %v604_v20 = vld [vmem:[#allocation2 + $0x168] sm:$0xff]  ;;  %v4799_v21 = vpack.c.bf16 %v605_v18, %v605_v18  ;;  %v1677_v22 = vld [vmem:[#allocation2 + $0xb2] sm:$0xff] }
  0x43   : > { %1194 = vst.msk [vmem:[#allocation3 + $0xcc] sm:$0xf] %vm734_vm2, %v5977_v45  ;;  %1213 = vst.msk [vmem:[#allocation3 + $0x248] sm:$0xf] %vm734_vm2, %v6011_v60  ;;  %v1676_v23 = vld [vmem:[#allocation2 + $0xaa] sm:$0xff]  ;;  %v6041_v24 = vpack.c.bf16 %v1677_v22, %v1677_v22  ;;  %v4893_v26 = vpack.c.bf16 %v1245_v14, %v1245_v14  ;;  %v4892_v27 = vpack.c.bf16 %v1244_v16, %v1244_v16  ;;  %v5412_v30 = vld [vmem:[%s7319_s1 + $0xf8] sm:$0xff]  }
  0x44   : > { %518 = vst.msk [vmem:[#allocation2 + $0xf1] sm:$0xff] %vm499_vm1, %v484_v10  ;;  %v487_v17 = vmax.f32 %v455_v12, 0.0  ;;  %v6043_v25 = vpack.c.bf16 %v1676_v23, %v1676_v23  ;;  %v774_v31 = vld [vmem:[#allocation2 + $0x51] sm:$0xff]  ;;  %v773_v32 = vld [vmem:[#allocation2 + $0x49] sm:$0xff]  ;;  %5168 = vmatprep.subr.bf16.mxu1 %v5412_v30  ;;  %v582_v51 = vld [vmem:[#allocation2 + $0x60] sm:$0xff] }
  0x45   : > { %1398 = vrot.lane.b32.xlu1 %v5845_v56, %s5562_s13  ;;  %1396 = vrot.lane.b32.xlu0 %v5847_v57, %s5562_s13  ;;  %v415_v56 = vmul.f32 %v5629_v1, %v377_v46  ;;  %v6003_v57 = vpack.c.bf16 %v1675_v48, %v1675_v48  ;;  %v454_v1 = vadd.f32 %v5710_v4, %v416_v5  ;;  %v798_v34 = vld [vmem:[#allocation2 + $0x171] sm:$0xff]  ;;  %v797_v39 = vld [vmem:[#allocation2 + $0x169] sm:$0xff]  ;;  %v1222_v54 = vld [vmem:[#allocation2 + $0x60] sm:$0xff] }
  0x46   : > { %521 = vst.msk [vmem:[#allocation2 + $0x111] sm:$0xff] %vm499_vm1, %v487_v17  ;;  %v1055_v38 = vld [vmem:[#allocation2 + $0x172] sm:$0xff]  ;;  %v1054_v41 = vld [vmem:[#allocation2 + $0x16a] sm:$0xff]  ;;  %v4831_v47 = vpack.c.bf16 %v798_v34, %v798_v34  ;;  %v4830_v48 = vpack.c.bf16 %v797_v39, %v797_v39  ;;  %v4776_v58 = vpack.c.bf16 %v582_v51, %v582_v51  ;;  %v4870_v5 = vpack.c.bf16 %v1222_v54, %v1222_v54  ;;  %v775_v17 = vld [vmem:[#allocation2 + $0x61] sm:$0xff] }
  0x47   : > { %v453_v7 = vadd.f32 %v5710_v4, %v415_v56  ;;  %1197 = vst.msk [vmem:[#allocation3 + $0x108] sm:$0xf] %vm734_vm2, %v6003_v57  ;;  %v486_v13 = vmax.f32 %v454_v1, 0.0  ;;  %v4798_v4 = vpack.c.bf16 %v604_v20, %v604_v20  ;;  %766 = vst.msk [vmem:[#allocation3 + $0x26c] sm:$0xf] %vm734_vm2, %v4799_v21  ;;  %v6062_v40 = vpack.c.bf16 %v1055_v38, %v1055_v38  ;;  %v1223_v49 = vld [vmem:[#allocation2 + $0x68] sm:$0xff] }
  0x48   : > { %1199 = vst.msk [vmem:[#allocation3 + $0x130] sm:$0xf] %vm734_vm2, %v6041_v24  ;;  %1198 = vst.msk [vmem:[#allocation3 + $0x11c] sm:$0xf] %vm734_vm2, %v6043_v25  ;;  %v6064_v46 = vpack.c.bf16 %v1054_v41, %v1054_v41  ;;  %v583_v56 = vld [vmem:[#allocation2 + $0x68] sm:$0xff]  ;;  %v4871_v3 = vpack.c.bf16 %v1223_v49, %v1223_v49  ;;  %v1472_v14 = vld [vmem:[#allocation2 + $0x19] sm:$0xff] }
  0x49   : > { %905 = vrot.lane.b32.xlu1 %v5981_v37, %s5562_s13  ;;  %903 = vrot.lane.b32.xlu0 %v5991_v43, %s5562_s13  ;;  %v485_v11 = vmax.f32 %v453_v7, 0.0  ;;  %520 = vst.msk [vmem:[#allocation2 + $0x109] sm:$0xff] %vm499_vm1, %v486_v13  ;;  %v4777_v55 = vpack.c.bf16 %v583_v56, %v583_v56  ;;  %v1246_v7 = vld [vmem:[#allocation2 + $0x180] sm:$0xff]  ;;  %v1247_v42 = vld [vmem:[#allocation2 + $0x188] sm:$0xff]  ;;  %v4896_v20 = vpack.c.bf16 %v1472_v14, %v1472_v14  ;;  %v1922_v22 = vld [vmem:[#allocation2 + $0x38] sm:$0xff] }
  0x4a   : > { %765 = vst.msk [vmem:[#allocation3 + $0x258] sm:$0xf] %vm734_vm2, %v4798_v4  ;;  %1215 = vst.msk [vmem:[#allocation3 + $0x270] sm:$0xf] %vm734_vm2, %v6062_v40  ;;  %v4894_v12 = vpack.c.bf16 %v1246_v7, %v1246_v7  ;;  %v1473_v13 = vld [vmem:[#allocation2 + $0x21] sm:$0xff]  ;;  %v776_v16 = vld [vmem:[#allocation2 + $0x69] sm:$0xff]  ;;  %v6096_v4 = vpack.c.bf16 %v775_v17, %v775_v17  ;;  %v4961_v30 = vpack.c.bf16 %v1922_v22, %v1922_v22 }
  0x4b   : > { %519 = vst.msk [vmem:[#allocation2 + $0xf9] sm:$0xff] %vm499_vm1, %v485_v11  ;;  %v4895_v11 = vpack.c.bf16 %v1247_v42, %v1247_v42  ;;  %v4897_v18 = vpack.c.bf16 %v1473_v13, %v1473_v13  ;;  %v6094_v21 = vpack.c.bf16 %v776_v16, %v776_v16  ;;  %v1921_v23 = vld [vmem:[#allocation2 + $0x30] sm:$0xff]  ;;  %v1680_v34 = vld [vmem:[#allocation2 + $0xda] sm:$0xff]  ;;  %v1923_v13 = vld [vmem:[#allocation2 + $0x48] sm:$0xff] }
  0x4c   : > { %1214 = vst.msk [vmem:[#allocation3 + $0x25c] sm:$0xf] %vm734_vm2, %v6064_v46  ;;  %744 = vst.msk [vmem:[#allocation3 + $0xb4] sm:$0xf] %vm734_vm2, %v4777_v55  ;;  %v6102_v39 = vpack.c.bf16 %v1680_v34, %v1680_v34  ;;  %v584_v49 = vld [vmem:[#allocation2 + $0x78] sm:$0xff]  ;;  %v778_v42 = vld [vmem:[#allocation2 + $0x81] sm:$0xff] }
  0x4d   : > { %953 = vrot.lane.b32.xlu1 %v4829_v8, %s5562_s13  ;;  %951 = vrot.lane.b32.xlu0 %v4828_v9, %s5562_s13  ;;  %743 = vst.msk [vmem:[#allocation3 + $0xa0] sm:$0xf] %vm734_vm2, %v4776_v58  ;;  %2086 = vst.msk [vmem:[#allocation3 + $0x70] sm:$0xf] %vm734_vm2, %v4777_v55  ;;  %v1679_v8 = vld [vmem:[#allocation2 + $0xca] sm:$0xff]  ;;  %v1678_v9 = vld [vmem:[#allocation2 + $0xc2] sm:$0xff]  ;;  %v4778_v51 = vpack.c.bf16 %v584_v49, %v584_v49 }
  0x4e   : > { %2085 = vst.msk [vmem:[#allocation3 + $0x5c] sm:$0xf] %vm734_vm2, %v4776_v58  ;;  %v6080_v10 = vpack.c.bf16 %v1679_v8, %v1679_v8  ;;  %v6082_v1 = vpack.c.bf16 %v1678_v9, %v1678_v9  ;;  %1633 = vst.msk [vmem:[#allocation3 + $0x1c] sm:$0xf] %vm734_vm2, %v4897_v18  ;;  %v1474_v7 = vld [vmem:[#allocation2 + $0x31] sm:$0xff]  ;;  %v777_v8 = vld [vmem:[#allocation2 + $0x79] sm:$0xff]  ;;  %v4962_v18 = vpack.c.bf16 %v1923_v13, %v1923_v13 }
  0x4f   : > { %1632 = vst.msk [vmem:[#allocation3 + $0x8] sm:$0xf] %vm734_vm2, %v4896_v20  ;;  %2082 = vst.msk [vmem:[#allocation3 + $0x20] sm:$0xf] %vm734_vm2, %v4961_v30  ;;  %v1227_v14 = vld [vmem:[#allocation2 + $0x98] sm:$0xff]  ;;  %v1226_v16 = vld [vmem:[#allocation2 + $0x90] sm:$0xff] }
  0x50   : > { %1201 = vst.msk [vmem:[#allocation3 + $0x158] sm:$0xf] %vm734_vm2, %v6080_v10  ;;  %1200 = vst.msk [vmem:[#allocation3 + $0x144] sm:$0xf] %vm734_vm2, %v6082_v1  ;;  %v1685_v20 = vld [vmem:[#allocation2 + $0x112] sm:$0xff]  ;;  %v1684_v22 = vld [vmem:[#allocation2 + $0x10a] sm:$0xff] }
  0x51   : > { %1354 = vrot.lane.b32.xlu1 %v5852_v63, %s5562_s13  ;;  %1352 = vrot.lane.b32.xlu0 %v5854_v0, %s5562_s13  ;;  %v6058_v63 = vpack.c.bf16 %v774_v31, %v774_v31  ;;  %v6060_v0 = vpack.c.bf16 %v773_v32, %v773_v32  ;;  %v4960_v31 = vpack.c.bf16 %v1921_v23, %v1921_v23  ;;  %v1681_v32 = vld [vmem:[#allocation2 + $0xe2] sm:$0xff]  ;;  %v586_v30 = vld [vmem:[#allocation2 + $0x90] sm:$0xff] }
  0x52   : > { %v6100_v38 = vpack.c.bf16 %v1681_v32, %v1681_v32  ;;  %1202 = vst.msk [vmem:[#allocation3 + $0x16c] sm:$0xf] %vm734_vm2, %v6102_v39  ;;  %745 = vst.msk [vmem:[#allocation3 + $0xc8] sm:$0xf] %vm734_vm2, %v4778_v51  ;;  %v1683_v54 = vld [vmem:[#allocation2 + $0xfa] sm:$0xff]  ;;  %v1682_v55 = vld [vmem:[#allocation2 + $0xf2] sm:$0xff]  ;;  %v6144_v23 = vpack.c.bf16 %v1684_v22, %v1684_v22  ;;  %v4780_v32 = vpack.c.bf16 %v586_v30, %v586_v30 }
  0x53   : > { %2081 = vst.msk [vmem:[#allocation3 + $0xc] sm:$0xf] %vm734_vm2, %v4960_v31  ;;  %2087 = vst.msk [vmem:[#allocation3 + $0x84] sm:$0xf] %vm734_vm2, %v4778_v51  ;;  %v6118_v58 = vpack.c.bf16 %v1683_v54, %v1683_v54  ;;  %v1477_v34 = vld [vmem:[#allocation2 + $0x51] sm:$0xff]  ;;  %v1228_v54 = vld [vmem:[#allocation2 + $0xa8] sm:$0xff] }
  0x54   : > { %1203 = vst.msk [vmem:[#allocation3 + $0x180] sm:$0xf] %vm734_vm2, %v6100_v38  ;;  %2083 = vst.msk [vmem:[#allocation3 + $0x34] sm:$0xf] %vm734_vm2, %v4962_v18  ;;  %v4901_v49 = vpack.c.bf16 %v1477_v34, %v1477_v34  ;;  %v781_v13 = vld [vmem:[#allocation2 + $0xa9] sm:$0xff] }
  0x55   : > { %1402 = vrot.lane.b32.xlu1 %v4893_v26, %s5562_s13  ;;  %1400 = vrot.lane.b32.xlu0 %v4892_v27, %s5562_s13  ;;  %v1225_v26 = vld [vmem:[#allocation2 + $0x80] sm:$0xff]  ;;  %v1224_v27 = vld [vmem:[#allocation2 + $0x78] sm:$0xff]  ;;  %1205 = vst.msk [vmem:[#allocation3 + $0x1a8] sm:$0xf] %vm734_vm2, %v6118_v58  ;;  %1206 = vst.msk [vmem:[#allocation3 + $0x1bc] sm:$0xf] %vm734_vm2, %v6144_v23  ;;  %v6207_v22 = vpack.c.bf16 %v781_v13, %v781_v13 }
  0x56   : > { %v4873_v41 = vpack.c.bf16 %v1225_v26, %v1225_v26  ;;  %v4874_v26 = vpack.c.bf16 %v1226_v16, %v1226_v16  ;;  %747 = vst.msk [vmem:[#allocation3 + $0xf0] sm:$0xf] %vm734_vm2, %v4780_v32  ;;  %2089 = vst.msk [vmem:[#allocation3 + $0xac] sm:$0xf] %vm734_vm2, %v4780_v32  ;;  %v5503_v18 = vld [vmem:[%s7320_s2] ss:$0 sm:$0xff] }
  0x57   : > { %1637 = vst.msk [vmem:[#allocation3 + $0x6c] sm:$0xf] %vm734_vm2, %v4901_v49  ;;  %v5504_v30 = vld [vmem:[%s7321_s3] ss:$0 sm:$0xff] }
  0x59   : > { %909 = vrot.lane.b32.xlu1 %v6058_v63, %s5562_s13  ;;  %907 = vrot.lane.b32.xlu0 %v6060_v0, %s5562_s13 }
  0x5d   : > { %957 = vrot.lane.b32.xlu1 %v4831_v47, %s5562_s13  ;;  %955 = vrot.lane.b32.xlu0 %v4830_v48, %s5562_s13  ;;  %v4872_v47 = vpack.c.bf16 %v1224_v27, %v1224_v27  ;;  %v585_v48 = vld [vmem:[#allocation2 + $0x80] sm:$0xff]  ;;  %v587_v27 = vld [vmem:[#allocation2 + $0x98] sm:$0xff] }
  0x5e   : > { %v4779_v56 = vpack.c.bf16 %v585_v48, %v585_v48  ;;  %v4781_v31 = vpack.c.bf16 %v587_v27, %v587_v27  ;;  %v779_v48 = vld [vmem:[#allocation2 + $0x91] sm:$0xff]  ;;  %v1230_v27 = vld [vmem:[#allocation2 + $0xc0] sm:$0xff] }
  0x5f   : > { %v6172_v51 = vpack.c.bf16 %v779_v48, %v779_v48 }
  0x60   : > { %746 = vst.msk [vmem:[#allocation3 + $0xdc] sm:$0xf] %vm734_vm2, %v4779_v56  ;;  %2088 = vst.msk [vmem:[#allocation3 + $0x98] sm:$0xf] %vm734_vm2, %v4779_v56 }
  0x61   : > { %1358 = vrot.lane.b32.xlu1 %v4871_v3, %s5562_s13  ;;  %1356 = vrot.lane.b32.xlu0 %v4870_v5, %s5562_s13  ;;  %v6120_v3 = vpack.c.bf16 %v1682_v55, %v1682_v55  ;;  %v1475_v5 = vld [vmem:[#allocation2 + $0x39] sm:$0xff]  ;;  %748 = vst.msk [vmem:[#allocation3 + $0x104] sm:$0xf] %vm734_vm2, %v4781_v31  ;;  %2090 = vst.msk [vmem:[#allocation3 + $0xc0] sm:$0xf] %vm734_vm2, %v4781_v31 }
  0x62   : > { %v4899_v9 = vpack.c.bf16 %v1475_v5, %v1475_v5  ;;  %v4876_v5 = vpack.c.bf16 %v1228_v54, %v1228_v54 }
  0x63   : > { %1204 = vst.msk [vmem:[#allocation3 + $0x194] sm:$0xf] %vm734_vm2, %v6120_v3 }
  0x64   : > { %1635 = vst.msk [vmem:[#allocation3 + $0x44] sm:$0xf] %vm734_vm2, %v4899_v9  ;;  %v1479_v9 = vld [vmem:[#allocation2 + $0x69] sm:$0xff] }
  0x65   : > { %1406 = vrot.lane.b32.xlu1 %v4895_v11, %s5562_s13  ;;  %1404 = vrot.lane.b32.xlu0 %v4894_v12, %s5562_s13  ;;  %v4898_v11 = vpack.c.bf16 %v1474_v7, %v1474_v7  ;;  %v1924_v12 = vld [vmem:[#allocation2 + $0x50] sm:$0xff] }
  0x66   : > { %v4963_v17 = vpack.c.bf16 %v1924_v12, %v1924_v12  ;;  %v589_v7 = vld [vmem:[#allocation2 + $0xb0] sm:$0xff] }
  0x67   : > { %1634 = vst.msk [vmem:[#allocation3 + $0x30] sm:$0xf] %vm734_vm2, %v4898_v11  ;;  %v1478_v11 = vld [vmem:[#allocation2 + $0x61] sm:$0xff]  ;;  %v782_v12 = vld [vmem:[#allocation2 + $0xb1] sm:$0xff] }
  0x68   : > { %2084 = vst.msk [vmem:[#allocation3 + $0x48] sm:$0xf] %vm734_vm2, %v4963_v17  ;;  %v4902_v16 = vpack.c.bf16 %v1478_v11, %v1478_v11  ;;  %v4341_v17 = vld [vmem:[%s5720_s18 + $0xf8] sm:$0xff]  ;;  %v783_v11 = vld [vmem:[#allocation2 + $0xc1] sm:$0xff] }
  0x69   : > { %913 = vrot.lane.b32.xlu1 %v6094_v21, %s5562_s13  ;;  %911 = vrot.lane.b32.xlu0 %v6096_v4, %s5562_s13 }
  0x6a   : > { %1638 = vst.msk [vmem:[#allocation3 + $0x80] sm:$0xf] %vm734_vm2, %v4902_v16 }
  0x6d   : > { %1362 = vrot.lane.b32.xlu1 %v4873_v41, %s5562_s13  ;;  %1360 = vrot.lane.b32.xlu0 %v4872_v47, %s5562_s13  ;;  %v1476_v41 = vld [vmem:[#allocation2 + $0x49] sm:$0xff]  ;;  %v780_v47 = vld [vmem:[#allocation2 + $0x99] sm:$0xff] }
  0x6e   : > { %v4900_v56 = vpack.c.bf16 %v1476_v41, %v1476_v41  ;;  %v591_v41 = vld [vmem:[#allocation2 + $0xc8] sm:$0xff] }
  0x6f   : > { %v4785_v49 = vpack.c.bf16 %v591_v41, %v591_v41 }
  0x70   : > { %1636 = vst.msk [vmem:[#allocation3 + $0x58] sm:$0xf] %vm734_vm2, %v4900_v56 }
  0x71   : > { %1794 = vrot.lane.b32.xlu1 %v5836_v52, %s5562_s13  ;;  %1792 = vrot.lane.b32.xlu0 %v5838_v53, %s5562_s13  ;;  %v6136_v52 = vpack.c.bf16 %v778_v42, %v778_v42  ;;  %v6138_v53 = vpack.c.bf16 %v777_v8, %v777_v8  ;;  %v588_v42 = vld [vmem:[#allocation2 + $0xa8] sm:$0xff]  ;;  %752 = vst.msk [vmem:[#allocation3 + $0x154] sm:$0xf] %vm734_vm2, %v4785_v49  ;;  %2094 = vst.msk [vmem:[#allocation3 + $0x110] sm:$0xf] %vm734_vm2, %v4785_v49  ;;  %v1482_v49 = vld [vmem:[#allocation2 + $0x91] sm:$0xff] }
  0x72   : > { %v4782_v8 = vpack.c.bf16 %v588_v42, %v588_v42 }
  0x74   : > { %749 = vst.msk [vmem:[#allocation3 + $0x118] sm:$0xf] %vm734_vm2, %v4782_v8  ;;  %2091 = vst.msk [vmem:[#allocation3 + $0xd4] sm:$0xf] %vm734_vm2, %v4782_v8  ;;  %v1480_v8 = vld [vmem:[#allocation2 + $0x79] sm:$0xff] }
  0x75   : > { %2243 = vrot.lane.b32.xlu1 %v5981_v37, %s5562_s13  ;;  %2241 = vrot.lane.b32.xlu0 %v5991_v43, %s5562_s13  ;;  %v6142_v37 = vpack.c.bf16 %v1685_v20, %v1685_v20  ;;  %v4875_v43 = vpack.c.bf16 %v1227_v14, %v1227_v14  ;;  %v4903_v14 = vpack.c.bf16 %v1479_v9, %v1479_v9  ;;  %v784_v9 = vld [vmem:[#allocation2 + $0xc9] sm:$0xff] }
  0x76   : > { %v560_v20 = vmul.f32 %v5503_v18, %v4341_v17  ;;  %v4904_v13 = vpack.c.bf16 %v1480_v8, %v1480_v8  ;;  %v1233_v17 = vld [vmem:[#allocation2 + $0xe0] sm:$0xff]  ;;  %v1235_v8 = vld [vmem:[#allocation2 + $0xf8] sm:$0xff] }
  0x77   : > { %1207 = vst.msk [vmem:[#allocation3 + $0x1d0] sm:$0xf] %vm734_vm2, %v6142_v37  ;;  %1639 = vst.msk [vmem:[#allocation3 + $0x94] sm:$0xf] %vm734_vm2, %v4903_v14 }
  0x78   : > { %v562_v31 = vadd.f32 %v5504_v30, %v560_v20  ;;  %1640 = vst.msk [vmem:[#allocation3 + $0xa8] sm:$0xf] %vm734_vm2, %v4904_v13 }
  0x79   : > { %917 = vrot.lane.b32.xlu1 %v6136_v52, %s5562_s13  ;;  %915 = vrot.lane.b32.xlu0 %v6138_v53, %s5562_s13 }
  0x7a   : > { %v564_v34 = vmax.f32 %v562_v31, 0.0 }
  0x7d   : > { %1366 = vrot.lane.b32.xlu1 %v4875_v43, %s5562_s13  ;;  %1364 = vrot.lane.b32.xlu0 %v4874_v26, %s5562_s13  ;;  %v1231_v26 = vld [vmem:[#allocation2 + $0xc8] sm:$0xff] }
  0x81   : > { %1798 = vrot.lane.b32.xlu1 %v5879_v15, %s5562_s13  ;;  %1796 = vrot.lane.b32.xlu0 %v5882_v19, %s5562_s13  ;;  %v6170_v15 = vpack.c.bf16 %v780_v47, %v780_v47  ;;  %v1229_v19 = vld [vmem:[#allocation2 + $0xb0] sm:$0xff]  ;;  %v590_v47 = vld [vmem:[#allocation2 + $0xc0] sm:$0xff] }
  0x82   : > { %v4877_v55 = vpack.c.bf16 %v1229_v19, %v1229_v19  ;;  %v4784_v56 = vpack.c.bf16 %v590_v47, %v590_v47  ;;  %v570_v19 = vmul.f32 0.0, %v564_v34  ;;  %v5413_v47 = vld [vmem:[%s7319_s1 + $0xb8] sm:$0xff]  }
  0x84   : > { %751 = vst.msk [vmem:[#allocation3 + $0x140] sm:$0xf] %vm734_vm2, %v4784_v56  ;;  %2093 = vst.msk [vmem:[#allocation3 + $0xfc] sm:$0xf] %vm734_vm2, %v4784_v56  ;;  %v786_v56 = vld [vmem:[#allocation2 + $0xe1] sm:$0xff] }
  0x85   : > { %2247 = vrot.lane.b32.xlu1 %v6058_v63, %s5562_s13  ;;  %2245 = vrot.lane.b32.xlu0 %v6060_v0, %s5562_s13  ;;  %v6181_v63 = vld [vmem:[%s7319_s1 + $0x118] sm:$0xff]   ;;  %v4783_v0 = vpack.c.bf16 %v589_v7, %v589_v7  ;;  %573 = vst.msk [vmem:[#allocation2 + $0x1a1] sm:$0xff] %vm499_vm1, %v570_v19 }
  0x86   : > { %5300 = vmatprep.subr.bf16.mxu0 %v6181_v63  ;;  %v785_v19 = vld [vmem:[#allocation2 + $0xd9] sm:$0xff] }
  0x87   : > { %750 = vst.msk [vmem:[#allocation3 + $0x12c] sm:$0xf] %vm734_vm2, %v4783_v0  ;;  %2092 = vst.msk [vmem:[#allocation3 + $0xe8] sm:$0xf] %vm734_vm2, %v4783_v0  ;;  %v1481_v0 = vld [vmem:[#allocation2 + $0x81] sm:$0xff] }
  0x89   : > { %921 = vrot.lane.b32.xlu1 %v6170_v15, %s5562_s13  ;;  %919 = vrot.lane.b32.xlu0 %v6172_v51, %s5562_s13 }
  0x8d   : > { %1370 = vrot.lane.b32.xlu1 %v4877_v55, %s5562_s13  ;;  %1368 = vrot.lane.b32.xlu0 %v4876_v5, %s5562_s13 }
  0x91   : > { %1802 = vrot.lane.b32.xlu1 %v5889_v29, %s5562_s13  ;;  %1800 = vrot.lane.b32.xlu0 %v5898_v33, %s5562_s13  ;;  %v4340_v29 = vld [vmem:[%s5720_s18 + $0xf0] sm:$0xff]  ;;  %v6205_v33 = vpack.c.bf16 %v782_v12, %v782_v12  ;;  %v4905_v12 = vpack.c.bf16 %v1481_v0, %v1481_v0  ;;  %v6283_v0 = vpack.c.bf16 %v785_v19, %v785_v19 }
  0x92   : > { %v559_v43 = vmul.f32 %v5503_v18, %v4340_v29  ;;  %v1232_v18 = vld [vmem:[#allocation2 + $0xd8] sm:$0xff] }
  0x93   : > { %1641 = vst.msk [vmem:[#allocation3 + $0xbc] sm:$0xf] %vm734_vm2, %v4905_v12  ;;  %v1485_v19 = vld [vmem:[#allocation2 + $0xb1] sm:$0xff] }
  0x94   : > { %v561_v32 = vadd.f32 %v5504_v30, %v559_v43  ;;  %v593_v43 = vld [vmem:[#allocation2 + $0xe0] sm:$0xff] }
  0x95   : > { %2251 = vrot.lane.b32.xlu1 %v6094_v21, %s5562_s13  ;;  %2249 = vrot.lane.b32.xlu0 %v6096_v4, %s5562_s13  ;;  %v4879_v21 = vpack.c.bf16 %v1231_v26, %v1231_v26  ;;  %v4878_v4 = vpack.c.bf16 %v1230_v27, %v1230_v27  ;;  %v592_v26 = vld [vmem:[#allocation2 + $0xd8] sm:$0xff]  ;;  %v4787_v27 = vpack.c.bf16 %v593_v43, %v593_v43 }
  0x96   : > { %v563_v48 = vmax.f32 %v561_v32, 0.0  ;;  %v4786_v30 = vpack.c.bf16 %v592_v26, %v592_v26 }
  0x97   : > { %754 = vst.msk [vmem:[#allocation3 + $0x17c] sm:$0xf] %vm734_vm2, %v4787_v27  ;;  %2096 = vst.msk [vmem:[#allocation3 + $0x138] sm:$0xf] %vm734_vm2, %v4787_v27  ;;  %v5421_v27 = vld [vmem:[%s7319_s1 + $0xa0] sm:$0xff]  }
  0x98   : > { %v569_v5 = vmul.f32 0.0, %v563_v48  ;;  %753 = vst.msk [vmem:[#allocation3 + $0x168] sm:$0xf] %vm734_vm2, %v4786_v30  ;;  %2095 = vst.msk [vmem:[#allocation3 + $0x124] sm:$0xf] %vm734_vm2, %v4786_v30  ;;  %v1483_v48 = vld [vmem:[#allocation2 + $0x99] sm:$0xff] }
  0x99   : > { %925 = vrot.lane.b32.xlu1 %v6205_v33, %s5562_s13  ;;  %923 = vrot.lane.b32.xlu0 %v6207_v22, %s5562_s13 }
  0x9a   : > { %572 = vst.msk [vmem:[#allocation2 + $0x199] sm:$0xff] %vm499_vm1, %v569_v5  ;;  %v4906_v5 = vpack.c.bf16 %v1482_v49, %v1482_v49  ;;  %v5450_v49 = vld [vmem:[%s7319_s1 + $0x110] sm:$0xff]  }
  0x9b   : > { %v944_v54 = vpop.permute.xlu1 %943  ;;  %v1345_v55 = vpop.permute.xlu0 %1344 }
  0x9c   : > { %1016 = vst.msk [vmem:[#allocation3 + $0x1e0] sm:$0xf] %vm991_vm3, %v944_v54  ;;  %1440 = vst.msk [vmem:[#allocation3 + $0x4] sm:$0xf] %vm991_vm3, %v1345_v55  ;;  %v5414_v54 = vld [vmem:[%s7319_s1 + $0xf0] sm:$0xff]   ;;  %v4907_v55 = vpack.c.bf16 %v1483_v48, %v1483_v48  ;;  %v5425_v48 = vld [vmem:[%s7319_s1 + $0x98] sm:$0xff]  }
  0x9d   : > { %1374 = vrot.lane.b32.xlu1 %v4879_v21, %s5562_s13  ;;  %1372 = vrot.lane.b32.xlu0 %v4878_v4, %s5562_s13  ;;  %1642 = vst.msk [vmem:[#allocation3 + $0xd0] sm:$0xf] %vm734_vm2, %v4906_v5  ;;  %v788_v5 = vld [vmem:[#allocation2 + $0xf9] sm:$0xff] }
  0x9e   : > { %1643 = vst.msk [vmem:[#allocation3 + $0xe4] sm:$0xf] %vm734_vm2, %v4907_v55 }
  0x9f   : > { %v946_v7 = vpop.permute.xlu1 %945  ;;  %v1393_v42 = vpop.permute.xlu0 %1392 }
  0xa0   : > { %1017 = vst.msk [vmem:[#allocation3 + $0x1f4] sm:$0xf] %vm991_vm3, %v946_v7  ;;  %1464 = vst.msk [vmem:[#allocation3 + $0x1e4] sm:$0xf] %vm991_vm3, %v1393_v42 }
  0xa1   : > { %1806 = vrot.lane.b32.xlu1 %v5932_v61, %s5562_s13  ;;  %1804 = vrot.lane.b32.xlu0 %v5934_v6, %s5562_s13  ;;  %v6240_v61 = vpack.c.bf16 %v784_v9, %v784_v9  ;;  %v6242_v6 = vpack.c.bf16 %v783_v11, %v783_v11  ;;  %v1234_v9 = vld [vmem:[#allocation2 + $0xf0] sm:$0xff]  ;;  %v5416_v11 = vld [vmem:[%s7319_s1 + $0xe8] sm:$0xff]  }
  0xa3   : > { %v1347_v14 = vpop.permute.xlu1 %1346  ;;  %v900_v16 = vpop.permute.xlu0 %899 }
  0xa4   : > { %1441 = vst.msk [vmem:[#allocation3 + $0x18] sm:$0xf] %vm991_vm3, %v1347_v14  ;;  %994 = vst.msk [vmem:[#allocation3 + $0x28] sm:$0xf] %vm991_vm3, %v900_v16  ;;  %v4882_v14 = vpack.c.bf16 %v1234_v9, %v1234_v9  ;;  %v595_v16 = vld [vmem:[#allocation2 + $0xf8] sm:$0xff] }
  0xa5   : > { %2255 = vrot.lane.b32.xlu1 %v6136_v52, %s5562_s13  ;;  %2253 = vrot.lane.b32.xlu0 %v6138_v53, %s5562_s13  ;;  %v4881_v52 = vpack.c.bf16 %v1233_v17, %v1233_v17  ;;  %v4880_v53 = vpack.c.bf16 %v1232_v18, %v1232_v18  ;;  %v594_v17 = vld [vmem:[#allocation2 + $0xf0] sm:$0xff]  ;;  %v5420_v18 = vld [vmem:[%s7319_s1 + $0xe0] sm:$0xff]  }
  0xa7   : > { %v1395_v20 = vpop.permute.xlu1 %1394  ;;  %v948_v29 = vpop.permute.xlu0 %947  ;;  %v5398_v4 = vld [vmem:[#allocation3 + $0x1e0] ss:$20 sps:$4 sm:$0xff]  }
  0xa8   : > { %1465 = vst.msk [vmem:[#allocation3 + $0x1f8] sm:$0xf] %vm991_vm3, %v1395_v20  ;;  %1018 = vst.msk [vmem:[#allocation3 + $0x208] sm:$0xf] %vm991_vm3, %v948_v29  ;;  %v4789_v20 = vpack.c.bf16 %v595_v16, %v595_v16  ;;  %v4788_v29 = vpack.c.bf16 %v594_v17, %v594_v17 }
  0xa9   : > { %929 = vrot.lane.b32.xlu1 %v6240_v61, %s5562_s13  ;;  %927 = vrot.lane.b32.xlu0 %v6242_v6, %s5562_s13 }
  0xaa   : > { %756 = vst.msk [vmem:[#allocation3 + $0x1a4] sm:$0xf] %vm734_vm2, %v4789_v20  ;;  %755 = vst.msk [vmem:[#allocation3 + $0x190] sm:$0xf] %vm734_vm2, %v4788_v29 }
  0xab   : > { %v902_v31 = vpop.permute.xlu1 %901  ;;  %v1349_v32 = vpop.permute.xlu0 %1348  ;;  %v5403_v26 = vld [vmem:[#allocation3 + $0x4] ss:$20 sps:$4 sm:$0xff]   ;;  %2098 = vst.msk [vmem:[#allocation3 + $0x160] sm:$0xf] %vm734_vm2, %v4789_v20  ;;  %2097 = vst.msk [vmem:[#allocation3 + $0x14c] sm:$0xf] %vm734_vm2, %v4788_v29 }
  0xac   : > { %995 = vst.msk [vmem:[#allocation3 + $0x3c] sm:$0xf] %vm991_vm3, %v902_v31  ;;  %1442 = vst.msk [vmem:[#allocation3 + $0x2c] sm:$0xf] %vm991_vm3, %v1349_v32  ;;  %3425 = vmatprep.mubr.bf16.mxu0 %v5403_v26  ;;  %v5424_v31 = vld [vmem:[%s7319_s1 + $0xd8] sm:$0xff]   ;;  %v597_v20 = vld [vmem:[#allocation2 + $0x110] sm:$0xff] }
  0xad   : > { %1378 = vrot.lane.b32.xlu1 %v4881_v52, %s5562_s13  ;;  %1376 = vrot.lane.b32.xlu0 %v4880_v53, %s5562_s13  ;;  %v596_v29 = vld [vmem:[#allocation2 + $0x108] sm:$0xff] }
  0xaf   : > { %v950_v34 = vpop.permute.xlu1 %949  ;;  %v896_v21 = vpop.permute.xlu0 %895  ;;  %v5400_v41 = vld [vmem:[#allocation3 + $0x1e4] ss:$20 sps:$4 sm:$0xff]  }
  0xb0   : > { %1019 = vst.msk [vmem:[#allocation3 + $0x21c] sm:$0xf] %vm991_vm3, %v950_v34  ;;  %992 = vst.msk [vmem:[#allocation3] sm:$0xf] %vm991_vm3, %v896_v21  ;;  %3521 = vmatprep.mubr.bf16.mxu1 %v5400_v41 }
  0xb1   : > { %1810 = vrot.lane.b32.xlu1 %v5974_v28, %s5562_s13  ;;  %1808 = vrot.lane.b32.xlu0 %v5977_v45, %s5562_s13  ;;  %v5415_v28 = vld [vmem:[%s7319_s1 + $0xb0] sm:$0xff]   ;;  %v6281_v45 = vpack.c.bf16 %v786_v56, %v786_v56 }
  0xb2   : > { %3522 = vmatmul.mubr.bf16.vlgmr.msra.gmra.mxu1 %v5398_v4  ;;  %v787_v56 = vld [vmem:[#allocation2 + $0xf1] sm:$0xff] }
  0xb3   : > { %v1351_v7 = vpop.permute.xlu1 %1350  ;;  %v898_v42 = vpop.permute.xlu0 %897  ;;  %5169 = vmatpush3.bf16.msra.mxu1 %v5413_v47 }
  0xb4   : > { %1443 = vst.msk [vmem:[#allocation3 + $0x40] sm:$0xf] %vm991_vm3, %v1351_v7  ;;  %993 = vst.msk [vmem:[#allocation3 + $0x14] sm:$0xf] %vm991_vm3, %v898_v42  ;;  %5170 = vmatprep.subr.bf16.mxu1 %v5414_v54  ;;  %v1484_v54 = vld [vmem:[#allocation2 + $0xa9] sm:$0xff]  ;;  %v4909_v42 = vpack.c.bf16 %v1485_v19, %v1485_v19  ;;  %v5464_v19 = vld [vmem:[%s7319_s1 + $0x100] sm:$0xff]  }
  0xb5   : > { %2259 = vrot.lane.b32.xlu1 %v6170_v15, %s5562_s13  ;;  %2257 = vrot.lane.b32.xlu0 %v6172_v51, %s5562_s13  ;;  %v5417_v15 = vld [vmem:[%s7319_s1 + $0xa8] sm:$0xff]   ;;  %v4883_v51 = vpack.c.bf16 %v1235_v8, %v1235_v8  ;;  %v5426_v7 = vld [vmem:[%s7319_s1 + $0xd0] sm:$0xff]  }
  0xb6   : > { %1645 = vst.msk [vmem:[#allocation3 + $0x10c] sm:$0xf] %vm734_vm2, %v4909_v42 }
  0xb7   : > { %v1399_v12 = vpop.permute.xlu1 %1398  ;;  %v1397_v13 = vpop.permute.xlu0 %1396  ;;  %5171 = vmatpush3.bf16.msra.mxu1 %v5415_v28  ;;  %v4908_v28 = vpack.c.bf16 %v1484_v54, %v1484_v54  ;;  %v1487_v54 = vld [vmem:[#allocation2 + $0xc9] sm:$0xff] }
  0xb8   : > { %1467 = vst.msk [vmem:[#allocation3 + $0x220] sm:$0xf] %vm991_vm3, %v1399_v12  ;;  %1466 = vst.msk [vmem:[#allocation3 + $0x20c] sm:$0xf] %vm991_vm3, %v1397_v13  ;;  %5172 = vmatprep.subr.bf16.mxu1 %v5416_v11  ;;  %v6341_v11 = vpack.c.bf16 %v788_v5, %v788_v5  ;;  %v6343_v12 = vpack.c.bf16 %v787_v56, %v787_v56  ;;  %v1236_v13 = vld [vmem:[#allocation2 + $0x108] sm:$0xff]  ;;  %v790_v5 = vld [vmem:[#allocation2 + $0x111] sm:$0xff]  ;;  %v4911_v42 = vpack.c.bf16 %v1487_v54, %v1487_v54 }
  0xb9   : > { %933 = vrot.lane.b32.xlu1 %v6281_v45, %s5562_s13  ;;  %931 = vrot.lane.b32.xlu0 %v6283_v0, %s5562_s13  ;;  %1644 = vst.msk [vmem:[#allocation3 + $0xf8] sm:$0xf] %vm734_vm2, %v4908_v28 }
  0xba   : > { %1647 = vst.msk [vmem:[#allocation3 + $0x134] sm:$0xf] %vm734_vm2, %v4911_v42  ;;  %v2378_v42 = vld [vmem:[#allocation2 + $0x9a] sm:$0xff] }
  0xbb   : > { %v906_v52 = vpop.permute.xlu1 %905  ;;  %v904_v53 = vpop.permute.xlu0 %903  ;;  %v5401_v43 = vld [vmem:[#allocation3] ss:$20 sps:$4 sm:$0xff]   ;;  %5173 = vmatpush3.bf16.msra.mxu1 %v5417_v15 }
  0xbc   : > { %997 = vst.msk [vmem:[#allocation3 + $0x64] sm:$0xf] %vm991_vm3, %v906_v52  ;;  %996 = vst.msk [vmem:[#allocation3 + $0x50] sm:$0xf] %vm991_vm3, %v904_v53  ;;  %v5404_v30 = vld [vmem:[#allocation3 + $0x2c] ss:$20 sps:$4 sm:$0xff]   ;;  %5174 = vmatprep.subr.bf16.mxu1 %v5420_v18  ;;  %3426 = vmatmul.mubr.bf16.vlgmr.msra.gmra.mxu0 %v5401_v43  ;;  %v4884_v18 = vpack.c.bf16 %v1236_v13, %v1236_v13  ;;  %v4791_v53 = vpack.c.bf16 %v597_v20, %v597_v20 }
  0xbd   : > { %1382 = vrot.lane.b32.xlu1 %v4883_v51, %s5562_s13  ;;  %1380 = vrot.lane.b32.xlu0 %v4882_v14, %s5562_s13  ;;  %v2570_v55 = vld [vmem:[#allocation3 + $0x3c] sm:$0xff]  ;;  %v5432_v52 = vld [vmem:[%s7319_s1 + $0xc0] sm:$0xff]   ;;  %v4790_v43 = vpack.c.bf16 %v596_v29, %v596_v29 }
  0xbe   : > { %3433 = vmatprep.mubr.bf16.mxu0 %v5404_v30  ;;  %5301 = vmatpush3.bf16.msra.mxu0 %v6181_v63  ;;  %v1237_v15 = vld [vmem:[#allocation2 + $0x110] sm:$0xff]  ;;  %v5430_v51 = vld [vmem:[%s7319_s1 + $0xc8] sm:$0xff]   ;;  %758 = vst.msk [vmem:[#allocation3 + $0x1cc] sm:$0xf] %vm734_vm2, %v4791_v53  ;;  %2100 = vst.msk [vmem:[#allocation3 + $0x188] sm:$0xf] %vm734_vm2, %v4791_v53 }
  0xbf   : > { %v954_v32 = vpop.permute.xlu1 %953  ;;  %v952_v34 = vpop.permute.xlu0 %951  ;;  %v2639_v21 = vld [vmem:[#allocation3 + $0x208] sm:$0xff]  ;;  %v2642_v4 = vld [vmem:[#allocation3 + $0x21c] sm:$0xff]  ;;  %5175 = vmatpush3.bf16.msra.mxu1 %v5421_v27  ;;  %5302 = vmatprep.subr.bf16.mxu0 %v5450_v49  ;;  %v4885_v17 = vpack.c.bf16 %v1237_v15, %v1237_v15  ;;  %757 = vst.msk [vmem:[#allocation3 + $0x1b8] sm:$0xf] %vm734_vm2, %v4790_v43  ;;  %2099 = vst.msk [vmem:[#allocation3 + $0x174] sm:$0xf] %vm734_vm2, %v4790_v43 }
  0xc0   : > { %v5406_v41 = vld [vmem:[#allocation3 + $0x20c] ss:$20 sps:$4 sm:$0xff]   ;;  %1021 = vst.msk [vmem:[#allocation3 + $0x244] sm:$0xf] %vm991_vm3, %v954_v32  ;;  %1020 = vst.msk [vmem:[#allocation3 + $0x230] sm:$0xf] %vm991_vm3, %v952_v34  ;;  %v4695_v47 = vcombine.low %v2639_v21, %v2642_v4  ;;  %5176 = vmatprep.subr.bf16.mxu1 %v5424_v31 }
  0xc1   : > { %1814 = vrot.lane.b32.xlu1 %v6003_v57, %s5562_s13  ;;  %1812 = vrot.lane.b32.xlu0 %v6005_v50, %s5562_s13  ;;  %v2567_v57 = vld [vmem:[#allocation3 + $0x28] sm:$0xff]  ;;  %v5427_v50 = vld [vmem:[%s7319_s1 + $0x90] sm:$0xff]   ;;  %v5457_v14 = vld [vmem:[%s7319_s1 + $0x108] sm:$0xff]  }
  0xc2   : > { %3529 = vmatprep.mubr.bf16.mxu1 %v5406_v41  ;;  %v4635_v63 = vcombine.low %v2567_v57, %v2570_v55  ;;  %5303 = vmatpush3.bf16.msra.mxu0 %v5450_v49  ;;  %v5433_v21 = vld [vmem:[%s7319_s1 + $0x80] sm:$0xff]   ;;  %v2369_v57 = vld [vmem:[#allocation2 + $0x32] sm:$0xff] }
  0xc3   : > { %v1355_v8 = vpop.permute.xlu1 %1354  ;;  %3530 = vmatmul.mubr.bf16.gmra.mxu1 %v4695_v47  ;;  %v1353_v9 = vpop.permute.xlu0 %1352  ;;  %5304 = vmatprep.subr.bf16.mxu0 %v5457_v14  ;;  %v1486_v55 = vld [vmem:[#allocation2 + $0xc1] sm:$0xff]  ;;  %v5024_v15 = vpack.c.bf16 %v2369_v57, %v2369_v57 }
  0xc4   : > { %1445 = vst.msk [vmem:[#allocation3 + $0x68] sm:$0xf] %vm991_vm3, %v1355_v8  ;;  %1444 = vst.msk [vmem:[#allocation3 + $0x54] sm:$0xf] %vm991_vm3, %v1353_v9  ;;  %5177 = vmatpush3.bf16.msra.mxu1 %v5425_v48  ;;  %3434 = vmatmul.mubr.bf16.gmra.mxu0 %v4635_v63  ;;  %v4910_v28 = vpack.c.bf16 %v1486_v55, %v1486_v55 }
  0xc5   : > { %2263 = vrot.lane.b32.xlu1 %v6205_v33, %s5562_s13  ;;  %2261 = vrot.lane.b32.xlu0 %v6207_v22, %s5562_s13  ;;  %v5431_v22 = vld [vmem:[%s7319_s1 + $0x88] sm:$0xff]   ;;  %2529 = vst.msk [vmem:[#allocation3 + $0x10] sm:$0xf] %vm734_vm2, %v5024_v15 }
  0xc6   : > { %5178 = vmatprep.subr.bf16.mxu1 %v5426_v7  ;;  %5305 = vmatpush3.bf16.msra.mxu0 %v5457_v14  ;;  %v789_v7 = vld [vmem:[#allocation2 + $0x109] sm:$0xff]  ;;  %1646 = vst.msk [vmem:[#allocation3 + $0x120] sm:$0xf] %vm734_vm2, %v4910_v28 }
  0xc7   : > { %v1403_v33 = vpop.permute.xlu1 %1402  ;;  %v1401_v16 = vpop.permute.xlu0 %1400  ;;  %5306 = vmatprep.subr.bf16.mxu0 %v5464_v19  ;;  %v2371_v14 = vld [vmem:[#allocation2 + $0x4a] sm:$0xff] }
  0xc8   : > { %1469 = vst.msk [vmem:[#allocation3 + $0x248] sm:$0xf] %vm991_vm3, %v1403_v33  ;;  %1468 = vst.msk [vmem:[#allocation3 + $0x234] sm:$0xf] %vm991_vm3, %v1401_v16  ;;  %5179 = vmatpush3.bf16.msra.mxu1 %v5427_v50  ;;  %v2370_v50 = vld [vmem:[#allocation2 + $0x3a] sm:$0xff]  ;;  %v2372_v33 = vld [vmem:[#allocation2 + $0x52] sm:$0xff] }
  0xc9   : > { %937 = vrot.lane.b32.xlu1 %v6341_v11, %s5562_s13  ;;  %935 = vrot.lane.b32.xlu0 %v6343_v12, %s5562_s13  ;;  %v5027_v16 = vpack.c.bf16 %v2372_v33, %v2372_v33  ;;  %v1492_v15 = vld [vmem:[#allocation2 + $0x109] sm:$0xff] }
  0xca   : > { %5180 = vmatprep.subr.bf16.mxu1 %v5430_v51  ;;  %5307 = vmatpush3.bf16.msra.mxu0 %v5464_v19  ;;  %v5025_v51 = vpack.c.bf16 %v2370_v50, %v2370_v50  ;;  %v2375_v19 = vld [vmem:[#allocation2 + $0x7a] sm:$0xff]  ;;  %v4916_v33 = vpack.c.bf16 %v1492_v15, %v1492_v15 }
  0xcb   : > { %v910_v26 = vpop.permute.xlu1 %909  ;;  %v908_v27 = vpop.permute.xlu0 %907  ;;  %v2573_v30 = vld [vmem:[#allocation3 + $0x50] sm:$0xff]  ;;  %v2576_v31 = vld [vmem:[#allocation3 + $0x64] sm:$0xff]  ;;  %2532 = vst.msk [vmem:[#allocation3 + $0x4c] sm:$0xf] %vm734_vm2, %v5027_v16 }
  0xcc   : > { %v5408_v32 = vld [vmem:[#allocation3 + $0x54] ss:$20 sps:$4 sm:$0xff]   ;;  %999 = vst.msk [vmem:[#allocation3 + $0x8c] sm:$0xf] %vm991_vm3, %v910_v26  ;;  %998 = vst.msk [vmem:[#allocation3 + $0x78] sm:$0xf] %vm991_vm3, %v908_v27  ;;  %v4640_v34 = vcombine.low %v2573_v30, %v2576_v31  ;;  %5181 = vmatpush3.bf16.msra.mxu1 %v5431_v22 }
  0xcd   : > { %1386 = vrot.lane.b32.xlu1 %v4885_v17, %s5562_s13  ;;  %1384 = vrot.lane.b32.xlu0 %v4884_v18, %s5562_s13  ;;  %v1488_v22 = vld [vmem:[#allocation2 + $0xd9] sm:$0xff]  ;;  %2530 = vst.msk [vmem:[#allocation3 + $0x24] sm:$0xf] %vm734_vm2, %v5025_v51  ;;  %v2373_v27 = vld [vmem:[#allocation2 + $0x62] sm:$0xff]  ;;  %v2374_v30 = vld [vmem:[#allocation2 + $0x6a] sm:$0xff] }
  0xce   : > { %3441 = vmatprep.mubr.bf16.mxu0 %v5408_v32  ;;  %5182 = vmatprep.subr.bf16.mxu1 %v5432_v52  ;;  %v4912_v18 = vpack.c.bf16 %v1488_v22, %v1488_v22  ;;  %v2379_v51 = vld [vmem:[#allocation2 + $0xaa] sm:$0xff]  ;;  %1652 = vst.msk [vmem:[#allocation3 + $0x198] sm:$0xf] %vm734_vm2, %v4916_v33 }
  0xcf   : > { %v958_v4 = vpop.permute.xlu1 %957  ;;  %v956_v41 = vpop.permute.xlu0 %955  ;;  %3442 = vmatmul.mubr.bf16.gmra.mxu0 %v4640_v34  ;;  %v2645_v47 = vld [vmem:[#allocation3 + $0x230] sm:$0xff]  ;;  %v2648_v48 = vld [vmem:[#allocation3 + $0x244] sm:$0xff]  ;;  %v5034_v16 = vpack.c.bf16 %v2379_v51, %v2379_v51 }
  0xd0   : > { %v5410_v49 = vld [vmem:[#allocation3 + $0x234] ss:$20 sps:$4 sm:$0xff]   ;;  %1023 = vst.msk [vmem:[#allocation3 + $0x26c] sm:$0xf] %vm991_vm3, %v958_v4  ;;  %1022 = vst.msk [vmem:[#allocation3 + $0x258] sm:$0xf] %vm991_vm3, %v956_v41  ;;  %v4700_v56 = vcombine.low %v2645_v47, %v2648_v48  ;;  %5183 = vmatpush3.bf16.msra.mxu1 %v5433_v21  ;;  %v5028_v41 = vpack.c.bf16 %v2373_v27, %v2373_v27  ;;  %v5029_v47 = vpack.c.bf16 %v2374_v30, %v2374_v30 }
  0xd1   : > { %1818 = vrot.lane.b32.xlu1 %v6041_v24, %s5562_s13  ;;  %1816 = vrot.lane.b32.xlu0 %v6043_v25, %s5562_s13  ;;  %v6391_v24 = vpack.c.bf16 %v790_v5, %v790_v5  ;;  %v6393_v25 = vpack.c.bf16 %v789_v7, %v789_v7  ;;  %1648 = vst.msk [vmem:[#allocation3 + $0x148] sm:$0xf] %vm734_vm2, %v4912_v18  ;;  %v2376_v5 = vld [vmem:[#allocation2 + $0x82] sm:$0xff]  ;;  %2539 = vst.msk [vmem:[#allocation3 + $0xd8] sm:$0xf] %vm734_vm2, %v5034_v16  ;;  %v2388_v51 = vld [vmem:[#allocation2 + $0x112] sm:$0xff] }
  0xd2   : > { %3537 = vmatprep.mubr.bf16.mxu1 %v5410_v49  ;;  %2533 = vst.msk [vmem:[#allocation3 + $0x60] sm:$0xf] %vm734_vm2, %v5028_v41  ;;  %2534 = vst.msk [vmem:[#allocation3 + $0x74] sm:$0xf] %vm734_vm2, %v5029_v47  ;;  %v5030_v7 = vpack.c.bf16 %v2375_v19, %v2375_v19  ;;  %v1941_v18 = vld [vmem:[#allocation2 + $0x120] sm:$0xff] }
  0xd3   : > { %v1359_v8 = vpop.permute.xlu1 %1358  ;;  %3538 = vmatmul.mubr.bf16.gmra.mxu1 %v4700_v56  ;;  %v1357_v9 = vpop.permute.xlu0 %1356 }
  0xd4   : > { %1447 = vst.msk [vmem:[#allocation3 + $0x90] sm:$0xf] %vm991_vm3, %v1359_v8  ;;  %1446 = vst.msk [vmem:[#allocation3 + $0x7c] sm:$0xf] %vm991_vm3, %v1357_v9 }
  0xd5   : > { %2267 = vrot.lane.b32.xlu1 %v6240_v61, %s5562_s13  ;;  %2265 = vrot.lane.b32.xlu0 %v6242_v6, %s5562_s13  ;;  %v5026_v61 = vpack.c.bf16 %v2371_v14, %v2371_v14  ;;  %v1489_v6 = vld [vmem:[#allocation2 + $0xe1] sm:$0xff]  ;;  %2535 = vst.msk [vmem:[#allocation3 + $0x88] sm:$0xf] %vm734_vm2, %v5030_v7 }
  0xd6   : > { %v4913_v17 = vpack.c.bf16 %v1489_v6, %v1489_v6 }
  0xd7   : > { %v1407_v63 = vpop.permute.xlu1 %1406  ;;  %v1405_v13 = vpop.permute.xlu0 %1404  ;;  %2531 = vst.msk [vmem:[#allocation3 + $0x38] sm:$0xf] %vm734_vm2, %v5026_v61  ;;  %v2380_v61 = vld [vmem:[#allocation2 + $0xb2] sm:$0xff] }
  0xd8   : > { %1471 = vst.msk [vmem:[#allocation3 + $0x270] sm:$0xf] %vm991_vm3, %v1407_v63  ;;  %1470 = vst.msk [vmem:[#allocation3 + $0x25c] sm:$0xf] %vm991_vm3, %v1405_v13  ;;  %v5033_v13 = vpack.c.bf16 %v2378_v42, %v2378_v42 }
  0xd9   : > { %941 = vrot.lane.b32.xlu1 %v6391_v24, %s5562_s13  ;;  %939 = vrot.lane.b32.xlu0 %v6393_v25, %s5562_s13  ;;  %1649 = vst.msk [vmem:[#allocation3 + $0x15c] sm:$0xf] %vm734_vm2, %v4913_v17  ;;  %v5035_v17 = vpack.c.bf16 %v2380_v61, %v2380_v61 }
  0xda   : > { %2538 = vst.msk [vmem:[#allocation3 + $0xc4] sm:$0xf] %vm734_vm2, %v5033_v13  ;;  %v1687_v13 = vld [vmem:[#allocation2 + $0x12a] sm:$0xff] }
  0xdb   : > { %v914_v20 = vpop.permute.xlu1 %913  ;;  %v912_v29 = vpop.permute.xlu0 %911  ;;  %v2579_v52 = vld [vmem:[#allocation3 + $0x78] sm:$0xff]  ;;  %v2582_v53 = vld [vmem:[#allocation3 + $0x8c] sm:$0xff]  ;;  %2540 = vst.msk [vmem:[#allocation3 + $0xec] sm:$0xf] %vm734_vm2, %v5035_v17  ;;  %v4951_v61 = vpack.c.bf16 %v1687_v13, %v1687_v13 }
  0xdc   : > { %v5418_v43 = vld [vmem:[#allocation3 + $0x7c] ss:$20 sps:$4 sm:$0xff]   ;;  %1001 = vst.msk [vmem:[#allocation3 + $0xb4] sm:$0xf] %vm991_vm3, %v914_v20  ;;  %1000 = vst.msk [vmem:[#allocation3 + $0xa0] sm:$0xf] %vm991_vm3, %v912_v29  ;;  %v4645_v26 = vcombine.low %v2579_v52, %v2582_v53  ;;  %v4980_v20 = vpack.c.bf16 %v1941_v18, %v1941_v18 }
  0xdd   : > { %1390 = vrot.lane.b32.xlu1 %v5930_v59, %s5562_s13  ;;  %1388 = vrot.lane.b32.xlu0 %v5904_v35, %s5562_s13  ;;  %v1491_v35 = vld [vmem:[#allocation2 + $0xf9] sm:$0xff]  ;;  %v1490_v59 = vld [vmem:[#allocation2 + $0xf1] sm:$0xff]  ;;  %v2381_v29 = vld [vmem:[#allocation2 + $0xc2] sm:$0xff] }
  0xde   : > { %3449 = vmatprep.mubr.bf16.mxu0 %v5418_v43  ;;  %v4915_v49 = vpack.c.bf16 %v1491_v35, %v1491_v35  ;;  %v4914_v56 = vpack.c.bf16 %v1490_v59, %v1490_v59  ;;  %v2382_v52 = vld [vmem:[#allocation2 + $0xca] sm:$0xff]  ;;  %v5036_v27 = vpack.c.bf16 %v2381_v29, %v2381_v29  ;;  %2101 = vst.msk [vmem:[#allocation3 + $0x19c] sm:$0xf] %vm734_vm2, %v4980_v20  ;;  %v1943_v59 = vld [vmem:[#allocation2 + $0x138] sm:$0xff]  ;;  %v2136_v17 = vld [vmem:[#allocation2 + $0x141] sm:$0xff] }
  0xdf   : > { %v1363_v31 = vpop.permute.xlu1 %1362  ;;  %v1361_v32 = vpop.permute.xlu0 %1360  ;;  %3450 = vmatmul.mubr.bf16.gmra.mxu0 %v4645_v26  ;;  %v2651_v34 = vld [vmem:[#allocation3 + $0x258] sm:$0xff]  ;;  %v2654_v21 = vld [vmem:[#allocation3 + $0x26c] sm:$0xff]  ;;  %v5037_v30 = vpack.c.bf16 %v2382_v52, %v2382_v52  ;;  %v4982_v19 = vpack.c.bf16 %v1943_v59, %v1943_v59 }
  0xe0   : > { %v5422_v4 = vld [vmem:[#allocation3 + $0x25c] ss:$20 sps:$4 sm:$0xff]   ;;  %1449 = vst.msk [vmem:[#allocation3 + $0xb8] sm:$0xf] %vm991_vm3, %v1363_v31  ;;  %1448 = vst.msk [vmem:[#allocation3 + $0xa4] sm:$0xf] %vm991_vm3, %v1361_v32  ;;  %v4705_v48 = vcombine.low %v2651_v34, %v2654_v21 }
  0xe1   : > { %1822 = vrot.lane.b32.xlu1 %v6080_v10, %s5562_s13  ;;  %1820 = vrot.lane.b32.xlu0 %v6082_v1, %s5562_s13  ;;  %1651 = vst.msk [vmem:[#allocation3 + $0x184] sm:$0xf] %vm734_vm2, %v4915_v49  ;;  %1650 = vst.msk [vmem:[#allocation3 + $0x170] sm:$0xf] %vm734_vm2, %v4914_v56  ;;  %v5031_v10 = vpack.c.bf16 %v2376_v5, %v2376_v5  ;;  %v2377_v1 = vld [vmem:[#allocation2 + $0x92] sm:$0xff]  ;;  %v1494_v31 = vld [vmem:[#allocation2 + $0x121] sm:$0xff] }
  0xe2   : > { %3545 = vmatprep.mubr.bf16.mxu1 %v5422_v4  ;;  %v5032_v63 = vpack.c.bf16 %v2377_v1, %v2377_v1  ;;  %2541 = vst.msk [vmem:[#allocation3 + $0x100] sm:$0xf] %vm734_vm2, %v5036_v27  ;;  %2542 = vst.msk [vmem:[#allocation3 + $0x114] sm:$0xf] %vm734_vm2, %v5037_v30  ;;  %v4918_v34 = vpack.c.bf16 %v1494_v31, %v1494_v31  ;;  %v2383_v21 = vld [vmem:[#allocation2 + $0xda] sm:$0xff]  ;;  %v2384_v4 = vld [vmem:[#allocation2 + $0xe2] sm:$0xff]  ;;  %v5015_v27 = vpack.c.bf16 %v2136_v17, %v2136_v17 }
  0xe3   : > { %v1795_v54 = vpop.permute.xlu1 %1794  ;;  %3546 = vmatmul.mubr.bf16.gmra.mxu1 %v4705_v48  ;;  %v1793_v55 = vpop.permute.xlu0 %1792  ;;  %2536 = vst.msk [vmem:[#allocation3 + $0x9c] sm:$0xf] %vm734_vm2, %v5031_v10  ;;  %v5038_v48 = vpack.c.bf16 %v2383_v21, %v2383_v21  ;;  %v5039_v35 = vpack.c.bf16 %v2384_v4, %v2384_v4  ;;  %v2133_v49 = vld [vmem:[#allocation2 + $0x121] sm:$0xff]  ;;  %2103 = vst.msk [vmem:[#allocation3 + $0x1c4] sm:$0xf] %vm734_vm2, %v4982_v19  ;;  %v2390_v31 = vld [vmem:[#allocation2 + $0x12a] sm:$0xff] }
  0xe4   : > { %1889 = vst.msk [vmem:[#allocation3 + $0x1c] sm:$0xf] %vm991_vm3, %v1795_v54  ;;  %1888 = vst.msk [vmem:[#allocation3 + $0x8] sm:$0xf] %vm991_vm3, %v1793_v55  ;;  %v2385_v54 = vld [vmem:[#allocation2 + $0xf2] sm:$0xff]  ;;  %v2386_v55 = vld [vmem:[#allocation2 + $0xfa] sm:$0xff]  ;;  %v5045_v4 = vpack.c.bf16 %v2390_v31, %v2390_v31 }
  0xe5   : > { %2271 = vrot.lane.b32.xlu1 %v6281_v45, %s5562_s13  ;;  %2269 = vrot.lane.b32.xlu0 %v6283_v0, %s5562_s13  ;;  %v1493_v0 = vld [vmem:[#allocation2 + $0x111] sm:$0xff]  ;;  %2537 = vst.msk [vmem:[#allocation3 + $0xb0] sm:$0xf] %vm734_vm2, %v5032_v63  ;;  %1654 = vst.msk [vmem:[#allocation3 + $0x1c0] sm:$0xf] %vm734_vm2, %v4918_v34  ;;  %v5040_v42 = vpack.c.bf16 %v2385_v54, %v2385_v54  ;;  %v1947_v54 = vld [vmem:[#allocation2 + $0x168] sm:$0xff] }
  0xe6   : > { %v4917_v14 = vpack.c.bf16 %v1493_v0, %v1493_v0  ;;  %2543 = vst.msk [vmem:[#allocation3 + $0x128] sm:$0xf] %vm734_vm2, %v5038_v48  ;;  %2544 = vst.msk [vmem:[#allocation3 + $0x13c] sm:$0xf] %vm734_vm2, %v5039_v35  ;;  %v2387_v63 = vld [vmem:[#allocation2 + $0x10a] sm:$0xff] }
  0xe7   : > { %v2244_v28 = vpop.permute.xlu1 %2243  ;;  %v2242_v8 = vpop.permute.xlu0 %2241  ;;  %v2585_v9 = vld [vmem:[#allocation3 + $0xa0] sm:$0xff]  ;;  %v2588_v57 = vld [vmem:[#allocation3 + $0xb4] sm:$0xff]  ;;  %2545 = vst.msk [vmem:[#allocation3 + $0x150] sm:$0xf] %vm734_vm2, %v5040_v42  ;;  %2550 = vst.msk [vmem:[#allocation3 + $0x1b4] sm:$0xf] %vm734_vm2, %v5045_v4  ;;  %v4986_v42 = vpack.c.bf16 %v1947_v54, %v1947_v54 }
  0xe8   : > { %v5428_v50 = vld [vmem:[#allocation3 + $0xa4] ss:$20 sps:$4 sm:$0xff]   ;;  %2338 = vst.msk [vmem:[#allocation3 + $0x20] sm:$0xf] %vm991_vm3, %v2244_v28  ;;  %2337 = vst.msk [vmem:[#allocation3 + $0xc] sm:$0xf] %vm991_vm3, %v2242_v8  ;;  %v4650_v45 = vcombine.low %v2585_v9, %v2588_v57  ;;  %v5041_v28 = vpack.c.bf16 %v2386_v55, %v2386_v55  ;;  %v5012_v9 = vpack.c.bf16 %v2133_v49, %v2133_v49 }
  0xe9   : > { %1826 = vrot.lane.b32.xlu1 %v6100_v38, %s5562_s13  ;;  %1824 = vrot.lane.b32.xlu0 %v6102_v39, %s5562_s13  ;;  %1653 = vst.msk [vmem:[#allocation3 + $0x1ac] sm:$0xf] %vm734_vm2, %v4917_v14  ;;  %v1942_v38 = vld [vmem:[#allocation2 + $0x128] sm:$0xff]  ;;  %v5042_v14 = vpack.c.bf16 %v2387_v63, %v2387_v63  ;;  %v1498_v34 = vld [vmem:[#allocation2 + $0x151] sm:$0xff]  ;;  %v2138_v49 = vld [vmem:[#allocation2 + $0x159] sm:$0xff] }
  0xea   : > { %3457 = vmatprep.mubr.bf16.mxu0 %v5428_v50  ;;  %v4981_v39 = vpack.c.bf16 %v1942_v38, %v1942_v38  ;;  %v1497_v57 = vld [vmem:[#allocation2 + $0x141] sm:$0xff]  ;;  %v1496_v50 = vld [vmem:[#allocation2 + $0x139] sm:$0xff]  ;;  %2546 = vst.msk [vmem:[#allocation3 + $0x164] sm:$0xf] %vm734_vm2, %v5041_v28  ;;  %v1948_v19 = vld [vmem:[#allocation2 + $0x170] sm:$0xff] }
  0xeb   : > { %v918_v6 = vpop.permute.xlu1 %917  ;;  %v916_v22 = vpop.permute.xlu0 %915  ;;  %3458 = vmatmul.mubr.bf16.gmra.mxu0 %v4650_v45  ;;  %v5434_v26 = vld [vmem:[#allocation3 + $0x8] ss:$20 sps:$4 sm:$0xff]   ;;  %v1686_v45 = vld [vmem:[#allocation2 + $0x122] sm:$0xff]  ;;  %v4921_v0 = vpack.c.bf16 %v1497_v57, %v1497_v57  ;;  %v4920_v15 = vpack.c.bf16 %v1496_v50, %v1496_v50  ;;  %2547 = vst.msk [vmem:[#allocation3 + $0x178] sm:$0xf] %vm734_vm2, %v5042_v14 }
  0xec   : > { %1003 = vst.msk [vmem:[#allocation3 + $0xdc] sm:$0xf] %vm991_vm3, %v918_v6  ;;  %1002 = vst.msk [vmem:[#allocation3 + $0xc8] sm:$0xf] %vm991_vm3, %v916_v22  ;;  %v4950_v16 = vpack.c.bf16 %v1686_v45, %v1686_v45  ;;  %v1946_v6 = vld [vmem:[#allocation2 + $0x158] sm:$0xff]  ;;  %v1945_v22 = vld [vmem:[#allocation2 + $0x150] sm:$0xff] }
  0xed   : > { %2275 = vrot.lane.b32.xlu1 %v6341_v11, %s5562_s13  ;;  %2273 = vrot.lane.b32.xlu0 %v6343_v12, %s5562_s13  ;;  %2102 = vst.msk [vmem:[#allocation3 + $0x1b0] sm:$0xf] %vm734_vm2, %v4981_v39  ;;  %v1495_v12 = vld [vmem:[#allocation2 + $0x129] sm:$0xff]  ;;  %1657 = vst.msk [vmem:[#allocation3 + $0x1fc] sm:$0xf] %vm734_vm2, %v4921_v0  ;;  %v2135_v38 = vld [vmem:[#allocation2 + $0x139] sm:$0xff]  ;;  %v4985_v39 = vpack.c.bf16 %v1946_v6, %v1946_v6  ;;  %v4984_v18 = vpack.c.bf16 %v1945_v22, %v1945_v22 }
  0xee   : > { %v4919_v32 = vpack.c.bf16 %v1495_v12, %v1495_v12  ;;  %1656 = vst.msk [vmem:[#allocation3 + $0x1e8] sm:$0xf] %vm734_vm2, %v4920_v15  ;;  %v5014_v30 = vpack.c.bf16 %v2135_v38, %v2135_v38  ;;  %v2389_v12 = vld [vmem:[#allocation2 + $0x122] sm:$0xff]  ;;  %v2394_v57 = vld [vmem:[#allocation2 + $0x15a] sm:$0xff]  ;;  %v2395_v50 = vld [vmem:[#allocation2 + $0x16a] sm:$0xff] }
  0xef   : > { %v1367_v53 = vpop.permute.xlu1 %1366  ;;  %v1365_v43 = vpop.permute.xlu0 %1364  ;;  %v5436_v11 = vld [vmem:[#allocation3 + $0xc] ss:$20 sps:$4 sm:$0xff]   ;;  %2106 = vst.msk [vmem:[#allocation3 + $0x200] sm:$0xf] %vm734_vm2, %v4985_v39  ;;  %2105 = vst.msk [vmem:[#allocation3 + $0x1ec] sm:$0xf] %vm734_vm2, %v4984_v18  ;;  %v5044_v21 = vpack.c.bf16 %v2389_v12, %v2389_v12  ;;  %v5049_v13 = vpack.c.bf16 %v2394_v57, %v2394_v57  ;;  %v5050_v0 = vpack.c.bf16 %v2395_v50, %v2395_v50 }
  0xf0   : > { %1451 = vst.msk [vmem:[#allocation3 + $0xe0] sm:$0xf] %vm991_vm3, %v1367_v53  ;;  %1450 = vst.msk [vmem:[#allocation3 + $0xcc] sm:$0xf] %vm991_vm3, %v1365_v43  ;;  %3586 = vmatprep.mubr.bf16.mxu1 %v5436_v11  ;;  %v1499_v11 = vld [vmem:[#allocation2 + $0x159] sm:$0xff]  ;;  %v1501_v15 = vld [vmem:[#allocation2 + $0x171] sm:$0xff] }
  0xf1   : > { %1830 = vrot.lane.b32.xlu1 %v6118_v58, %s5562_s13  ;;  %1828 = vrot.lane.b32.xlu0 %v6120_v3, %s5562_s13  ;;  %1655 = vst.msk [vmem:[#allocation3 + $0x1d4] sm:$0xf] %vm734_vm2, %v4919_v32  ;;  %v2134_v58 = vld [vmem:[#allocation2 + $0x129] sm:$0xff]  ;;  %v1944_v3 = vld [vmem:[#allocation2 + $0x140] sm:$0xff]  ;;  %v4923_v32 = vpack.c.bf16 %v1499_v11, %v1499_v11  ;;  %2549 = vst.msk [vmem:[#allocation3 + $0x1a0] sm:$0xf] %vm734_vm2, %v5044_v21 }
  0xf2   : > { %3587 = vmatmul.mubr.bf16.vlgmr.msra.gmra.mxu1 %v5434_v26  ;;  %v4983_v56 = vpack.c.bf16 %v1944_v3, %v1944_v3  ;;  %v5013_v8 = vpack.c.bf16 %v2134_v58, %v2134_v58  ;;  %v4922_v58 = vpack.c.bf16 %v1498_v34, %v1498_v34  ;;  %2107 = vst.msk [vmem:[#allocation3 + $0x214] sm:$0xf] %vm734_vm2, %v4986_v42  ;;  %v2396_v45 = vld [vmem:[#allocation2 + $0x172] sm:$0xff]  ;;  %2554 = vst.msk [vmem:[#allocation3 + $0x204] sm:$0xf] %vm734_vm2, %v5049_v13  ;;  %v1949_v6 = vld [vmem:[#allocation2 + $0x180] sm:$0xff] }
  0xf3   : > { %v1799_v41 = vpop.permute.xlu1 %1798  ;;  %v1797_v47 = vpop.permute.xlu0 %1796  ;;  %1659 = vst.msk [vmem:[#allocation3 + $0x224] sm:$0xf] %vm734_vm2, %v4923_v32  ;;  %v5051_v14 = vpack.c.bf16 %v2396_v45, %v2396_v45  ;;  %2555 = vst.msk [vmem:[#allocation3 + $0x218] sm:$0xf] %vm734_vm2, %v5050_v0  ;;  %v1503_v32 = vld [vmem:[#allocation2 + $0x189] sm:$0xff]  ;;  %v1502_v34 = vld [vmem:[#allocation2 + $0x181] sm:$0xff] }
  0xf4   : > { %1891 = vst.msk [vmem:[#allocation3 + $0x44] sm:$0xf] %vm991_vm3, %v1799_v41  ;;  %1890 = vst.msk [vmem:[#allocation3 + $0x30] sm:$0xf] %vm991_vm3, %v1797_v47  ;;  %v2391_v41 = vld [vmem:[#allocation2 + $0x13a] sm:$0xff]  ;;  %v2392_v47 = vld [vmem:[#allocation2 + $0x142] sm:$0xff] }
  0xf5   : > { %2279 = vrot.lane.b32.xlu1 %v6391_v24, %s5562_s13  ;;  %2277 = vrot.lane.b32.xlu0 %v6393_v25, %s5562_s13  ;;  %2104 = vst.msk [vmem:[#allocation3 + $0x1d8] sm:$0xf] %vm734_vm2, %v4983_v56  ;;  %v5046_v3 = vpack.c.bf16 %v2391_v41, %v2391_v41  ;;  %v5047_v59 = vpack.c.bf16 %v2392_v47, %v2392_v47  ;;  %v2137_v56 = vld [vmem:[#allocation2 + $0x151] sm:$0xff]  ;;  %1658 = vst.msk [vmem:[#allocation3 + $0x210] sm:$0xf] %vm734_vm2, %v4922_v58  ;;  %v2399_v21 = vld [vmem:[#allocation2 + $0x19a] sm:$0xff] }
  0xf6   : > { %2556 = vst.msk [vmem:[#allocation3 + $0x22c] sm:$0xf] %vm734_vm2, %v5051_v14  ;;  %v2142_v4 = vld [vmem:[#allocation2 + $0x189] sm:$0xff]  ;;  %v5054_v47 = vpack.c.bf16 %v2399_v21, %v2399_v21  ;;  %v1951_v58 = vld [vmem:[#allocation2 + $0x198] sm:$0xff] }
  0xf7   : > { %v2248_v5 = vpop.permute.xlu1 %2247  ;;  %v2246_v7 = vpop.permute.xlu0 %2245  ;;  %v2591_v10 = vld [vmem:[#allocation3 + $0xc8] sm:$0xff]  ;;  %v2594_v1 = vld [vmem:[#allocation3 + $0xdc] sm:$0xff]  ;;  %2551 = vst.msk [vmem:[#allocation3 + $0x1c8] sm:$0xf] %vm734_vm2, %v5046_v3  ;;  %2552 = vst.msk [vmem:[#allocation3 + $0x1dc] sm:$0xf] %vm734_vm2, %v5047_v59 }
  0xf8   : > { %v5437_v24 = vld [vmem:[#allocation3 + $0xcc] ss:$20 sps:$4 sm:$0xff]   ;;  %2340 = vst.msk [vmem:[#allocation3 + $0x48] sm:$0xf] %vm991_vm3, %v2248_v5  ;;  %2339 = vst.msk [vmem:[#allocation3 + $0x34] sm:$0xf] %vm991_vm3, %v2246_v7  ;;  %v4655_v25 = vcombine.low %v2591_v10, %v2594_v1 }
  0xf9   : > { %1834 = vrot.lane.b32.xlu1 %v6142_v37, %s5562_s13  ;;  %1832 = vrot.lane.b32.xlu0 %v6144_v23, %s5562_s13  ;;  %v5043_v23 = vpack.c.bf16 %v2388_v51, %v2388_v51  ;;  %v1500_v51 = vld [vmem:[#allocation2 + $0x169] sm:$0xff]  ;;  %2559 = vst.msk [vmem:[#allocation3 + $0x268] sm:$0xf] %vm734_vm2, %v5054_v47 }
  0xfa   : > { %3465 = vmatprep.mubr.bf16.mxu0 %v5437_v24  ;;  %v4987_v24 = vpack.c.bf16 %v1948_v19, %v1948_v19  ;;  %v2400_v41 = vld [vmem:[#allocation2 + $0x1a2] sm:$0xff] }
  0xfb   : > { %v922_v37 = vpop.permute.xlu1 %921  ;;  %v920_v33 = vpop.permute.xlu0 %919  ;;  %3466 = vmatmul.mubr.bf16.gmra.mxu0 %v4655_v25  ;;  %2548 = vst.msk [vmem:[#allocation3 + $0x18c] sm:$0xf] %vm734_vm2, %v5043_v23  ;;  %v5017_v25 = vpack.c.bf16 %v2138_v49, %v2138_v49  ;;  %v4925_v23 = vpack.c.bf16 %v1501_v15, %v1501_v15  ;;  %v5055_v3 = vpack.c.bf16 %v2400_v41, %v2400_v41  ;;  %v1694_v42 = vld [vmem:[#allocation2 + $0x182] sm:$0xff] }
  0xfc   : > { %1005 = vst.msk [vmem:[#allocation3 + $0x104] sm:$0xf] %vm991_vm3, %v922_v37  ;;  %1004 = vst.msk [vmem:[#allocation3 + $0xf0] sm:$0xf] %vm991_vm3, %v920_v33 }
  0xfd   : > { %2283 = vrot.lane.b32.xlu1 %v5013_v8, %s5562_s13  ;;  %2281 = vrot.lane.b32.xlu0 %v5012_v9, %s5562_s13  ;;  %v5016_v8 = vpack.c.bf16 %v2137_v56, %v2137_v56  ;;  %v2393_v9 = vld [vmem:[#allocation2 + $0x152] sm:$0xff]  ;;  %2108 = vst.msk [vmem:[#allocation3 + $0x228] sm:$0xf] %vm734_vm2, %v4987_v24  ;;  %1661 = vst.msk [vmem:[#allocation3 + $0x24c] sm:$0xf] %vm734_vm2, %v4925_v23  ;;  %v1695_v24 = vld [vmem:[#allocation2 + $0x18a] sm:$0xff] }
  0xfe   : > { %v5048_v63 = vpack.c.bf16 %v2393_v9, %v2393_v9  ;;  %2560 = vst.msk [vmem:[#allocation3 + $0x27c] sm:$0xf] %vm734_vm2, %v5055_v3  ;;  %v2143_v9 = vld [vmem:[#allocation2 + $0x199] sm:$0xff] }
  0xff   : > { %v1371_v20 = vpop.permute.xlu1 %1370  ;;  %v1369_v29 = vpop.permute.xlu0 %1368  ;;  %v2568_v52 = vld [vmem:[#allocation3 + $0x30] sm:$0xff]  ;;  %v2571_v53 = vld [vmem:[#allocation3 + $0x44] sm:$0xff] }
 0x100   : > { %v5439_v43 = vld [vmem:[#allocation3 + $0x34] ss:$20 sps:$4 sm:$0xff]   ;;  %1453 = vst.msk [vmem:[#allocation3 + $0x108] sm:$0xf] %vm991_vm3, %v1371_v20  ;;  %1452 = vst.msk [vmem:[#allocation3 + $0xf4] sm:$0xf] %vm991_vm3, %v1369_v29  ;;  %v4637_v26 = vcombine.low %v2568_v52, %v2571_v53  ;;  %v4988_v29 = vpack.c.bf16 %v1949_v6, %v1949_v6 }
 0x101   : > { %1838 = vrot.lane.b32.xlu1 %v4951_v61, %s5562_s13  ;;  %1836 = vrot.lane.b32.xlu0 %v4950_v16, %s5562_s13  ;;  %2553 = vst.msk [vmem:[#allocation3 + $0x1f0] sm:$0xf] %vm734_vm2, %v5048_v63  ;;  %v2139_v61 = vld [vmem:[#allocation2 + $0x169] sm:$0xff] }
 0x102   : > { %3594 = vmatprep.mubr.bf16.mxu1 %v5439_v43  ;;  %v1950_v16 = vld [vmem:[#allocation2 + $0x188] sm:$0xff]  ;;  %v5018_v43 = vpack.c.bf16 %v2139_v61, %v2139_v61  ;;  %2109 = vst.msk [vmem:[#allocation3 + $0x23c] sm:$0xf] %vm734_vm2, %v4988_v29 }
 0x103   : > { %v1803_v48 = vpop.permute.xlu1 %1802  ;;  %3595 = vmatmul.mubr.bf16.gmra.mxu1 %v4637_v26  ;;  %v1801_v35 = vpop.permute.xlu0 %1800  ;;  %v4989_v20 = vpack.c.bf16 %v1950_v16, %v1950_v16  ;;  %v2397_v26 = vld [vmem:[#allocation2 + $0x182] sm:$0xff] }
 0x104   : > { %1893 = vst.msk [vmem:[#allocation3 + $0x6c] sm:$0xf] %vm991_vm3, %v1803_v48  ;;  %1892 = vst.msk [vmem:[#allocation3 + $0x58] sm:$0xf] %vm991_vm3, %v1801_v35  ;;  %v2141_v48 = vld [vmem:[#allocation2 + $0x181] sm:$0xff] }
 0x105   : > { %2287 = vrot.lane.b32.xlu1 %v5015_v27, %s5562_s13  ;;  %2285 = vrot.lane.b32.xlu0 %v5014_v30, %s5562_s13  ;;  %2110 = vst.msk [vmem:[#allocation3 + $0x250] sm:$0xf] %vm734_vm2, %v4989_v20  ;;  %v2398_v27 = vld [vmem:[#allocation2 + $0x18a] sm:$0xff]  ;;  %v5052_v30 = vpack.c.bf16 %v2397_v26, %v2397_v26  ;;  %v1952_v35 = vld [vmem:[#allocation2 + $0x1a0] sm:$0xff] }
 0x106   : > { %v5053_v11 = vpack.c.bf16 %v2398_v27, %v2398_v27 }
 0x107   : > { %v2252_v55 = vpop.permute.xlu1 %2251  ;;  %v2250_v5 = vpop.permute.xlu0 %2249  ;;  %v2597_v7 = vld [vmem:[#allocation3 + $0xf0] sm:$0xff]  ;;  %v2600_v10 = vld [vmem:[#allocation3 + $0x104] sm:$0xff]  ;;  %2557 = vst.msk [vmem:[#allocation3 + $0x240] sm:$0xf] %vm734_vm2, %v5052_v30 }
 0x108   : > { %v5441_v1 = vld [vmem:[#allocation3 + $0xf4] ss:$20 sps:$4 sm:$0xff]   ;;  %2342 = vst.msk [vmem:[#allocation3 + $0x70] sm:$0xf] %vm991_vm3, %v2252_v55  ;;  %2341 = vst.msk [vmem:[#allocation3 + $0x5c] sm:$0xf] %vm991_vm3, %v2250_v5  ;;  %v4660_v28 = vcombine.low %v2597_v7, %v2600_v10  ;;  %v4991_v55 = vpack.c.bf16 %v1952_v35, %v1952_v35  ;;  %v4990_v5 = vpack.c.bf16 %v1951_v58, %v1951_v58 }
 0x109   : > { %1842 = vrot.lane.b32.xlu1 %v5979_v36, %s5562_s13  ;;  %1840 = vrot.lane.b32.xlu0 %v5996_v44, %s5562_s13  ;;  %v4924_v36 = vpack.c.bf16 %v1500_v51, %v1500_v51  ;;  %v2140_v44 = vld [vmem:[#allocation2 + $0x171] sm:$0xff]  ;;  %2558 = vst.msk [vmem:[#allocation3 + $0x254] sm:$0xf] %vm734_vm2, %v5053_v11  ;;  %v5021_v10 = vpack.c.bf16 %v2142_v4, %v2142_v4 }
 0x10a   : > { %3473 = vmatprep.mubr.bf16.mxu0 %v5441_v1  ;;  %v5019_v53 = vpack.c.bf16 %v2140_v44, %v2140_v44  ;;  %v5020_v1 = vpack.c.bf16 %v2141_v48, %v2141_v48  ;;  %2112 = vst.msk [vmem:[#allocation3 + $0x278] sm:$0xf] %vm734_vm2, %v4991_v55  ;;  %2111 = vst.msk [vmem:[#allocation3 + $0x264] sm:$0xf] %vm734_vm2, %v4990_v5  ;;  %v5022_v51 = vpack.c.bf16 %v2143_v9, %v2143_v9 }
 0x10b   : > { %v926_v37 = vpop.permute.xlu1 %925  ;;  %v924_v33 = vpop.permute.xlu0 %923  ;;  %3474 = vmatmul.mubr.bf16.gmra.mxu0 %v4660_v28  ;;  %1660 = vst.msk [vmem:[#allocation3 + $0x238] sm:$0xf] %vm734_vm2, %v4924_v36 }
 0x10c   : > { %1007 = vst.msk [vmem:[#allocation3 + $0x12c] sm:$0xf] %vm991_vm3, %v926_v37  ;;  %1006 = vst.msk [vmem:[#allocation3 + $0x118] sm:$0xf] %vm991_vm3, %v924_v33 }
 0x10d   : > { %2291 = vrot.lane.b32.xlu1 %v5017_v25, %s5562_s13  ;;  %2289 = vrot.lane.b32.xlu0 %v5016_v8, %s5562_s13  ;;  %v2144_v8 = vld [vmem:[#allocation2 + $0x1a1] sm:$0xff] }
 0x10e   : > { %v5023_v15 = vpack.c.bf16 %v2144_v8, %v2144_v8 }
 0x10f   : > { %v1375_v22 = vpop.permute.xlu1 %1374  ;;  %v1373_v17 = vpop.permute.xlu0 %1372  ;;  %v2574_v38 = vld [vmem:[#allocation3 + $0x58] sm:$0xff]  ;;  %v2577_v39 = vld [vmem:[#allocation3 + $0x6c] sm:$0xff] }
 0x110   : > { %v5444_v18 = vld [vmem:[#allocation3 + $0x5c] ss:$20 sps:$4 sm:$0xff]   ;;  %1455 = vst.msk [vmem:[#allocation3 + $0x130] sm:$0xf] %vm991_vm3, %v1375_v22  ;;  %1454 = vst.msk [vmem:[#allocation3 + $0x11c] sm:$0xf] %vm991_vm3, %v1373_v17  ;;  %v4642_v52 = vcombine.low %v2574_v38, %v2577_v39 }
 0x111   : > { %1846 = vrot.lane.b32.xlu1 %v6011_v60, %s5562_s13  ;;  %1844 = vrot.lane.b32.xlu0 %v6013_v62, %s5562_s13  ;;  %v4927_v60 = vpack.c.bf16 %v1503_v32, %v1503_v32  ;;  %v4926_v62 = vpack.c.bf16 %v1502_v34, %v1502_v34 }
 0x112   : > { %3602 = vmatprep.mubr.bf16.mxu1 %v5444_v18 }
 0x113   : > { %v1807_v12 = vpop.permute.xlu1 %1806  ;;  %3603 = vmatmul.mubr.bf16.gmra.mxu1 %v4642_v52  ;;  %v1805_v31 = vpop.permute.xlu0 %1804  ;;  %1663 = vst.msk [vmem:[#allocation3 + $0x274] sm:$0xf] %vm734_vm2, %v4927_v60  ;;  %1662 = vst.msk [vmem:[#allocation3 + $0x260] sm:$0xf] %vm734_vm2, %v4926_v62 }
 0x114   : > { %1895 = vst.msk [vmem:[#allocation3 + $0x94] sm:$0xf] %vm991_vm3, %v1807_v12  ;;  %1894 = vst.msk [vmem:[#allocation3 + $0x80] sm:$0xf] %vm991_vm3, %v1805_v31 }
 0x115   : > { %2295 = vrot.lane.b32.xlu1 %v5019_v53, %s5562_s13  ;;  %2293 = vrot.lane.b32.xlu0 %v5018_v43, %s5562_s13 }
 0x117   : > { %v2256_v59 = vpop.permute.xlu1 %2255  ;;  %v2254_v49 = vpop.permute.xlu0 %2253  ;;  %v2603_v56 = vld [vmem:[#allocation3 + $0x118] sm:$0xff]  ;;  %v2606_v19 = vld [vmem:[#allocation3 + $0x12c] sm:$0xff] }
 0x118   : > { %v5446_v54 = vld [vmem:[#allocation3 + $0x11c] ss:$20 sps:$4 sm:$0xff]   ;;  %2344 = vst.msk [vmem:[#allocation3 + $0x98] sm:$0xf] %vm991_vm3, %v2256_v59  ;;  %2343 = vst.msk [vmem:[#allocation3 + $0x84] sm:$0xf] %vm991_vm3, %v2254_v49  ;;  %v4665_v7 = vcombine.low %v2603_v56, %v2606_v19 }
 0x119   : > { %1850 = vrot.lane.b32.xlu1 %v6062_v40, %s5562_s13  ;;  %1848 = vrot.lane.b32.xlu0 %v6064_v46, %s5562_s13  ;;  %v4959_v40 = vpack.c.bf16 %v1695_v24, %v1695_v24  ;;  %v4958_v46 = vpack.c.bf16 %v1694_v42, %v1694_v42 }
 0x11a   : > { %3481 = vmatprep.mubr.bf16.mxu0 %v5446_v54 }
 0x11b   : > { %v930_v28 = vpop.permute.xlu1 %929  ;;  %v928_v25 = vpop.permute.xlu0 %927  ;;  %3482 = vmatmul.mubr.bf16.gmra.mxu0 %v4665_v7 }
 0x11c   : > { %1009 = vst.msk [vmem:[#allocation3 + $0x154] sm:$0xf] %vm991_vm3, %v930_v28  ;;  %1008 = vst.msk [vmem:[#allocation3 + $0x140] sm:$0xf] %vm991_vm3, %v928_v25  ;;  %v5469_v25 = vld [vmem:[#allocation3 + $0x10] ss:$20 sps:$4 sm:$0xff]  }
 0x11d   : > { %2299 = vrot.lane.b32.xlu1 %v5021_v10, %s5562_s13  ;;  %2297 = vrot.lane.b32.xlu0 %v5020_v1, %s5562_s13 }
 0x11f   : > { %v1379_v57 = vpop.permute.xlu1 %1378  ;;  %v1377_v50 = vpop.permute.xlu0 %1376  ;;  %v2580_v63 = vld [vmem:[#allocation3 + $0x80] sm:$0xff]  ;;  %v2583_v13 = vld [vmem:[#allocation3 + $0x94] sm:$0xff] }
 0x120   : > { %v5448_v45 = vld [vmem:[#allocation3 + $0x84] ss:$20 sps:$4 sm:$0xff]   ;;  %1457 = vst.msk [vmem:[#allocation3 + $0x158] sm:$0xf] %vm991_vm3, %v1379_v57  ;;  %1456 = vst.msk [vmem:[#allocation3 + $0x144] sm:$0xf] %vm991_vm3, %v1377_v50  ;;  %v4647_v0 = vcombine.low %v2580_v63, %v2583_v13 }
 0x121   : > { %1854 = vrot.lane.b32.xlu1 %v4959_v40, %s5562_s13  ;;  %1852 = vrot.lane.b32.xlu0 %v4958_v46, %s5562_s13 }
 0x122   : > { %3610 = vmatprep.mubr.bf16.mxu1 %v5448_v45  ;;  %v5470_v45 = vld [vmem:[#allocation3 + $0x38] ss:$20 sps:$4 sm:$0xff]  }
 0x123   : > { %v1811_v14 = vpop.permute.xlu1 %1810  ;;  %3611 = vmatmul.mubr.bf16.gmra.mxu1 %v4647_v0  ;;  %v1809_v37 = vpop.permute.xlu0 %1808  ;;  %v5473_v0 = vld [vmem:[#allocation3 + $0x60] ss:$20 sps:$4 sm:$0xff]  }
 0x124   : > { %1897 = vst.msk [vmem:[#allocation3 + $0xbc] sm:$0xf] %vm991_vm3, %v1811_v14  ;;  %1896 = vst.msk [vmem:[#allocation3 + $0xa8] sm:$0xf] %vm991_vm3, %v1809_v37 }
 0x125   : > { %2303 = vrot.lane.b32.xlu1 %v5023_v15, %s5562_s13  ;;  %2301 = vrot.lane.b32.xlu0 %v5022_v51, %s5562_s13 }
 0x127   : > { %v2260_v33 = vpop.permute.xlu1 %2259  ;;  %v2258_v23 = vpop.permute.xlu0 %2257  ;;  %v2609_v36 = vld [vmem:[#allocation3 + $0x140] sm:$0xff]  ;;  %v2612_v44 = vld [vmem:[#allocation3 + $0x154] sm:$0xff] }
 0x128   : > { %v5451_v61 = vld [vmem:[#allocation3 + $0x144] ss:$20 sps:$4 sm:$0xff]   ;;  %2346 = vst.msk [vmem:[#allocation3 + $0xc0] sm:$0xf] %vm991_vm3, %v2260_v33  ;;  %2345 = vst.msk [vmem:[#allocation3 + $0xac] sm:$0xf] %vm991_vm3, %v2258_v23  ;;  %v4670_v16 = vcombine.low %v2609_v36, %v2612_v44 }
 0x129   : > { %3489 = vmatprep.mubr.bf16.mxu0 %v5451_v61  ;;  %v5474_v61 = vld [vmem:[#allocation3 + $0x88] ss:$20 sps:$4 sm:$0xff]  }
 0x12a   : > { %3490 = vmatmul.mubr.bf16.gmra.mxu0 %v4670_v16  ;;  %v5477_v16 = vld [vmem:[#allocation3 + $0xb0] ss:$20 sps:$4 sm:$0xff]  }
 0x12b   : > { %v934_v6 = vpop.permute.xlu1 %933  ;;  %v932_v22 = vpop.permute.xlu0 %931 }
 0x12c   : > { %1011 = vst.msk [vmem:[#allocation3 + $0x17c] sm:$0xf] %vm991_vm3, %v934_v6  ;;  %1010 = vst.msk [vmem:[#allocation3 + $0x168] sm:$0xf] %vm991_vm3, %v932_v22 }
 0x12f   : > { %v1383_v17 = vpop.permute.xlu1 %1382  ;;  %v1381_v38 = vpop.permute.xlu0 %1380  ;;  %v2586_v39 = vld [vmem:[#allocation3 + $0xa8] sm:$0xff]  ;;  %v2589_v18 = vld [vmem:[#allocation3 + $0xbc] sm:$0xff] }
 0x130   : > { %v5453_v20 = vld [vmem:[#allocation3 + $0xac] ss:$20 sps:$4 sm:$0xff]   ;;  %1459 = vst.msk [vmem:[#allocation3 + $0x180] sm:$0xf] %vm991_vm3, %v1383_v17  ;;  %1458 = vst.msk [vmem:[#allocation3 + $0x16c] sm:$0xf] %vm991_vm3, %v1381_v38  ;;  %v4652_v29 = vcombine.low %v2586_v39, %v2589_v18 }
 0x131   : > { %3618 = vmatprep.mubr.bf16.mxu1 %v5453_v20 }
 0x132   : > { %3619 = vmatmul.mubr.bf16.gmra.mxu1 %v4652_v29 }
 0x133   : > { %v1815_v52 = vpop.permute.xlu1 %1814  ;;  %v1813_v53 = vpop.permute.xlu0 %1812 }
 0x134   : > { %1899 = vst.msk [vmem:[#allocation3 + $0xe4] sm:$0xf] %vm991_vm3, %v1815_v52  ;;  %1898 = vst.msk [vmem:[#allocation3 + $0xd0] sm:$0xf] %vm991_vm3, %v1813_v53  ;;  %v5478_v52 = vld [vmem:[#allocation3 + $0xd8] ss:$20 sps:$4 sm:$0xff]  }
 0x135   : > { %v5481_v53 = vld [vmem:[#allocation3 + $0x100] ss:$20 sps:$4 sm:$0xff]  }
 0x137   : > { %v2264_v43 = vpop.permute.xlu1 %2263  ;;  %v2262_v26 = vpop.permute.xlu0 %2261  ;;  %v2615_v27 = vld [vmem:[#allocation3 + $0x168] sm:$0xff]  ;;  %v2618_v30 = vld [vmem:[#allocation3 + $0x17c] sm:$0xff] }
 0x138   : > { %v5455_v11 = vld [vmem:[#allocation3 + $0x16c] ss:$20 sps:$4 sm:$0xff]   ;;  %2348 = vst.msk [vmem:[#allocation3 + $0xe8] sm:$0xf] %vm991_vm3, %v2264_v43  ;;  %2347 = vst.msk [vmem:[#allocation3 + $0xd4] sm:$0xf] %vm991_vm3, %v2262_v26  ;;  %v4675_v12 = vcombine.low %v2615_v27, %v2618_v30 }
 0x139   : > { %3497 = vmatprep.mubr.bf16.mxu0 %v5455_v11 }
 0x13a   : > { %3498 = vmatmul.mubr.bf16.gmra.mxu0 %v4675_v12 }
 0x13b   : > { %v938_v31 = vpop.permute.xlu1 %937  ;;  %v936_v32 = vpop.permute.xlu0 %935 }
 0x13c   : > { %1013 = vst.msk [vmem:[#allocation3 + $0x1a4] sm:$0xf] %vm991_vm3, %v938_v31  ;;  %1012 = vst.msk [vmem:[#allocation3 + $0x190] sm:$0xf] %vm991_vm3, %v936_v32 }
 0x13f   : > { %v1387_v34 = vpop.permute.xlu1 %1386  ;;  %v1385_v60 = vpop.permute.xlu0 %1384  ;;  %v2592_v62 = vld [vmem:[#allocation3 + $0xd0] sm:$0xff]  ;;  %v2595_v21 = vld [vmem:[#allocation3 + $0xe4] sm:$0xff] }
 0x140   : > { %v5458_v4 = vld [vmem:[#allocation3 + $0xd4] ss:$20 sps:$4 sm:$0xff]   ;;  %1461 = vst.msk [vmem:[#allocation3 + $0x1a8] sm:$0xf] %vm991_vm3, %v1387_v34  ;;  %1460 = vst.msk [vmem:[#allocation3 + $0x194] sm:$0xf] %vm991_vm3, %v1385_v60  ;;  %v4657_v41 = vcombine.low %v2592_v62, %v2595_v21 }
 0x141   : > { %3626 = vmatprep.mubr.bf16.mxu1 %v5458_v4  ;;  %v5482_v21 = vld [vmem:[#allocation3 + $0x128] ss:$20 sps:$4 sm:$0xff]   ;;  %v5485_v4 = vld [vmem:[#allocation3 + $0x150] ss:$20 sps:$4 sm:$0xff]  }
 0x142   : > { %3627 = vmatmul.mubr.bf16.gmra.mxu1 %v4657_v41 }
 0x143   : > { %v1819_v47 = vpop.permute.xlu1 %1818  ;;  %v1817_v48 = vpop.permute.xlu0 %1816 }
 0x144   : > { %1901 = vst.msk [vmem:[#allocation3 + $0x10c] sm:$0xf] %vm991_vm3, %v1819_v47  ;;  %1900 = vst.msk [vmem:[#allocation3 + $0xf8] sm:$0xf] %vm991_vm3, %v1817_v48 }
 0x147   : > { %v2268_v35 = vpop.permute.xlu1 %2267  ;;  %v2266_v58 = vpop.permute.xlu0 %2265  ;;  %v2621_v3 = vld [vmem:[#allocation3 + $0x190] sm:$0xff]  ;;  %v2624_v59 = vld [vmem:[#allocation3 + $0x1a4] sm:$0xff] }
 0x148   : > { %v5460_v49 = vld [vmem:[#allocation3 + $0x194] ss:$20 sps:$4 sm:$0xff]   ;;  %2350 = vst.msk [vmem:[#allocation3 + $0x110] sm:$0xf] %vm991_vm3, %v2268_v35  ;;  %2349 = vst.msk [vmem:[#allocation3 + $0xfc] sm:$0xf] %vm991_vm3, %v2266_v58  ;;  %v4680_v56 = vcombine.low %v2621_v3, %v2624_v59 }
 0x149   : > { %3505 = vmatprep.mubr.bf16.mxu0 %v5460_v49 }
 0x14a   : > { %3506 = vmatmul.mubr.bf16.gmra.mxu0 %v4680_v56 }
 0x14b   : > { %v942_v19 = vpop.permute.xlu1 %941  ;;  %v940_v54 = vpop.permute.xlu0 %939 }
 0x14c   : > { %1015 = vst.msk [vmem:[#allocation3 + $0x1cc] sm:$0xf] %vm991_vm3, %v942_v19  ;;  %1014 = vst.msk [vmem:[#allocation3 + $0x1b8] sm:$0xf] %vm991_vm3, %v940_v54 }
 0x14f   : > { %v1391_v55 = vpop.permute.xlu1 %1390  ;;  %v1389_v5 = vpop.permute.xlu0 %1388  ;;  %v2598_v7 = vld [vmem:[#allocation3 + $0xf8] sm:$0xff]  ;;  %v2601_v10 = vld [vmem:[#allocation3 + $0x10c] sm:$0xff] }
 0x150   : > { %v5462_v1 = vld [vmem:[#allocation3 + $0xfc] ss:$20 sps:$4 sm:$0xff]   ;;  %1463 = vst.msk [vmem:[#allocation3 + $0x1d0] sm:$0xf] %vm991_vm3, %v1391_v55  ;;  %1462 = vst.msk [vmem:[#allocation3 + $0x1bc] sm:$0xf] %vm991_vm3, %v1389_v5  ;;  %v4662_v24 = vcombine.low %v2598_v7, %v2601_v10 }
 0x151   : > { %3634 = vmatprep.mubr.bf16.mxu1 %v5462_v1  ;;  %v5486_v55 = vld [vmem:[#allocation3 + $0x178] ss:$20 sps:$4 sm:$0xff]   ;;  %v5489_v1 = vld [vmem:[#allocation3 + $0x1a0] ss:$20 sps:$4 sm:$0xff]  }
 0x152   : > { %3635 = vmatmul.mubr.bf16.gmra.mxu1 %v4662_v24 }
 0x153   : > { %v1823_v42 = vpop.permute.xlu1 %1822  ;;  %v1821_v28 = vpop.permute.xlu0 %1820 }
 0x154   : > { %1903 = vst.msk [vmem:[#allocation3 + $0x134] sm:$0xf] %vm991_vm3, %v1823_v42  ;;  %1902 = vst.msk [vmem:[#allocation3 + $0x120] sm:$0xf] %vm991_vm3, %v1821_v28 }
 0x157   : > { %v2272_v40 = vpop.permute.xlu1 %2271  ;;  %v2270_v46 = vpop.permute.xlu0 %2269  ;;  %v2627_v8 = vld [vmem:[#allocation3 + $0x1b8] sm:$0xff]  ;;  %v2630_v9 = vld [vmem:[#allocation3 + $0x1cc] sm:$0xff] }
 0x158   : > { %v5465_v57 = vld [vmem:[#allocation3 + $0x1bc] ss:$20 sps:$4 sm:$0xff]   ;;  %2352 = vst.msk [vmem:[#allocation3 + $0x138] sm:$0xf] %vm991_vm3, %v2272_v40  ;;  %2351 = vst.msk [vmem:[#allocation3 + $0x124] sm:$0xf] %vm991_vm3, %v2270_v46  ;;  %v4685_v50 = vcombine.low %v2627_v8, %v2630_v9 }
 0x159   : > { %3513 = vmatprep.mubr.bf16.mxu0 %v5465_v57 }
 0x15a   : > { %3514 = vmatmul.mubr.bf16.gmra.mxu0 %v4685_v50 }
 0x15b   : > { %v1827_v63 = vpop.permute.xlu1 %1826  ;;  %v1825_v13 = vpop.permute.xlu0 %1824  ;;  %5308 = vmatprep.mubr.msk.bf16.mxu0 %vm499_vm1, %v5469_v25 }
 0x15c   : > { %1905 = vst.msk [vmem:[#allocation3 + $0x15c] sm:$0xf] %vm991_vm3, %v1827_v63  ;;  %1904 = vst.msk [vmem:[#allocation3 + $0x148] sm:$0xf] %vm991_vm3, %v1825_v13 }
 0x15f   : > { %v2276_v15 = vpop.permute.xlu1 %2275  ;;  %v2274_v51 = vpop.permute.xlu0 %2273  ;;  %v2604_v14 = vld [vmem:[#allocation3 + $0x120] sm:$0xff]  ;;  %v2607_v37 = vld [vmem:[#allocation3 + $0x134] sm:$0xff] }
 0x160   : > { %v5467_v33 = vld [vmem:[#allocation3 + $0x124] ss:$20 sps:$4 sm:$0xff]   ;;  %2354 = vst.msk [vmem:[#allocation3 + $0x160] sm:$0xf] %vm991_vm3, %v2276_v15  ;;  %2353 = vst.msk [vmem:[#allocation3 + $0x14c] sm:$0xf] %vm991_vm3, %v2274_v51  ;;  %v4667_v23 = vcombine.low %v2604_v14, %v2607_v37 }
 0x161   : > { %3642 = vmatprep.mubr.bf16.mxu1 %v5467_v33  ;;  %v5493_v33 = vld [vmem:[#allocation3 + $0x1f0] ss:$20 sps:$4 sm:$0xff]  }
 0x162   : > { %3643 = vmatmul.mubr.bf16.gmra.mxu1 %v4667_v23  ;;  %5309 = vmatmul.mubr.msk.bf16.vlgmr.msra.gmra.mxu0 %vm499_vm1, %v5470_v45 }
 0x163   : > { %v1831_v36 = vpop.permute.xlu1 %1830  ;;  %v1829_v44 = vpop.permute.xlu0 %1828  ;;  %5312 = vmatprep.mubr.msk.bf16.mxu0 %vm499_vm1, %v5473_v0  ;;  %v5490_v0 = vld [vmem:[#allocation3 + $0x1c8] ss:$20 sps:$4 sm:$0xff]  }
 0x164   : > { %1907 = vst.msk [vmem:[#allocation3 + $0x184] sm:$0xf] %vm991_vm3, %v1831_v36  ;;  %1906 = vst.msk [vmem:[#allocation3 + $0x170] sm:$0xf] %vm991_vm3, %v1829_v44 }
 0x167   : > { %v2280_v6 = vpop.permute.xlu1 %2279  ;;  %v2278_v22 = vpop.permute.xlu0 %2277  ;;  %v2610_v17 = vld [vmem:[#allocation3 + $0x148] sm:$0xff]  ;;  %v2613_v38 = vld [vmem:[#allocation3 + $0x15c] sm:$0xff] }
 0x168   : > { %v5471_v39 = vld [vmem:[#allocation3 + $0x14c] ss:$20 sps:$4 sm:$0xff]   ;;  %2356 = vst.msk [vmem:[#allocation3 + $0x188] sm:$0xf] %vm991_vm3, %v2280_v6  ;;  %2355 = vst.msk [vmem:[#allocation3 + $0x174] sm:$0xf] %vm991_vm3, %v2278_v22  ;;  %v4672_v18 = vcombine.low %v2610_v17, %v2613_v38 }
 0x169   : > { %3650 = vmatprep.mubr.bf16.mxu1 %v5471_v39  ;;  %v4762_v38 = vld [vmem:[%s7322_s4] ss:$0 sm:$0xff] }
 0x16a   : > { %3651 = vmatmul.mubr.bf16.gmra.mxu1 %v4672_v18  ;;  %5313 = vmatmul.mubr.msk.bf16.gmra.mxu0 %vm499_vm1, %v5474_v61 }
 0x16b   : > { %v1835_v20 = vpop.permute.xlu1 %1834  ;;  %v1833_v29 = vpop.permute.xlu0 %1832  ;;  %5316 = vmatprep.mubr.msk.bf16.mxu0 %vm499_vm1, %v5477_v16  ;;  %4063 = vrot.lane.b32.xlu0 %v4762_v38, %s5562_s13 }
 0x16c   : > { %1909 = vst.msk [vmem:[#allocation3 + $0x1ac] sm:$0xf] %vm991_vm3, %v1835_v20  ;;  %1908 = vst.msk [vmem:[#allocation3 + $0x198] sm:$0xf] %vm991_vm3, %v1833_v29 }
 0x16f   : > { %v2284_v43 = vpop.permute.xlu1 %2283  ;;  %v2282_v26 = vpop.permute.xlu0 %2281  ;;  %v2616_v27 = vld [vmem:[#allocation3 + $0x170] sm:$0xff]  ;;  %v2619_v30 = vld [vmem:[#allocation3 + $0x184] sm:$0xff] }
 0x170   : > { %v5475_v11 = vld [vmem:[#allocation3 + $0x174] ss:$20 sps:$4 sm:$0xff]   ;;  %2358 = vst.msk [vmem:[#allocation3 + $0x1b0] sm:$0xf] %vm991_vm3, %v2284_v43  ;;  %2357 = vst.msk [vmem:[#allocation3 + $0x19c] sm:$0xf] %vm991_vm3, %v2282_v26  ;;  %v4677_v12 = vcombine.low %v2616_v27, %v2619_v30 }
 0x171   : > { %3658 = vmatprep.mubr.bf16.mxu1 %v5475_v11  ;;  %v5494_v26 = vld [vmem:[#allocation3 + $0x218] ss:$20 sps:$4 sm:$0xff]  }
 0x172   : > { %3659 = vmatmul.mubr.bf16.gmra.mxu1 %v4677_v12  ;;  %5317 = vmatmul.mubr.msk.bf16.gmra.mxu0 %vm499_vm1, %v5478_v52  ;;  %v5144_v32 = vpop.f32.mrf.mxu1  ;;  %v5498_v12 = vld [vmem:[#allocation3 + $0x240] ss:$20 sps:$4 sm:$0xff]  }
 0x173   : > { %v1839_v31 = vpop.permute.xlu1 %1838  ;;  %5320 = vmatprep.mubr.msk.bf16.mxu0 %vm499_vm1, %v5481_v53  ;;  %v1837_v34 = vpop.permute.xlu0 %1836  ;;  %v4763_v53 = vld [vmem:[%s7323_s5] ss:$0 sm:$0xff] }
 0x174   : > { %1911 = vst.msk [vmem:[#allocation3 + $0x1d4] sm:$0xf] %vm991_vm3, %v1839_v31  ;;  %1910 = vst.msk [vmem:[#allocation3 + $0x1c0] sm:$0xf] %vm991_vm3, %v1837_v34  ;;  %v5145_v60 = vpop.f32.mrf.mxu1  ;;  %4104 = vrot.lane.b32.xlu1 %v4763_v53, %s5562_s13  ;;  %s4337_s13 = sshll.u32 %s7381_s24, 3 }
 0x175   : > { %v6606_v62 = vadd.f32 %v5145_v60, %v5144_v32  ;;  %s6689_s14 = scalar_lea.vmem %s7325_s7, %s4337_s13 }
 0x176   : > { %v5147_v47 = vpop.f32.mrf.mxu1  ;;  %3880 = vst.msk [vmem:[%s6689_s14] sm:$0xff] %vm499_vm1, %v5561_v2 }
 0x177   : > { %7328 = vst [vmem:[#allocation4_spill] sm:$0xff] %v6606_v62  ;;  %v2288_v41 = vpop.permute.xlu1 %2287  ;;  %v2622_v48 = vld [vmem:[#allocation3 + $0x198] sm:$0xff]  ;;  %v2625_v35 = vld [vmem:[#allocation3 + $0x1ac] sm:$0xff]  ;;  %v2286_v3 = vpop.permute.xlu0 %2285 }
 0x178   : > { %v5479_v58 = vld [vmem:[#allocation3 + $0x19c] ss:$20 sps:$4 sm:$0xff]   ;;  %2360 = vst.msk [vmem:[#allocation3 + $0x1d8] sm:$0xf] %vm991_vm3, %v2288_v41  ;;  %v4682_v59 = vcombine.low %v2622_v48, %v2625_v35  ;;  %2359 = vst.msk [vmem:[#allocation3 + $0x1c4] sm:$0xf] %vm991_vm3, %v2286_v3  ;;  %v5148_v49 = vpop.f32.mrf.mxu1 }
 0x179   : > { %3666 = vmatprep.mubr.bf16.mxu1 %v5479_v58  ;;  %v6610_v56 = vadd.f32 %v5148_v49, %v5147_v47  ;;  %v5499_v49 = vld [vmem:[#allocation3 + $0x268] ss:$20 sps:$4 sm:$0xff]  }
 0x17a   : > { %3667 = vmatmul.mubr.bf16.gmra.mxu1 %v4682_v59  ;;  %5321 = vmatmul.mubr.msk.bf16.gmra.mxu0 %vm499_vm1, %v5482_v21 }
 0x17b   : > { %7329 = vst [vmem:[#allocation5_spill] sm:$0xff] %v6610_v56  ;;  %v1843_v19 = vpop.permute.xlu1 %1842  ;;  %5324 = vmatprep.mubr.msk.bf16.mxu0 %vm499_vm1, %v5485_v4  ;;  %v1841_v54 = vpop.permute.xlu0 %1840 }
 0x17c   : > { %1913 = vst.msk [vmem:[#allocation3 + $0x1fc] sm:$0xf] %vm991_vm3, %v1843_v19  ;;  %1912 = vst.msk [vmem:[#allocation3 + $0x1e8] sm:$0xf] %vm991_vm3, %v1841_v54  ;;  %v5072_v7 = vpop.f32.mrf.mxu0 }
 0x17e   : > { %v5073_v25 = vpop.f32.mrf.mxu0 }
 0x17f   : > { %v2292_v5 = vpop.permute.xlu1 %2291  ;;  %v2631_v10 = vld [vmem:[#allocation3 + $0x1d4] sm:$0xff]  ;;  %v2290_v24 = vpop.permute.xlu0 %2289  ;;  %v2628_v42 = vld [vmem:[#allocation3 + $0x1c0] sm:$0xff]  ;;  %v6618_v46 = vadd.f32 %v5073_v25, %v5072_v7 }
 0x180   : > { %2362 = vst.msk [vmem:[#allocation3 + $0x200] sm:$0xf] %vm991_vm3, %v2292_v5  ;;  %v5483_v28 = vld [vmem:[#allocation3 + $0x1c4] ss:$20 sps:$4 sm:$0xff]   ;;  %2361 = vst.msk [vmem:[#allocation3 + $0x1ec] sm:$0xf] %vm991_vm3, %v2290_v24  ;;  %v4687_v40 = vcombine.low %v2628_v42, %v2631_v10  ;;  %v5075_v9 = vpop.f32.mrf.mxu0 }
 0x181   : > { %3674 = vmatprep.mubr.bf16.mxu1 %v5483_v28 }
 0x182   : > { %5325 = vmatmul.mubr.msk.bf16.gmra.mxu0 %vm499_vm1, %v5486_v55  ;;  %3675 = vmatmul.mubr.bf16.gmra.mxu1 %v4687_v40  ;;  %v5076_v63 = vpop.f32.mrf.mxu0 }
 0x183   : > { %v1847_v8 = vpop.permute.xlu1 %1846  ;;  %5328 = vmatprep.mubr.msk.bf16.mxu0 %vm499_vm1, %v5489_v1  ;;  %v5150_v57 = vpop.f32.mrf.mxu1  ;;  %v6624_v13 = vadd.f32 %v5076_v63, %v5075_v9 }
 0x184   : > { %1915 = vst.msk [vmem:[#allocation3 + $0x224] sm:$0xf] %vm991_vm3, %v1847_v8  ;;  %v1845_v50 = vpop.permute.xlu0 %1844  ;;  %v5078_v14 = vpop.f32.mrf.mxu0 }
 0x185   : > { %1914 = vst.msk [vmem:[#allocation3 + $0x210] sm:$0xf] %vm991_vm3, %v1845_v50  ;;  %v5151_v45 = vpop.f32.mrf.mxu1 }
 0x186   : > { %v6626_v15 = vadd.f32 %v5151_v45, %v5150_v57  ;;  %v5079_v16 = vpop.f32.mrf.mxu0 }
 0x187   : > { %v2296_v51 = vpop.permute.xlu1 %2295  ;;  %v2637_v37 = vld [vmem:[#allocation3 + $0x1fc] sm:$0xff]  ;;  %v5153_v23 = vpop.f32.mrf.mxu1  ;;  %v2634_v44 = vld [vmem:[#allocation3 + $0x1e8] sm:$0xff]  ;;  %v6630_v22 = vadd.f32 %v5079_v16, %v5078_v14 }
 0x188   : > { %7330 = vst [vmem:[#allocation6_spill] sm:$0xff] %v6626_v15  ;;  %2364 = vst.msk [vmem:[#allocation3 + $0x228] sm:$0xf] %vm991_vm3, %v2296_v51  ;;  %v2294_v36 = vpop.permute.xlu0 %2293  ;;  %v5487_v61 = vld [vmem:[#allocation3 + $0x1ec] ss:$20 sps:$4 sm:$0xff]   ;;  %v4692_v6 = vcombine.low %v2634_v44, %v2637_v37  ;;  %v5081_v20 = vpop.f32.mrf.mxu0 }
 0x189   : > { %2363 = vst.msk [vmem:[#allocation3 + $0x214] sm:$0xf] %vm991_vm3, %v2294_v36  ;;  %v5154_v17 = vpop.f32.mrf.mxu1  ;;  %3682 = vmatprep.mubr.bf16.mxu1 %v5487_v61 }
 0x18a   : > { %5329 = vmatmul.mubr.msk.bf16.gmra.mxu0 %vm499_vm1, %v5490_v0  ;;  %v6636_v39 = vadd.f32 %v5154_v17, %v5153_v23  ;;  %3683 = vmatmul.mubr.bf16.gmra.mxu1 %v4692_v6  ;;  %v5082_v52 = vpop.f32.mrf.mxu0 }
 0x18b   : > { %v1851_v18 = vpop.permute.xlu1 %1850  ;;  %5332 = vmatprep.mubr.msk.bf16.mxu0 %vm499_vm1, %v5493_v33  ;;  %v6645_v43 = vadd.f32 %v5082_v52, %v5081_v20 }
 0x18c   : > { %7331 = vst [vmem:[#allocation7_spill] sm:$0xff] %v6636_v39  ;;  %1917 = vst.msk [vmem:[#allocation3 + $0x24c] sm:$0xf] %vm991_vm3, %v1851_v18  ;;  %v1849_v29 = vpop.permute.xlu0 %1848 }
 0x18d   : > { %1916 = vst.msk [vmem:[#allocation3 + $0x238] sm:$0xf] %vm991_vm3, %v1849_v29 }
 0x18f   : > { %v2300_v27 = vpop.permute.xlu1 %2299  ;;  %v5084_v30 = vpop.f32.mrf.mxu0  ;;  %v2643_v11 = vld [vmem:[#allocation3 + $0x224] sm:$0xff] }
 0x190   : > { %2366 = vst.msk [vmem:[#allocation3 + $0x250] sm:$0xf] %vm991_vm3, %v2300_v27  ;;  %v2298_v31 = vpop.permute.xlu0 %2297  ;;  %v2640_v32 = vld [vmem:[#allocation3 + $0x210] sm:$0xff] }
 0x191   : > { %v5491_v34 = vld [vmem:[#allocation3 + $0x214] ss:$20 sps:$4 sm:$0xff]   ;;  %2365 = vst.msk [vmem:[#allocation3 + $0x23c] sm:$0xf] %vm991_vm3, %v2298_v31  ;;  %v5085_v60 = vpop.f32.mrf.mxu0  ;;  %v4697_v21 = vcombine.low %v2640_v32, %v2643_v11 }
 0x192   : > { %v6650_v4 = vadd.f32 %v5085_v60, %v5084_v30  ;;  %3690 = vmatprep.mubr.bf16.mxu1 %v5491_v34  ;;  %5333 = vmatmul.mubr.msk.bf16.gmra.mxu0 %vm499_vm1, %v5494_v26 }
 0x193   : > { %v1855_v41 = vpop.permute.xlu1 %1854  ;;  %v5156_v47 = vpop.f32.mrf.mxu1  ;;  %3691 = vmatmul.mubr.bf16.gmra.mxu1 %v4697_v21  ;;  %5336 = vmatprep.mubr.msk.bf16.mxu0 %vm499_vm1, %v5498_v12 }
 0x194   : > { %1919 = vst.msk [vmem:[#allocation3 + $0x274] sm:$0xf] %vm991_vm3, %v1855_v41  ;;  %v1853_v48 = vpop.permute.xlu0 %1852  ;;  %v5087_v35 = vpop.f32.mrf.mxu0  ;;  %v5497_v10 = vld [vmem:[#allocation3 + $0x238] ss:$20 sps:$4 sm:$0xff]  }
 0x195   : > { %1918 = vst.msk [vmem:[#allocation3 + $0x260] sm:$0xf] %vm991_vm3, %v1853_v48  ;;  %v5157_v58 = vpop.f32.mrf.mxu1 }
 0x196   : > { %v5088_v3 = vpop.f32.mrf.mxu0  ;;  %v6656_v59 = vadd.f32 %v5157_v58, %v5156_v47 }
 0x197   : > { %v6658_v19 = vadd.f32 %v5088_v3, %v5087_v35  ;;  %v2304_v54 = vpop.permute.xlu1 %2303  ;;  %v5159_v55 = vpop.f32.mrf.mxu1 }
 0x198   : > { %7332 = vst [vmem:[#allocation8_spill] sm:$0xff] %v6656_v59  ;;  %2368 = vst.msk [vmem:[#allocation3 + $0x278] sm:$0xf] %vm991_vm3, %v2304_v54  ;;  %v2302_v5 = vpop.permute.xlu0 %2301  ;;  %v5495_v7 = vld [vmem:[#allocation3 + $0x23c] ss:$20 sps:$4 sm:$0xff]  }
 0x199   : > { %2367 = vst.msk [vmem:[#allocation3 + $0x264] sm:$0xf] %vm991_vm3, %v2302_v5  ;;  %v5160_v1 = vpop.f32.mrf.mxu1  ;;  %3698 = vmatprep.mubr.bf16.mxu1 %v5495_v7 }
 0x19a   : > { %v6662_v24 = vadd.f32 %v5160_v1, %v5159_v55  ;;  %5337 = vmatmul.mubr.msk.bf16.gmra.mxu0 %vm499_vm1, %v5499_v49 }
 0x19b   : > { %3699 = vmatmul.mubr.bf16.gmra.mxu1 %v5497_v10 }
 0x19c   : > { %7333 = vst [vmem:[#allocation9_spill] sm:$0xff] %v6662_v24  ;;  %v5502_v25 = vld [vmem:[#allocation3 + $0x260] ss:$20 sps:$4 sm:$0xff]  }
 0x19f   : > { %v5090_v42 = vpop.f32.mrf.mxu0 }
 0x1a0   : > { %v5500_v28 = vld [vmem:[#allocation3 + $0x264] ss:$20 sps:$4 sm:$0xff]  }
 0x1a1   : > { %v5091_v40 = vpop.f32.mrf.mxu0  ;;  %3706 = vmatprep.mubr.bf16.mxu1 %v5500_v28 }
 0x1a2   : > { %v6665_v8 = vadd.f32 %v5091_v40, %v5090_v42 }
 0x1a3   : > { %v5093_v9 = vpop.f32.mrf.mxu0  ;;  %v5162_v57 = vpop.f32.mrf.mxu1  ;;  %3707 = vmatmul.mubr.bf16.gmra.mxu1 %v5502_v25 }
 0x1a5   : > { %v5094_v50 = vpop.f32.mrf.mxu0  ;;  %v5163_v63 = vpop.f32.mrf.mxu1 }
 0x1a6   : > { %v6667_v45 = vadd.f32 %v5094_v50, %v5093_v9  ;;  %v6669_v0 = vadd.f32 %v5163_v63, %v5162_v57 }
 0x1a7   : > { %v5165_v51 = vpop.f32.mrf.mxu1 }
 0x1a8   : > { %7334 = vst [vmem:[#allocation10_spill] sm:$0xff] %v6669_v0 }
 0x1a9   : > { %v5166_v14 = vpop.f32.mrf.mxu1 }
 0x1aa   : > { %v6671_v37 = vadd.f32 %v5166_v14, %v5165_v51 }
 0x1ab   : > { %v5096_v33 = vpop.f32.mrf.mxu0 }
 0x1ac   : > { %7335 = vst [vmem:[#allocation11_spill] sm:$0xff] %v6671_v37 }
 0x1ad   : > { %v5097_v23 = vpop.f32.mrf.mxu0 }
 0x1ae   : > { %v6673_v36 = vadd.f32 %v5097_v23, %v5096_v33 }
 0x1af   : > { %v5099_v44 = vpop.f32.mrf.mxu0 }
 0x1b1   : > { %v5100_v61 = vpop.f32.mrf.mxu0 }
 0x1b2   : > { %v6675_v16 = vadd.f32 %v5100_v61, %v5099_v44  ;;  %v5184_v20 = vpop.f32.mrf.mxu1 }
 0x1b4   : > { %v5185_v53 = vpop.f32.mrf.mxu1 }
 0x1b5   : > { %v5186_v56 = vadd.f32 %v5185_v53, %v5184_v20 }
 0x1b6   : > { %v5187_v26 = vpop.f32.mrf.mxu1 }
 0x1b8   : > { %v5188_v30 = vpop.f32.mrf.mxu1 }
 0x1b9   : > { %v5189_v62 = vadd.f32 %v5188_v30, %v5187_v26 }
 0x1bb   : > { %v5102_v6 = vpop.f32.mrf.mxu0  ;;  %v6743_v26 = vadd.f32 %v5189_v62, %v6624_v13 }
 0x1bd   : > { %v5103_v17 = vpop.f32.mrf.mxu0 }
 0x1be   : > { %v6677_v38 = vadd.f32 %v5103_v17, %v5102_v6 }
 0x1bf   : > { %v5105_v18 = vpop.f32.mrf.mxu0 }
 0x1c1   : > { %v5106_v29 = vpop.f32.mrf.mxu0 }
 0x1c2   : > { %v6679_v52 = vadd.f32 %v5106_v29, %v5105_v18  ;;  %v5505_v18 = vld [vmem:[%s5720_s18 + $0xe8] sm:$0xff] }
 0x1c3   : > { %v5190_v12 = vpop.f32.mrf.mxu1 }
 0x1c4   : > { %7336 = vst [vmem:[#allocation12_spill] sm:$0xff] %v6679_v52 }
 0x1c5   : > { %v5191_v60 = vpop.f32.mrf.mxu1 }
 0x1c7   : > { %v5193_v41 = vpop.f32.mrf.mxu1 }
 0x1c9   : > { %v5194_v47 = vpop.f32.mrf.mxu1 }
 0x1cb   : > { %v5108_v27 = vpop.f32.mrf.mxu0 }
 0x1cd   : > { %v5109_v11 = vpop.f32.mrf.mxu0 }
 0x1ce   : > { %v6681_v31 = vadd.f32 %v5109_v11, %v5108_v27  ;;  %v5506_v27 = vld [vmem:[%s5720_s18 + $0xf0] sm:$0xff] }
 0x1cf   : > { %v5111_v32 = vpop.f32.mrf.mxu0 }
 0x1d0   : > { %7337 = vst [vmem:[#allocation13_spill] sm:$0xff] %v6681_v31  ;;  %v5195_v31 = vadd.f32 %v5194_v47, %v5193_v41  ;;  %v5509_v47 = vld [vmem:[%s5720_s18 + $0x10] sm:$0xff] }
 0x1d1   : > { %v5112_v34 = vpop.f32.mrf.mxu0 }
 0x1d2   : > { %v6683_v21 = vadd.f32 %v5112_v34, %v5111_v32  ;;  %v5507_v32 = vld [vmem:[%s5720_s18 + $0xf8] sm:$0xff]  ;;  %v6740_v53 = vadd.f32 %v5195_v31, %v6645_v43 }
 0x1d3   : > { %v5196_v48 = vpop.f32.mrf.mxu1 }
 0x1d4   : > { %7338 = vst [vmem:[#allocation14_spill] sm:$0xff] %v6683_v21  ;;  %v5192_v21 = vadd.f32 %v5191_v60, %v5190_v12 }
 0x1d5   : > { %v5197_v35 = vpop.f32.mrf.mxu1 }
 0x1d6   : > { %v3597_v20 = vadd.f32 %v5192_v21, %v6630_v22 }
 0x1d7   : > { %v5199_v3 = vpop.f32.mrf.mxu1 }
 0x1d9   : > { %v5200_v54 = vpop.f32.mrf.mxu1 }
 0x1db   : > { %v5114_v58 = vpop.f32.mrf.mxu0 }
 0x1dd   : > { %v5115_v49 = vpop.f32.mrf.mxu0  ;;  %v6696_v61 = vpop.permute.xlu0 %4063 }
 0x1de   : > { %7339 = vst [vmem:[#allocation15_spill] sm:$0xff] %v6696_v61  ;;  %v4095_v29 = vmul.f32 %v5505_v18, %v6696_v61  ;;  %v4096_v11 = vmul.f32 %v5506_v27, %v6696_v61  ;;  %v4097_v34 = vmul.f32 %v5507_v32, %v6696_v61  ;;  %v6748_v12 = vadd.f32 %v5115_v49, %v5114_v58  ;;  %v5512_v58 = vld [vmem:[%s5720_s18 + $0x20] sm:$0xff] }
 0x1df   : > { %v5117_v55 = vpop.f32.mrf.mxu0 }
 0x1e1   : > { %v5118_v7 = vpop.f32.mrf.mxu0 }
 0x1e2   : > { %v6750_v60 = vadd.f32 %v5118_v7, %v5117_v55  ;;  %v5513_v55 = vld [vmem:[%s5720_s18 + $0x28] sm:$0xff]  ;;  %v5514_v7 = vld [vmem:[%s5720_s18 + $0x30] sm:$0xff] }
 0x1e3   : > { %v5202_v5 = vpop.f32.mrf.mxu1 }
 0x1e5   : > { %v5203_v10 = vpop.f32.mrf.mxu1 }
 0x1e6   : > { %v6710_v0 = vpop.permute.xlu1 %4104 }
 0x1e7   : > { %v5205_v42 = vpop.f32.mrf.mxu1  ;;  %v6715_v59 = vadd.f32 %v6710_v0, %v4095_v29  ;;  %v6718_v39 = vadd.f32 %v6710_v0, %v4096_v11  ;;  %v6721_v18 = vadd.f32 %v6710_v0, %v4097_v34  ;;  %v5204_v29 = vadd.f32 %v5203_v10, %v5202_v5 }
 0x1e8   : > { %v6801_v5 = vmul.f32 %v5513_v55, %v6696_v61  ;;  %v6805_v10 = vmul.f32 %v5514_v7, %v6696_v61  ;;  %v5524_v55 = vld [vmem:[%s5720_s18 + $0x80] sm:$0xff] }
 0x1e9   : > { %v5206_v25 = vpop.f32.mrf.mxu1  ;;  %7342 = vst [vmem:[#allocation18_spill] sm:$0xff] %v6715_v59  ;;  %7343 = vst [vmem:[#allocation19_spill] sm:$0xff] %v6718_v39  ;;  %v6859_v7 = vmul.f32 %v5524_v55, %v6696_v61  ;;  %v5530_v55 = vld [vmem:[%s5720_s18 + $0xb0] sm:$0xff] }
 0x1ea   : > { %v5120_v1 = vpop.f32.mrf.mxu0  ;;  %7344 = vst [vmem:[#allocation20_spill] sm:$0xff] %v6721_v18  ;;  %v5207_v39 = vadd.f32 %v5206_v25, %v5205_v42 }
 0x1ec   : > { %v5121_v28 = vpop.f32.mrf.mxu0  ;;  %v6767_v43 = vadd.f32 %v5207_v39, %v6667_v45  ;;  %v4068_v39 = vmul.f32 %v5509_v47, %v6696_v61 }
 0x1ed   : > { %v6762_v13 = vadd.f32 %v5121_v28, %v5120_v1  ;;  %v5515_v1 = vld [vmem:[%s5720_s18 + $0x38] sm:$0xff]  ;;  %v5516_v28 = vld [vmem:[%s5720_s18 + $0x40] sm:$0xff] }
 0x1ee   : > { %v5123_v40 = vpop.f32.mrf.mxu0  ;;  %v6809_v42 = vmul.f32 %v5515_v1, %v6696_v61  ;;  %v6813_v25 = vmul.f32 %v5516_v28, %v6696_v61 }
 0x1f0   : > { %v5124_v57 = vpop.f32.mrf.mxu0 }
 0x1f1   : > { %v6764_v22 = vadd.f32 %v5124_v57, %v5123_v40  ;;  %v5517_v40 = vld [vmem:[%s5720_s18 + $0x48] sm:$0xff]  ;;  %v5518_v57 = vld [vmem:[%s5720_s18 + $0x50] sm:$0xff] }
 0x1f2   : > { %v5208_v9 = vpop.f32.mrf.mxu1 }
 0x1f3   : > { %7347 = vst [vmem:[#allocation23_spill] sm:$0xff] %v6764_v22 }
 0x1f4   : > { %v5209_v50 = vpop.f32.mrf.mxu1 }
 0x1f5   : > { %v5210_v34 = vadd.f32 %v5209_v50, %v5208_v9  ;;  %v6817_v9 = vmul.f32 %v5517_v40, %v6696_v61  ;;  %v6821_v50 = vmul.f32 %v5518_v57, %v6696_v61 }
 0x1f6   : > { %v5211_v51 = vpop.f32.mrf.mxu1 }
 0x1f8   : > { %v5212_v33 = vpop.f32.mrf.mxu1 }
 0x1f9   : > { %v5213_v18 = vadd.f32 %v5212_v33, %v5211_v51 }
 0x1fa   : > { %v5126_v63 = vpop.f32.mrf.mxu0 }
 0x1fb   : > { %v6777_v31 = vadd.f32 %v5213_v18, %v6675_v16 }
 0x1fc   : > { %v5127_v14 = vpop.f32.mrf.mxu0 }
 0x1fe   : > { %v5129_v23 = vpop.f32.mrf.mxu0 }
 0x200   : > { %v5130_v2 = vpop.f32.mrf.mxu0 }
 0x201   : > { %v6783_v45 = vadd.f32 %v5130_v2, %v5129_v23 }
 0x202   : > { %v6694_v44 = vpop.f32.mrf.mxu1 }
 0x204   : > { %v6698_v6 = vpop.f32.mrf.mxu1 }
 0x206   : > { %v6708_v37 = vpop.f32.mrf.mxu1 }
 0x208   : > { %v6723_v15 = vpop.f32.mrf.mxu1 }
 0x209   : > { %v5219_v1 = vadd.f32 %v6723_v15, %v6708_v37  ;;  %v5527_v37 = vld [vmem:[%s5720_s18 + $0x98] sm:$0xff] }
 0x20a   : > { %v6700_v17 = vpop.f32.mrf.mxu0 }
 0x20b   : > { %7340 = vst [vmem:[#allocation16_spill] sm:$0xff] %v6700_v17  ;;  %v5201_v17 = vadd.f32 %v5200_v54, %v5199_v3  ;;  %v6793_v3 = vmul.f32 %v5512_v58, %v6696_v61 }
 0x20c   : > { %v6712_v24 = vpop.f32.mrf.mxu0 }
 0x20d   : > { %7341 = vst [vmem:[#allocation17_spill] sm:$0xff] %v6712_v24  ;;  %v5198_v24 = vadd.f32 %v5197_v35, %v5196_v48  ;;  %v6760_v62 = vadd.f32 %v5201_v17, %v6658_v19  ;;  %v5508_v19 = vld [vmem:[%s5720_s18] sm:$0xff]  ;;  %v5511_v35 = vld [vmem:[%s5720_s18 + $0x18] sm:$0xff]  ;;  %v5521_v17 = vld [vmem:[%s5720_s18 + $0x68] sm:$0xff] }
 0x20e   : > { %v6725_v27 = vpop.f32.mrf.mxu0  ;;  %v4066_v21 = vmul.f32 %v5508_v19, %v6696_v61  ;;  %v4069_v16 = vmul.f32 %v5511_v35, %v6696_v61  ;;  %v6842_v18 = vmul.f32 %v5521_v17, %v6696_v61  ;;  %v5523_v19 = vld [vmem:[%s5720_s18 + $0x78] sm:$0xff]  ;;  %v5216_v35 = vadd.f32 %v6698_v6, %v6694_v44  ;;  %v5526_v44 = vld [vmem:[%s5720_s18 + $0x90] sm:$0xff]  ;;  %v5529_v17 = vld [vmem:[%s5720_s18 + $0xa8] sm:$0xff] }
 0x20f   : > { %7345 = vst [vmem:[#allocation21_spill] sm:$0xff] %v6725_v27  ;;  %v6736_v27 = vadd.f32 %v5186_v56, %v6618_v46  ;;  %v6746_v30 = vadd.f32 %v5198_v24, %v6650_v4  ;;  %v6757_v46 = vadd.f32 %v5204_v29, %v6665_v8  ;;  %v6770_v4 = vadd.f32 %v5210_v34, %v6673_v36  ;;  %v5510_v36 = vld [vmem:[%s5720_s18 + $0x8] sm:$0xff]  ;;  %v5522_v29 = vld [vmem:[%s5720_s18 + $0x70] sm:$0xff] }
 0x210   : > { %v6729_v59 = vpop.f32.mrf.mxu0  ;;  %v6772_v24 = vadd.f32 %v5127_v14, %v5126_v63  ;;  %v6787_v48 = vmul.f32 %v5510_v36, %v6696_v61  ;;  %v5519_v63 = vld [vmem:[%s5720_s18 + $0x58] sm:$0xff]  ;;  %v5520_v14 = vld [vmem:[%s5720_s18 + $0x60] sm:$0xff]  ;;  %v6846_v34 = vmul.f32 %v5522_v29, %v6696_v61  ;;  %v6850_v47 = vmul.f32 %v5523_v19, %v6696_v61 }
 0x211   : > { %7346 = vst [vmem:[#allocation22_spill] sm:$0xff] %v6729_v59  ;;  %v6825_v51 = vmul.f32 %v5519_v63, %v6696_v61  ;;  %v6829_v33 = vmul.f32 %v5520_v14, %v6696_v61  ;;  %v4109_v36 = vadd.f32 %v6710_v0, %v4068_v39  ;;  %v5525_v39 = vld [vmem:[%s5720_s18 + $0x88] sm:$0xff]  ;;  %v6871_v6 = vmul.f32 %v5526_v44, %v6696_v61  ;;  %v5528_v14 = vld [vmem:[%s5720_s18 + $0xa0] sm:$0xff] }
 0x212   : > { %v6727_v32 = vpop.f32.mrf.mxu1  ;;  %v6867_v57 = vmul.f32 %v5525_v39, %v6696_v61  ;;  %v6880_v63 = vmul.f32 %v5527_v37, %v6696_v61  ;;  %v6888_v29 = vmul.f32 %v5529_v17, %v6696_v61  ;;  %v5532_v44 = vld [vmem:[%s5720_s18 + $0xc0] sm:$0xff] }
 0x213   : > { %v6902_v37 = vmul.f32 %v5532_v44, %v6696_v61  ;;  %v4108_v44 = vadd.f32 %v6710_v0, %v6787_v48  ;;  %v4114_v48 = vadd.f32 %v6710_v0, %v6809_v42  ;;  %v6955_v42 = vadd.f32 %v6710_v0, %v6825_v51 }
 0x214   : > { %v6731_v11 = vpop.f32.mrf.mxu1  ;;  %7348 = vst [vmem:[#allocation24_spill] sm:$0xff] %v6888_v29  ;;  %v5533_v29 = vld [vmem:[%s5720_s18 + $0xc8] sm:$0xff]  ;;  %v6976_v51 = vadd.f32 %v6710_v0, %v6846_v34  ;;  %v6993_v34 = vadd.f32 %v6710_v0, %v6850_v47 }
 0x215   : > { %7349 = vst [vmem:[#allocation25_spill] sm:$0xff] %v6902_v37 }
 0x216   : > { %v6752_v41 = vpop.f32.mrf.mxu1 }
 0x218   : > { %v6795_v49 = vpop.f32.mrf.mxu1 }
 0x21a   : > { %v6733_v52 = vpop.f32.mrf.mxu0 }
 0x21c   : > { %v6754_v56 = vpop.f32.mrf.mxu0 }
 0x21e   : > { %v6774_v8 = vpop.f32.mrf.mxu0 }
 0x220   : > { %v6797_v54 = vpop.f32.mrf.mxu0 }
 0x222   : > { %v6838_v23 = vpop.f32.mrf.mxu1  ;;  %v5310_v2 = vpop.f32.mrf.mxu0 }
 0x223   : > { %v6855_v58 = vadd.f32 %v5310_v2, %v3597_v20  ;;  %v4107_v20 = vadd.f32 %v6710_v0, %v4066_v21  ;;  %v6884_v2 = vmul.f32 %v5528_v14, %v6696_v61  ;;  %v4110_v14 = vadd.f32 %v6710_v0, %v4069_v16  ;;  %v7351_v16 = vld [vmem:[#allocation12_spill] sm:$0xff] }
 0x224   : > { %v6863_v28 = vpop.f32.mrf.mxu1  ;;  %v3749_v40 = vpop.f32.mrf.mxu0  ;;  %v6922_v22 = vadd.f32 %v5219_v1, %v7351_v16 }
 0x225   : > { %4141 = vst.msk [vmem:[%s6836_s17 + $0x10] sm:$0xff] %vm499_vm1, %v6855_v58  ;;  %v3750_v15 = vadd.f32 %v3749_v40, %v6736_v27  ;;  %v6894_v27 = vmul.f32 %v5530_v55, %v6696_v61  ;;  %v5531_v40 = vld [vmem:[%s5720_s18 + $0xb8] sm:$0xff]  ;;  %v6911_v55 = vadd.f32 %v5216_v35, %v6677_v38  ;;  %v6928_v38 = vadd.f32 %v6710_v0, %v6801_v5 }
 0x226   : > { %v6890_v21 = vpop.f32.mrf.mxu1  ;;  %v5311_v19 = vpop.f32.mrf.mxu0  ;;  %v6898_v39 = vmul.f32 %v5531_v40, %v6696_v61  ;;  %4174 = vst.msk [vmem:[%s6836_s17 + $0x10] sm:$0xff] %vm4171_vm4, %v4109_v36  ;;  %v6915_v40 = vmul.f32 %v5533_v29, %v6696_v61  ;;  %v4113_v36 = vadd.f32 %v6710_v0, %v6805_v10  ;;  %v6940_v35 = vadd.f32 %v6710_v0, %v6813_v25 }
 0x227   : > { %4139 = vst.msk [vmem:[%s6836_s17] sm:$0xff] %vm499_vm1, %v3750_v15  ;;  %v3761_v17 = vadd.f32 %v5311_v19, %v6740_v53  ;;  %v4111_v53 = vadd.f32 %v6710_v0, %v6793_v3  ;;  %v6944_v3 = vadd.f32 %v6710_v0, %v6817_v9  ;;  %v6948_v5 = vadd.f32 %v6710_v0, %v6821_v50  ;;  %v7352_v9 = vld [vmem:[#allocation16_spill] sm:$0xff]  ;;  %v7353_v50 = vld [vmem:[#allocation17_spill] sm:$0xff] }
 0x228   : > { %7350 = vst [vmem:[#allocation26_spill] sm:$0xff] %v6915_v40  ;;  %v6919_v37 = vpop.f32.mrf.mxu1  ;;  %v3752_v59 = vpop.f32.mrf.mxu0  ;;  %4172 = vst.msk [vmem:[%s6836_s17] sm:$0xff] %vm4171_vm4, %v4107_v20  ;;  %v3954_v10 = vmul.f32 %v3750_v15, %v3750_v15  ;;  %v6959_v25 = vadd.f32 %v6710_v0, %v6829_v33  ;;  %v6965_v19 = vadd.f32 %v7353_v50, %v7352_v9 }
 0x229   : > { %4142 = vst.msk [vmem:[%s6836_s17 + $0x18] sm:$0xff] %vm499_vm1, %v3761_v17  ;;  %v3753_v1 = vadd.f32 %v3752_v59, %v6743_v26  ;;  %v6972_v26 = vadd.f32 %v6710_v0, %v6842_v18  ;;  %v3956_v33 = vmul.f32 %v6855_v58, %v6855_v58  ;;  %v3885_v18 = vsel %vm499_vm1, %v6855_v58, 0.0 }
 0x22a   : > { %v6951_v20 = vpop.f32.mrf.mxu1  ;;  %v5314_v29 = vpop.f32.mrf.mxu0  ;;  %4175 = vst.msk [vmem:[%s6836_s17 + $0x18] sm:$0xff] %vm4171_vm4, %v4110_v14  ;;  %v3882_v14 = vsel %vm499_vm1, %v3750_v15, 0.0  ;;  %v6997_v15 = vadd.f32 %v6710_v0, %v6859_v7  ;;  %v3957_v40 = vmul.f32 %v3761_v17, %v3761_v17 }
 0x22b   : > { %v6968_v59 = vadd.f32 %v5314_v29, %v6757_v46  ;;  %v3883_v16 = vsel %vm499_vm1, %v3753_v1, 0.0  ;;  %v3955_v9 = vmul.f32 %v3753_v1, %v3753_v1  ;;  %4140 = vst.msk [vmem:[%s6836_s17 + $0x8] sm:$0xff] %vm499_vm1, %v3753_v1  ;;  %v3986_v1 = vsel %vm499_vm1, %v3954_v10, 0.0 }
 0x22c   : > { %v6984_v46 = vpop.f32.mrf.mxu1  ;;  %v3765_v29 = vpop.f32.mrf.mxu0  ;;  %v3884_v50 = vadd.f32 %v3883_v16, %v3882_v14  ;;  %7354 = vst [vmem:[#allocation12_spill] sm:$0xff] %v6997_v15  ;;  %4173 = vst.msk [vmem:[%s6836_s17 + $0x8] sm:$0xff] %vm4171_vm4, %v4108_v44  ;;  %v7011_v44 = vadd.f32 %v6710_v0, %v6867_v57  ;;  %v3989_v10 = vsel %vm499_vm1, %v3956_v33, 0.0  ;;  %v7027_v57 = vadd.f32 %v6710_v0, %v6880_v63 }
 0x22d   : > { %4145 = vst.msk [vmem:[%s6836_s17 + $0x30] sm:$0xff] %vm499_vm1, %v6968_v59  ;;  %v3987_v58 = vsel %vm499_vm1, %v3955_v9, 0.0  ;;  %v3766_v14 = vadd.f32 %v3765_v29, %v6746_v30  ;;  %v3887_v9 = vsel %vm499_vm1, %v3761_v17, 0.0  ;;  %v7031_v17 = vadd.f32 %v6710_v0, %v6884_v2 }
 0x22e   : > { %v7004_v16 = vpop.f32.mrf.mxu1  ;;  %v5315_v61 = vpop.f32.mrf.mxu0  ;;  %4178 = vst.msk [vmem:[%s6836_s17 + $0x30] sm:$0xff] %vm4171_vm4, %v4113_v36  ;;  %v3886_v47 = vadd.f32 %v3885_v18, %v3884_v50  ;;  %v3988_v7 = vadd.f32 %v3987_v58, %v3986_v1  ;;  %v7021_v18 = vadd.f32 %v6710_v0, %v6871_v6  ;;  %v3991_v33 = vsel %vm499_vm1, %v3957_v40, 0.0 }
 0x22f   : > { %v3777_v15 = vadd.f32 %v5315_v61, %v6767_v43  ;;  %v3958_v30 = vmul.f32 %v3766_v14, %v3766_v14  ;;  %4143 = vst.msk [vmem:[%s6836_s17 + $0x20] sm:$0xff] %vm499_vm1, %v3766_v14  ;;  %v3889_v6 = vsel %vm499_vm1, %v3766_v14, 0.0  ;;  %v7042_v63 = vadd.f32 %v6710_v0, %v6894_v27 }
 0x230   : > { %v7017_v29 = vpop.f32.mrf.mxu1  ;;  %v3768_v36 = vpop.f32.mrf.mxu0  ;;  %v3990_v61 = vadd.f32 %v3989_v10, %v3988_v7  ;;  %v3888_v43 = vadd.f32 %v3887_v9, %v3886_v47  ;;  %4176 = vst.msk [vmem:[%s6836_s17 + $0x20] sm:$0xff] %vm4171_vm4, %v4111_v53  ;;  %v5222_v2 = vadd.f32 %v6731_v11, %v6727_v32  ;;  %v5225_v32 = vadd.f32 %v6795_v49, %v6752_v41 }
 0x231   : > { %4146 = vst.msk [vmem:[%s6836_s17 + $0x38] sm:$0xff] %vm499_vm1, %v3777_v15  ;;  %v3769_v50 = vadd.f32 %v3768_v36, %v6760_v62  ;;  %v3960_v62 = vmul.f32 %v6968_v59, %v6968_v59  ;;  %v3993_v47 = vsel %vm499_vm1, %v3958_v30, 0.0  ;;  %v5228_v11 = vadd.f32 %v6863_v28, %v6838_v23 }
 0x232   : > { %v7038_v1 = vpop.f32.mrf.mxu1  ;;  %v5318_v58 = vpop.f32.mrf.mxu0  ;;  %4179 = vst.msk [vmem:[%s6836_s17 + $0x38] sm:$0xff] %vm4171_vm4, %v4114_v48  ;;  %v3890_v53 = vadd.f32 %v3889_v6, %v3888_v43  ;;  %v3992_v40 = vadd.f32 %v3991_v33, %v3990_v61  ;;  %v3893_v30 = vsel %vm499_vm1, %v6968_v59, 0.0  ;;  %v3961_v36 = vmul.f32 %v3777_v15, %v3777_v15 }
 0x233   : > { %v3790_v14 = vadd.f32 %v5318_v58, %v6911_v55  ;;  %v3891_v7 = vsel %vm499_vm1, %v3769_v50, 0.0  ;;  %v3959_v27 = vmul.f32 %v3769_v50, %v3769_v50  ;;  %4144 = vst.msk [vmem:[%s6836_s17 + $0x28] sm:$0xff] %vm499_vm1, %v3769_v50  ;;  %v5231_v23 = vadd.f32 %v6919_v37, %v6890_v21 }
 0x234   : > { %v5239_v48 = vpop.f32.mrf.mxu1  ;;  %v3781_v10 = vpop.f32.mrf.mxu0  ;;  %v3994_v55 = vadd.f32 %v3993_v47, %v3992_v40  ;;  %v3892_v9 = vadd.f32 %v3891_v7, %v3890_v53  ;;  %4177 = vst.msk [vmem:[%s6836_s17 + $0x28] sm:$0xff] %vm4171_vm4, %v6928_v38  ;;  %v3997_v59 = vsel %vm499_vm1, %v3960_v62, 0.0  ;;  %v3895_v6 = vsel %vm499_vm1, %v3777_v15, 0.0  ;;  %v7355_v53 = vld [vmem:[#allocation13_spill] sm:$0xff] }
 0x235   : > { %4149 = vst.msk [vmem:[%s6836_s17 + $0x50] sm:$0xff] %vm499_vm1, %v3790_v14  ;;  %v3995_v61 = vsel %vm499_vm1, %v3959_v27, 0.0  ;;  %v3782_v43 = vadd.f32 %v3781_v10, %v6770_v4  ;;  %v3637_v40 = vadd.f32 %v5222_v2, %v7355_v53  ;;  %v3999_v15 = vsel %vm499_vm1, %v3961_v36, 0.0  ;;  %v7356_v27 = vld [vmem:[#allocation14_spill] sm:$0xff] }
 0x236   : > { %v5241_v41 = vpop.f32.mrf.mxu1  ;;  %v5319_v49 = vpop.f32.mrf.mxu0  ;;  %4182 = vst.msk [vmem:[%s6836_s17 + $0x50] sm:$0xff] %vm4171_vm4, %v6948_v5  ;;  %v3894_v28 = vadd.f32 %v3893_v30, %v3892_v9  ;;  %v3996_v38 = vadd.f32 %v3995_v61, %v3994_v55  ;;  %v7080_v5 = vadd.f32 %v6710_v0, %v6898_v39  ;;  %v3640_v10 = vadd.f32 %v5225_v32, %v7356_v27 }
 0x237   : > { %v3793_v33 = vadd.f32 %v5319_v49, %v6922_v22  ;;  %v3962_v50 = vmul.f32 %v3782_v43, %v3782_v43  ;;  %4147 = vst.msk [vmem:[%s6836_s17 + $0x40] sm:$0xff] %vm499_vm1, %v3782_v43  ;;  %v3645_v22 = vadd.f32 %v5228_v11, %v6748_v12  ;;  %v3897_v62 = vsel %vm499_vm1, %v3782_v43, 0.0 }
 0x238   : > { %v5242_v4 = vpop.f32.mrf.mxu1  ;;  %v3784_v58 = vpop.f32.mrf.mxu0  ;;  %v3998_v21 = vadd.f32 %v3997_v59, %v3996_v38  ;;  %v3896_v37 = vadd.f32 %v3895_v6, %v3894_v28  ;;  %4180 = vst.msk [vmem:[%s6836_s17 + $0x40] sm:$0xff] %vm4171_vm4, %v6940_v35  ;;  %v3648_v11 = vadd.f32 %v5231_v23, %v6750_v60  ;;  %v3964_v55 = vmul.f32 %v3790_v14, %v3790_v14 }
 0x239   : > { %4150 = vst.msk [vmem:[%s6836_s17 + $0x58] sm:$0xff] %vm499_vm1, %v3793_v33  ;;  %v3785_v47 = vadd.f32 %v3784_v58, %v6777_v31  ;;  %v4001_v9 = vsel %vm499_vm1, %v3962_v50, 0.0  ;;  %v5240_v61 = vadd.f32 %v5239_v48, %v7038_v1  ;;  %v3901_v60 = vsel %vm499_vm1, %v3790_v14, 0.0 }
 0x23a   : > { %v7092_v39 = vpop.f32.mrf.mxu1  ;;  %v5322_v7 = vpop.f32.mrf.mxu0  ;;  %4183 = vst.msk [vmem:[%s6836_s17 + $0x58] sm:$0xff] %vm4171_vm4, %v6955_v42  ;;  %v3898_v12 = vadd.f32 %v3897_v62, %v3896_v37  ;;  %v4000_v2 = vadd.f32 %v3999_v15, %v3998_v21  ;;  %v5234_v42 = vadd.f32 %v6984_v46, %v6951_v20  ;;  %v3965_v23 = vmul.f32 %v3793_v33, %v3793_v33 }
 0x23b   : > { %v3806_v35 = vadd.f32 %v5322_v7, %v3645_v22  ;;  %v3899_v31 = vsel %vm499_vm1, %v3785_v47, 0.0  ;;  %v3963_v30 = vmul.f32 %v3785_v47, %v3785_v47  ;;  %4148 = vst.msk [vmem:[%s6836_s17 + $0x48] sm:$0xff] %vm499_vm1, %v3785_v47  ;;  %v5243_v46 = vadd.f32 %v5242_v4, %v5241_v41 }
 0x23c   : > { %v5245_v32 = vpop.f32.mrf.mxu1  ;;  %v3797_v36 = vpop.f32.mrf.mxu0  ;;  %v4002_v43 = vadd.f32 %v4001_v9, %v4000_v2  ;;  %v3900_v49 = vadd.f32 %v3899_v31, %v3898_v12  ;;  %4181 = vst.msk [vmem:[%s6836_s17 + $0x48] sm:$0xff] %vm4171_vm4, %v6944_v3  ;;  %v5140_v3 = vadd.f32 %v6754_v56, %v6733_v52  ;;  %v4005_v14 = vsel %vm499_vm1, %v3964_v55, 0.0 }
 0x23d   : > { %4153 = vst.msk [vmem:[%s6836_s17 + $0x70] sm:$0xff] %vm499_vm1, %v3806_v35  ;;  %v4003_v28 = vsel %vm499_vm1, %v3963_v30, 0.0  ;;  %v3798_v38 = vadd.f32 %v3797_v36, %v3637_v40  ;;  %v3903_v50 = vsel %vm499_vm1, %v3793_v33, 0.0  ;;  %v3661_v41 = vadd.f32 %v5240_v61, %v6772_v24 }
 0x23e   : > { %v7113_v59 = vpop.f32.mrf.mxu1  ;;  %v5323_v20 = vpop.f32.mrf.mxu0  ;;  %4186 = vst.msk [vmem:[%s6836_s17 + $0x70] sm:$0xff] %vm4171_vm4, %v6976_v51  ;;  %v3902_v1 = vadd.f32 %v3901_v60, %v3900_v49  ;;  %v4004_v48 = vadd.f32 %v4003_v28, %v4002_v43  ;;  %v3653_v4 = vadd.f32 %v5234_v42, %v6762_v13  ;;  %v5237_v52 = vadd.f32 %v7017_v29, %v7004_v16  ;;  %v7357_v49 = vld [vmem:[#allocation23_spill] sm:$0xff] }
 0x23f   : > { %v3809_v6 = vadd.f32 %v5323_v20, %v3648_v11  ;;  %v3966_v58 = vmul.f32 %v3798_v38, %v3798_v38  ;;  %4151 = vst.msk [vmem:[%s6836_s17 + $0x60] sm:$0xff] %vm499_vm1, %v3798_v38  ;;  %v4007_v56 = vsel %vm499_vm1, %v3965_v23, 0.0  ;;  %v3905_v33 = vsel %vm499_vm1, %v3798_v38, 0.0  ;;  %v7358_v20 = vld [vmem:[#allocation12_spill] sm:$0xff] }
 0x240   : > { %v5248_v21 = vpop.f32.mrf.mxu1  ;;  %v3800_v37 = vpop.f32.mrf.mxu0  ;;  %v4006_v22 = vadd.f32 %v4005_v14, %v4004_v48  ;;  %v3904_v51 = vadd.f32 %v3903_v50, %v3902_v1  ;;  %4184 = vst.msk [vmem:[%s6836_s17 + $0x60] sm:$0xff] %vm4171_vm4, %v6959_v25  ;;  %v3664_v25 = vadd.f32 %v5243_v46, %v6783_v45  ;;  %v3968_v47 = vmul.f32 %v3806_v35, %v3806_v35 }
 0x241   : > { %4154 = vst.msk [vmem:[%s6836_s17 + $0x78] sm:$0xff] %vm499_vm1, %v3809_v6  ;;  %v3801_v53 = vadd.f32 %v3800_v37, %v3640_v10  ;;  %v4009_v16 = vsel %vm499_vm1, %v3966_v58, 0.0  ;;  %v5246_v10 = vadd.f32 %v5245_v32, %v7092_v39  ;;  %v3969_v11 = vmul.f32 %v3809_v6, %v3809_v6 }
 0x242   : > { %v5326_v40 = vpop.f32.mrf.mxu0  ;;  %4187 = vst.msk [vmem:[%s6836_s17 + $0x78] sm:$0xff] %vm4171_vm4, %v6993_v34  ;;  %v3906_v24 = vadd.f32 %v3905_v33, %v3904_v51  ;;  %v4008_v15 = vadd.f32 %v4007_v56, %v4006_v22  ;;  %v5250_v13 = vpop.f32.mrf.mxu1  ;;  %v3909_v34 = vsel %vm499_vm1, %v3806_v35, 0.0  ;;  %v5143_v39 = vadd.f32 %v6797_v54, %v6774_v8 }
 0x243   : > { %v7138_v62 = vadd.f32 %v5326_v40, %v3661_v41  ;;  %v3907_v29 = vsel %vm499_vm1, %v3801_v53, 0.0  ;;  %v3967_v7 = vmul.f32 %v3801_v53, %v3801_v53  ;;  %4152 = vst.msk [vmem:[%s6836_s17 + $0x68] sm:$0xff] %vm499_vm1, %v3801_v53  ;;  %v3911_v61 = vsel %vm499_vm1, %v3809_v6, 0.0 }
 0x244   : > { %v3813_v27 = vpop.f32.mrf.mxu0  ;;  %v4010_v12 = vadd.f32 %v4009_v16, %v4008_v15  ;;  %v3908_v2 = vadd.f32 %v3907_v29, %v3906_v24  ;;  %v5251_v45 = vpop.f32.mrf.mxu1  ;;  %4185 = vst.msk [vmem:[%s6836_s17 + $0x68] sm:$0xff] %vm4171_vm4, %v6972_v26  ;;  %v4013_v26 = vsel %vm499_vm1, %v3968_v47, 0.0  ;;  %v3656_v60 = vadd.f32 %v5237_v52, %v7357_v49  ;;  %v7359_v52 = vld [vmem:[#allocation21_spill] sm:$0xff] }
 0x245   : > { %4157 = vst.msk [vmem:[%s6836_s17 + $0x90] sm:$0xff] %vm499_vm1, %v7138_v62  ;;  %v4011_v55 = vsel %vm499_vm1, %v3967_v7, 0.0  ;;  %v5252_v9 = vadd.f32 %v5251_v45, %v5250_v13  ;;  %v3814_v31 = vadd.f32 %v3813_v27, %v3653_v4  ;;  %v3669_v38 = vadd.f32 %v5246_v10, %v6965_v19 }
 0x246   : > { %v5327_v30 = vpop.f32.mrf.mxu0  ;;  %4190 = vst.msk [vmem:[%s6836_s17 + $0x90] sm:$0xff] %vm4171_vm4, %v7021_v18  ;;  %v3910_v35 = vadd.f32 %v3909_v34, %v3908_v2  ;;  %v4012_v32 = vadd.f32 %v4011_v55, %v4010_v12  ;;  %v5253_v36 = vpop.f32.mrf.mxu1  ;;  %v4015_v46 = vsel %vm499_vm1, %v3969_v11, 0.0  ;;  %v5249_v50 = vadd.f32 %v5248_v21, %v7113_v59  ;;  %v7360_v59 = vld [vmem:[#allocation22_spill] sm:$0xff]  ;;  %v5534_v55 = vld [vmem:[%s5720_s18 + $0xd0] sm:$0xff] }
 0x247   : > { %v3825_v42 = vadd.f32 %v5327_v30, %v3664_v25  ;;  %v3970_v43 = vmul.f32 %v3814_v31, %v3814_v31  ;;  %4155 = vst.msk [vmem:[%s6836_s17 + $0x80] sm:$0xff] %vm499_vm1, %v3814_v31  ;;  %v3677_v54 = vadd.f32 %v5252_v9, %v5140_v3  ;;  %v3913_v1 = vsel %vm499_vm1, %v3814_v31, 0.0  ;;  %v7361_v9 = vld [vmem:[#allocation15_spill] sm:$0xff]  ;;  %v7362_v30 = vld [vmem:[#allocation24_spill] sm:$0xff] }
 0x248   : > { %v3816_v23 = vpop.f32.mrf.mxu0  ;;  %v4014_v18 = vadd.f32 %v4013_v26, %v4012_v32  ;;  %v3912_v28 = vadd.f32 %v3911_v61, %v3910_v35  ;;  %v5254_v8 = vpop.f32.mrf.mxu1  ;;  %4188 = vst.msk [vmem:[%s6836_s17 + $0x80] sm:$0xff] %vm4171_vm4, %v7358_v20  ;;  %v3972_v22 = vmul.f32 %v7138_v62, %v7138_v62  ;;  %v5137_v21 = vadd.f32 %v7360_v59, %v7359_v52  ;;  %v7363_v26 = vld [vmem:[#allocation25_spill] sm:$0xff]  ;;  %v7366_v59 = vld [vmem:[#allocation26_spill] sm:$0xff] }
 0x249   : > { %4158 = vst.msk [vmem:[%s6836_s17 + $0x98] sm:$0xff] %vm499_vm1, %v3825_v42  ;;  %v5255_v48 = vadd.f32 %v5254_v8, %v5253_v36  ;;  %v3817_v6 = vadd.f32 %v3816_v23, %v3656_v60  ;;  %v4017_v51 = vsel %vm499_vm1, %v3970_v43, 0.0  ;;  %v3917_v24 = vsel %vm499_vm1, %v7138_v62, 0.0 }
 0x24a   : > { %v5330_v14 = vpop.f32.mrf.mxu0  ;;  %4191 = vst.msk [vmem:[%s6836_s17 + $0x98] sm:$0xff] %vm4171_vm4, %v7027_v57  ;;  %v3914_v3 = vadd.f32 %v3913_v1, %v3912_v28  ;;  %v4016_v19 = vadd.f32 %v4015_v46, %v4014_v18  ;;  %v5256_v58 = vpop.f32.mrf.mxu1  ;;  %v3973_v15 = vmul.f32 %v3825_v42, %v3825_v42  ;;  %v3919_v62 = vsel %vm499_vm1, %v3825_v42, 0.0 }
 0x24b   : > { %v7176_v37 = vadd.f32 %v5330_v14, %v3677_v54  ;;  %v3915_v41 = vsel %vm499_vm1, %v3817_v6, 0.0  ;;  %v3971_v4 = vmul.f32 %v3817_v6, %v3817_v6  ;;  %4156 = vst.msk [vmem:[%s6836_s17 + $0x88] sm:$0xff] %vm499_vm1, %v3817_v6  ;;  %v3680_v40 = vadd.f32 %v5255_v48, %v5143_v39  ;;  %v5535_v6 = vld [vmem:[%s5720_s18 + $0xd8] sm:$0xff] }
 0x24c   : > { %v3829_v57 = vpop.f32.mrf.mxu0  ;;  %v4018_v56 = vadd.f32 %v4017_v51, %v4016_v19  ;;  %v3916_v33 = vadd.f32 %v3915_v41, %v3914_v3  ;;  %v5257_v53 = vpop.f32.mrf.mxu1  ;;  %4189 = vst.msk [vmem:[%s6836_s17 + $0x88] sm:$0xff] %vm4171_vm4, %v7011_v44  ;;  %v4021_v44 = vsel %vm499_vm1, %v3972_v22, 0.0  ;;  %v3672_v12 = vadd.f32 %v5249_v50, %v5137_v21 }
 0x24d   : > { %4161 = vst.msk [vmem:[%s6836_s17 + $0xb0] sm:$0xff] %vm499_vm1, %v7176_v37  ;;  %v4019_v13 = vsel %vm499_vm1, %v3971_v4, 0.0  ;;  %v3830_v25 = vadd.f32 %v3829_v57, %v3669_v38  ;;  %v5258_v7 = vadd.f32 %v5257_v53, %v5256_v58  ;;  %v4092_v31 = vmul.f32 %v5534_v55, %v7361_v9  ;;  %v7365_v57 = vld [vmem:[#allocation5_spill] sm:$0xff]  ;;  %v7368_v55 = vld [vmem:[#allocation7_spill] sm:$0xff] }
 0x24e   : > { %v5331_v47 = vpop.f32.mrf.mxu0  ;;  %4194 = vst.msk [vmem:[%s6836_s17 + $0xb0] sm:$0xff] %vm4171_vm4, %v7042_v63  ;;  %v3918_v16 = vadd.f32 %v3917_v24, %v3916_v33  ;;  %v4020_v29 = vadd.f32 %v4019_v13, %v4018_v56  ;;  %v5259_v27 = vpop.f32.mrf.mxu1  ;;  %v4128_v39 = vadd.f32 %v6710_v0, %v7362_v30  ;;  %v4023_v35 = vsel %vm499_vm1, %v3973_v15, 0.0  ;;  %v7367_v33 = vld [vmem:[#allocation6_spill] sm:$0xff] }
 0x24f   : > { %v3841_v34 = vadd.f32 %v5331_v47, %v3680_v40  ;;  %v3974_v10 = vmul.f32 %v3830_v25, %v3830_v25  ;;  %4159 = vst.msk [vmem:[%s6836_s17 + $0xa0] sm:$0xff] %vm499_vm1, %v3830_v25  ;;  %v3921_v32 = vsel %vm499_vm1, %v3830_v25, 0.0  ;;  %v4131_v61 = vadd.f32 %v6710_v0, %v7363_v26  ;;  %v5536_v30 = vld [vmem:[%s5720_s18 + $0xe0] sm:$0xff] }
 0x250   : > { %v3832_v2 = vpop.f32.mrf.mxu0  ;;  %v4022_v45 = vadd.f32 %v4021_v44, %v4020_v29  ;;  %v3920_v11 = vadd.f32 %v3919_v62, %v3918_v16  ;;  %v5260_v63 = vpop.f32.mrf.mxu1  ;;  %4192 = vst.msk [vmem:[%s6836_s17 + $0xa0] sm:$0xff] %vm4171_vm4, %v7031_v17  ;;  %v7364_v17 = vld [vmem:[#allocation4_spill] sm:$0xff]  ;;  %v3976_v28 = vmul.f32 %v7176_v37, %v7176_v37  ;;  %v4093_v14 = vmul.f32 %v5535_v6, %v7361_v9 }
 0x251   : > { %4162 = vst.msk [vmem:[%s6836_s17 + $0xb8] sm:$0xff] %vm499_vm1, %v3841_v34  ;;  %v3833_v36 = vadd.f32 %v3832_v2, %v3672_v12  ;;  %v5261_v60 = vadd.f32 %v5260_v63, %v5259_v27  ;;  %v3685_v18 = vadd.f32 %v5258_v7, %v7364_v17  ;;  %v4025_v8 = vsel %vm499_vm1, %v3974_v10, 0.0 }
 0x252   : > { %v5334_v42 = vpop.f32.mrf.mxu0  ;;  %4195 = vst.msk [vmem:[%s6836_s17 + $0xb8] sm:$0xff] %vm4171_vm4, %v7080_v5  ;;  %v3922_v43 = vadd.f32 %v3921_v32, %v3920_v11  ;;  %v4024_v49 = vadd.f32 %v4023_v35, %v4022_v45  ;;  %v3925_v50 = vsel %vm499_vm1, %v7176_v37, 0.0  ;;  %v3977_v3 = vmul.f32 %v3841_v34, %v3841_v34 }
 0x253   : > { %v5262_v23 = vpop.f32.mrf.mxu1  ;;  %v3923_v54 = vsel %vm499_vm1, %v3833_v36, 0.0  ;;  %v3975_v38 = vmul.f32 %v3833_v36, %v3833_v36  ;;  %4160 = vst.msk [vmem:[%s6836_s17 + $0xa8] sm:$0xff] %vm499_vm1, %v3833_v36  ;;  %v3688_v52 = vadd.f32 %v5261_v60, %v7365_v57  ;;  %v4132_v21 = vadd.f32 %v6710_v0, %v7366_v59 }
 0x254   : > { %v3845_v5 = vpop.f32.mrf.mxu0  ;;  %v4026_v20 = vadd.f32 %v4025_v8, %v4024_v49  ;;  %v3924_v46 = vadd.f32 %v3923_v54, %v3922_v43  ;;  %4193 = vst.msk [vmem:[%s6836_s17 + $0xa8] sm:$0xff] %vm4171_vm4, %v4128_v39  ;;  %v4029_v56 = vsel %vm499_vm1, %v3976_v28, 0.0  ;;  %v3927_v37 = vsel %vm499_vm1, %v3841_v34, 0.0  ;;  %v7369_v8 = vld [vmem:[#allocation8_spill] sm:$0xff] }
 0x255   : > { %v5263_v1 = vpop.f32.mrf.mxu1  ;;  %v3846_v48 = vadd.f32 %v3845_v5, %v3685_v18  ;;  %v4027_v19 = vsel %vm499_vm1, %v3975_v38, 0.0  ;;  %v4133_v16 = vadd.f32 %v6710_v0, %v4092_v31  ;;  %v4031_v29 = vsel %vm499_vm1, %v3977_v3, 0.0 }
 0x256   : > { %v5264_v58 = vadd.f32 %v5263_v1, %v5262_v23  ;;  %v5335_v22 = vpop.f32.mrf.mxu0  ;;  %v3926_v51 = vadd.f32 %v3925_v50, %v3924_v46  ;;  %v4028_v41 = vadd.f32 %v4027_v19, %v4026_v20  ;;  %v4094_v39 = vmul.f32 %v5536_v30, %v7361_v9  ;;  %v7375_v30 = vld [vmem:[#allocation20_spill] sm:$0xff] }
 0x257   : > { %4163 = vst.msk [vmem:[%s6836_s17 + $0xc0] sm:$0xff] %vm499_vm1, %v3846_v48  ;;  %v5265_v4 = vpop.f32.mrf.mxu1  ;;  %v3978_v40 = vmul.f32 %v3846_v48, %v3846_v48  ;;  %v3929_v27 = vsel %vm499_vm1, %v3846_v48, 0.0 }
 0x258   : > { %v3693_v53 = vadd.f32 %v5264_v58, %v7367_v33  ;;  %v3848_v24 = vpop.f32.mrf.mxu0  ;;  %4196 = vst.msk [vmem:[%s6836_s17 + $0xc0] sm:$0xff] %vm4171_vm4, %v4131_v61  ;;  %v4030_v15 = vadd.f32 %v4029_v56, %v4028_v41  ;;  %v3928_v13 = vadd.f32 %v3927_v37, %v3926_v51  ;;  %v4134_v61 = vadd.f32 %v6710_v0, %v4093_v14  ;;  %v7370_v51 = vld [vmem:[#allocation9_spill] sm:$0xff] }
 0x259   : > { %v5266_v25 = vpop.f32.mrf.mxu1  ;;  %v3849_v47 = vadd.f32 %v3848_v24, %v3688_v52  ;;  %v4033_v63 = vsel %vm499_vm1, %v3978_v40, 0.0  ;;  %v4135_v48 = vadd.f32 %v6710_v0, %v4094_v39  ;;  %v7371_v40 = vld [vmem:[#allocation10_spill] sm:$0xff] }
 0x25a   : > { %v3854_v7 = vadd.f32 %v5334_v42, %v3693_v53  ;;  %v5267_v34 = vadd.f32 %v5266_v25, %v5265_v4  ;;  %v7245_v44 = vpop.f32.mrf.mxu0  ;;  %v3930_v62 = vadd.f32 %v3929_v27, %v3928_v13  ;;  %v4032_v10 = vadd.f32 %v4031_v29, %v4030_v15  ;;  %v7372_v25 = vld [vmem:[#allocation18_spill] sm:$0xff] }
 0x25b   : > { %v3931_v12 = vsel %vm499_vm1, %v3849_v47, 0.0  ;;  %v3979_v2 = vmul.f32 %v3849_v47, %v3849_v47  ;;  %4164 = vst.msk [vmem:[%s6836_s17 + $0xc8] sm:$0xff] %vm499_vm1, %v3849_v47  ;;  %v5268_v45 = vpop.f32.mrf.mxu1 }
 0x25c   : > { %v3980_v11 = vmul.f32 %v3854_v7, %v3854_v7  ;;  %4165 = vst.msk [vmem:[%s6836_s17 + $0xd0] sm:$0xff] %vm499_vm1, %v3854_v7  ;;  %v3696_v31 = vadd.f32 %v5267_v34, %v7368_v55  ;;  %v4034_v35 = vadd.f32 %v4033_v63, %v4032_v10  ;;  %v3932_v32 = vadd.f32 %v3931_v12, %v3930_v62  ;;  %v3861_v26 = vpop.f32.mrf.mxu0  ;;  %v7373_v62 = vld [vmem:[#allocation11_spill] sm:$0xff] }
 0x25d   : > { %4197 = vst.msk [vmem:[%s6836_s17 + $0xc8] sm:$0xff] %vm4171_vm4, %v4132_v21  ;;  %v4035_v36 = vsel %vm499_vm1, %v3979_v2, 0.0  ;;  %v5269_v42 = vpop.f32.mrf.mxu1  ;;  %4198 = vst.msk [vmem:[%s6836_s17 + $0xd0] sm:$0xff] %vm4171_vm4, %v4133_v16  ;;  %v3933_v49 = vsel %vm499_vm1, %v3854_v7, 0.0  ;;  %v7374_v2 = vld [vmem:[#allocation19_spill] sm:$0xff] }
 0x25e   : > { %v3857_v43 = vadd.f32 %v5335_v22, %v3696_v31  ;;  %v5270_v60 = vadd.f32 %v5269_v42, %v5268_v45  ;;  %v3934_v23 = vadd.f32 %v3933_v49, %v3932_v32  ;;  %v4036_v9 = vadd.f32 %v4035_v36, %v4034_v35  ;;  %v5339_v1 = vpop.f32.mrf.mxu0 }
 0x25f   : > { %v5271_v17 = vpop.f32.mrf.mxu1  ;;  %v4037_v28 = vsel %vm499_vm1, %v3980_v11, 0.0 }
 0x260   : > { %v3981_v18 = vmul.f32 %v3857_v43, %v3857_v43  ;;  %4166 = vst.msk [vmem:[%s6836_s17 + $0xd8] sm:$0xff] %vm499_vm1, %v3857_v43  ;;  %v3701_v54 = vadd.f32 %v5270_v60, %v7369_v8  ;;  %v3935_v38 = vsel %vm499_vm1, %v3857_v43, 0.0  ;;  %v4038_v5 = vadd.f32 %v4037_v28, %v4036_v9  ;;  %v3864_v57 = vpop.f32.mrf.mxu0  ;;  %v3881_v9 = vld [vmem:[%s6689_s14] sm:$0x1]  ;;  %v3953_v28 = vld [vmem:[%s6689_s14 + $0x1] sm:$0x1] }
 0x261   : > { %v3936_v20 = vadd.f32 %v3935_v38, %v3934_v23  ;;  %v5272_v46 = vpop.f32.mrf.mxu1  ;;  %4199 = vst.msk [vmem:[%s6836_s17 + $0xd8] sm:$0xff] %vm4171_vm4, %v4134_v61 }
 0x262   : > { %v3862_v6 = vadd.f32 %v3861_v26, %v3701_v54  ;;  %v4039_v14 = vsel %vm499_vm1, %v3981_v18, 0.0  ;;  %v5273_v50 = vadd.f32 %v5272_v46, %v5271_v17 }
 0x263   : > { %v4040_v3 = vadd.f32 %v4039_v14, %v4038_v5  ;;  %v5274_v19 = vpop.f32.mrf.mxu1 }
 0x264   : > { %v3937_v58 = vsel %vm499_vm1, %v3862_v6, 0.0  ;;  %v3982_v22 = vmul.f32 %v3862_v6, %v3862_v6  ;;  %4167 = vst.msk [vmem:[%s6836_s17 + $0xe0] sm:$0xff] %vm499_vm1, %v3862_v6  ;;  %v3704_v41 = vadd.f32 %v5273_v50, %v7370_v51 }
 0x265   : > { %v3938_v4 = vadd.f32 %v3937_v58, %v3936_v20  ;;  %v5275_v0 = vpop.f32.mrf.mxu1  ;;  %4200 = vst.msk [vmem:[%s6836_s17 + $0xe0] sm:$0xff] %vm4171_vm4, %v4135_v48 }
 0x266   : > { %v4041_v52 = vsel %vm499_vm1, %v3982_v22, 0.0  ;;  %v3865_v59 = vadd.f32 %v3864_v57, %v3704_v41  ;;  %v5276_v21 = vadd.f32 %v5275_v0, %v5274_v19 }
 0x267   : > { %v4042_v56 = vadd.f32 %v4041_v52, %v4040_v3  ;;  %v5277_v37 = vpop.f32.mrf.mxu1 }
 0x268   : > { %v3939_v33 = vsel %vm499_vm1, %v3865_v59, 0.0  ;;  %v3983_v53 = vmul.f32 %v3865_v59, %v3865_v59  ;;  %4168 = vst.msk [vmem:[%s6836_s17 + $0xe8] sm:$0xff] %vm499_vm1, %v3865_v59  ;;  %v3709_v24 = vadd.f32 %v5276_v21, %v7371_v40 }
 0x269   : > { %v3940_v15 = vadd.f32 %v3939_v33, %v3938_v4  ;;  %v5278_v13 = vpop.f32.mrf.mxu1  ;;  %4201 = vst.msk [vmem:[%s6836_s17 + $0xe8] sm:$0xff] %vm4171_vm4, %v7372_v25 }
 0x26a   : > { %v4043_v47 = vsel %vm499_vm1, %v3983_v53, 0.0  ;;  %v3870_v16 = vadd.f32 %v7245_v44, %v3709_v24  ;;  %v5279_v29 = vadd.f32 %v5278_v13, %v5277_v37 }
 0x26b   : > { %v4044_v7 = vadd.f32 %v4043_v47, %v4042_v56 }
 0x26c   : > { %v3941_v27 = vsel %vm499_vm1, %v3870_v16, 0.0  ;;  %v3984_v34 = vmul.f32 %v3870_v16, %v3870_v16  ;;  %4169 = vst.msk [vmem:[%s6836_s17 + $0xf0] sm:$0xff] %vm499_vm1, %v3870_v16  ;;  %v3712_v10 = vadd.f32 %v5279_v29, %v7373_v62 }
 0x26d   : > { %v3942_v12 = vadd.f32 %v3941_v27, %v3940_v15  ;;  %4202 = vst.msk [vmem:[%s6836_s17 + $0xf0] sm:$0xff] %vm4171_vm4, %v7374_v2 }
 0x26e   : > { %v4045_v45 = vsel %vm499_vm1, %v3984_v34, 0.0  ;;  %v3873_v11 = vadd.f32 %v5339_v1, %v3712_v10 }
 0x26f   : > { %v4046_v63 = vadd.f32 %v4045_v45, %v4044_v7 }
 0x270   : > { %v3943_v44 = vsel %vm499_vm1, %v3873_v11, 0.0  ;;  %v3985_v55 = vmul.f32 %v3873_v11, %v3873_v11  ;;  %4170 = vst.msk [vmem:[%s6836_s17 + $0xf8] sm:$0xff] %vm499_vm1, %v3873_v11 }
 0x271   : > { %v3944_v31 = vadd.f32 %v3943_v44, %v3942_v12  ;;  %4203 = vst.msk [vmem:[%s6836_s17 + $0xf8] sm:$0xff] %vm4171_vm4, %v7375_v30 }
 0x272   : > { %v4047_v39 = vsel %vm499_vm1, %v3985_v55, 0.0 }
 0x273   : > { %v3945_v35 = vrot.slane %v3944_v31, 4  ;;  %v4048_v32 = vadd.f32 %v4047_v39, %v4046_v63 }
 0x275   : > { %v3946_v36 = vadd.f32 %v3945_v35, %v3944_v31  ;;  %v4049_v42 = vrot.slane %v4048_v32, 4 }
 0x277   : > { %v3947_v26 = vrot.slane %v3946_v36, 2  ;;  %v4050_v61 = vadd.f32 %v4049_v42, %v4048_v32 }
 0x279   : > { %v3948_v43 = vadd.f32 %v3947_v26, %v3946_v36  ;;  %v4051_v49 = vrot.slane %v4050_v61, 2 }
 0x27b   : > { %v3949_v60 = vrot.slane %v3948_v43, 1  ;;  %v4052_v23 = vadd.f32 %v4051_v49, %v4050_v61 }
 0x27d   : > { %v3950_v17 = vadd.f32 %v3949_v60, %v3948_v43  ;;  %v4053_v18 = vrot.slane %v4052_v23, 1 }
 0x27f   : > { %v3951_v8 = vadd.f32 %v3950_v17, %v3881_v9  ;;  %v4054_v54 = vadd.f32 %v4053_v18, %v4052_v23 }
 0x281   : > { %3952 = vst.msk [vmem:[%s6689_s14] sm:$0x1] %vm319_vm0, %v3951_v8  ;;  %v4055_v38 = vadd.f32 %v4054_v54, %v3953_v28 }
 0x283   : > { %4056 = vst.msk [vmem:[%s6689_s14 + $0x1] sm:$0x1] %vm319_vm0, %v4055_v38 }
 0x284 PF: > { %s18_s26 = sadd.s32 1, %s5559_s26   ;;  %s7376_s24 = smov %s5555_s25 }
 0x285   : > { %p15_p5 = scmp.ge.s32.totalorder %s18_s26, 4   ;;  %s7377_s25 = smov %s7379_s27 }
 0x287   :  { %17 = sbr.rel (!%p15_p5) target bundleno = 2 (0x2), region = 96 }

</bundles_post_ra>
